<compile_context>
chip_gen: v7x
topology: tpu7x:2x2x1
jax: 0.10.0
libtpu: 0.0.40
codegen_flags: <defaults>
</compile_context>

<pallas_src>
import jax
import jax.numpy as jnp
import numpy as np
from jax.experimental import pallas as pl
from jax.experimental.pallas import tpu as pltpu

# Full-precision matmuls in the pure-JAX reference so the strict f32
# comparison against the kernel (which accumulates in f32) is meaningful.
jax.config.update("jax_default_matmul_precision", "highest")

N_EMBED = 32
BLOCK_SIZE = 8
N_HEAD = 4
HEAD_SIZE = N_EMBED // N_HEAD
N_LAYER = 3
VOCAB_SIZE = 65            # stand-in for len(set(text)) of tiny-shakespeare
VOCAB_PAD = 128            # lane-dense logits store; sliced back in wrapper
MAX_ROW_BLOCK = 256        # cap rows/grid-step (amortize per-step overhead)
LN_EPS = 1e-5              # torch.nn.LayerNorm default
MASK_NEG = -1e30           # additive causal bias (finite; no 0/0 NaNs)


def _layernorm(h, g, b):
    mu = jnp.mean(h, axis=-1, keepdims=True)
    var = jnp.mean((h - mu) ** 2, axis=-1, keepdims=True)
    return (h - mu) * jax.lax.rsqrt(var + LN_EPS) * g + b


def model_kernel(mask_ref, x_ref, wqkv_ref, wp_ref, w1_ref, w2_ref,
                 vec_ref, wlm_ref, fin_ref, out_ref):
    x = x_ref[...]                                   # (R, C) rows = B*T tokens
    bias = mask_ref[...]                             # (R, R) additive 0/-1e30

    for l in range(N_LAYER):
        vecs = vec_ref[l]                            # (8, 128) packed vectors
        ln1_g = vecs[0:1, :N_EMBED]
        ln1_b = vecs[1:2, :N_EMBED]
        ln2_g = vecs[2:3, :N_EMBED]
        ln2_b = vecs[3:4, :N_EMBED]
        b_proj = vecs[4:5, :N_EMBED]
        b2 = vecs[5:6, :N_EMBED]
        b1 = vecs[6:7, :]                            # (1, 4*C) = (1, 128)

        # --- multi-head causal self attention on ln1(x) ---
        h = _layernorm(x, ln1_g, ln1_b)              # (R, C)
        # One fused QKV projection for all heads; Q columns are pre-scaled by
        # n_embed**-0.5 in the wrapper (PyTorch Head scales by C**-0.5, C=32).
        qkv = jnp.dot(h, wqkv_ref[l], preferred_element_type=jnp.float32)

        heads = []
        for hd in range(N_HEAD):
            lo = hd * HEAD_SIZE
            hi = lo + HEAD_SIZE
            q = qkv[:, lo:hi]                                    # (R, D)
            k = qkv[:, N_EMBED + lo:N_EMBED + hi]                # (R, D)
            v = qkv[:, 2 * N_EMBED + lo:2 * N_EMBED + hi]        # (R, D)
            # Contract over the last dims of q and k (no materialized k.T).
            wei = jax.lax.dot_general(
                q, k, dimension_numbers=(((1,), (1,)), ((), ())),
                preferred_element_type=jnp.float32)              # (R, R)
            wei = wei + bias
            wei = wei - jnp.max(wei, axis=-1, keepdims=True)
            e = jnp.exp(wei)
            denom = jnp.sum(e, axis=-1, keepdims=True)           # (R, 1)
            # Deferred normalization: normalize the (R, D) output, not the
            # (R, R) probability matrix.
            o = jnp.dot(e, v, preferred_element_type=jnp.float32)
            heads.append(o * (1.0 / denom))
        # Single fused output projection for all heads: (R,32) @ (32,32).
        o_cat = jnp.concatenate(heads, axis=-1)                  # (R, C)
        sa = jnp.dot(o_cat, wp_ref[l],
                     preferred_element_type=jnp.float32) + b_proj
        x = x + sa

        # --- feed-forward on ln2(x) ---
        h2 = _layernorm(x, ln2_g, ln2_b)
        ff = jnp.dot(h2, w1_ref[l], preferred_element_type=jnp.float32) + b1
        ff = jnp.maximum(ff, 0.0)
        ff = jnp.dot(ff, w2_ref[l], preferred_element_type=jnp.float32) + b2
        x = x + ff

    fin = fin_ref[...]                               # (8, 128) packed vectors
    xf = _layernorm(x, fin[0:1, :N_EMBED], fin[1:2, :N_EMBED])
    # lm_head padded to 128 lanes -> unmasked, lane-dense stores.
    logits = jnp.dot(xf, wlm_ref[...],
                     preferred_element_type=jnp.float32) + fin[2:3, :]
    out_ref[...] = logits


# ---------------------------------------------------------------------------
# Wrapper-side (trace-time) parameter massaging — folded by XLA, not per-step.
# ---------------------------------------------------------------------------

def _fuse_qkv(wq, wk, wv, scale):
    """(L, H, C, D) per-head weights -> (L, C, 3C) fused weight.

    Column layout: [q_head0..q_head3 | k_head0..k_head3 | v_head0..v_head3].
    The attention scale is folded into the Q columns (zero in-kernel cost).
    """
    L, H, C, D = wq.shape
    q = jnp.transpose(wq, (0, 2, 1, 3)).reshape(L, C, H * D) * scale
    k = jnp.transpose(wk, (0, 2, 1, 3)).reshape(L, C, H * D)
    v = jnp.transpose(wv, (0, 2, 1, 3)).reshape(L, C, H * D)
    return jnp.concatenate([q, k, v], axis=-1)


def _pack_layer_vecs(p):
    """Pack per-layer gains/biases into one lane-dense (L, 8, 128) slab."""
    slab = jnp.zeros((N_LAYER, 8, 128), jnp.float32)
    rows = [("ln1_g", 0), ("ln1_b", 1), ("ln2_g", 2), ("ln2_b", 3),
            ("b_proj", 4), ("b2", 5), ("b1", 6)]
    for name, r in rows:
        v = p[name].reshape(N_LAYER, -1).astype(jnp.float32)
        slab = slab.at[:, r, :v.shape[-1]].set(v)
    return slab


def _pack_final_vecs(p):
    """Pack lnf gain/bias and lm_head bias into one (8, 128) slab."""
    slab = jnp.zeros((8, 128), jnp.float32)
    slab = slab.at[0, :N_EMBED].set(p["lnf_g"].reshape(-1))
    slab = slab.at[1, :N_EMBED].set(p["lnf_b"].reshape(-1))
    slab = slab.at[2, :VOCAB_SIZE].set(p["b_lm"].reshape(-1))
    return slab


def _causal_bias(row_block, seq_len):
    """Block-diagonal causal additive bias: 0 where attend, -1e30 elsewhere."""
    r = np.arange(row_block)
    same_seq = (r[:, None] // seq_len) == (r[None, :] // seq_len)
    causal = same_seq & (r[:, None] >= r[None, :])
    return jnp.asarray(np.where(causal, 0.0, MASK_NEG), dtype=jnp.float32)


def _choose_row_block(n_rows, seq_len):
    """Rows per grid step: multiple of seq_len and 8, capped at MAX_ROW_BLOCK.

    Small inputs (e.g. B=2, T=8) get a single tight block with no padding;
    large batches get 256-row blocks (amortizes the ~0.35 us/step overhead)
    and a multi-step "parallel" grid so v7x can shard across both TCs.
    """
    base = int(np.lcm(seq_len, 8))
    cap = (MAX_ROW_BLOCK // base) * base
    if n_rows <= cap:
        return max(base, ((n_rows + base - 1) // base) * base)
    return cap


def bigram_lm_forward(idx, params):
    """Returns (logits, loss). loss is None (no targets), matching the module."""
    B, T = idx.shape
    assert T <= BLOCK_SIZE

    # Embedding lookups are plain-JAX glue.
    tok_emb = jnp.take(params["tok_emb"], idx, axis=0)           # (B, T, C)
    pos_emb = params["pos_emb"][:T]                              # (T, C)
    x = (tok_emb + pos_emb[None]).astype(jnp.float32)

    # Flatten to rows; pad to a multiple of the row block (padded rows are
    # zeros, form their own causal dummy sequences, and are sliced off).
    n_rows = B * T
    row_block = _choose_row_block(n_rows, T)
    n_rows_pad = ((n_rows + row_block - 1) // row_block) * row_block
    x_flat = x.reshape(n_rows, N_EMBED)
    if n_rows_pad != n_rows:
        x_flat = jnp.pad(x_flat, ((0, n_rows_pad - n_rows), (0, 0)))

    scale = float(N_EMBED) ** -0.5
    w_qkv = _fuse_qkv(params["wq"], params["wk"], params["wv"], scale)
    w_lm_pad = jnp.pad(params["w_lm"], ((0, 0), (0, VOCAB_PAD - VOCAB_SIZE)))
    vec_slab = _pack_layer_vecs(params)
    fin_slab = _pack_final_vecs(params)
    bias = _causal_bias(row_block, T)

    weights = [w_qkv, params["w_proj"], params["w1"], params["w2"],
               vec_slab, w_lm_pad, fin_slab]

    def const_spec(a):
        nd = a.ndim
        return pl.BlockSpec(a.shape, lambda i, _nd=nd: (0,) * _nd)

    in_specs = ([pl.BlockSpec((row_block, row_block), lambda i: (0, 0)),
                 pl.BlockSpec((row_block, N_EMBED), lambda i: (i, 0))]
                + [const_spec(a) for a in weights])
    out_spec = pl.BlockSpec((row_block, VOCAB_PAD), lambda i: (i, 0))

    logits_pad = pl.pallas_call(
        model_kernel,
        out_shape=jax.ShapeDtypeStruct((n_rows_pad, VOCAB_PAD), jnp.float32),
        grid_spec=pltpu.PrefetchScalarGridSpec(
            num_scalar_prefetch=0,
            grid=(n_rows_pad // row_block,),
            in_specs=in_specs,
            out_specs=out_spec,
        ),
        compiler_params=pltpu.CompilerParams(
            dimension_semantics=("parallel",)),      # independent row blocks
    )(bias, x_flat, *weights)

    logits = logits_pad[:n_rows, :VOCAB_SIZE].reshape(B, T, VOCAB_SIZE)
    # TODO(synk): cross-entropy loss path (targets is not None) not implemented.
    return logits, None


def init_params(key):
    ks = iter(jax.random.split(key, 24))

    def nrm(shape, s=0.02):
        return (s * jax.random.normal(next(ks), shape)).astype(jnp.float32)

    return {
        "tok_emb": nrm((VOCAB_SIZE, N_EMBED), 1.0),
        "pos_emb": nrm((BLOCK_SIZE, N_EMBED), 1.0),
        "ln1_g": jnp.ones((N_LAYER, 1, N_EMBED), jnp.float32),
        "ln1_b": jnp.zeros((N_LAYER, 1, N_EMBED), jnp.float32),
        "wq": nrm((N_LAYER, N_HEAD, N_EMBED, HEAD_SIZE)),
        "wk": nrm((N_LAYER, N_HEAD, N_EMBED, HEAD_SIZE)),
        "wv": nrm((N_LAYER, N_HEAD, N_EMBED, HEAD_SIZE)),
        "w_proj": nrm((N_LAYER, N_EMBED, N_EMBED)),
        "b_proj": nrm((N_LAYER, 1, N_EMBED)),
        "ln2_g": jnp.ones((N_LAYER, 1, N_EMBED), jnp.float32),
        "ln2_b": jnp.zeros((N_LAYER, 1, N_EMBED), jnp.float32),
        "w1": nrm((N_LAYER, N_EMBED, 4 * N_EMBED)),
        "b1": nrm((N_LAYER, 1, 4 * N_EMBED)),
        "w2": nrm((N_LAYER, 4 * N_EMBED, N_EMBED)),
        "b2": nrm((N_LAYER, 1, N_EMBED)),
        "lnf_g": jnp.ones((1, N_EMBED), jnp.float32),
        "lnf_b": jnp.zeros((1, N_EMBED), jnp.float32),
        "w_lm": nrm((N_EMBED, VOCAB_SIZE)),
        "b_lm": nrm((1, VOCAB_SIZE)),
    }


def reference_forward(idx, params):
    """Pure-JAX reference mirroring the PyTorch forward semantics."""
    B, T = idx.shape
    x = params["tok_emb"][idx] + params["pos_emb"][:T][None]
    causal = jnp.tril(jnp.ones((T, T), bool))

    def ln(h, g, b):
        mu = h.mean(-1, keepdims=True)
        var = ((h - mu) ** 2).mean(-1, keepdims=True)
        return (h - mu) / jnp.sqrt(var + LN_EPS) * g.reshape(-1) + b.reshape(-1)

    for l in range(N_LAYER):
        h = ln(x, params["ln1_g"][l], params["ln1_b"][l])
        outs = []
        for hd in range(N_HEAD):
            q = h @ params["wq"][l, hd]
            k = h @ params["wk"][l, hd]
            v = h @ params["wv"][l, hd]
            wei = (q @ jnp.swapaxes(k, -1, -2)) * (N_EMBED ** -0.5)
            wei = jnp.where(causal, wei, -jnp.inf)
            wei = jax.nn.softmax(wei, axis=-1)
            outs.append(wei @ v)
        sa = jnp.concatenate(outs, -1) @ params["w_proj"][l] + params["b_proj"][l].reshape(-1)
        x = x + sa
        h2 = ln(x, params["ln2_g"][l], params["ln2_b"][l])
        ff = jax.nn.relu(h2 @ params["w1"][l] + params["b1"][l].reshape(-1))
        ff = ff @ params["w2"][l] + params["b2"][l].reshape(-1)
        x = x + ff
    xf = ln(x, params["lnf_g"], params["lnf_b"])
    return xf @ params["w_lm"] + params["b_lm"].reshape(-1)


if __name__ == "__main__":
    key = jax.random.PRNGKey(0)
    pkey, ikey = jax.random.split(key)
    params = init_params(pkey)

    B, T = 2, BLOCK_SIZE
    idx = jax.random.randint(ikey, (B, T), 0, VOCAB_SIZE, dtype=jnp.int32)

    logits, loss = bigram_lm_forward(idx, params)
    logits = jax.block_until_ready(logits)
    assert logits.shape == (B, T, VOCAB_SIZE) and loss is None

    ref = reference_forward(idx, params)
    np.testing.assert_allclose(np.asarray(logits), np.asarray(ref),
                               atol=1e-4, rtol=1e-4)
    print("KERNEL_OK")
</pallas_src>

<mosaic_0001>
module attributes {stable_mosaic.version = 11 : i64} {
  func.func @model_kernel(%arg0: i32, %arg1: memref<16x16xf32, #tpu.memory_space<vmem>>, %arg2: memref<16x32xf32, #tpu.memory_space<vmem>>, %arg3: memref<3x32x96xf32, #tpu.memory_space<vmem>>, %arg4: memref<3x32x32xf32, #tpu.memory_space<vmem>>, %arg5: memref<3x32x128xf32, #tpu.memory_space<vmem>>, %arg6: memref<3x128x32xf32, #tpu.memory_space<vmem>>, %arg7: memref<3x8x128xf32, #tpu.memory_space<vmem>>, %arg8: memref<32x128xf32, #tpu.memory_space<vmem>>, %arg9: memref<8x128xf32, #tpu.memory_space<vmem>>, %arg10: memref<16x128xf32, #tpu.memory_space<vmem>>) attributes {dimension_semantics = [#tpu.dimension_semantics<parallel>], iteration_bounds = array<i64: 1>, scalar_prefetch = 0 : i64, scratch_operands = 0 : i64, tpu.core_type = #tpu.core_type<tc>, window_params = [{pipeline_mode = #tpu.pipeline_mode<synchronous>, transform_indices = @transform_0, window_bounds = array<i64: 16, 16>}, {transform_indices = @transform_1, window_bounds = array<i64: 16, 32>}, {pipeline_mode = #tpu.pipeline_mode<synchronous>, transform_indices = @transform_2, window_bounds = array<i64: 3, 32, 96>}, {pipeline_mode = #tpu.pipeline_mode<synchronous>, transform_indices = @transform_3, window_bounds = array<i64: 3, 32, 32>}, {pipeline_mode = #tpu.pipeline_mode<synchronous>, transform_indices = @transform_4, window_bounds = array<i64: 3, 32, 128>}, {pipeline_mode = #tpu.pipeline_mode<synchronous>, transform_indices = @transform_5, window_bounds = array<i64: 3, 128, 32>}, {pipeline_mode = #tpu.pipeline_mode<synchronous>, transform_indices = @transform_6, window_bounds = array<i64: 3, 8, 128>}, {pipeline_mode = #tpu.pipeline_mode<synchronous>, transform_indices = @transform_7, window_bounds = array<i64: 32, 128>}, {pipeline_mode = #tpu.pipeline_mode<synchronous>, transform_indices = @transform_8, window_bounds = array<i64: 8, 128>}, {transform_indices = @transform_9, window_bounds = array<i64: 16, 128>}]} {
    %c0 = arith.constant 0 : index
    %c0_0 = arith.constant 0 : index
    %0 = vector.load %arg2[%c0, %c0_0] : memref<16x32xf32, #tpu.memory_space<vmem>>, vector<16x32xf32>
    %c0_1 = arith.constant 0 : index
    %c0_2 = arith.constant 0 : index
    %1 = vector.load %arg1[%c0_1, %c0_2] : memref<16x16xf32, #tpu.memory_space<vmem>>, vector<16x16xf32>
    %c0_3 = arith.constant 0 : index
    %c0_4 = arith.constant 0 : index
    %c0_5 = arith.constant 0 : index
    %2 = vector.load %arg7[%c0_3, %c0_4, %c0_5] : memref<3x8x128xf32, #tpu.memory_space<vmem>>, vector<1x8x128xf32>
    %3 = vector.shape_cast %2 : vector<1x8x128xf32> to vector<8x128xf32>
    %4 = vector.extract_strided_slice %3 {offsets = [0, 0], sizes = [1, 32], strides = [1, 1]} : vector<8x128xf32> to vector<1x32xf32>
    %5 = vector.extract_strided_slice %3 {offsets = [1, 0], sizes = [1, 32], strides = [1, 1]} : vector<8x128xf32> to vector<1x32xf32>
    %6 = vector.extract_strided_slice %3 {offsets = [2, 0], sizes = [1, 32], strides = [1, 1]} : vector<8x128xf32> to vector<1x32xf32>
    %7 = vector.extract_strided_slice %3 {offsets = [3, 0], sizes = [1, 32], strides = [1, 1]} : vector<8x128xf32> to vector<1x32xf32>
    %8 = vector.extract_strided_slice %3 {offsets = [4, 0], sizes = [1, 32], strides = [1, 1]} : vector<8x128xf32> to vector<1x32xf32>
    %9 = vector.extract_strided_slice %3 {offsets = [5, 0], sizes = [1, 32], strides = [1, 1]} : vector<8x128xf32> to vector<1x32xf32>
    %10 = vector.extract_strided_slice %3 {offsets = [6, 0], sizes = [1, 128], strides = [1, 1]} : vector<8x128xf32> to vector<1x128xf32>
    %cst = arith.constant dense<0.000000e+00> : vector<16xf32>
    %11 = vector.multi_reduction <add>, %0, %cst [1] : vector<16x32xf32> to vector<16xf32>
    %12 = vector.shape_cast %11 : vector<16xf32> to vector<16x1xf32>
    %cst_6 = arith.constant 3.200000e+01 : f32
    %13 = vector.broadcast %cst_6 : f32 to vector<16x1xf32>
    %14 = arith.divf %12, %13 : vector<16x1xf32>
    %15 = vector.broadcast %14 : vector<16x1xf32> to vector<16x32xf32>
    %16 = arith.subf %0, %15 : vector<16x32xf32>
    %17 = arith.mulf %16, %16 : vector<16x32xf32>
    %cst_7 = arith.constant dense<0.000000e+00> : vector<16xf32>
    %18 = vector.multi_reduction <add>, %17, %cst_7 [1] : vector<16x32xf32> to vector<16xf32>
    %19 = vector.shape_cast %18 : vector<16xf32> to vector<16x1xf32>
    %cst_8 = arith.constant 3.200000e+01 : f32
    %20 = vector.broadcast %cst_8 : f32 to vector<16x1xf32>
    %21 = arith.divf %19, %20 : vector<16x1xf32>
    %22 = vector.broadcast %14 : vector<16x1xf32> to vector<16x32xf32>
    %23 = arith.subf %0, %22 : vector<16x32xf32>
    %cst_9 = arith.constant 9.99999974E-6 : f32
    %24 = vector.broadcast %cst_9 : f32 to vector<16x1xf32>
    %25 = arith.addf %21, %24 : vector<16x1xf32>
    %26 = math.rsqrt %25 : vector<16x1xf32>
    %27 = vector.broadcast %26 : vector<16x1xf32> to vector<16x32xf32>
    %28 = arith.mulf %23, %27 : vector<16x32xf32>
    %29 = vector.broadcast %4 : vector<1x32xf32> to vector<16x32xf32>
    %30 = arith.mulf %28, %29 : vector<16x32xf32>
    %31 = vector.broadcast %5 : vector<1x32xf32> to vector<16x32xf32>
    %32 = arith.addf %30, %31 : vector<16x32xf32>
    %c0_10 = arith.constant 0 : index
    %c0_11 = arith.constant 0 : index
    %c0_12 = arith.constant 0 : index
    %33 = vector.load %arg3[%c0_10, %c0_11, %c0_12] : memref<3x32x96xf32, #tpu.memory_space<vmem>>, vector<1x32x96xf32>
    %34 = vector.shape_cast %33 : vector<1x32x96xf32> to vector<32x96xf32>
    %cst_13 = arith.constant dense<0.000000e+00> : vector<16x96xf32>
    %35 = tpu.matmul %32, %34, %cst_13 {dimension_numbers = #tpu.dot_dimension_numbers<[1], [0], [0], [1], [0, 0, 1, 1], [], []>, precision = #tpu.contract_precision<fp32>} : vector<16x32xf32>, vector<32x96xf32>, vector<16x96xf32> -> vector<16x96xf32>
    %36 = vector.extract_strided_slice %35 {offsets = [0, 0], sizes = [16, 8], strides = [1, 1]} : vector<16x96xf32> to vector<16x8xf32>
    %37 = vector.extract_strided_slice %35 {offsets = [0, 32], sizes = [16, 8], strides = [1, 1]} : vector<16x96xf32> to vector<16x8xf32>
    %38 = vector.extract_strided_slice %35 {offsets = [0, 64], sizes = [16, 8], strides = [1, 1]} : vector<16x96xf32> to vector<16x8xf32>
    %cst_14 = arith.constant dense<0.000000e+00> : vector<16x16xf32>
    %39 = tpu.matmul %36, %37, %cst_14 {dimension_numbers = #tpu.dot_dimension_numbers<[1], [1], [0], [0], [0, 0, 1, 0], [], []>, precision = #tpu.contract_precision<fp32>} : vector<16x8xf32>, vector<16x8xf32>, vector<16x16xf32> -> vector<16x16xf32>
    %40 = arith.addf %39, %1 : vector<16x16xf32>
    %cst_15 = arith.constant dense<0xFF800000> : vector<16xf32>
    %41 = vector.multi_reduction <maximumf>, %40, %cst_15 [1] : vector<16x16xf32> to vector<16xf32>
    %42 = vector.shape_cast %41 : vector<16xf32> to vector<16x1xf32>
    %43 = vector.broadcast %42 : vector<16x1xf32> to vector<16x16xf32>
    %44 = arith.subf %40, %43 : vector<16x16xf32>
    %45 = math.exp %44 : vector<16x16xf32>
    %cst_16 = arith.constant dense<0.000000e+00> : vector<16xf32>
    %46 = vector.multi_reduction <add>, %45, %cst_16 [1] : vector<16x16xf32> to vector<16xf32>
    %47 = vector.shape_cast %46 : vector<16xf32> to vector<16x1xf32>
    %cst_17 = arith.constant dense<0.000000e+00> : vector<16x8xf32>
    %48 = tpu.matmul %45, %38, %cst_17 {dimension_numbers = #tpu.dot_dimension_numbers<[1], [0], [0], [1], [0, 0, 1, 1], [], []>, precision = #tpu.contract_precision<fp32>} : vector<16x16xf32>, vector<16x8xf32>, vector<16x8xf32> -> vector<16x8xf32>
    %cst_18 = arith.constant 1.000000e+00 : f32
    %49 = vector.broadcast %cst_18 : f32 to vector<16x1xf32>
    %50 = arith.divf %49, %47 : vector<16x1xf32>
    %51 = vector.broadcast %50 : vector<16x1xf32> to vector<16x8xf32>
    %52 = arith.mulf %48, %51 : vector<16x8xf32>
    %53 = vector.extract_strided_slice %35 {offsets = [0, 8], sizes = [16, 8], strides = [1, 1]} : vector<16x96xf32> to vector<16x8xf32>
    %54 = vector.extract_strided_slice %35 {offsets = [0, 40], sizes = [16, 8], strides = [1, 1]} : vector<16x96xf32> to vector<16x8xf32>
    %55 = vector.extract_strided_slice %35 {offsets = [0, 72], sizes = [16, 8], strides = [1, 1]} : vector<16x96xf32> to vector<16x8xf32>
    %cst_19 = arith.constant dense<0.000000e+00> : vector<16x16xf32>
    %56 = tpu.matmul %53, %54, %cst_19 {dimension_numbers = #tpu.dot_dimension_numbers<[1], [1], [0], [0], [0, 0, 1, 0], [], []>, precision = #tpu.contract_precision<fp32>} : vector<16x8xf32>, vector<16x8xf32>, vector<16x16xf32> -> vector<16x16xf32>
    %57 = arith.addf %56, %1 : vector<16x16xf32>
    %cst_20 = arith.constant dense<0xFF800000> : vector<16xf32>
    %58 = vector.multi_reduction <maximumf>, %57, %cst_20 [1] : vector<16x16xf32> to vector<16xf32>
    %59 = vector.shape_cast %58 : vector<16xf32> to vector<16x1xf32>
    %60 = vector.broadcast %59 : vector<16x1xf32> to vector<16x16xf32>
    %61 = arith.subf %57, %60 : vector<16x16xf32>
    %62 = math.exp %61 : vector<16x16xf32>
    %cst_21 = arith.constant dense<0.000000e+00> : vector<16xf32>
    %63 = vector.multi_reduction <add>, %62, %cst_21 [1] : vector<16x16xf32> to vector<16xf32>
    %64 = vector.shape_cast %63 : vector<16xf32> to vector<16x1xf32>
    %cst_22 = arith.constant dense<0.000000e+00> : vector<16x8xf32>
    %65 = tpu.matmul %62, %55, %cst_22 {dimension_numbers = #tpu.dot_dimension_numbers<[1], [0], [0], [1], [0, 0, 1, 1], [], []>, precision = #tpu.contract_precision<fp32>} : vector<16x16xf32>, vector<16x8xf32>, vector<16x8xf32> -> vector<16x8xf32>
    %cst_23 = arith.constant 1.000000e+00 : f32
    %66 = vector.broadcast %cst_23 : f32 to vector<16x1xf32>
    %67 = arith.divf %66, %64 : vector<16x1xf32>
    %68 = vector.broadcast %67 : vector<16x1xf32> to vector<16x8xf32>
    %69 = arith.mulf %65, %68 : vector<16x8xf32>
    %70 = vector.extract_strided_slice %35 {offsets = [0, 16], sizes = [16, 8], strides = [1, 1]} : vector<16x96xf32> to vector<16x8xf32>
    %71 = vector.extract_strided_slice %35 {offsets = [0, 48], sizes = [16, 8], strides = [1, 1]} : vector<16x96xf32> to vector<16x8xf32>
    %72 = vector.extract_strided_slice %35 {offsets = [0, 80], sizes = [16, 8], strides = [1, 1]} : vector<16x96xf32> to vector<16x8xf32>
    %cst_24 = arith.constant dense<0.000000e+00> : vector<16x16xf32>
    %73 = tpu.matmul %70, %71, %cst_24 {dimension_numbers = #tpu.dot_dimension_numbers<[1], [1], [0], [0], [0, 0, 1, 0], [], []>, precision = #tpu.contract_precision<fp32>} : vector<16x8xf32>, vector<16x8xf32>, vector<16x16xf32> -> vector<16x16xf32>
    %74 = arith.addf %73, %1 : vector<16x16xf32>
    %cst_25 = arith.constant dense<0xFF800000> : vector<16xf32>
    %75 = vector.multi_reduction <maximumf>, %74, %cst_25 [1] : vector<16x16xf32> to vector<16xf32>
    %76 = vector.shape_cast %75 : vector<16xf32> to vector<16x1xf32>
    %77 = vector.broadcast %76 : vector<16x1xf32> to vector<16x16xf32>
    %78 = arith.subf %74, %77 : vector<16x16xf32>
    %79 = math.exp %78 : vector<16x16xf32>
    %cst_26 = arith.constant dense<0.000000e+00> : vector<16xf32>
    %80 = vector.multi_reduction <add>, %79, %cst_26 [1] : vector<16x16xf32> to vector<16xf32>
    %81 = vector.shape_cast %80 : vector<16xf32> to vector<16x1xf32>
    %cst_27 = arith.constant dense<0.000000e+00> : vector<16x8xf32>
    %82 = tpu.matmul %79, %72, %cst_27 {dimension_numbers = #tpu.dot_dimension_numbers<[1], [0], [0], [1], [0, 0, 1, 1], [], []>, precision = #tpu.contract_precision<fp32>} : vector<16x16xf32>, vector<16x8xf32>, vector<16x8xf32> -> vector<16x8xf32>
    %cst_28 = arith.constant 1.000000e+00 : f32
    %83 = vector.broadcast %cst_28 : f32 to vector<16x1xf32>
    %84 = arith.divf %83, %81 : vector<16x1xf32>
    %85 = vector.broadcast %84 : vector<16x1xf32> to vector<16x8xf32>
    %86 = arith.mulf %82, %85 : vector<16x8xf32>
    %87 = vector.extract_strided_slice %35 {offsets = [0, 24], sizes = [16, 8], strides = [1, 1]} : vector<16x96xf32> to vector<16x8xf32>
    %88 = vector.extract_strided_slice %35 {offsets = [0, 56], sizes = [16, 8], strides = [1, 1]} : vector<16x96xf32> to vector<16x8xf32>
    %89 = vector.extract_strided_slice %35 {offsets = [0, 88], sizes = [16, 8], strides = [1, 1]} : vector<16x96xf32> to vector<16x8xf32>
    %cst_29 = arith.constant dense<0.000000e+00> : vector<16x16xf32>
    %90 = tpu.matmul %87, %88, %cst_29 {dimension_numbers = #tpu.dot_dimension_numbers<[1], [1], [0], [0], [0, 0, 1, 0], [], []>, precision = #tpu.contract_precision<fp32>} : vector<16x8xf32>, vector<16x8xf32>, vector<16x16xf32> -> vector<16x16xf32>
    %91 = arith.addf %90, %1 : vector<16x16xf32>
    %cst_30 = arith.constant dense<0xFF800000> : vector<16xf32>
    %92 = vector.multi_reduction <maximumf>, %91, %cst_30 [1] : vector<16x16xf32> to vector<16xf32>
    %93 = vector.shape_cast %92 : vector<16xf32> to vector<16x1xf32>
    %94 = vector.broadcast %93 : vector<16x1xf32> to vector<16x16xf32>
    %95 = arith.subf %91, %94 : vector<16x16xf32>
    %96 = math.exp %95 : vector<16x16xf32>
    %cst_31 = arith.constant dense<0.000000e+00> : vector<16xf32>
    %97 = vector.multi_reduction <add>, %96, %cst_31 [1] : vector<16x16xf32> to vector<16xf32>
    %98 = vector.shape_cast %97 : vector<16xf32> to vector<16x1xf32>
    %cst_32 = arith.constant dense<0.000000e+00> : vector<16x8xf32>
    %99 = tpu.matmul %96, %89, %cst_32 {dimension_numbers = #tpu.dot_dimension_numbers<[1], [0], [0], [1], [0, 0, 1, 1], [], []>, precision = #tpu.contract_precision<fp32>} : vector<16x16xf32>, vector<16x8xf32>, vector<16x8xf32> -> vector<16x8xf32>
    %cst_33 = arith.constant 1.000000e+00 : f32
    %100 = vector.broadcast %cst_33 : f32 to vector<16x1xf32>
    %101 = arith.divf %100, %98 : vector<16x1xf32>
    %102 = vector.broadcast %101 : vector<16x1xf32> to vector<16x8xf32>
    %103 = arith.mulf %99, %102 : vector<16x8xf32>
    %104 = tpu.concatenate %52, %69, %86, %103 in 1 : vector<16x8xf32>, vector<16x8xf32>, vector<16x8xf32>, vector<16x8xf32> -> vector<16x32xf32>
    %c0_34 = arith.constant 0 : index
    %c0_35 = arith.constant 0 : index
    %c0_36 = arith.constant 0 : index
    %105 = vector.load %arg4[%c0_34, %c0_35, %c0_36] : memref<3x32x32xf32, #tpu.memory_space<vmem>>, vector<1x32x32xf32>
    %106 = vector.shape_cast %105 : vector<1x32x32xf32> to vector<32x32xf32>
    %cst_37 = arith.constant dense<0.000000e+00> : vector<16x32xf32>
    %107 = tpu.matmul %104, %106, %cst_37 {dimension_numbers = #tpu.dot_dimension_numbers<[1], [0], [0], [1], [0, 0, 1, 1], [], []>, precision = #tpu.contract_precision<fp32>} : vector<16x32xf32>, vector<32x32xf32>, vector<16x32xf32> -> vector<16x32xf32>
    %108 = vector.broadcast %8 : vector<1x32xf32> to vector<16x32xf32>
    %109 = arith.addf %107, %108 : vector<16x32xf32>
    %110 = arith.addf %0, %109 : vector<16x32xf32>
    %cst_38 = arith.constant dense<0.000000e+00> : vector<16xf32>
    %111 = vector.multi_reduction <add>, %110, %cst_38 [1] : vector<16x32xf32> to vector<16xf32>
    %112 = vector.shape_cast %111 : vector<16xf32> to vector<16x1xf32>
    %cst_39 = arith.constant 3.200000e+01 : f32
    %113 = vector.broadcast %cst_39 : f32 to vector<16x1xf32>
    %114 = arith.divf %112, %113 : vector<16x1xf32>
    %115 = vector.broadcast %114 : vector<16x1xf32> to vector<16x32xf32>
    %116 = arith.subf %110, %115 : vector<16x32xf32>
    %117 = arith.mulf %116, %116 : vector<16x32xf32>
    %cst_40 = arith.constant dense<0.000000e+00> : vector<16xf32>
    %118 = vector.multi_reduction <add>, %117, %cst_40 [1] : vector<16x32xf32> to vector<16xf32>
    %119 = vector.shape_cast %118 : vector<16xf32> to vector<16x1xf32>
    %cst_41 = arith.constant 3.200000e+01 : f32
    %120 = vector.broadcast %cst_41 : f32 to vector<16x1xf32>
    %121 = arith.divf %119, %120 : vector<16x1xf32>
    %122 = vector.broadcast %114 : vector<16x1xf32> to vector<16x32xf32>
    %123 = arith.subf %110, %122 : vector<16x32xf32>
    %cst_42 = arith.constant 9.99999974E-6 : f32
    %124 = vector.broadcast %cst_42 : f32 to vector<16x1xf32>
    %125 = arith.addf %121, %124 : vector<16x1xf32>
    %126 = math.rsqrt %125 : vector<16x1xf32>
    %127 = vector.broadcast %126 : vector<16x1xf32> to vector<16x32xf32>
    %128 = arith.mulf %123, %127 : vector<16x32xf32>
    %129 = vector.broadcast %6 : vector<1x32xf32> to vector<16x32xf32>
    %130 = arith.mulf %128, %129 : vector<16x32xf32>
    %131 = vector.broadcast %7 : vector<1x32xf32> to vector<16x32xf32>
    %132 = arith.addf %130, %131 : vector<16x32xf32>
    %c0_43 = arith.constant 0 : index
    %c0_44 = arith.constant 0 : index
    %c0_45 = arith.constant 0 : index
    %133 = vector.load %arg5[%c0_43, %c0_44, %c0_45] : memref<3x32x128xf32, #tpu.memory_space<vmem>>, vector<1x32x128xf32>
    %134 = vector.shape_cast %133 : vector<1x32x128xf32> to vector<32x128xf32>
    %cst_46 = arith.constant dense<0.000000e+00> : vector<16x128xf32>
    %135 = tpu.matmul %132, %134, %cst_46 {dimension_numbers = #tpu.dot_dimension_numbers<[1], [0], [0], [1], [0, 0, 1, 1], [], []>, precision = #tpu.contract_precision<fp32>} : vector<16x32xf32>, vector<32x128xf32>, vector<16x128xf32> -> vector<16x128xf32>
    %136 = vector.broadcast %10 : vector<1x128xf32> to vector<16x128xf32>
    %137 = arith.addf %135, %136 : vector<16x128xf32>
    %cst_47 = arith.constant 0.000000e+00 : f32
    %138 = vector.broadcast %cst_47 : f32 to vector<16x128xf32>
    %139 = arith.maximumf %137, %138 : vector<16x128xf32>
    %c0_48 = arith.constant 0 : index
    %c0_49 = arith.constant 0 : index
    %c0_50 = arith.constant 0 : index
    %140 = vector.load %arg6[%c0_48, %c0_49, %c0_50] : memref<3x128x32xf32, #tpu.memory_space<vmem>>, vector<1x128x32xf32>
    %141 = vector.shape_cast %140 : vector<1x128x32xf32> to vector<128x32xf32>
    %cst_51 = arith.constant dense<0.000000e+00> : vector<16x32xf32>
    %142 = tpu.matmul %139, %141, %cst_51 {dimension_numbers = #tpu.dot_dimension_numbers<[1], [0], [0], [1], [0, 0, 1, 1], [], []>, precision = #tpu.contract_precision<fp32>} : vector<16x128xf32>, vector<128x32xf32>, vector<16x32xf32> -> vector<16x32xf32>
    %143 = vector.broadcast %9 : vector<1x32xf32> to vector<16x32xf32>
    %144 = arith.addf %142, %143 : vector<16x32xf32>
    %145 = arith.addf %110, %144 : vector<16x32xf32>
    %c1 = arith.constant 1 : index
    %c0_52 = arith.constant 0 : index
    %c0_53 = arith.constant 0 : index
    %146 = vector.load %arg7[%c1, %c0_52, %c0_53] : memref<3x8x128xf32, #tpu.memory_space<vmem>>, vector<1x8x128xf32>
    %147 = vector.shape_cast %146 : vector<1x8x128xf32> to vector<8x128xf32>
    %148 = vector.extract_strided_slice %147 {offsets = [0, 0], sizes = [1, 32], strides = [1, 1]} : vector<8x128xf32> to vector<1x32xf32>
    %149 = vector.extract_strided_slice %147 {offsets = [1, 0], sizes = [1, 32], strides = [1, 1]} : vector<8x128xf32> to vector<1x32xf32>
    %150 = vector.extract_strided_slice %147 {offsets = [2, 0], sizes = [1, 32], strides = [1, 1]} : vector<8x128xf32> to vector<1x32xf32>
    %151 = vector.extract_strided_slice %147 {offsets = [3, 0], sizes = [1, 32], strides = [1, 1]} : vector<8x128xf32> to vector<1x32xf32>
    %152 = vector.extract_strided_slice %147 {offsets = [4, 0], sizes = [1, 32], strides = [1, 1]} : vector<8x128xf32> to vector<1x32xf32>
    %153 = vector.extract_strided_slice %147 {offsets = [5, 0], sizes = [1, 32], strides = [1, 1]} : vector<8x128xf32> to vector<1x32xf32>
    %154 = vector.extract_strided_slice %147 {offsets = [6, 0], sizes = [1, 128], strides = [1, 1]} : vector<8x128xf32> to vector<1x128xf32>
    %cst_54 = arith.constant dense<0.000000e+00> : vector<16xf32>
    %155 = vector.multi_reduction <add>, %145, %cst_54 [1] : vector<16x32xf32> to vector<16xf32>
    %156 = vector.shape_cast %155 : vector<16xf32> to vector<16x1xf32>
    %cst_55 = arith.constant 3.200000e+01 : f32
    %157 = vector.broadcast %cst_55 : f32 to vector<16x1xf32>
    %158 = arith.divf %156, %157 : vector<16x1xf32>
    %159 = vector.broadcast %158 : vector<16x1xf32> to vector<16x32xf32>
    %160 = arith.subf %145, %159 : vector<16x32xf32>
    %161 = arith.mulf %160, %160 : vector<16x32xf32>
    %cst_56 = arith.constant dense<0.000000e+00> : vector<16xf32>
    %162 = vector.multi_reduction <add>, %161, %cst_56 [1] : vector<16x32xf32> to vector<16xf32>
    %163 = vector.shape_cast %162 : vector<16xf32> to vector<16x1xf32>
    %cst_57 = arith.constant 3.200000e+01 : f32
    %164 = vector.broadcast %cst_57 : f32 to vector<16x1xf32>
    %165 = arith.divf %163, %164 : vector<16x1xf32>
    %166 = vector.broadcast %158 : vector<16x1xf32> to vector<16x32xf32>
    %167 = arith.subf %145, %166 : vector<16x32xf32>
    %cst_58 = arith.constant 9.99999974E-6 : f32
    %168 = vector.broadcast %cst_58 : f32 to vector<16x1xf32>
    %169 = arith.addf %165, %168 : vector<16x1xf32>
    %170 = math.rsqrt %169 : vector<16x1xf32>
    %171 = vector.broadcast %170 : vector<16x1xf32> to vector<16x32xf32>
    %172 = arith.mulf %167, %171 : vector<16x32xf32>
    %173 = vector.broadcast %148 : vector<1x32xf32> to vector<16x32xf32>
    %174 = arith.mulf %172, %173 : vector<16x32xf32>
    %175 = vector.broadcast %149 : vector<1x32xf32> to vector<16x32xf32>
    %176 = arith.addf %174, %175 : vector<16x32xf32>
    %c1_59 = arith.constant 1 : index
    %c0_60 = arith.constant 0 : index
    %c0_61 = arith.constant 0 : index
    %177 = vector.load %arg3[%c1_59, %c0_60, %c0_61] : memref<3x32x96xf32, #tpu.memory_space<vmem>>, vector<1x32x96xf32>
    %178 = vector.shape_cast %177 : vector<1x32x96xf32> to vector<32x96xf32>
    %cst_62 = arith.constant dense<0.000000e+00> : vector<16x96xf32>
    %179 = tpu.matmul %176, %178, %cst_62 {dimension_numbers = #tpu.dot_dimension_numbers<[1], [0], [0], [1], [0, 0, 1, 1], [], []>, precision = #tpu.contract_precision<fp32>} : vector<16x32xf32>, vector<32x96xf32>, vector<16x96xf32> -> vector<16x96xf32>
    %180 = vector.extract_strided_slice %179 {offsets = [0, 0], sizes = [16, 8], strides = [1, 1]} : vector<16x96xf32> to vector<16x8xf32>
    %181 = vector.extract_strided_slice %179 {offsets = [0, 32], sizes = [16, 8], strides = [1, 1]} : vector<16x96xf32> to vector<16x8xf32>
    %182 = vector.extract_strided_slice %179 {offsets = [0, 64], sizes = [16, 8], strides = [1, 1]} : vector<16x96xf32> to vector<16x8xf32>
    %cst_63 = arith.constant dense<0.000000e+00> : vector<16x16xf32>
    %183 = tpu.matmul %180, %181, %cst_63 {dimension_numbers = #tpu.dot_dimension_numbers<[1], [1], [0], [0], [0, 0, 1, 0], [], []>, precision = #tpu.contract_precision<fp32>} : vector<16x8xf32>, vector<16x8xf32>, vector<16x16xf32> -> vector<16x16xf32>
    %184 = arith.addf %183, %1 : vector<16x16xf32>
    %cst_64 = arith.constant dense<0xFF800000> : vector<16xf32>
    %185 = vector.multi_reduction <maximumf>, %184, %cst_64 [1] : vector<16x16xf32> to vector<16xf32>
    %186 = vector.shape_cast %185 : vector<16xf32> to vector<16x1xf32>
    %187 = vector.broadcast %186 : vector<16x1xf32> to vector<16x16xf32>
    %188 = arith.subf %184, %187 : vector<16x16xf32>
    %189 = math.exp %188 : vector<16x16xf32>
    %cst_65 = arith.constant dense<0.000000e+00> : vector<16xf32>
    %190 = vector.multi_reduction <add>, %189, %cst_65 [1] : vector<16x16xf32> to vector<16xf32>
    %191 = vector.shape_cast %190 : vector<16xf32> to vector<16x1xf32>
    %cst_66 = arith.constant dense<0.000000e+00> : vector<16x8xf32>
    %192 = tpu.matmul %189, %182, %cst_66 {dimension_numbers = #tpu.dot_dimension_numbers<[1], [0], [0], [1], [0, 0, 1, 1], [], []>, precision = #tpu.contract_precision<fp32>} : vector<16x16xf32>, vector<16x8xf32>, vector<16x8xf32> -> vector<16x8xf32>
    %cst_67 = arith.constant 1.000000e+00 : f32
    %193 = vector.broadcast %cst_67 : f32 to vector<16x1xf32>
    %194 = arith.divf %193, %191 : vector<16x1xf32>
    %195 = vector.broadcast %194 : vector<16x1xf32> to vector<16x8xf32>
    %196 = arith.mulf %192, %195 : vector<16x8xf32>
    %197 = vector.extract_strided_slice %179 {offsets = [0, 8], sizes = [16, 8], strides = [1, 1]} : vector<16x96xf32> to vector<16x8xf32>
    %198 = vector.extract_strided_slice %179 {offsets = [0, 40], sizes = [16, 8], strides = [1, 1]} : vector<16x96xf32> to vector<16x8xf32>
    %199 = vector.extract_strided_slice %179 {offsets = [0, 72], sizes = [16, 8], strides = [1, 1]} : vector<16x96xf32> to vector<16x8xf32>
    %cst_68 = arith.constant dense<0.000000e+00> : vector<16x16xf32>
    %200 = tpu.matmul %197, %198, %cst_68 {dimension_numbers = #tpu.dot_dimension_numbers<[1], [1], [0], [0], [0, 0, 1, 0], [], []>, precision = #tpu.contract_precision<fp32>} : vector<16x8xf32>, vector<16x8xf32>, vector<16x16xf32> -> vector<16x16xf32>
    %201 = arith.addf %200, %1 : vector<16x16xf32>
    %cst_69 = arith.constant dense<0xFF800000> : vector<16xf32>
    %202 = vector.multi_reduction <maximumf>, %201, %cst_69 [1] : vector<16x16xf32> to vector<16xf32>
    %203 = vector.shape_cast %202 : vector<16xf32> to vector<16x1xf32>
    %204 = vector.broadcast %203 : vector<16x1xf32> to vector<16x16xf32>
    %205 = arith.subf %201, %204 : vector<16x16xf32>
    %206 = math.exp %205 : vector<16x16xf32>
    %cst_70 = arith.constant dense<0.000000e+00> : vector<16xf32>
    %207 = vector.multi_reduction <add>, %206, %cst_70 [1] : vector<16x16xf32> to vector<16xf32>
    %208 = vector.shape_cast %207 : vector<16xf32> to vector<16x1xf32>
    %cst_71 = arith.constant dense<0.000000e+00> : vector<16x8xf32>
    %209 = tpu.matmul %206, %199, %cst_71 {dimension_numbers = #tpu.dot_dimension_numbers<[1], [0], [0], [1], [0, 0, 1, 1], [], []>, precision = #tpu.contract_precision<fp32>} : vector<16x16xf32>, vector<16x8xf32>, vector<16x8xf32> -> vector<16x8xf32>
    %cst_72 = arith.constant 1.000000e+00 : f32
    %210 = vector.broadcast %cst_72 : f32 to vector<16x1xf32>
    %211 = arith.divf %210, %208 : vector<16x1xf32>
    %212 = vector.broadcast %211 : vector<16x1xf32> to vector<16x8xf32>
    %213 = arith.mulf %209, %212 : vector<16x8xf32>
    %214 = vector.extract_strided_slice %179 {offsets = [0, 16], sizes = [16, 8], strides = [1, 1]} : vector<16x96xf32> to vector<16x8xf32>
    %215 = vector.extract_strided_slice %179 {offsets = [0, 48], sizes = [16, 8], strides = [1, 1]} : vector<16x96xf32> to vector<16x8xf32>
    %216 = vector.extract_strided_slice %179 {offsets = [0, 80], sizes = [16, 8], strides = [1, 1]} : vector<16x96xf32> to vector<16x8xf32>
    %cst_73 = arith.constant dense<0.000000e+00> : vector<16x16xf32>
    %217 = tpu.matmul %214, %215, %cst_73 {dimension_numbers = #tpu.dot_dimension_numbers<[1], [1], [0], [0], [0, 0, 1, 0], [], []>, precision = #tpu.contract_precision<fp32>} : vector<16x8xf32>, vector<16x8xf32>, vector<16x16xf32> -> vector<16x16xf32>
    %218 = arith.addf %217, %1 : vector<16x16xf32>
    %cst_74 = arith.constant dense<0xFF800000> : vector<16xf32>
    %219 = vector.multi_reduction <maximumf>, %218, %cst_74 [1] : vector<16x16xf32> to vector<16xf32>
    %220 = vector.shape_cast %219 : vector<16xf32> to vector<16x1xf32>
    %221 = vector.broadcast %220 : vector<16x1xf32> to vector<16x16xf32>
    %222 = arith.subf %218, %221 : vector<16x16xf32>
    %223 = math.exp %222 : vector<16x16xf32>
    %cst_75 = arith.constant dense<0.000000e+00> : vector<16xf32>
    %224 = vector.multi_reduction <add>, %223, %cst_75 [1] : vector<16x16xf32> to vector<16xf32>
    %225 = vector.shape_cast %224 : vector<16xf32> to vector<16x1xf32>
    %cst_76 = arith.constant dense<0.000000e+00> : vector<16x8xf32>
    %226 = tpu.matmul %223, %216, %cst_76 {dimension_numbers = #tpu.dot_dimension_numbers<[1], [0], [0], [1], [0, 0, 1, 1], [], []>, precision = #tpu.contract_precision<fp32>} : vector<16x16xf32>, vector<16x8xf32>, vector<16x8xf32> -> vector<16x8xf32>
    %cst_77 = arith.constant 1.000000e+00 : f32
    %227 = vector.broadcast %cst_77 : f32 to vector<16x1xf32>
    %228 = arith.divf %227, %225 : vector<16x1xf32>
    %229 = vector.broadcast %228 : vector<16x1xf32> to vector<16x8xf32>
    %230 = arith.mulf %226, %229 : vector<16x8xf32>
    %231 = vector.extract_strided_slice %179 {offsets = [0, 24], sizes = [16, 8], strides = [1, 1]} : vector<16x96xf32> to vector<16x8xf32>
    %232 = vector.extract_strided_slice %179 {offsets = [0, 56], sizes = [16, 8], strides = [1, 1]} : vector<16x96xf32> to vector<16x8xf32>
    %233 = vector.extract_strided_slice %179 {offsets = [0, 88], sizes = [16, 8], strides = [1, 1]} : vector<16x96xf32> to vector<16x8xf32>
    %cst_78 = arith.constant dense<0.000000e+00> : vector<16x16xf32>
    %234 = tpu.matmul %231, %232, %cst_78 {dimension_numbers = #tpu.dot_dimension_numbers<[1], [1], [0], [0], [0, 0, 1, 0], [], []>, precision = #tpu.contract_precision<fp32>} : vector<16x8xf32>, vector<16x8xf32>, vector<16x16xf32> -> vector<16x16xf32>
    %235 = arith.addf %234, %1 : vector<16x16xf32>
    %cst_79 = arith.constant dense<0xFF800000> : vector<16xf32>
    %236 = vector.multi_reduction <maximumf>, %235, %cst_79 [1] : vector<16x16xf32> to vector<16xf32>
    %237 = vector.shape_cast %236 : vector<16xf32> to vector<16x1xf32>
    %238 = vector.broadcast %237 : vector<16x1xf32> to vector<16x16xf32>
    %239 = arith.subf %235, %238 : vector<16x16xf32>
    %240 = math.exp %239 : vector<16x16xf32>
    %cst_80 = arith.constant dense<0.000000e+00> : vector<16xf32>
    %241 = vector.multi_reduction <add>, %240, %cst_80 [1] : vector<16x16xf32> to vector<16xf32>
    %242 = vector.shape_cast %241 : vector<16xf32> to vector<16x1xf32>
    %cst_81 = arith.constant dense<0.000000e+00> : vector<16x8xf32>
    %243 = tpu.matmul %240, %233, %cst_81 {dimension_numbers = #tpu.dot_dimension_numbers<[1], [0], [0], [1], [0, 0, 1, 1], [], []>, precision = #tpu.contract_precision<fp32>} : vector<16x16xf32>, vector<16x8xf32>, vector<16x8xf32> -> vector<16x8xf32>
    %cst_82 = arith.constant 1.000000e+00 : f32
    %244 = vector.broadcast %cst_82 : f32 to vector<16x1xf32>
    %245 = arith.divf %244, %242 : vector<16x1xf32>
    %246 = vector.broadcast %245 : vector<16x1xf32> to vector<16x8xf32>
    %247 = arith.mulf %243, %246 : vector<16x8xf32>
    %248 = tpu.concatenate %196, %213, %230, %247 in 1 : vector<16x8xf32>, vector<16x8xf32>, vector<16x8xf32>, vector<16x8xf32> -> vector<16x32xf32>
    %c1_83 = arith.constant 1 : index
    %c0_84 = arith.constant 0 : index
    %c0_85 = arith.constant 0 : index
    %249 = vector.load %arg4[%c1_83, %c0_84, %c0_85] : memref<3x32x32xf32, #tpu.memory_space<vmem>>, vector<1x32x32xf32>
    %250 = vector.shape_cast %249 : vector<1x32x32xf32> to vector<32x32xf32>
    %cst_86 = arith.constant dense<0.000000e+00> : vector<16x32xf32>
    %251 = tpu.matmul %248, %250, %cst_86 {dimension_numbers = #tpu.dot_dimension_numbers<[1], [0], [0], [1], [0, 0, 1, 1], [], []>, precision = #tpu.contract_precision<fp32>} : vector<16x32xf32>, vector<32x32xf32>, vector<16x32xf32> -> vector<16x32xf32>
    %252 = vector.broadcast %152 : vector<1x32xf32> to vector<16x32xf32>
    %253 = arith.addf %251, %252 : vector<16x32xf32>
    %254 = arith.addf %145, %253 : vector<16x32xf32>
    %cst_87 = arith.constant dense<0.000000e+00> : vector<16xf32>
    %255 = vector.multi_reduction <add>, %254, %cst_87 [1] : vector<16x32xf32> to vector<16xf32>
    %256 = vector.shape_cast %255 : vector<16xf32> to vector<16x1xf32>
    %cst_88 = arith.constant 3.200000e+01 : f32
    %257 = vector.broadcast %cst_88 : f32 to vector<16x1xf32>
    %258 = arith.divf %256, %257 : vector<16x1xf32>
    %259 = vector.broadcast %258 : vector<16x1xf32> to vector<16x32xf32>
    %260 = arith.subf %254, %259 : vector<16x32xf32>
    %261 = arith.mulf %260, %260 : vector<16x32xf32>
    %cst_89 = arith.constant dense<0.000000e+00> : vector<16xf32>
    %262 = vector.multi_reduction <add>, %261, %cst_89 [1] : vector<16x32xf32> to vector<16xf32>
    %263 = vector.shape_cast %262 : vector<16xf32> to vector<16x1xf32>
    %cst_90 = arith.constant 3.200000e+01 : f32
    %264 = vector.broadcast %cst_90 : f32 to vector<16x1xf32>
    %265 = arith.divf %263, %264 : vector<16x1xf32>
    %266 = vector.broadcast %258 : vector<16x1xf32> to vector<16x32xf32>
    %267 = arith.subf %254, %266 : vector<16x32xf32>
    %cst_91 = arith.constant 9.99999974E-6 : f32
    %268 = vector.broadcast %cst_91 : f32 to vector<16x1xf32>
    %269 = arith.addf %265, %268 : vector<16x1xf32>
    %270 = math.rsqrt %269 : vector<16x1xf32>
    %271 = vector.broadcast %270 : vector<16x1xf32> to vector<16x32xf32>
    %272 = arith.mulf %267, %271 : vector<16x32xf32>
    %273 = vector.broadcast %150 : vector<1x32xf32> to vector<16x32xf32>
    %274 = arith.mulf %272, %273 : vector<16x32xf32>
    %275 = vector.broadcast %151 : vector<1x32xf32> to vector<16x32xf32>
    %276 = arith.addf %274, %275 : vector<16x32xf32>
    %c1_92 = arith.constant 1 : index
    %c0_93 = arith.constant 0 : index
    %c0_94 = arith.constant 0 : index
    %277 = vector.load %arg5[%c1_92, %c0_93, %c0_94] : memref<3x32x128xf32, #tpu.memory_space<vmem>>, vector<1x32x128xf32>
    %278 = vector.shape_cast %277 : vector<1x32x128xf32> to vector<32x128xf32>
    %cst_95 = arith.constant dense<0.000000e+00> : vector<16x128xf32>
    %279 = tpu.matmul %276, %278, %cst_95 {dimension_numbers = #tpu.dot_dimension_numbers<[1], [0], [0], [1], [0, 0, 1, 1], [], []>, precision = #tpu.contract_precision<fp32>} : vector<16x32xf32>, vector<32x128xf32>, vector<16x128xf32> -> vector<16x128xf32>
    %280 = vector.broadcast %154 : vector<1x128xf32> to vector<16x128xf32>
    %281 = arith.addf %279, %280 : vector<16x128xf32>
    %cst_96 = arith.constant 0.000000e+00 : f32
    %282 = vector.broadcast %cst_96 : f32 to vector<16x128xf32>
    %283 = arith.maximumf %281, %282 : vector<16x128xf32>
    %c1_97 = arith.constant 1 : index
    %c0_98 = arith.constant 0 : index
    %c0_99 = arith.constant 0 : index
    %284 = vector.load %arg6[%c1_97, %c0_98, %c0_99] : memref<3x128x32xf32, #tpu.memory_space<vmem>>, vector<1x128x32xf32>
    %285 = vector.shape_cast %284 : vector<1x128x32xf32> to vector<128x32xf32>
    %cst_100 = arith.constant dense<0.000000e+00> : vector<16x32xf32>
    %286 = tpu.matmul %283, %285, %cst_100 {dimension_numbers = #tpu.dot_dimension_numbers<[1], [0], [0], [1], [0, 0, 1, 1], [], []>, precision = #tpu.contract_precision<fp32>} : vector<16x128xf32>, vector<128x32xf32>, vector<16x32xf32> -> vector<16x32xf32>
    %287 = vector.broadcast %153 : vector<1x32xf32> to vector<16x32xf32>
    %288 = arith.addf %286, %287 : vector<16x32xf32>
    %289 = arith.addf %254, %288 : vector<16x32xf32>
    %c2 = arith.constant 2 : index
    %c0_101 = arith.constant 0 : index
    %c0_102 = arith.constant 0 : index
    %290 = vector.load %arg7[%c2, %c0_101, %c0_102] : memref<3x8x128xf32, #tpu.memory_space<vmem>>, vector<1x8x128xf32>
    %291 = vector.shape_cast %290 : vector<1x8x128xf32> to vector<8x128xf32>
    %292 = vector.extract_strided_slice %291 {offsets = [0, 0], sizes = [1, 32], strides = [1, 1]} : vector<8x128xf32> to vector<1x32xf32>
    %293 = vector.extract_strided_slice %291 {offsets = [1, 0], sizes = [1, 32], strides = [1, 1]} : vector<8x128xf32> to vector<1x32xf32>
    %294 = vector.extract_strided_slice %291 {offsets = [2, 0], sizes = [1, 32], strides = [1, 1]} : vector<8x128xf32> to vector<1x32xf32>
    %295 = vector.extract_strided_slice %291 {offsets = [3, 0], sizes = [1, 32], strides = [1, 1]} : vector<8x128xf32> to vector<1x32xf32>
    %296 = vector.extract_strided_slice %291 {offsets = [4, 0], sizes = [1, 32], strides = [1, 1]} : vector<8x128xf32> to vector<1x32xf32>
    %297 = vector.extract_strided_slice %291 {offsets = [5, 0], sizes = [1, 32], strides = [1, 1]} : vector<8x128xf32> to vector<1x32xf32>
    %298 = vector.extract_strided_slice %291 {offsets = [6, 0], sizes = [1, 128], strides = [1, 1]} : vector<8x128xf32> to vector<1x128xf32>
    %cst_103 = arith.constant dense<0.000000e+00> : vector<16xf32>
    %299 = vector.multi_reduction <add>, %289, %cst_103 [1] : vector<16x32xf32> to vector<16xf32>
    %300 = vector.shape_cast %299 : vector<16xf32> to vector<16x1xf32>
    %cst_104 = arith.constant 3.200000e+01 : f32
    %301 = vector.broadcast %cst_104 : f32 to vector<16x1xf32>
    %302 = arith.divf %300, %301 : vector<16x1xf32>
    %303 = vector.broadcast %302 : vector<16x1xf32> to vector<16x32xf32>
    %304 = arith.subf %289, %303 : vector<16x32xf32>
    %305 = arith.mulf %304, %304 : vector<16x32xf32>
    %cst_105 = arith.constant dense<0.000000e+00> : vector<16xf32>
    %306 = vector.multi_reduction <add>, %305, %cst_105 [1] : vector<16x32xf32> to vector<16xf32>
    %307 = vector.shape_cast %306 : vector<16xf32> to vector<16x1xf32>
    %cst_106 = arith.constant 3.200000e+01 : f32
    %308 = vector.broadcast %cst_106 : f32 to vector<16x1xf32>
    %309 = arith.divf %307, %308 : vector<16x1xf32>
    %310 = vector.broadcast %302 : vector<16x1xf32> to vector<16x32xf32>
    %311 = arith.subf %289, %310 : vector<16x32xf32>
    %cst_107 = arith.constant 9.99999974E-6 : f32
    %312 = vector.broadcast %cst_107 : f32 to vector<16x1xf32>
    %313 = arith.addf %309, %312 : vector<16x1xf32>
    %314 = math.rsqrt %313 : vector<16x1xf32>
    %315 = vector.broadcast %314 : vector<16x1xf32> to vector<16x32xf32>
    %316 = arith.mulf %311, %315 : vector<16x32xf32>
    %317 = vector.broadcast %292 : vector<1x32xf32> to vector<16x32xf32>
    %318 = arith.mulf %316, %317 : vector<16x32xf32>
    %319 = vector.broadcast %293 : vector<1x32xf32> to vector<16x32xf32>
    %320 = arith.addf %318, %319 : vector<16x32xf32>
    %c2_108 = arith.constant 2 : index
    %c0_109 = arith.constant 0 : index
    %c0_110 = arith.constant 0 : index
    %321 = vector.load %arg3[%c2_108, %c0_109, %c0_110] : memref<3x32x96xf32, #tpu.memory_space<vmem>>, vector<1x32x96xf32>
    %322 = vector.shape_cast %321 : vector<1x32x96xf32> to vector<32x96xf32>
    %cst_111 = arith.constant dense<0.000000e+00> : vector<16x96xf32>
    %323 = tpu.matmul %320, %322, %cst_111 {dimension_numbers = #tpu.dot_dimension_numbers<[1], [0], [0], [1], [0, 0, 1, 1], [], []>, precision = #tpu.contract_precision<fp32>} : vector<16x32xf32>, vector<32x96xf32>, vector<16x96xf32> -> vector<16x96xf32>
    %324 = vector.extract_strided_slice %323 {offsets = [0, 0], sizes = [16, 8], strides = [1, 1]} : vector<16x96xf32> to vector<16x8xf32>
    %325 = vector.extract_strided_slice %323 {offsets = [0, 32], sizes = [16, 8], strides = [1, 1]} : vector<16x96xf32> to vector<16x8xf32>
    %326 = vector.extract_strided_slice %323 {offsets = [0, 64], sizes = [16, 8], strides = [1, 1]} : vector<16x96xf32> to vector<16x8xf32>
    %cst_112 = arith.constant dense<0.000000e+00> : vector<16x16xf32>
    %327 = tpu.matmul %324, %325, %cst_112 {dimension_numbers = #tpu.dot_dimension_numbers<[1], [1], [0], [0], [0, 0, 1, 0], [], []>, precision = #tpu.contract_precision<fp32>} : vector<16x8xf32>, vector<16x8xf32>, vector<16x16xf32> -> vector<16x16xf32>
    %328 = arith.addf %327, %1 : vector<16x16xf32>
    %cst_113 = arith.constant dense<0xFF800000> : vector<16xf32>
    %329 = vector.multi_reduction <maximumf>, %328, %cst_113 [1] : vector<16x16xf32> to vector<16xf32>
    %330 = vector.shape_cast %329 : vector<16xf32> to vector<16x1xf32>
    %331 = vector.broadcast %330 : vector<16x1xf32> to vector<16x16xf32>
    %332 = arith.subf %328, %331 : vector<16x16xf32>
    %333 = math.exp %332 : vector<16x16xf32>
    %cst_114 = arith.constant dense<0.000000e+00> : vector<16xf32>
    %334 = vector.multi_reduction <add>, %333, %cst_114 [1] : vector<16x16xf32> to vector<16xf32>
    %335 = vector.shape_cast %334 : vector<16xf32> to vector<16x1xf32>
    %cst_115 = arith.constant dense<0.000000e+00> : vector<16x8xf32>
    %336 = tpu.matmul %333, %326, %cst_115 {dimension_numbers = #tpu.dot_dimension_numbers<[1], [0], [0], [1], [0, 0, 1, 1], [], []>, precision = #tpu.contract_precision<fp32>} : vector<16x16xf32>, vector<16x8xf32>, vector<16x8xf32> -> vector<16x8xf32>
    %cst_116 = arith.constant 1.000000e+00 : f32
    %337 = vector.broadcast %cst_116 : f32 to vector<16x1xf32>
    %338 = arith.divf %337, %335 : vector<16x1xf32>
    %339 = vector.broadcast %338 : vector<16x1xf32> to vector<16x8xf32>
    %340 = arith.mulf %336, %339 : vector<16x8xf32>
    %341 = vector.extract_strided_slice %323 {offsets = [0, 8], sizes = [16, 8], strides = [1, 1]} : vector<16x96xf32> to vector<16x8xf32>
    %342 = vector.extract_strided_slice %323 {offsets = [0, 40], sizes = [16, 8], strides = [1, 1]} : vector<16x96xf32> to vector<16x8xf32>
    %343 = vector.extract_strided_slice %323 {offsets = [0, 72], sizes = [16, 8], strides = [1, 1]} : vector<16x96xf32> to vector<16x8xf32>
    %cst_117 = arith.constant dense<0.000000e+00> : vector<16x16xf32>
    %344 = tpu.matmul %341, %342, %cst_117 {dimension_numbers = #tpu.dot_dimension_numbers<[1], [1], [0], [0], [0, 0, 1, 0], [], []>, precision = #tpu.contract_precision<fp32>} : vector<16x8xf32>, vector<16x8xf32>, vector<16x16xf32> -> vector<16x16xf32>
    %345 = arith.addf %344, %1 : vector<16x16xf32>
    %cst_118 = arith.constant dense<0xFF800000> : vector<16xf32>
    %346 = vector.multi_reduction <maximumf>, %345, %cst_118 [1] : vector<16x16xf32> to vector<16xf32>
    %347 = vector.shape_cast %346 : vector<16xf32> to vector<16x1xf32>
    %348 = vector.broadcast %347 : vector<16x1xf32> to vector<16x16xf32>
    %349 = arith.subf %345, %348 : vector<16x16xf32>
    %350 = math.exp %349 : vector<16x16xf32>
    %cst_119 = arith.constant dense<0.000000e+00> : vector<16xf32>
    %351 = vector.multi_reduction <add>, %350, %cst_119 [1] : vector<16x16xf32> to vector<16xf32>
    %352 = vector.shape_cast %351 : vector<16xf32> to vector<16x1xf32>
    %cst_120 = arith.constant dense<0.000000e+00> : vector<16x8xf32>
    %353 = tpu.matmul %350, %343, %cst_120 {dimension_numbers = #tpu.dot_dimension_numbers<[1], [0], [0], [1], [0, 0, 1, 1], [], []>, precision = #tpu.contract_precision<fp32>} : vector<16x16xf32>, vector<16x8xf32>, vector<16x8xf32> -> vector<16x8xf32>
    %cst_121 = arith.constant 1.000000e+00 : f32
    %354 = vector.broadcast %cst_121 : f32 to vector<16x1xf32>
    %355 = arith.divf %354, %352 : vector<16x1xf32>
    %356 = vector.broadcast %355 : vector<16x1xf32> to vector<16x8xf32>
    %357 = arith.mulf %353, %356 : vector<16x8xf32>
    %358 = vector.extract_strided_slice %323 {offsets = [0, 16], sizes = [16, 8], strides = [1, 1]} : vector<16x96xf32> to vector<16x8xf32>
    %359 = vector.extract_strided_slice %323 {offsets = [0, 48], sizes = [16, 8], strides = [1, 1]} : vector<16x96xf32> to vector<16x8xf32>
    %360 = vector.extract_strided_slice %323 {offsets = [0, 80], sizes = [16, 8], strides = [1, 1]} : vector<16x96xf32> to vector<16x8xf32>
    %cst_122 = arith.constant dense<0.000000e+00> : vector<16x16xf32>
    %361 = tpu.matmul %358, %359, %cst_122 {dimension_numbers = #tpu.dot_dimension_numbers<[1], [1], [0], [0], [0, 0, 1, 0], [], []>, precision = #tpu.contract_precision<fp32>} : vector<16x8xf32>, vector<16x8xf32>, vector<16x16xf32> -> vector<16x16xf32>
    %362 = arith.addf %361, %1 : vector<16x16xf32>
    %cst_123 = arith.constant dense<0xFF800000> : vector<16xf32>
    %363 = vector.multi_reduction <maximumf>, %362, %cst_123 [1] : vector<16x16xf32> to vector<16xf32>
    %364 = vector.shape_cast %363 : vector<16xf32> to vector<16x1xf32>
    %365 = vector.broadcast %364 : vector<16x1xf32> to vector<16x16xf32>
    %366 = arith.subf %362, %365 : vector<16x16xf32>
    %367 = math.exp %366 : vector<16x16xf32>
    %cst_124 = arith.constant dense<0.000000e+00> : vector<16xf32>
    %368 = vector.multi_reduction <add>, %367, %cst_124 [1] : vector<16x16xf32> to vector<16xf32>
    %369 = vector.shape_cast %368 : vector<16xf32> to vector<16x1xf32>
    %cst_125 = arith.constant dense<0.000000e+00> : vector<16x8xf32>
    %370 = tpu.matmul %367, %360, %cst_125 {dimension_numbers = #tpu.dot_dimension_numbers<[1], [0], [0], [1], [0, 0, 1, 1], [], []>, precision = #tpu.contract_precision<fp32>} : vector<16x16xf32>, vector<16x8xf32>, vector<16x8xf32> -> vector<16x8xf32>
    %cst_126 = arith.constant 1.000000e+00 : f32
    %371 = vector.broadcast %cst_126 : f32 to vector<16x1xf32>
    %372 = arith.divf %371, %369 : vector<16x1xf32>
    %373 = vector.broadcast %372 : vector<16x1xf32> to vector<16x8xf32>
    %374 = arith.mulf %370, %373 : vector<16x8xf32>
    %375 = vector.extract_strided_slice %323 {offsets = [0, 24], sizes = [16, 8], strides = [1, 1]} : vector<16x96xf32> to vector<16x8xf32>
    %376 = vector.extract_strided_slice %323 {offsets = [0, 56], sizes = [16, 8], strides = [1, 1]} : vector<16x96xf32> to vector<16x8xf32>
    %377 = vector.extract_strided_slice %323 {offsets = [0, 88], sizes = [16, 8], strides = [1, 1]} : vector<16x96xf32> to vector<16x8xf32>
    %cst_127 = arith.constant dense<0.000000e+00> : vector<16x16xf32>
    %378 = tpu.matmul %375, %376, %cst_127 {dimension_numbers = #tpu.dot_dimension_numbers<[1], [1], [0], [0], [0, 0, 1, 0], [], []>, precision = #tpu.contract_precision<fp32>} : vector<16x8xf32>, vector<16x8xf32>, vector<16x16xf32> -> vector<16x16xf32>
    %379 = arith.addf %378, %1 : vector<16x16xf32>
    %cst_128 = arith.constant dense<0xFF800000> : vector<16xf32>
    %380 = vector.multi_reduction <maximumf>, %379, %cst_128 [1] : vector<16x16xf32> to vector<16xf32>
    %381 = vector.shape_cast %380 : vector<16xf32> to vector<16x1xf32>
    %382 = vector.broadcast %381 : vector<16x1xf32> to vector<16x16xf32>
    %383 = arith.subf %379, %382 : vector<16x16xf32>
    %384 = math.exp %383 : vector<16x16xf32>
    %cst_129 = arith.constant dense<0.000000e+00> : vector<16xf32>
    %385 = vector.multi_reduction <add>, %384, %cst_129 [1] : vector<16x16xf32> to vector<16xf32>
    %386 = vector.shape_cast %385 : vector<16xf32> to vector<16x1xf32>
    %cst_130 = arith.constant dense<0.000000e+00> : vector<16x8xf32>
    %387 = tpu.matmul %384, %377, %cst_130 {dimension_numbers = #tpu.dot_dimension_numbers<[1], [0], [0], [1], [0, 0, 1, 1], [], []>, precision = #tpu.contract_precision<fp32>} : vector<16x16xf32>, vector<16x8xf32>, vector<16x8xf32> -> vector<16x8xf32>
    %cst_131 = arith.constant 1.000000e+00 : f32
    %388 = vector.broadcast %cst_131 : f32 to vector<16x1xf32>
    %389 = arith.divf %388, %386 : vector<16x1xf32>
    %390 = vector.broadcast %389 : vector<16x1xf32> to vector<16x8xf32>
    %391 = arith.mulf %387, %390 : vector<16x8xf32>
    %392 = tpu.concatenate %340, %357, %374, %391 in 1 : vector<16x8xf32>, vector<16x8xf32>, vector<16x8xf32>, vector<16x8xf32> -> vector<16x32xf32>
    %c2_132 = arith.constant 2 : index
    %c0_133 = arith.constant 0 : index
    %c0_134 = arith.constant 0 : index
    %393 = vector.load %arg4[%c2_132, %c0_133, %c0_134] : memref<3x32x32xf32, #tpu.memory_space<vmem>>, vector<1x32x32xf32>
    %394 = vector.shape_cast %393 : vector<1x32x32xf32> to vector<32x32xf32>
    %cst_135 = arith.constant dense<0.000000e+00> : vector<16x32xf32>
    %395 = tpu.matmul %392, %394, %cst_135 {dimension_numbers = #tpu.dot_dimension_numbers<[1], [0], [0], [1], [0, 0, 1, 1], [], []>, precision = #tpu.contract_precision<fp32>} : vector<16x32xf32>, vector<32x32xf32>, vector<16x32xf32> -> vector<16x32xf32>
    %396 = vector.broadcast %296 : vector<1x32xf32> to vector<16x32xf32>
    %397 = arith.addf %395, %396 : vector<16x32xf32>
    %398 = arith.addf %289, %397 : vector<16x32xf32>
    %cst_136 = arith.constant dense<0.000000e+00> : vector<16xf32>
    %399 = vector.multi_reduction <add>, %398, %cst_136 [1] : vector<16x32xf32> to vector<16xf32>
    %400 = vector.shape_cast %399 : vector<16xf32> to vector<16x1xf32>
    %cst_137 = arith.constant 3.200000e+01 : f32
    %401 = vector.broadcast %cst_137 : f32 to vector<16x1xf32>
    %402 = arith.divf %400, %401 : vector<16x1xf32>
    %403 = vector.broadcast %402 : vector<16x1xf32> to vector<16x32xf32>
    %404 = arith.subf %398, %403 : vector<16x32xf32>
    %405 = arith.mulf %404, %404 : vector<16x32xf32>
    %cst_138 = arith.constant dense<0.000000e+00> : vector<16xf32>
    %406 = vector.multi_reduction <add>, %405, %cst_138 [1] : vector<16x32xf32> to vector<16xf32>
    %407 = vector.shape_cast %406 : vector<16xf32> to vector<16x1xf32>
    %cst_139 = arith.constant 3.200000e+01 : f32
    %408 = vector.broadcast %cst_139 : f32 to vector<16x1xf32>
    %409 = arith.divf %407, %408 : vector<16x1xf32>
    %410 = vector.broadcast %402 : vector<16x1xf32> to vector<16x32xf32>
    %411 = arith.subf %398, %410 : vector<16x32xf32>
    %cst_140 = arith.constant 9.99999974E-6 : f32
    %412 = vector.broadcast %cst_140 : f32 to vector<16x1xf32>
    %413 = arith.addf %409, %412 : vector<16x1xf32>
    %414 = math.rsqrt %413 : vector<16x1xf32>
    %415 = vector.broadcast %414 : vector<16x1xf32> to vector<16x32xf32>
    %416 = arith.mulf %411, %415 : vector<16x32xf32>
    %417 = vector.broadcast %294 : vector<1x32xf32> to vector<16x32xf32>
    %418 = arith.mulf %416, %417 : vector<16x32xf32>
    %419 = vector.broadcast %295 : vector<1x32xf32> to vector<16x32xf32>
    %420 = arith.addf %418, %419 : vector<16x32xf32>
    %c2_141 = arith.constant 2 : index
    %c0_142 = arith.constant 0 : index
    %c0_143 = arith.constant 0 : index
    %421 = vector.load %arg5[%c2_141, %c0_142, %c0_143] : memref<3x32x128xf32, #tpu.memory_space<vmem>>, vector<1x32x128xf32>
    %422 = vector.shape_cast %421 : vector<1x32x128xf32> to vector<32x128xf32>
    %cst_144 = arith.constant dense<0.000000e+00> : vector<16x128xf32>
    %423 = tpu.matmul %420, %422, %cst_144 {dimension_numbers = #tpu.dot_dimension_numbers<[1], [0], [0], [1], [0, 0, 1, 1], [], []>, precision = #tpu.contract_precision<fp32>} : vector<16x32xf32>, vector<32x128xf32>, vector<16x128xf32> -> vector<16x128xf32>
    %424 = vector.broadcast %298 : vector<1x128xf32> to vector<16x128xf32>
    %425 = arith.addf %423, %424 : vector<16x128xf32>
    %cst_145 = arith.constant 0.000000e+00 : f32
    %426 = vector.broadcast %cst_145 : f32 to vector<16x128xf32>
    %427 = arith.maximumf %425, %426 : vector<16x128xf32>
    %c2_146 = arith.constant 2 : index
    %c0_147 = arith.constant 0 : index
    %c0_148 = arith.constant 0 : index
    %428 = vector.load %arg6[%c2_146, %c0_147, %c0_148] : memref<3x128x32xf32, #tpu.memory_space<vmem>>, vector<1x128x32xf32>
    %429 = vector.shape_cast %428 : vector<1x128x32xf32> to vector<128x32xf32>
    %cst_149 = arith.constant dense<0.000000e+00> : vector<16x32xf32>
    %430 = tpu.matmul %427, %429, %cst_149 {dimension_numbers = #tpu.dot_dimension_numbers<[1], [0], [0], [1], [0, 0, 1, 1], [], []>, precision = #tpu.contract_precision<fp32>} : vector<16x128xf32>, vector<128x32xf32>, vector<16x32xf32> -> vector<16x32xf32>
    %431 = vector.broadcast %297 : vector<1x32xf32> to vector<16x32xf32>
    %432 = arith.addf %430, %431 : vector<16x32xf32>
    %433 = arith.addf %398, %432 : vector<16x32xf32>
    %c0_150 = arith.constant 0 : index
    %c0_151 = arith.constant 0 : index
    %434 = vector.load %arg9[%c0_150, %c0_151] : memref<8x128xf32, #tpu.memory_space<vmem>>, vector<8x128xf32>
    %435 = vector.extract_strided_slice %434 {offsets = [0, 0], sizes = [1, 32], strides = [1, 1]} : vector<8x128xf32> to vector<1x32xf32>
    %436 = vector.extract_strided_slice %434 {offsets = [1, 0], sizes = [1, 32], strides = [1, 1]} : vector<8x128xf32> to vector<1x32xf32>
    %cst_152 = arith.constant dense<0.000000e+00> : vector<16xf32>
    %437 = vector.multi_reduction <add>, %433, %cst_152 [1] : vector<16x32xf32> to vector<16xf32>
    %438 = vector.shape_cast %437 : vector<16xf32> to vector<16x1xf32>
    %cst_153 = arith.constant 3.200000e+01 : f32
    %439 = vector.broadcast %cst_153 : f32 to vector<16x1xf32>
    %440 = arith.divf %438, %439 : vector<16x1xf32>
    %441 = vector.broadcast %440 : vector<16x1xf32> to vector<16x32xf32>
    %442 = arith.subf %433, %441 : vector<16x32xf32>
    %443 = arith.mulf %442, %442 : vector<16x32xf32>
    %cst_154 = arith.constant dense<0.000000e+00> : vector<16xf32>
    %444 = vector.multi_reduction <add>, %443, %cst_154 [1] : vector<16x32xf32> to vector<16xf32>
    %445 = vector.shape_cast %444 : vector<16xf32> to vector<16x1xf32>
    %cst_155 = arith.constant 3.200000e+01 : f32
    %446 = vector.broadcast %cst_155 : f32 to vector<16x1xf32>
    %447 = arith.divf %445, %446 : vector<16x1xf32>
    %448 = vector.broadcast %440 : vector<16x1xf32> to vector<16x32xf32>
    %449 = arith.subf %433, %448 : vector<16x32xf32>
    %cst_156 = arith.constant 9.99999974E-6 : f32
    %450 = vector.broadcast %cst_156 : f32 to vector<16x1xf32>
    %451 = arith.addf %447, %450 : vector<16x1xf32>
    %452 = math.rsqrt %451 : vector<16x1xf32>
    %453 = vector.broadcast %452 : vector<16x1xf32> to vector<16x32xf32>
    %454 = arith.mulf %449, %453 : vector<16x32xf32>
    %455 = vector.broadcast %435 : vector<1x32xf32> to vector<16x32xf32>
    %456 = arith.mulf %454, %455 : vector<16x32xf32>
    %457 = vector.broadcast %436 : vector<1x32xf32> to vector<16x32xf32>
    %458 = arith.addf %456, %457 : vector<16x32xf32>
    %c0_157 = arith.constant 0 : index
    %c0_158 = arith.constant 0 : index
    %459 = vector.load %arg8[%c0_157, %c0_158] : memref<32x128xf32, #tpu.memory_space<vmem>>, vector<32x128xf32>
    %cst_159 = arith.constant dense<0.000000e+00> : vector<16x128xf32>
    %460 = tpu.matmul %458, %459, %cst_159 {dimension_numbers = #tpu.dot_dimension_numbers<[1], [0], [0], [1], [0, 0, 1, 1], [], []>, precision = #tpu.contract_precision<fp32>} : vector<16x32xf32>, vector<32x128xf32>, vector<16x128xf32> -> vector<16x128xf32>
    %461 = vector.extract_strided_slice %434 {offsets = [2, 0], sizes = [1, 128], strides = [1, 1]} : vector<8x128xf32> to vector<1x128xf32>
    %462 = vector.broadcast %461 : vector<1x128xf32> to vector<16x128xf32>
    %463 = arith.addf %460, %462 : vector<16x128xf32>
    %c0_160 = arith.constant 0 : index
    %c0_161 = arith.constant 0 : index
    %464 = vector.load %arg10[%c0_160, %c0_161] : memref<16x128xf32, #tpu.memory_space<vmem>>, vector<16x128xf32>
    tpu.vector_store %arg10[%c0_160, %c0_161], %463 {strides = array<i32>} : memref<16x128xf32, #tpu.memory_space<vmem>>, vector<16x128xf32>,
    return
  }
  func.func @transform_0(%arg0: i32) -> (i32, i32) {
    %c0_i32 = arith.constant 0 : i32
    %c0_i32_0 = arith.constant 0 : i32
    %c0_i32_1 = arith.constant 0 : i32
    return %c0_i32, %c0_i32_0 : i32, i32
  }
  func.func @transform_1(%arg0: i32) -> (i32, i32) {
    %c0_i32 = arith.constant 0 : i32
    %c0_i32_0 = arith.constant 0 : i32
    return %arg0, %c0_i32 : i32, i32
  }
  func.func @transform_2(%arg0: i32) -> (i32, i32, i32) {
    %c0_i32 = arith.constant 0 : i32
    %c0_i32_0 = arith.constant 0 : i32
    %c0_i32_1 = arith.constant 0 : i32
    %c0_i32_2 = arith.constant 0 : i32
    return %c0_i32, %c0_i32_0, %c0_i32_1 : i32, i32, i32
  }
  func.func @transform_3(%arg0: i32) -> (i32, i32, i32) {
    %c0_i32 = arith.constant 0 : i32
    %c0_i32_0 = arith.constant 0 : i32
    %c0_i32_1 = arith.constant 0 : i32
    %c0_i32_2 = arith.constant 0 : i32
    return %c0_i32, %c0_i32_0, %c0_i32_1 : i32, i32, i32
  }
  func.func @transform_4(%arg0: i32) -> (i32, i32, i32) {
    %c0_i32 = arith.constant 0 : i32
    %c0_i32_0 = arith.constant 0 : i32
    %c0_i32_1 = arith.constant 0 : i32
    %c0_i32_2 = arith.constant 0 : i32
    return %c0_i32, %c0_i32_0, %c0_i32_1 : i32, i32, i32
  }
  func.func @transform_5(%arg0: i32) -> (i32, i32, i32) {
    %c0_i32 = arith.constant 0 : i32
    %c0_i32_0 = arith.constant 0 : i32
    %c0_i32_1 = arith.constant 0 : i32
    %c0_i32_2 = arith.constant 0 : i32
    return %c0_i32, %c0_i32_0, %c0_i32_1 : i32, i32, i32
  }
  func.func @transform_6(%arg0: i32) -> (i32, i32, i32) {
    %c0_i32 = arith.constant 0 : i32
    %c0_i32_0 = arith.constant 0 : i32
    %c0_i32_1 = arith.constant 0 : i32
    %c0_i32_2 = arith.constant 0 : i32
    return %c0_i32, %c0_i32_0, %c0_i32_1 : i32, i32, i32
  }
  func.func @transform_7(%arg0: i32) -> (i32, i32) {
    %c0_i32 = arith.constant 0 : i32
    %c0_i32_0 = arith.constant 0 : i32
    %c0_i32_1 = arith.constant 0 : i32
    return %c0_i32, %c0_i32_0 : i32, i32
  }
  func.func @transform_8(%arg0: i32) -> (i32, i32) {
    %c0_i32 = arith.constant 0 : i32
    %c0_i32_0 = arith.constant 0 : i32
    %c0_i32_1 = arith.constant 0 : i32
    return %c0_i32, %c0_i32_0 : i32, i32
  }
  func.func @transform_9(%arg0: i32) -> (i32, i32) {
    %c0_i32 = arith.constant 0 : i32
    %c0_i32_0 = arith.constant 0 : i32
    return %arg0, %c0_i32 : i32, i32
  }
}

</mosaic_0001>

<bundles_post_ra>
// kernel: tpu_custom_call.1
= control target key start
LH: loop header
LB: loop body
LE: loop exit
PB: predicated region body
PF: predicated region fallthrough
CT: control target
= control target key end

     0   :  { %vm38_vm0 = vcmask 261120   ;;  %s28904_s0 = inlined_call_operand.vmem [shape: f32[16,16], index: 0, kind: input, shape index: {}]   ;;  %s28905_s1 = inlined_call_operand.vmem [shape: f32[16,32], index: 1, kind: input, shape index: {}]   ;;  %s28906_s2 = inlined_call_operand.vmem [shape: f32[3,32,96], index: 2, kind: input, shape index: {}]   ;;  %s28907_s3 = inlined_call_operand.vmem [shape: f32[3,32,32], index: 3, kind: input, shape index: {}]   ;;  %s28908_s4 = inlined_call_operand.vmem [shape: f32[3,32,128], index: 4, kind: input, shape index: {}]   ;;  %s28909_s5 = inlined_call_operand.vmem [shape: f32[3,128,32], index: 5, kind: input, shape index: {}]   ;;  %s28910_s6 = inlined_call_operand.vmem [shape: f32[3,8,128], index: 6, kind: input, shape index: {}]   ;;  %s28911_s7 = inlined_call_operand.vmem [shape: f32[32,128], index: 7, kind: input, shape index: {}]   ;;  %s28912_s8 = inlined_call_operand.vmem [shape: f32[8,128], index: 8, kind: input, shape index: {}]   ;;  %s28913_s9 = inlined_call_operand.hbm [shape: f32[16,128], index: 9, kind: output, shape index: {}]  }
   0x1   :  { %v33_v0 = vld [vmem:[%s28905_s1] sm:$0xff]  ;;  %v34_v1 = vld [vmem:[%s28905_s1 + $0x8] sm:$0xff] }
   0x2   :  { %14 = vsyncpa [#allocation3], 0  ;;  %v39_v2 = vsel %vm38_vm0, %v33_v0, 0.0  ;;  %v42_v3 = vsel %vm38_vm0, %v34_v1, 0.0  ;;  %v78_v14 = vld [vmem:[%s28906_s2] sm:$0xff]  ;;  %v79_v15 = vld [vmem:[%s28906_s2 + $0x8] sm:$0xff]  ;;  %v66_v48 = vlaneseq }
   0x3   :  { %40 = vadd.xlane.f32.xlu0 %v39_v2  ;;  %v89_v16 = vand.u32 4294901760, %v78_v14  ;;  %v92_v17 = vand.u32 4294901760, %v79_v15  ;;  %v80_v20 = vld [vmem:[%s28906_s2 + $0x10] sm:$0xff]  ;;  %v81_v21 = vld [vmem:[%s28906_s2 + $0x18] sm:$0xff]  ;;  %v37_v55 = vld [vmem:[%s28910_s6] sm:$0xff]  ;;  %vm622_vm1 = vcmask 64512  }
   0x4   :  { %v95_v24 = vand.u32 4294901760, %v80_v20  ;;  %v98_v25 = vand.u32 4294901760, %v81_v21  ;;  %v26573_v52 = vshrl.u32 %v66_v48, 7  ;;  %s26469_s23 = smov 96   ;;  %s26470_s24 = smov 88   ;;  %vm1133_vm2 = vcmask 130048  }
   0x5   :  { %v179_v18 = vsub.f32 %v78_v14, %v89_v16  ;;  %v186_v19 = vsub.f32 %v79_v15, %v92_v17  ;;  %v26565_v37 = vpack.c.bf16 %v92_v17, %v89_v16  ;;  %s26471_s25 = smov 120   ;;  %s26472_s30 = smov 64   ;;  %vm4868_vm3 = vcmask 195584  }
   0x6   :  { %v193_v28 = vsub.f32 %v80_v20, %v95_v24  ;;  %v200_v29 = vsub.f32 %v81_v21, %v98_v25  ;;  %v26567_v38 = vpack.c.bf16 %v98_v25, %v95_v24  ;;  %v26576_v54 = vsub.s32 0, %v26573_v52  ;;  %s26473_s10 = smov 56   ;;  %s26474_s11 = smov 80  }
   0x7   :  { %43 = vadd.xlane.f32.xlu0 %v42_v3  ;;  %v180_v22 = vand.u32 4294901760, %v179_v18  ;;  %v187_v23 = vand.u32 4294901760, %v186_v19  ;;  %24251 = vmatprep.subr.bf16.mxu1 %v26565_v37  ;;  %v24266_v42 = vpack.c.bf16 %v186_v19, %v179_v18  ;;  %v26582_v56 = vsub.s32 1, %v26573_v52  ;;  %s26475_s12 = smov 112   ;;  %s26476_s13 = smov 48  }
   0x8   :  { %v194_v32 = vand.u32 4294901760, %v193_v28  ;;  %v201_v33 = vand.u32 4294901760, %v200_v29  ;;  %24253 = vmatpush3.bf16.msra.mxu1 %v26565_v37  ;;  %v24270_v43 = vpack.c.bf16 %v200_v29, %v193_v28  ;;  %v69_v57 = vrot.slane %v37_v55, %v26576_v54  ;;  %s26477_s14 = smov 72   ;;  %s26478_s15 = smov 104  }
   0x9   :  { %v181_v26 = vsub.f32 %v179_v18, %v180_v22  ;;  %v188_v27 = vsub.f32 %v186_v19, %v187_v23  ;;  %24255 = vmatprep.subr.bf16.mxu1 %v26567_v38  ;;  %v24282_v44 = vpack.c.bf16 %v187_v23, %v180_v22  ;;  %v75_v60 = vrot.slane %v37_v55, %v26582_v56  ;;  %s26479_s16 = smov 40   ;;  %s26480_s17 = smov 8  }
   0xa   :  { %v195_v35 = vsub.f32 %v193_v28, %v194_v32  ;;  %v202_v36 = vsub.f32 %v200_v29, %v201_v33  ;;  %v24286_v45 = vpack.c.bf16 %v201_v33, %v194_v32  ;;  %s28916_s18 = smov 16   ;;  %s28914_s19 = smov 24  }
   0xb   :  { %v182_v30 = vand.u32 4294901760, %v181_v26  ;;  %v189_v31 = vand.u32 4294901760, %v188_v27  ;;  %s28946_s22 = smov 16   ;;  %s28947_s21 = smov 24  }
   0xc   :  { %v196_v39 = vand.u32 4294901760, %v195_v35  ;;  %v203_v40 = vand.u32 4294901760, %v202_v36  ;;  %24257 = vmatpush3.bf16.msra.mxu1 %v26567_v38 }
   0xd   :  { %v24258_v34 = vpack.c.bf16 %v189_v31, %v182_v30 }
   0xe   :  { %v24262_v41 = vpack.c.bf16 %v203_v40, %v196_v39 }
   0xf   :  { %24259 = vmatprep.subr.bf16.mxu0 %v24258_v34 }
  0x10   :  { %24261 = vmatpush3.bf16.msra.mxu0 %v24258_v34 }
  0x11   :  { %24263 = vmatprep.subr.bf16.mxu0 %v24262_v41 }
  0x14   :  { %24265 = vmatpush3.bf16.msra.mxu0 %v24262_v41 }
  0x15   :  { %24267 = vmatprep.subr.bf16.mxu0 %v24266_v42 }
  0x90   :  { %v41_v4 = vpop.xlane.xlu0 %40 }
  0x91   :  { %v46_v5 = vmul.f32 0.03125, %v41_v4 }
  0x93   :  { %v26543_v6 = vsub.f32 %v33_v0, %v46_v5 }
  0x94   :  { %v44_v7 = vpop.xlane.xlu0 %43 }
  0x95   :  { %v47_v8 = vmul.f32 0.03125, %v44_v7  ;;  %v50_v9 = vmul.f32 %v26543_v6, %v26543_v6 }
  0x97   :  { %v26547_v10 = vsub.f32 %v34_v1, %v47_v8  ;;  %v52_v11 = vsel %vm38_vm0, %v50_v9, 0.0 }
  0x98   :  { %53 = vadd.xlane.f32.xlu1 %v52_v11 }
  0x99   :  { %v51_v12 = vmul.f32 %v26547_v10, %v26547_v10 }
  0x9b   :  { %v55_v13 = vsel %vm38_vm0, %v51_v12, 0.0 }
  0x9c   :  { %56 = vadd.xlane.f32.xlu1 %v55_v13 }
 0x125   :  { %v54_v46 = vpop.xlane.xlu1 %53 }
 0x126   :  { %v58_v47 = vmul.f32 0.03125, %v54_v46 }
 0x128   :  { %v60_v49 = vadd.f32 1e-05, %v58_v47 }
 0x129   :  { %v57_v50 = vpop.xlane.xlu1 %56 }
 0x12a   :  { %26312 = vrsqrt.f32 %v60_v49  ;;  %v59_v51 = vmul.f32 0.03125, %v57_v50 }
 0x12c   :  { %v61_v53 = vadd.f32 1e-05, %v59_v51 }
 0x12e   :  { %26314 = vrsqrt.f32 %v61_v53 }
 0x134   :  { %v26313_v58 = vpop.eup %26312 }
 0x135   :  { %v64_v59 = vmul.f32 %v26313_v58, %v26543_v6 }
 0x137   :  { %v70_v61 = vmul.f32 %v69_v57, %v64_v59 }
 0x138   :  { %v26315_v62 = vpop.eup %26314 }
 0x139   :  { %v65_v63 = vmul.f32 %v26315_v62, %v26547_v10  ;;  %v76_v0 = vadd.f32 %v75_v60, %v70_v61 }
 0x13b   :  { %v83_v1 = vsel %vm38_vm0, %v76_v0, 0  ;;  %v71_v2 = vmul.f32 %v69_v57, %v65_v63 }
 0x13c   :  { %v157_v3 = vand.u32 4294901760, %v83_v1 }
 0x13d   :  { %v77_v4 = vadd.f32 %v75_v60, %v71_v2 }
 0x13e   :  { %21971 = vmatprep.mubr.f32.mxu0 %v157_v3  ;;  %v158_v5 = vsub.f32 %v83_v1, %v157_v3 }
 0x13f   :  { %v86_v7 = vsel %vm38_vm0, %v77_v4, 0 }
 0x140   :  { %v167_v8 = vand.u32 4294901760, %v86_v7  ;;  %v159_v9 = vand.u32 4294901760, %v158_v5 }
 0x142   :  { %21972 = vmatmul.mubr.f32.vlgmr.msra.gmra.mrb[0].mxu0 %v167_v8  ;;  %v160_v6 = vsub.f32 %v158_v5, %v159_v9  ;;  %v168_v11 = vsub.f32 %v86_v7, %v167_v8 }
 0x143   :  { %24269 = vmatpush3.bf16.msra.mxu0 %v24266_v42  ;;  %21982 = vmatprep.mubr.f32.mxu0 %v158_v5 }
 0x144   :  { %v161_v12 = vand.u32 4294901760, %v160_v6  ;;  %24271 = vmatprep.subr.bf16.mxu0 %v24270_v43  ;;  %v169_v10 = vand.u32 4294901760, %v168_v11 }
 0x146   :  { %21960 = vmatprep.mubr.f32.mxu1 %v161_v12  ;;  %v170_v13 = vsub.f32 %v168_v11, %v169_v10 }
 0x147   :  { %24273 = vmatpush3.bf16.msra.mxu0 %v24270_v43 }
 0x148   :  { %v171_v14 = vand.u32 4294901760, %v170_v13  ;;  %24275 = vmatprep.subr.bf16.mxu0 %v26565_v37 }
 0x14a   :  { %21961 = vmatmul.mubr.f32.vlgmr.msra.gmra.mrb[0].mxu1 %v171_v14  ;;  %21983 = vmatmul.mubr.f32.vlgmr.msra.gmra.mrb[0].mxu0 %v168_v11 }
 0x14b   :  { %24277 = vmatpush3.bf16.msra.mxu0 %v26565_v37  ;;  %21993 = vmatprep.mubr.f32.mxu0 %v159_v9 }
 0x14c   :  { %24279 = vmatprep.subr.bf16.mxu0 %v26567_v38 }
 0x14f   :  { %24281 = vmatpush3.bf16.msra.mxu0 %v26567_v38 }
 0x150   :  { %24283 = vmatprep.subr.bf16.mxu0 %v24282_v44 }
 0x152   :  { %21994 = vmatmul.mubr.f32.vlgmr.msra.gmra.mrb[0].mxu0 %v169_v10 }
 0x153   :  { %24285 = vmatpush3.bf16.msra.mxu0 %v24282_v44  ;;  %22004 = vmatprep.mubr.f32.mxu0 %v157_v3 }
 0x154   :  { %24287 = vmatprep.subr.bf16.mxu0 %v24286_v45 }
 0x157   :  { %24289 = vmatpush3.bf16.msra.mxu0 %v24286_v45 }
 0x158   :  { %24291 = vmatprep.subr.bf16.mxu0 %v26565_v37 }
 0x15a   :  { %22005 = vmatmul.mubr.f32.vlgmr.msra.gmra.mrb[0].mxu0 %v167_v8 }
 0x15b   :  { %24293 = vmatpush3.bf16.msra.mxu0 %v26565_v37  ;;  %22015 = vmatprep.mubr.f32.mxu0 %v157_v3 }
 0x15c   :  { %24295 = vmatprep.subr.bf16.mxu0 %v26567_v38 }
 0x15f   :  { %24297 = vmatpush3.bf16.msra.mxu0 %v26567_v38 }
 0x162   :  { %22016 = vmatmul.mubr.f32.vlgmr.msra.gmra.mrb[0].mxu0 %v167_v8 }
 0x21d   :  { %v21962_v15 = vpop.f32.mrb[0].mxu1 }
 0x21e   :  { %v163_v16 = vpop.f32.mrb[1].mxu1 }
 0x235   :  { %v22017_v17 = vpop.f32.mrb[0].mxu0 }
 0x236   :  { %v26598_v18 = vadd.f32 %v22017_v17, %v21962_v15  ;;  %v606_v19 = vpop.f32.mrb[1].mxu0 }
 0x237   :  { %v26600_v20 = vadd.f32 %v606_v19, %v163_v16 }
 0x238   :  { %620 = vrot.lane.b32.xlu1 %v26598_v18, %s26469_s23  ;;  %v625_v27 = vsel %vm622_vm1, %v26598_v18, 0 }
 0x239   :  { %618 = vrot.lane.b32.xlu0 %v26600_v20, %s26469_s23  ;;  %v623_v21 = vsel %vm622_vm1, %v26600_v20, 0  ;;  %v26621_v28 = vand.u32 4294901760, %v625_v27 }
 0x23a   :  { %v26608_v22 = vand.u32 4294901760, %v623_v21 }
 0x23b   :  { %v709_v32 = vsub.f32 %v625_v27, %v26621_v28 }
 0x23c   :  { %1678 = vrot.lane.b32.xlu1 %v26598_v18, %s26470_s24  ;;  %v699_v23 = vsub.f32 %v623_v21, %v26608_v22 }
 0x23d   :  { %1672 = vrot.lane.b32.xlu0 %v26600_v20, %s26471_s25  ;;  %v710_v39 = vand.u32 4294901760, %v709_v32 }
 0x23e   :  { %v700_v24 = vand.u32 4294901760, %v699_v23 }
 0x23f   :  { %v711_v43 = vsub.f32 %v709_v32, %v710_v39 }
 0x240   :  { %1676 = vrot.lane.b32.xlu1 %v26600_v20, %s26470_s24  ;;  %v701_v25 = vsub.f32 %v699_v23, %v700_v24 }
 0x241   :  { %v712_v47 = vand.u32 4294901760, %v711_v43 }
 0x242   :  { %v702_v26 = vand.u32 4294901760, %v701_v25  ;;  %v26644_v25 = vld [vmem:[%s28904_s0] sm:$0xff] }
 0x244   :  { %1674 = vrot.lane.b32.xlu1 %v26598_v18, %s26471_s25  ;;  %22022 = vmatprep.mubr.f32.mxu1 %v702_v26 }
 0x2aa   :  { %v621_v29 = vpop.permute.xlu1 %620 }
 0x2ab   :  { %v629_v30 = vsel %vm622_vm1, %v621_v29, 0  ;;  %v619_v31 = vpop.permute.xlu0 %618 }
 0x2ac   :  { %v635_v33 = vand.u32 4294901760, %v629_v30  ;;  %v627_v34 = vsel %vm622_vm1, %v619_v31, 0 }
 0x2ad   :  { %v632_v35 = vand.u32 4294901760, %v627_v34 }
 0x2ae   :  { %v727_v36 = vsub.f32 %v629_v30, %v635_v33  ;;  %v1679_v50 = vpop.permute.xlu1 %1678 }
 0x2af   :  { %v24298_v37 = vpack.c.bf16 %v635_v33, %v632_v35  ;;  %v720_v38 = vsub.f32 %v627_v34, %v632_v35  ;;  %v1673_v55 = vpop.permute.xlu0 %1672  ;;  %v1686_v58 = vsel %vm622_vm1, %v1679_v50, 0 }
 0x2b0   :  { %v728_v40 = vand.u32 4294901760, %v727_v36  ;;  %v1680_v59 = vsel %vm622_vm1, %v1673_v55, 0  ;;  %v1692_v61 = vand.u32 4294901760, %v1686_v58 }
 0x2b1   :  { %v721_v41 = vand.u32 4294901760, %v720_v38  ;;  %24299 = vmatprep.subr.bf16.mxu1 %v24298_v37  ;;  %v24306_v49 = vpack.c.bf16 %v727_v36, %v720_v38  ;;  %v1755_v62 = vand.u32 4294901760, %v1680_v59 }
 0x2b2   :  { %24301 = vmatpush3.bf16.xpose.msra.mxu1 %v24298_v37  ;;  %v729_v42 = vsub.f32 %v727_v36, %v728_v40  ;;  %v1677_v51 = vpop.permute.xlu1 %1676  ;;  %v1784_v1 = vsub.f32 %v1686_v58, %v1692_v61 }
 0x2b3   :  { %v722_v44 = vsub.f32 %v720_v38, %v721_v41  ;;  %v24314_v53 = vpack.c.bf16 %v728_v40, %v721_v41  ;;  %v1684_v57 = vsel %vm622_vm1, %v1677_v51, 0  ;;  %v1756_v2 = vsub.f32 %v1680_v59, %v1755_v62 }
 0x2b4   :  { %v730_v45 = vand.u32 4294901760, %v729_v42  ;;  %v1689_v60 = vand.u32 4294901760, %v1684_v57  ;;  %v1785_v5 = vand.u32 4294901760, %v1784_v1 }
 0x2b5   :  { %v723_v46 = vand.u32 4294901760, %v722_v44  ;;  %v1757_v8 = vand.u32 4294901760, %v1756_v2 }
 0x2b6   :  { %v1777_v63 = vsub.f32 %v1684_v57, %v1689_v60  ;;  %v1675_v0 = vpop.permute.xlu1 %1674  ;;  %v24346_v9 = vpack.c.bf16 %v1692_v61, %v1689_v60  ;;  %v1786_v12 = vsub.f32 %v1784_v1, %v1785_v5 }
 0x2b7   :  { %v24302_v48 = vpack.c.bf16 %v730_v45, %v723_v46  ;;  %v1682_v3 = vsel %vm622_vm1, %v1675_v0, 0  ;;  %v1758_v10 = vsub.f32 %v1756_v2, %v1757_v8 }
 0x2b8   :  { %v1778_v4 = vand.u32 4294901760, %v1777_v63  ;;  %v1765_v7 = vand.u32 4294901760, %v1682_v3  ;;  %v1787_v15 = vand.u32 4294901760, %v1786_v12 }
 0x2b9   :  { %22023 = vmatmul.mubr.f32.vlgmr.msra.gmra.mrb[2].mxu1 %v712_v47  ;;  %24303 = vmatprep.subr.bf16.mxu1 %v24302_v48  ;;  %v1759_v16 = vand.u32 4294901760, %v1758_v10 }
 0x2ba   :  { %24305 = vmatpush3.bf16.xpose.msra.mxu1 %v24302_v48  ;;  %22029 = vmatprep.mubr.f32.mxu1 %v26608_v22  ;;  %v1779_v6 = vsub.f32 %v1777_v63, %v1778_v4  ;;  %v1766_v11 = vsub.f32 %v1682_v3, %v1765_v7 }
 0x2bb   :  { %24307 = vmatprep.subr.bf16.mxu1 %v24306_v49 }
 0x2bc   :  { %v1780_v13 = vand.u32 4294901760, %v1779_v6  ;;  %v1767_v14 = vand.u32 4294901760, %v1766_v11 }
 0x2be   :  { %v24350_v17 = vpack.c.bf16 %v1787_v15, %v1780_v13  ;;  %v1768_v19 = vsub.f32 %v1766_v11, %v1767_v14 }
 0x2c0   :  { %v1769_v21 = vand.u32 4294901760, %v1768_v19 }
 0x2c1   :  { %22030 = vmatmul.mubr.f32.vlgmr.msra.gmra.mrb[2].mxu1 %v26621_v28 }
 0x2c2   :  { %24309 = vmatpush3.bf16.xpose.msra.mxu1 %v24306_v49  ;;  %22036 = vmatprep.mubr.f32.mxu1 %v699_v23  ;;  %v24354_v23 = vpack.c.bf16 %v1784_v1, %v1777_v63 }
 0x2c3   :  { %24311 = vmatprep.subr.bf16.mxu1 %v24298_v37 }
 0x2c9   :  { %22037 = vmatmul.mubr.f32.vlgmr.msra.gmra.mrb[2].mxu1 %v709_v32 }
 0x2ca   :  { %24313 = vmatpush3.bf16.xpose.msra.mxu1 %v24298_v37  ;;  %22043 = vmatprep.mubr.f32.mxu1 %v700_v24  ;;  %v26639_v24 = vld [vmem:[%s28904_s0 + $0x8] sm:$0xff] }
 0x2cb   :  { %24315 = vmatprep.subr.bf16.mxu1 %v24314_v53 }
 0x2d1   :  { %22044 = vmatmul.mubr.f32.vlgmr.msra.gmra.mrb[2].mxu1 %v710_v39 }
 0x2d2   :  { %24317 = vmatpush3.bf16.xpose.msra.mxu1 %v24314_v53  ;;  %22050 = vmatprep.mubr.f32.mxu1 %v26608_v22 }
 0x2d3   :  { %24319 = vmatprep.subr.bf16.mxu1 %v24298_v37 }
 0x2d9   :  { %22051 = vmatmul.mubr.f32.vlgmr.msra.gmra.mrb[2].mxu1 %v26621_v28 }
 0x2da   :  { %24321 = vmatpush3.bf16.xpose.msra.mxu1 %v24298_v37  ;;  %22057 = vmatprep.mubr.f32.mxu1 %v26608_v22  ;;  %v24362_v22 = vpack.c.bf16 %v1785_v5, %v1778_v4 }
 0x2db   :  { %24347 = vmatprep.subr.bf16.mxu1 %v24346_v9 }
 0x2e1   :  { %22058 = vmatmul.mubr.f32.vlgmr.msra.gmra.mrb[2].mxu1 %v26621_v28 }
 0x2e2   :  { %24349 = vmatpush3.bf16.xpose.msra.mxu1 %v24346_v9  ;;  %22106 = vmatprep.mubr.f32.mxu1 %v1759_v16 }
 0x2e3   :  { %24351 = vmatprep.subr.bf16.mxu1 %v24350_v17 }
 0x2e9   :  { %22107 = vmatmul.mubr.f32.vlgmr.msra.gmra.mrb[4].mxu1 %v1769_v21 }
 0x2ea   :  { %24353 = vmatpush3.bf16.xpose.msra.mxu1 %v24350_v17  ;;  %22113 = vmatprep.mubr.f32.mxu1 %v1755_v62 }
 0x2eb   :  { %24355 = vmatprep.subr.bf16.mxu1 %v24354_v23 }
 0x2f1   :  { %22114 = vmatmul.mubr.f32.vlgmr.msra.gmra.mrb[4].mxu1 %v1765_v7 }
 0x2f2   :  { %24357 = vmatpush3.bf16.xpose.msra.mxu1 %v24354_v23  ;;  %22120 = vmatprep.mubr.f32.mxu1 %v1756_v2 }
 0x2f3   :  { %24359 = vmatprep.subr.bf16.mxu1 %v24346_v9 }
 0x2f9   :  { %22121 = vmatmul.mubr.f32.vlgmr.msra.gmra.mrb[4].mxu1 %v1766_v11 }
 0x2fa   :  { %24361 = vmatpush3.bf16.xpose.msra.mxu1 %v24346_v9  ;;  %22127 = vmatprep.mubr.f32.mxu1 %v1757_v8 }
 0x2fb   :  { %24363 = vmatprep.subr.bf16.mxu1 %v24362_v22 }
 0x301   :  { %22128 = vmatmul.mubr.f32.vlgmr.msra.gmra.mrb[4].mxu1 %v1767_v14 }
 0x302   :  { %24365 = vmatpush3.bf16.xpose.msra.mxu1 %v24362_v22  ;;  %22134 = vmatprep.mubr.f32.mxu1 %v1755_v62 }
 0x303   :  { %24367 = vmatprep.subr.bf16.mxu1 %v24346_v9 }
 0x309   :  { %22135 = vmatmul.mubr.f32.vlgmr.msra.gmra.mrb[4].mxu1 %v1765_v7 }
 0x30a   :  { %24369 = vmatpush3.bf16.xpose.msra.mxu1 %v24346_v9  ;;  %22141 = vmatprep.mubr.f32.mxu1 %v1755_v62 }
 0x311   :  { %22142 = vmatmul.mubr.f32.vlgmr.msra.gmra.mrb[4].mxu1 %v1765_v7 }
 0x3b4   :  { %v22059_v26 = vpop.f32.mrb[2].mxu1 }
 0x3b5   :  { %v25884_v27 = vadd.f32 %v22059_v26, %v26639_v24  ;;  %v1123_v28 = vpop.f32.mrb[3].mxu1 }
 0x3b6   :  { %v25885_v29 = vadd.f32 %v1123_v28, %v26644_v25 }
 0x3b7   :  { %v1137_v30 = vsel %vm1133_vm2, %v25884_v27, -inf }
 0x3b8   :  { %1138 = vmax.xlane.f32.xlu1 %v1137_v30  ;;  %v1134_v31 = vsel %vm1133_vm2, %v25885_v29, -inf }
 0x3b9   :  { %1135 = vmax.xlane.f32.xlu0 %v1134_v31 }
 0x3c9   :  { %1154 = vrot.lane.b32.xlu1 %v26598_v18, %s26472_s30 }
 0x3cf   :  { %1152 = vrot.lane.b32.xlu0 %v26600_v20, %s26472_s30 }
 0x3e4   :  { %v22143_v32 = vpop.f32.mrb[4].mxu1 }
 0x3e5   :  { %v2180_v33 = vpop.f32.mrb[5].mxu1  ;;  %v26655_v34 = vadd.f32 %v22143_v32, %v26639_v24 }
 0x3e6   :  { %v26658_v35 = vadd.f32 %v2180_v33, %v26644_v25 }
 0x3e7   :  { %v2193_v36 = vsel %vm1133_vm2, %v26655_v34, -inf }
 0x3e8   :  { %v2190_v37 = vsel %vm1133_vm2, %v26658_v35, -inf }
 0x3ed   :  { %2194 = vmax.xlane.f32.xlu1 %v2193_v36 }
 0x3ee   :  { %2191 = vmax.xlane.f32.xlu0 %v2190_v37 }
 0x3fe   :  { %2210 = vrot.lane.b32.xlu1 %v26598_v18, %s26473_s10 }
 0x402   :  { %2734 = vrot.lane.b32.xlu1 %v26598_v18, %s26474_s11 }
 0x404   :  { %2208 = vrot.lane.b32.xlu0 %v26600_v20, %s26473_s10 }
 0x406   :  { %2730 = vrot.lane.b32.xlu1 %v26598_v18, %s26475_s12 }
 0x408   :  { %2732 = vrot.lane.b32.xlu0 %v26600_v20, %s26474_s11 }
 0x40c   :  { %2728 = vrot.lane.b32.xlu0 %v26600_v20, %s26475_s12 }
 0x445   :  { %v1139_v38 = vpop.xlane.xlu1 %1138 }
 0x446   :  { %v1141_v39 = vsub.f32 %v25884_v27, %v1139_v38  ;;  %v1136_v40 = vpop.xlane.xlu0 %1135 }
 0x447   :  { %v1140_v41 = vsub.f32 %v25885_v29, %v1136_v40 }
 0x448   :  { %v1144_v42 = vmul.f32 1.442695, %v1141_v39 }
 0x449   :  { %v1142_v43 = vmul.f32 1.442695, %v1140_v41  ;;  %v1155_v44 = vpop.permute.xlu1 %1154 }
 0x44a   :  { %26316 = vpow2.f32 %v1144_v42  ;;  %v1168_v45 = vand.u32 4294901760, %v1155_v44  ;;  %v1153_v46 = vpop.permute.xlu0 %1152 }
 0x44b   :  { %26318 = vpow2.f32 %v1142_v43  ;;  %v1165_v47 = vand.u32 4294901760, %v1153_v46 }
 0x44c   :  { %v1260_v48 = vsub.f32 %v1155_v44, %v1168_v45 }
 0x44d   :  { %v24322_v49 = vpack.c.bf16 %v1168_v45, %v1165_v47  ;;  %v1253_v50 = vsub.f32 %v1153_v46, %v1165_v47 }
 0x44e   :  { %v1261_v51 = vand.u32 4294901760, %v1260_v48 }
 0x44f   :  { %v1254_v53 = vand.u32 4294901760, %v1253_v50  ;;  %24323 = vmatprep.subr.bf16.mxu0 %v24322_v49  ;;  %v24330_v12 = vpack.c.bf16 %v1260_v48, %v1253_v50 }
 0x450   :  { %24325 = vmatpush3.bf16.msra.mxu0 %v24322_v49  ;;  %v1262_v55 = vsub.f32 %v1260_v48, %v1261_v51 }
 0x451   :  { %v1255_v57 = vsub.f32 %v1253_v50, %v1254_v53  ;;  %v24338_v10 = vpack.c.bf16 %v1261_v51, %v1254_v53 }
 0x452   :  { %v1263_v58 = vand.u32 4294901760, %v1262_v55 }
 0x453   :  { %v1256_v59 = vand.u32 4294901760, %v1255_v57 }
 0x454   :  { %v26676_v60 = vpop.eup %26316 }
 0x455   :  { %v26678_v61 = vpop.eup %26318  ;;  %v24326_v62 = vpack.c.bf16 %v1263_v58, %v1256_v59  ;;  %v1162_v63 = vsel %vm1133_vm2, %v26676_v60, 0 }
 0x456   :  { %v1159_v0 = vsel %vm1133_vm2, %v26678_v61, 0  ;;  %v1241_v1 = vand.u32 4294901760, %v1162_v63 }
 0x457   :  { %24327 = vmatprep.subr.bf16.mxu0 %v24326_v62  ;;  %v1231_v2 = vand.u32 4294901760, %v1159_v0 }
 0x458   :  { %v1242_v3 = vsub.f32 %v1162_v63, %v1241_v1 }
 0x459   :  { %v1232_v4 = vsub.f32 %v1159_v0, %v1231_v2 }
 0x45a   :  { %v1243_v5 = vand.u32 4294901760, %v1242_v3 }
 0x45b   :  { %v1233_v7 = vand.u32 4294901760, %v1232_v4 }
 0x45c   :  { %v1244_v8 = vsub.f32 %v1242_v3, %v1243_v5 }
 0x45d   :  { %v1234_v9 = vsub.f32 %v1232_v4, %v1233_v7 }
 0x45e   :  { %v1245_v11 = vand.u32 4294901760, %v1244_v8 }
 0x45f   :  { %v1235_v6 = vand.u32 4294901760, %v1234_v9 }
 0x461   :  { %22064 = vmatprep.mubr.f32.mxu0 %v1235_v6 }
 0x462   :  { %22065 = vmatmul.mubr.f32.vlgmr.msra.gmra.mrb[2].mxu0 %v1245_v11 }
 0x463   :  { %24329 = vmatpush3.bf16.msra.mxu0 %v24326_v62  ;;  %22071 = vmatprep.mubr.f32.mxu0 %v1231_v2 }
 0x464   :  { %24331 = vmatprep.subr.bf16.mxu0 %v24330_v12 }
 0x46a   :  { %22072 = vmatmul.mubr.f32.vlgmr.msra.gmra.mrb[2].mxu0 %v1241_v1 }
 0x46b   :  { %24333 = vmatpush3.bf16.msra.mxu0 %v24330_v12  ;;  %22078 = vmatprep.mubr.f32.mxu0 %v1232_v4 }
 0x46c   :  { %24335 = vmatprep.subr.bf16.mxu0 %v24322_v49 }
 0x472   :  { %22079 = vmatmul.mubr.f32.vlgmr.msra.gmra.mrb[2].mxu0 %v1242_v3 }
 0x473   :  { %24337 = vmatpush3.bf16.msra.mxu0 %v24322_v49  ;;  %22085 = vmatprep.mubr.f32.mxu0 %v1233_v7 }
 0x474   :  { %24339 = vmatprep.subr.bf16.mxu0 %v24338_v10 }
 0x47a   :  { %v2195_v13 = vpop.xlane.xlu1 %2194  ;;  %22086 = vmatmul.mubr.f32.vlgmr.msra.gmra.mrb[2].mxu0 %v1243_v5 }
 0x47b   :  { %v2197_v14 = vsub.f32 %v26655_v34, %v2195_v13  ;;  %24341 = vmatpush3.bf16.msra.mxu0 %v24338_v10  ;;  %22092 = vmatprep.mubr.f32.mxu0 %v1231_v2  ;;  %v2192_v15 = vpop.xlane.xlu0 %2191 }
 0x47c   :  { %24343 = vmatprep.subr.bf16.mxu0 %v24322_v49  ;;  %v2196_v16 = vsub.f32 %v26658_v35, %v2192_v15 }
 0x47d   :  { %v2200_v17 = vmul.f32 1.442695, %v2197_v14 }
 0x47e   :  { %v2198_v19 = vmul.f32 1.442695, %v2196_v16  ;;  %v2211_v21 = vpop.permute.xlu1 %2210 }
 0x47f   :  { %26320 = vpow2.f32 %v2200_v17  ;;  %v2224_v23 = vand.u32 4294901760, %v2211_v21  ;;  %v2209_v22 = vpop.permute.xlu0 %2208 }
 0x480   :  { %26322 = vpow2.f32 %v2198_v19  ;;  %v2221_v26 = vand.u32 4294901760, %v2209_v22 }
 0x481   :  { %v2316_v27 = vsub.f32 %v2211_v21, %v2224_v23 }
 0x482   :  { %v26686_v28 = vpack.c.bf16 %v2224_v23, %v2221_v26  ;;  %v2309_v29 = vsub.f32 %v2209_v22, %v2221_v26  ;;  %22093 = vmatmul.mubr.f32.vlgmr.msra.gmra.mrb[2].mxu0 %v1241_v1  ;;  %v2735_v55 = vpop.permute.xlu1 %2734 }
 0x483   :  { %v2317_v30 = vand.u32 4294901760, %v2316_v27  ;;  %24345 = vmatpush3.bf16.msra.mxu0 %v24322_v49  ;;  %22099 = vmatprep.mubr.f32.mxu0 %v1231_v2  ;;  %v2733_v53 = vpop.permute.xlu0 %2732  ;;  %v2742_v59 = vsel %vm622_vm1, %v2735_v55, 0 }
 0x484   :  { %v2310_v31 = vand.u32 4294901760, %v2309_v29  ;;  %24371 = vmatprep.subr.bf16.mxu0 %v26686_v28  ;;  %v24378_v51 = vpack.c.bf16 %v2316_v27, %v2309_v29  ;;  %v2740_v62 = vsel %vm622_vm1, %v2733_v53, 0  ;;  %v2748_v0 = vand.u32 4294901760, %v2742_v59 }
 0x485   :  { %v2318_v32 = vsub.f32 %v2316_v27, %v2317_v30 }
 0x486   :  { %v2311_v33 = vsub.f32 %v2309_v29, %v2310_v31  ;;  %v24386_v57 = vpack.c.bf16 %v2317_v30, %v2310_v31  ;;  %v2840_v3 = vsub.f32 %v2742_v59, %v2748_v0  ;;  %v2731_v5 = vpop.permute.xlu1 %2730 }
 0x487   :  { %v2319_v34 = vand.u32 4294901760, %v2318_v32  ;;  %v2729_v58 = vpop.permute.xlu0 %2728  ;;  %v2738_v8 = vsel %vm622_vm1, %v2731_v5, 0 }
 0x488   :  { %v2312_v35 = vand.u32 4294901760, %v2311_v33  ;;  %v2736_v63 = vsel %vm622_vm1, %v2729_v58, 0  ;;  %v2841_v9 = vand.u32 4294901760, %v2840_v3  ;;  %v2821_v11 = vand.u32 4294901760, %v2738_v8 }
 0x489   :  { %v26689_v36 = vpop.eup %26320  ;;  %v2811_v2 = vand.u32 4294901760, %v2736_v63 }
 0x48a   :  { %v26691_v37 = vpop.eup %26322  ;;  %22100 = vmatmul.mubr.f32.vlgmr.msra.gmra.mrb[2].mxu0 %v1241_v1  ;;  %v24374_v38 = vpack.c.bf16 %v2319_v34, %v2312_v35  ;;  %v2218_v39 = vsel %vm1133_vm2, %v26689_v36, 0  ;;  %v2745_v1 = vand.u32 4294901760, %v2740_v62  ;;  %v2842_v14 = vsub.f32 %v2840_v3, %v2841_v9 }
 0x48b   :  { %24373 = vmatpush3.bf16.msra.mxu0 %v26686_v28  ;;  %v2215_v40 = vsel %vm1133_vm2, %v26691_v37, 0  ;;  %v2297_v41 = vand.u32 4294901760, %v2218_v39  ;;  %v2812_v7 = vsub.f32 %v2736_v63, %v2811_v2  ;;  %v2822_v15 = vsub.f32 %v2738_v8, %v2821_v11 }
 0x48c   :  { %24375 = vmatprep.subr.bf16.mxu0 %v24374_v38  ;;  %v2287_v42 = vand.u32 4294901760, %v2215_v40  ;;  %v2833_v4 = vsub.f32 %v2740_v62, %v2745_v1  ;;  %v24394_v10 = vpack.c.bf16 %v2748_v0, %v2745_v1  ;;  %v2843_v19 = vand.u32 4294901760, %v2842_v14 }
 0x48d   :  { %v2298_v43 = vsub.f32 %v2218_v39, %v2297_v41  ;;  %v2813_v12 = vand.u32 4294901760, %v2812_v7  ;;  %v2823_v21 = vand.u32 4294901760, %v2822_v15 }
 0x48e   :  { %v2288_v44 = vsub.f32 %v2215_v40, %v2287_v42  ;;  %v2834_v6 = vand.u32 4294901760, %v2833_v4  ;;  %v24402_v29 = vpack.c.bf16 %v2840_v3, %v2833_v4 }
 0x48f   :  { %v2299_v45 = vand.u32 4294901760, %v2298_v43  ;;  %v2814_v16 = vsub.f32 %v2812_v7, %v2813_v12  ;;  %v2824_v26 = vsub.f32 %v2822_v15, %v2823_v21 }
 0x490   :  { %v2289_v46 = vand.u32 4294901760, %v2288_v44  ;;  %v2835_v13 = vsub.f32 %v2833_v4, %v2834_v6 }
 0x491   :  { %v2300_v47 = vsub.f32 %v2298_v43, %v2299_v45  ;;  %v2815_v23 = vand.u32 4294901760, %v2814_v16  ;;  %v2825_v27 = vand.u32 4294901760, %v2824_v26 }
 0x492   :  { %v2290_v48 = vsub.f32 %v2288_v44, %v2289_v46  ;;  %v2836_v17 = vand.u32 4294901760, %v2835_v13 }
 0x493   :  { %v2301_v50 = vand.u32 4294901760, %v2300_v47 }
 0x494   :  { %v2291_v49 = vand.u32 4294901760, %v2290_v48  ;;  %v24398_v22 = vpack.c.bf16 %v2843_v19, %v2836_v17 }
 0x496   :  { %22148 = vmatprep.mubr.f32.mxu0 %v2291_v49 }
 0x497   :  { %22149 = vmatmul.mubr.f32.vlgmr.msra.gmra.mrb[4].mxu0 %v2301_v50 }
 0x498   :  { %24377 = vmatpush3.bf16.msra.mxu0 %v24374_v38  ;;  %22155 = vmatprep.mubr.f32.mxu0 %v2287_v42 }
 0x499   :  { %24379 = vmatprep.subr.bf16.mxu0 %v24378_v51 }
 0x49f   :  { %22156 = vmatmul.mubr.f32.vlgmr.msra.gmra.mrb[4].mxu0 %v2297_v41 }
 0x4a0   :  { %24381 = vmatpush3.bf16.msra.mxu0 %v24378_v51  ;;  %22162 = vmatprep.mubr.f32.mxu0 %v2288_v44 }
 0x4a1   :  { %24383 = vmatprep.subr.bf16.mxu0 %v26686_v28 }
 0x4a7   :  { %22163 = vmatmul.mubr.f32.vlgmr.msra.gmra.mrb[4].mxu0 %v2298_v43 }
 0x4a8   :  { %24385 = vmatpush3.bf16.msra.mxu0 %v26686_v28  ;;  %22169 = vmatprep.mubr.f32.mxu0 %v2289_v46 }
 0x4a9   :  { %24387 = vmatprep.subr.bf16.mxu0 %v24386_v57 }
 0x4af   :  { %22170 = vmatmul.mubr.f32.vlgmr.msra.gmra.mrb[4].mxu0 %v2299_v45 }
 0x4b0   :  { %24389 = vmatpush3.bf16.msra.mxu0 %v24386_v57  ;;  %22176 = vmatprep.mubr.f32.mxu0 %v2287_v42 }
 0x4b1   :  { %24391 = vmatprep.subr.bf16.mxu0 %v26686_v28 }
 0x4b7   :  { %22177 = vmatmul.mubr.f32.vlgmr.msra.gmra.mrb[4].mxu0 %v2297_v41 }
 0x4b8   :  { %24393 = vmatpush3.bf16.msra.mxu0 %v26686_v28  ;;  %22183 = vmatprep.mubr.f32.mxu0 %v2287_v42  ;;  %v24410_v28 = vpack.c.bf16 %v2841_v9, %v2834_v6 }
 0x4b9   :  { %24395 = vmatprep.subr.bf16.mxu0 %v24394_v10 }
 0x4bf   :  { %22184 = vmatmul.mubr.f32.vlgmr.msra.gmra.mrb[4].mxu0 %v2297_v41 }
 0x4c0   :  { %22190 = vmatprep.mubr.f32.mxu0 %v2815_v23 }
 0x4c1   :  { %24397 = vmatpush3.bf16.xpose.msra.mxu0 %v24394_v10 }
 0x4c2   :  { %24399 = vmatprep.subr.bf16.mxu0 %v24398_v22 }
 0x4c8   :  { %22191 = vmatmul.mubr.f32.vlgmr.msra.gmra.mrb[6].mxu0 %v2825_v27 }
 0x4c9   :  { %24401 = vmatpush3.bf16.xpose.msra.mxu0 %v24398_v22  ;;  %22197 = vmatprep.mubr.f32.mxu0 %v2811_v2 }
 0x4ca   :  { %24403 = vmatprep.subr.bf16.mxu0 %v24402_v29 }
 0x4d0   :  { %22198 = vmatmul.mubr.f32.vlgmr.msra.gmra.mrb[6].mxu0 %v2821_v11 }
 0x4d1   :  { %24405 = vmatpush3.bf16.xpose.msra.mxu0 %v24402_v29  ;;  %22204 = vmatprep.mubr.f32.mxu0 %v2812_v7 }
 0x4d2   :  { %24407 = vmatprep.subr.bf16.mxu0 %v24394_v10 }
 0x4d8   :  { %22205 = vmatmul.mubr.f32.vlgmr.msra.gmra.mrb[6].mxu0 %v2822_v15 }
 0x4d9   :  { %24409 = vmatpush3.bf16.xpose.msra.mxu0 %v24394_v10  ;;  %22211 = vmatprep.mubr.f32.mxu0 %v2813_v12 }
 0x4da   :  { %24411 = vmatprep.subr.bf16.mxu0 %v24410_v28 }
 0x4e0   :  { %22212 = vmatmul.mubr.f32.vlgmr.msra.gmra.mrb[6].mxu0 %v2823_v21 }
 0x4e1   :  { %24413 = vmatpush3.bf16.xpose.msra.mxu0 %v24410_v28  ;;  %22218 = vmatprep.mubr.f32.mxu0 %v2811_v2 }
 0x4e2   :  { %24415 = vmatprep.subr.bf16.mxu0 %v24394_v10 }
 0x4e8   :  { %22219 = vmatmul.mubr.f32.vlgmr.msra.gmra.mrb[6].mxu0 %v2821_v11 }
 0x4e9   :  { %24417 = vmatpush3.bf16.xpose.msra.mxu0 %v24394_v10  ;;  %22225 = vmatprep.mubr.f32.mxu0 %v2811_v2 }
 0x4f0   :  { %22226 = vmatmul.mubr.f32.vlgmr.msra.gmra.mrb[6].mxu0 %v2821_v11 }
 0x55d   :  { %v26706_v30 = vpop.f32.mrb[2].mxu0 }
 0x55e   :  { %v26708_v31 = vpop.f32.mrb[3].mxu0 }
 0x592   :  { %v26710_v32 = vpop.f32.mrb[4].mxu0 }
 0x593   :  { %v26712_v33 = vpop.f32.mrb[5].mxu0 }
 0x5c3   :  { %v22227_v34 = vpop.f32.mrb[6].mxu0 }
 0x5c4   :  { %v25888_v35 = vadd.f32 %v22227_v34, %v26639_v24  ;;  %v3236_v38 = vpop.f32.mrb[7].mxu0 }
 0x5c5   :  { %v25889_v39 = vadd.f32 %v3236_v38, %v26644_v25 }
 0x5c6   :  { %v3249_v40 = vsel %vm1133_vm2, %v25888_v35, -inf }
 0x5c7   :  { %3250 = vmax.xlane.f32.xlu1 %v3249_v40  ;;  %v3246_v41 = vsel %vm1133_vm2, %v25889_v39, -inf }
 0x5c8   :  { %3247 = vmax.xlane.f32.xlu0 %v3246_v41 }
 0x5d8   :  { %3266 = vrot.lane.b32.xlu1 %v26598_v18, %s26476_s13 }
 0x5dc   :  { %3790 = vrot.lane.b32.xlu1 %v26598_v18, %s26477_s14 }
 0x5de   :  { %3264 = vrot.lane.b32.xlu0 %v26600_v20, %s26476_s13 }
 0x5e0   :  { %3786 = vrot.lane.b32.xlu1 %v26598_v18, %s26478_s15 }
 0x5e2   :  { %3788 = vrot.lane.b32.xlu0 %v26600_v20, %s26477_s14 }
 0x5e6   :  { %3784 = vrot.lane.b32.xlu0 %v26600_v20, %s26478_s15 }
 0x654   :  { %v3251_v42 = vpop.xlane.xlu1 %3250 }
 0x655   :  { %v3253_v43 = vsub.f32 %v25888_v35, %v3251_v42  ;;  %v3248_v44 = vpop.xlane.xlu0 %3247 }
 0x656   :  { %v3252_v45 = vsub.f32 %v25889_v39, %v3248_v44 }
 0x657   :  { %v3256_v46 = vmul.f32 1.442695, %v3253_v43 }
 0x658   :  { %v3254_v47 = vmul.f32 1.442695, %v3252_v45  ;;  %v3267_v48 = vpop.permute.xlu1 %3266 }
 0x659   :  { %26324 = vpow2.f32 %v3256_v46  ;;  %v3280_v49 = vand.u32 4294901760, %v3267_v48  ;;  %v3265_v50 = vpop.permute.xlu0 %3264 }
 0x65a   :  { %26326 = vpow2.f32 %v3254_v47  ;;  %v3277_v51 = vand.u32 4294901760, %v3265_v50 }
 0x65b   :  { %v3372_v53 = vsub.f32 %v3267_v48, %v3280_v49 }
 0x65c   :  { %v26730_v55 = vpack.c.bf16 %v3280_v49, %v3277_v51  ;;  %v3365_v57 = vsub.f32 %v3265_v50, %v3277_v51  ;;  %v3791_v21 = vpop.permute.xlu1 %3790 }
 0x65d   :  { %v3373_v58 = vand.u32 4294901760, %v3372_v53  ;;  %v3789_v19 = vpop.permute.xlu0 %3788  ;;  %v3798_v26 = vsel %vm622_vm1, %v3791_v21, 0 }
 0x65e   :  { %v3366_v59 = vand.u32 4294901760, %v3365_v57  ;;  %24419 = vmatprep.subr.bf16.mxu1 %v26730_v55  ;;  %v24426_v17 = vpack.c.bf16 %v3372_v53, %v3365_v57  ;;  %v3796_v27 = vsel %vm622_vm1, %v3789_v19, 0  ;;  %v3804_v28 = vand.u32 4294901760, %v3798_v26 }
 0x65f   :  { %24421 = vmatpush3.bf16.msra.mxu1 %v26730_v55  ;;  %v3374_v62 = vsub.f32 %v3372_v53, %v3373_v58  ;;  %v3801_v34 = vand.u32 4294901760, %v3796_v27 }
 0x660   :  { %v3367_v63 = vsub.f32 %v3365_v57, %v3366_v59  ;;  %v24434_v23 = vpack.c.bf16 %v3373_v58, %v3366_v59  ;;  %v3896_v38 = vsub.f32 %v3798_v26, %v3804_v28  ;;  %v3787_v40 = vpop.permute.xlu1 %3786 }
 0x661   :  { %v3375_v0 = vand.u32 4294901760, %v3374_v62  ;;  %v3785_v22 = vpop.permute.xlu0 %3784  ;;  %v3889_v39 = vsub.f32 %v3796_v27, %v3801_v34  ;;  %v3794_v42 = vsel %vm622_vm1, %v3787_v40, 0  ;;  %v24442_v47 = vpack.c.bf16 %v3804_v28, %v3801_v34 }
 0x662   :  { %v3368_v1 = vand.u32 4294901760, %v3367_v63  ;;  %v3792_v29 = vsel %vm622_vm1, %v3785_v22, 0  ;;  %v3897_v43 = vand.u32 4294901760, %v3896_v38  ;;  %v3877_v45 = vand.u32 4294901760, %v3794_v42 }
 0x663   :  { %v26734_v2 = vpop.eup %26324  ;;  %v3867_v35 = vand.u32 4294901760, %v3792_v29  ;;  %v3890_v44 = vand.u32 4294901760, %v3889_v39 }
 0x664   :  { %v26736_v3 = vpop.eup %26326  ;;  %v24422_v4 = vpack.c.bf16 %v3375_v0, %v3368_v1  ;;  %v3274_v5 = vsel %vm1133_vm2, %v26734_v2, 0  ;;  %v3898_v49 = vsub.f32 %v3896_v38, %v3897_v43  ;;  %v3878_v50 = vsub.f32 %v3794_v42, %v3877_v45 }
 0x665   :  { %v3271_v7 = vsel %vm1133_vm2, %v26736_v3, 0  ;;  %v3353_v8 = vand.u32 4294901760, %v3274_v5  ;;  %v3868_v41 = vsub.f32 %v3792_v29, %v3867_v35  ;;  %v3891_v48 = vsub.f32 %v3889_v39, %v3890_v44 }
 0x666   :  { %24423 = vmatprep.subr.bf16.mxu1 %v24422_v4  ;;  %v3343_v9 = vand.u32 4294901760, %v3271_v7  ;;  %v3899_v57 = vand.u32 4294901760, %v3898_v49  ;;  %v3879_v58 = vand.u32 4294901760, %v3878_v50  ;;  %v24450_v1 = vpack.c.bf16 %v3896_v38, %v3889_v39 }
 0x667   :  { %v3354_v6 = vsub.f32 %v3274_v5, %v3353_v8  ;;  %v3869_v46 = vand.u32 4294901760, %v3868_v41  ;;  %v3892_v53 = vand.u32 4294901760, %v3891_v48  ;;  %v1146_v49 = vsel %vm1133_vm2, %v26678_v61, 0.0 }
 0x668   :  { %v3344_v11 = vsub.f32 %v3271_v7, %v3343_v9  ;;  %v3880_v63 = vsub.f32 %v3878_v50, %v3879_v58 }
 0x669   :  { %v3355_v12 = vand.u32 4294901760, %v3354_v6  ;;  %v3870_v51 = vsub.f32 %v3868_v41, %v3869_v46  ;;  %v24446_v62 = vpack.c.bf16 %v3899_v57, %v3892_v53 }
 0x66a   :  { %v3345_v10 = vand.u32 4294901760, %v3344_v11  ;;  %v3881_v0 = vand.u32 4294901760, %v3880_v63 }
 0x66b   :  { %v3356_v13 = vsub.f32 %v3354_v6, %v3355_v12  ;;  %v3871_v59 = vand.u32 4294901760, %v3870_v51 }
 0x66c   :  { %v3346_v14 = vsub.f32 %v3344_v11, %v3345_v10 }
 0x66d   :  { %v3357_v16 = vand.u32 4294901760, %v3356_v13  ;;  %v3261_v13 = vsel %vm1133_vm2, %v26734_v2, 0.0 }
 0x66e   :  { %v3347_v15 = vand.u32 4294901760, %v3346_v14 }
 0x670   :  { %22232 = vmatprep.mubr.f32.mxu1 %v3347_v15 }
 0x671   :  { %22233 = vmatmul.mubr.f32.vlgmr.msra.gmra.mrb[6].mxu1 %v3357_v16 }
 0x672   :  { %24425 = vmatpush3.bf16.msra.mxu1 %v24422_v4  ;;  %22239 = vmatprep.mubr.f32.mxu1 %v3343_v9 }
 0x673   :  { %24427 = vmatprep.subr.bf16.mxu1 %v24426_v17 }
 0x679   :  { %22240 = vmatmul.mubr.f32.vlgmr.msra.gmra.mrb[6].mxu1 %v3353_v8 }
 0x67a   :  { %24429 = vmatpush3.bf16.msra.mxu1 %v24426_v17  ;;  %22246 = vmatprep.mubr.f32.mxu1 %v3344_v11 }
 0x67b   :  { %24431 = vmatprep.subr.bf16.mxu1 %v26730_v55 }
 0x681   :  { %22247 = vmatmul.mubr.f32.vlgmr.msra.gmra.mrb[6].mxu1 %v3354_v6 }
 0x682   :  { %24433 = vmatpush3.bf16.msra.mxu1 %v26730_v55  ;;  %22253 = vmatprep.mubr.f32.mxu1 %v3345_v10  ;;  %v2205_v10 = vsel %vm1133_vm2, %v26689_v36, 0.0 }
 0x683   :  { %24435 = vmatprep.subr.bf16.mxu1 %v24434_v23 }
 0x689   :  { %22254 = vmatmul.mubr.f32.vlgmr.msra.gmra.mrb[6].mxu1 %v3355_v12 }
 0x68a   :  { %24437 = vmatpush3.bf16.msra.mxu1 %v24434_v23  ;;  %22260 = vmatprep.mubr.f32.mxu1 %v3343_v9 }
 0x68b   :  { %24439 = vmatprep.subr.bf16.mxu1 %v26730_v55 }
 0x691   :  { %22261 = vmatmul.mubr.f32.vlgmr.msra.gmra.mrb[6].mxu1 %v3353_v8 }
 0x692   :  { %24441 = vmatpush3.bf16.msra.mxu1 %v26730_v55  ;;  %22267 = vmatprep.mubr.f32.mxu1 %v3343_v9  ;;  %v24458_v55 = vpack.c.bf16 %v3897_v43, %v3890_v44 }
 0x693   :  { %24443 = vmatprep.subr.bf16.mxu1 %v24442_v47 }
 0x699   :  { %22268 = vmatmul.mubr.f32.vlgmr.msra.gmra.mrb[6].mxu1 %v3353_v8 }
 0x69a   :  { %22274 = vmatprep.mubr.f32.mxu1 %v3871_v59 }
 0x69b   :  { %24445 = vmatpush3.bf16.xpose.msra.mxu1 %v24442_v47 }
 0x69c   :  { %24447 = vmatprep.subr.bf16.mxu1 %v24446_v62 }
 0x6a2   :  { %22275 = vmatmul.mubr.f32.vlgmr.msra.gmra.mrb[8].mxu1 %v3881_v0 }
 0x6a3   :  { %24449 = vmatpush3.bf16.xpose.msra.mxu1 %v24446_v62  ;;  %22281 = vmatprep.mubr.f32.mxu1 %v3867_v35 }
 0x6a4   :  { %24451 = vmatprep.subr.bf16.mxu1 %v24450_v1 }
 0x6aa   :  { %22282 = vmatmul.mubr.f32.vlgmr.msra.gmra.mrb[8].mxu1 %v3877_v45 }
 0x6ab   :  { %24453 = vmatpush3.bf16.xpose.msra.mxu1 %v24450_v1  ;;  %22288 = vmatprep.mubr.f32.mxu1 %v3868_v41 }
 0x6ac   :  { %24455 = vmatprep.subr.bf16.mxu1 %v24442_v47 }
 0x6b2   :  { %22289 = vmatmul.mubr.f32.vlgmr.msra.gmra.mrb[8].mxu1 %v3878_v50 }
 0x6b3   :  { %24457 = vmatpush3.bf16.xpose.msra.mxu1 %v24442_v47  ;;  %22295 = vmatprep.mubr.f32.mxu1 %v3869_v46 }
 0x6b4   :  { %24459 = vmatprep.subr.bf16.mxu1 %v24458_v55 }
 0x6ba   :  { %22296 = vmatmul.mubr.f32.vlgmr.msra.gmra.mrb[8].mxu1 %v3879_v58 }
 0x6bb   :  { %24461 = vmatpush3.bf16.xpose.msra.mxu1 %v24458_v55  ;;  %22302 = vmatprep.mubr.f32.mxu1 %v3867_v35 }
 0x6bc   :  { %24463 = vmatprep.subr.bf16.mxu1 %v24442_v47 }
 0x6c2   :  { %22303 = vmatmul.mubr.f32.vlgmr.msra.gmra.mrb[8].mxu1 %v3877_v45 }
 0x6c3   :  { %24465 = vmatpush3.bf16.xpose.msra.mxu1 %v24442_v47  ;;  %22309 = vmatprep.mubr.f32.mxu1 %v3867_v35  ;;  %v1149_v47 = vsel %vm1133_vm2, %v26676_v60, 0.0 }
 0x6ca   :  { %22310 = vmatmul.mubr.f32.vlgmr.msra.gmra.mrb[8].mxu1 %v3877_v45 }
 0x76c   :  { %v26750_v4 = vpop.f32.mrb[6].mxu1 }
 0x76d   :  { %v26752_v5 = vpop.f32.mrb[7].mxu1 }
 0x79d   :  { %v22311_v7 = vpop.f32.mrb[8].mxu1 }
 0x79e   :  { %v25890_v8 = vadd.f32 %v22311_v7, %v26639_v24  ;;  %v4292_v9 = vpop.f32.mrb[9].mxu1  ;;  %v2202_v24 = vsel %vm1133_vm2, %v26691_v37, 0.0 }
 0x79f   :  { %v25891_v6 = vadd.f32 %v4292_v9, %v26644_v25  ;;  %v3258_v25 = vsel %vm1133_vm2, %v26736_v3, 0.0 }
 0x7a0   :  { %v4305_v11 = vsel %vm1133_vm2, %v25890_v8, -inf }
 0x7a1   :  { %4306 = vmax.xlane.f32.xlu1 %v4305_v11  ;;  %v4302_v12 = vsel %vm1133_vm2, %v25891_v6, -inf }
 0x7a2   :  { %4303 = vmax.xlane.f32.xlu0 %v4302_v12 }
 0x7b2   :  { %4322 = vrot.lane.b32.xlu1 %v26598_v18, %s26479_s16 }
 0x7b8   :  { %4320 = vrot.lane.b32.xlu0 %v26600_v20, %s26479_s16 }
 0x7d6   :  { %2206 = vadd.xlane.f32.xlu1 %v2205_v10 }
 0x7d7   :  { %2203 = vadd.xlane.f32.xlu0 %v2202_v24 }
 0x7db   :  { %3259 = vadd.xlane.f32.xlu0 %v3258_v25 }
 0x7df   :  { %3262 = vadd.xlane.f32.xlu0 %v3261_v13 }
 0x82e   :  { %v4307_v18 = vpop.xlane.xlu1 %4306 }
 0x82f   :  { %v4309_v14 = vsub.f32 %v25890_v8, %v4307_v18  ;;  %v4304_v15 = vpop.xlane.xlu0 %4303  ;;  %v4874_v18 = vld [vmem:[%s28907_s3 + $0x18] sm:$0xff] }
 0x830   :  { %v4308_v20 = vsub.f32 %v25891_v6, %v4304_v15 }
 0x831   :  { %v4312_v16 = vmul.f32 1.442695, %v4309_v14 }
 0x832   :  { %v4310_v17 = vmul.f32 1.442695, %v4308_v20  ;;  %v4323_v36 = vpop.permute.xlu1 %4322  ;;  %v4895_v20 = vand.u32 4294901760, %v4874_v18 }
 0x833   :  { %26328 = vpow2.f32 %v4312_v16  ;;  %v4336_v19 = vand.u32 4294901760, %v4323_v36  ;;  %v4321_v21 = vpop.permute.xlu0 %4320 }
 0x834   :  { %26330 = vpow2.f32 %v4310_v17  ;;  %v4333_v37 = vand.u32 4294901760, %v4321_v21 }
 0x835   :  { %v4428_v23 = vsub.f32 %v4323_v36, %v4336_v19 }
 0x836   :  { %v24466_v22 = vpack.c.bf16 %v4336_v19, %v4333_v37  ;;  %v4421_v3 = vsub.f32 %v4321_v21, %v4333_v37 }
 0x837   :  { %v4429_v26 = vand.u32 4294901760, %v4428_v23 }
 0x838   :  { %v4422_v27 = vand.u32 4294901760, %v4421_v3  ;;  %24467 = vmatprep.subr.bf16.mxu0 %v24466_v22  ;;  %v24474_v62 = vpack.c.bf16 %v4428_v23, %v4421_v3 }
 0x839   :  { %24469 = vmatpush3.bf16.msra.mxu0 %v24466_v22  ;;  %v4430_v2 = vsub.f32 %v4428_v23, %v4429_v26 }
 0x83a   :  { %v4423_v29 = vsub.f32 %v4421_v3, %v4422_v27  ;;  %v24482_v60 = vpack.c.bf16 %v4429_v26, %v4422_v27 }
 0x83b   :  { %v4431_v28 = vand.u32 4294901760, %v4430_v2 }
 0x83c   :  { %v4424_v34 = vand.u32 4294901760, %v4423_v29  ;;  %v4997_v29 = vsub.f32 %v4874_v18, %v4895_v20 }
 0x83d   :  { %v26329_v35 = vpop.eup %26328 }
 0x83e   :  { %v26331_v38 = vpop.eup %26330  ;;  %v4317_v39 = vsel %vm1133_vm2, %v26329_v35, 0.0  ;;  %v24470_v40 = vpack.c.bf16 %v4431_v28, %v4424_v34  ;;  %v4330_v41 = vsel %vm1133_vm2, %v26329_v35, 0 }
 0x83f   :  { %4318 = vadd.xlane.f32.xlu1 %v4317_v39  ;;  %v4314_v42 = vsel %vm1133_vm2, %v26331_v38, 0.0  ;;  %v4327_v43 = vsel %vm1133_vm2, %v26331_v38, 0  ;;  %v4409_v44 = vand.u32 4294901760, %v4330_v41  ;;  %v4998_v39 = vand.u32 4294901760, %v4997_v29 }
 0x840   :  { %4315 = vadd.xlane.f32.xlu0 %v4314_v42  ;;  %24471 = vmatprep.subr.bf16.mxu0 %v24470_v40  ;;  %v4399_v45 = vand.u32 4294901760, %v4327_v43 }
 0x841   :  { %v4410_v46 = vsub.f32 %v4330_v41, %v4409_v44  ;;  %v4999_v42 = vsub.f32 %v4997_v29, %v4998_v39 }
 0x842   :  { %v4400_v48 = vsub.f32 %v4327_v43, %v4399_v45 }
 0x843   :  { %1150 = vadd.xlane.f32.xlu1 %v1149_v47  ;;  %v4411_v50 = vand.u32 4294901760, %v4410_v46 }
 0x844   :  { %1147 = vadd.xlane.f32.xlu0 %v1146_v49  ;;  %v4401_v51 = vand.u32 4294901760, %v4400_v48 }
 0x845   :  { %v4412_v53 = vsub.f32 %v4410_v46, %v4411_v50 }
 0x846   :  { %v4402_v57 = vsub.f32 %v4400_v48, %v4401_v51 }
 0x847   :  { %v4413_v59 = vand.u32 4294901760, %v4412_v53 }
 0x848   :  { %v4403_v58 = vand.u32 4294901760, %v4402_v57 }
 0x84a   :  { %22316 = vmatprep.mubr.f32.mxu0 %v4403_v58 }
 0x84b   :  { %22317 = vmatmul.mubr.f32.vlgmr.msra.gmra.mrb[8].mxu0 %v4413_v59 }
 0x84c   :  { %24473 = vmatpush3.bf16.msra.mxu0 %v24470_v40  ;;  %22323 = vmatprep.mubr.f32.mxu0 %v4399_v45 }
 0x84d   :  { %24475 = vmatprep.subr.bf16.mxu0 %v24474_v62 }
 0x853   :  { %22324 = vmatmul.mubr.f32.vlgmr.msra.gmra.mrb[8].mxu0 %v4409_v44 }
 0x854   :  { %24477 = vmatpush3.bf16.msra.mxu0 %v24474_v62  ;;  %22330 = vmatprep.mubr.f32.mxu0 %v4400_v48 }
 0x855   :  { %24479 = vmatprep.subr.bf16.mxu0 %v24466_v22 }
 0x85b   :  { %22331 = vmatmul.mubr.f32.vlgmr.msra.gmra.mrb[8].mxu0 %v4410_v46 }
 0x85c   :  { %24481 = vmatpush3.bf16.msra.mxu0 %v24466_v22  ;;  %22337 = vmatprep.mubr.f32.mxu0 %v4401_v51 }
 0x85d   :  { %24483 = vmatprep.subr.bf16.mxu0 %v24482_v60 }
 0x863   :  { %v2207_v61 = vpop.xlane.xlu1 %2206  ;;  %22338 = vmatmul.mubr.f32.vlgmr.msra.gmra.mrb[8].mxu0 %v4411_v50 }
 0x864   :  { %26332 = vrcp.f32 %v2207_v61  ;;  %24485 = vmatpush3.bf16.msra.mxu0 %v24482_v60  ;;  %22344 = vmatprep.mubr.f32.mxu0 %v4399_v45  ;;  %v2204_v63 = vpop.xlane.xlu0 %2203 }
 0x865   :  { %24487 = vmatprep.subr.bf16.mxu0 %v24466_v22  ;;  %26334 = vrcp.f32 %v2204_v63 }
 0x868   :  { %v3260_v0 = vpop.xlane.xlu0 %3259 }
 0x869   :  { %26336 = vrcp.f32 %v3260_v0 }
 0x86b   :  { %22345 = vmatmul.mubr.f32.vlgmr.msra.gmra.mrb[8].mxu0 %v4409_v44 }
 0x86c   :  { %24489 = vmatpush3.bf16.msra.mxu0 %v24466_v22  ;;  %22351 = vmatprep.mubr.f32.mxu0 %v4399_v45  ;;  %v3263_v1 = vpop.xlane.xlu0 %3262  ;;  %v5000_v45 = vand.u32 4294901760, %v4999_v42 }
 0x86d   :  { %26338 = vrcp.f32 %v3263_v1 }
 0x86e   :  { %v26333_v55 = vpop.eup %26332 }
 0x86f   :  { %v26335_v7 = vpop.eup %26334  ;;  %v2727_v8 = vmul.f32 %v26333_v55, %v26710_v32 }
 0x870   :  { %v2726_v9 = vmul.f32 %v26335_v7, %v26712_v33  ;;  %v4871_v33 = vld [vmem:[%s28907_s3] sm:$0xff] }
 0x871   :  { %4844 = vrot.lane.b32.xlu1 %v2727_v8, %s26480_s17  ;;  %v4886_v25 = vand.u32 4294901760, %v4871_v33 }
 0x872   :  { %4842 = vrot.lane.b32.xlu0 %v2726_v9, %s26480_s17 }
 0x873   :  { %v26337_v6 = vpop.eup %26336  ;;  %22352 = vmatmul.mubr.f32.vlgmr.msra.gmra.mrb[8].mxu0 %v4409_v44  ;;  %v4976_v16 = vsub.f32 %v4871_v33, %v4886_v25 }
 0x874   :  { %v3782_v11 = vmul.f32 %v26337_v6, %v26752_v5  ;;  %v4872_v5 = vld [vmem:[%s28907_s3 + $0x8] sm:$0xff] }
 0x875   :  { %v4889_v13 = vand.u32 4294901760, %v4872_v5  ;;  %v4977_v19 = vand.u32 4294901760, %v4976_v16 }
 0x876   :  { %4850 = vrot.lane.b32.xlu1 %v3782_v11, %s28916_s18 }
 0x877   :  { %v26339_v12 = vpop.eup %26338  ;;  %v26798_v14 = vpack.c.bf16 %v4889_v13, %v4886_v25  ;;  %v4983_v17 = vsub.f32 %v4872_v5, %v4889_v13  ;;  %v4978_v27 = vsub.f32 %v4976_v16, %v4977_v19 }
 0x878   :  { %v3783_v10 = vmul.f32 %v26339_v12, %v26750_v4  ;;  %v4873_v4 = vld [vmem:[%s28907_s3 + $0x10] sm:$0xff] }
 0x879   :  { %v4892_v15 = vand.u32 4294901760, %v4873_v4  ;;  %24491 = vmatprep.subr.bf16.mxu0 %v26798_v14  ;;  %v4984_v23 = vand.u32 4294901760, %v4983_v17  ;;  %v4979_v35 = vand.u32 4294901760, %v4978_v27  ;;  %v24506_v47 = vpack.c.bf16 %v4983_v17, %v4976_v16  ;;  %v26832_v16 = vld [vmem:[%s28910_s6] sm:$0xff] }
 0x87a   :  { %4852 = vrot.lane.b32.xlu1 %v3783_v10, %s28916_s18  ;;  %24493 = vmatpush3.bf16.msra.mxu0 %v26798_v14 }
 0x87b   :  { %v26801_v36 = vpack.c.bf16 %v4895_v20, %v4892_v15  ;;  %v4990_v2 = vsub.f32 %v4873_v4, %v4892_v15  ;;  %v4985_v34 = vsub.f32 %v4983_v17, %v4984_v23  ;;  %v24522_v49 = vpack.c.bf16 %v4984_v23, %v4977_v19 }
 0x87c   :  { %v26827_v20 = vsub.s32 4, %v26573_v52 }
 0x87d   :  { %24495 = vmatprep.subr.bf16.mxu0 %v26801_v36  ;;  %v4991_v38 = vand.u32 4294901760, %v4990_v2  ;;  %v4986_v40 = vand.u32 4294901760, %v4985_v34  ;;  %v24510_v48 = vpack.c.bf16 %v4997_v29, %v4990_v2 }
 0x87e   :  { %24497 = vmatpush3.bf16.msra.mxu0 %v26801_v36  ;;  %v4878_v17 = vrot.slane %v26832_v16, %v26827_v20 }
 0x87f   :  { %v4992_v41 = vsub.f32 %v4990_v2, %v4991_v38  ;;  %v24498_v43 = vpack.c.bf16 %v4986_v40, %v4979_v35  ;;  %v24526_v50 = vpack.c.bf16 %v4998_v39, %v4991_v38 }
 0x881   :  { %v4993_v44 = vand.u32 4294901760, %v4992_v41  ;;  %24499 = vmatprep.subr.bf16.mxu0 %v24498_v43 }
 0x883   :  { %v24502_v46 = vpack.c.bf16 %v5000_v45, %v4993_v44  ;;  %v5454_v44 = vld [vmem:[%s28908_s4 + $0x8] sm:$0xff]  ;;  %v5455_v45 = vld [vmem:[%s28908_s4 + $0x10] sm:$0xff] }
 0x8cc   :  { %v4319_v32 = vpop.xlane.xlu1 %4318 }
 0x8cd   :  { %v4316_v24 = vpop.xlane.xlu0 %4315  ;;  %26340 = vrcp.f32 %v4319_v32 }
 0x8ce   :  { %26342 = vrcp.f32 %v4316_v24 }
 0x8d0   :  { %v1151_v51 = vpop.xlane.xlu1 %1150 }
 0x8d1   :  { %v1148_v53 = vpop.xlane.xlu0 %1147  ;;  %26344 = vrcp.f32 %v1151_v51 }
 0x8d2   :  { %26346 = vrcp.f32 %v1148_v53 }
 0x8d7   :  { %v26341_v21 = vpop.eup %26340 }
 0x8d8   :  { %v26343_v22 = vpop.eup %26342 }
 0x8db   :  { %v26345_v59 = vpop.eup %26344 }
 0x8dc   :  { %v26347_v62 = vpop.eup %26346  ;;  %v1671_v61 = vmul.f32 %v26345_v59, %v26706_v30 }
 0x8dd   :  { %v1670_v0 = vmul.f32 %v26347_v62, %v26708_v31 }
 0x8e3   :  { %v4845_v57 = vpop.permute.xlu1 %4844 }
 0x8e4   :  { %v4843_v63 = vpop.permute.xlu0 %4842  ;;  %v4865_v1 = vsel %vm622_vm1, %v1671_v61, %v4845_v57 }
 0x8e5   :  { %v4864_v55 = vsel %vm622_vm1, %v1670_v0, %v4843_v63 }
 0x8e8   :  { %v4851_v58 = vpop.permute.xlu1 %4850 }
 0x8e9   :  { %v4866_v9 = vsel %vm1133_vm2, %v4864_v55, %v4851_v58 }
 0x8ec   :  { %v4853_v60 = vpop.permute.xlu1 %4852 }
 0x8ed   :  { %v4867_v7 = vsel %vm1133_vm2, %v4865_v1, %v4853_v60 }
 0x946   :  { %v22353_v37 = vpop.f32.mrb[8].mxu0 }
 0x947   :  { %v4839_v3 = vmul.f32 %v26341_v21, %v22353_v37  ;;  %v4824_v26 = vpop.f32.mrb[9].mxu0 }
 0x948   :  { %v4838_v28 = vmul.f32 %v26343_v22, %v4824_v26  ;;  %v26438_v22 = vld [vmem:[%s28905_s1] sm:$0xff] }
 0x949   :  { %4860 = vrot.lane.b32.xlu1 %v4839_v3, %s28914_s19 }
 0x94a   :  { %4858 = vrot.lane.b32.xlu0 %v4838_v28, %s28914_s19 }
 0x9bb   :  { %v4861_v8 = vpop.permute.xlu1 %4860 }
 0x9bc   :  { %v4870_v6 = vsel %vm4868_vm3, %v4867_v7, %v4861_v8  ;;  %v4859_v11 = vpop.permute.xlu0 %4858 }
 0x9bd   :  { %v4883_v12 = vsel %vm38_vm0, %v4870_v6, 0  ;;  %v4869_v30 = vsel %vm4868_vm3, %v4866_v9, %v4859_v11 }
 0x9be   :  { %v4964_v10 = vand.u32 4294901760, %v4883_v12  ;;  %v4880_v31 = vsel %vm38_vm0, %v4869_v30, 0 }
 0x9bf   :  { %v4954_v32 = vand.u32 4294901760, %v4880_v31 }
 0x9c0   :  { %v4965_v24 = vsub.f32 %v4883_v12, %v4964_v10 }
 0x9c1   :  { %v4955_v33 = vsub.f32 %v4880_v31, %v4954_v32 }
 0x9c2   :  { %v4966_v5 = vand.u32 4294901760, %v4965_v24 }
 0x9c3   :  { %v4956_v25 = vand.u32 4294901760, %v4955_v33 }
 0x9c4   :  { %v4967_v13 = vsub.f32 %v4965_v24, %v4966_v5 }
 0x9c5   :  { %v4957_v4 = vsub.f32 %v4955_v33, %v4956_v25 }
 0x9c6   :  { %v4968_v15 = vand.u32 4294901760, %v4967_v13  ;;  %v5999_v13 = vld [vmem:[%s28909_s5 + $0x10] sm:$0xff] }
 0x9c7   :  { %v4958_v18 = vand.u32 4294901760, %v4957_v4 }
 0x9c9   :  { %22362 = vmatprep.mubr.f32.mxu0 %v4958_v18 }
 0x9ca   :  { %22363 = vmatmul.mubr.f32.vlgmr.msra.gmra.mrb[10].mxu0 %v4968_v15  ;;  %v6000_v15 = vld [vmem:[%s28909_s5 + $0x18] sm:$0xff] }
 0x9cb   :  { %24501 = vmatpush3.bf16.msra.mxu0 %v24498_v43  ;;  %22373 = vmatprep.mubr.f32.mxu0 %v4954_v32  ;;  %v5453_v43 = vld [vmem:[%s28908_s4] sm:$0xff] }
 0x9cc   :  { %24503 = vmatprep.subr.bf16.mxu0 %v24502_v46 }
 0x9cf   :  { %24505 = vmatpush3.bf16.msra.mxu0 %v24502_v46  ;;  %v5468_v46 = vand.u32 4294901760, %v5453_v43 }
 0x9d0   :  { %24507 = vmatprep.subr.bf16.mxu0 %v24506_v47 }
 0x9d1   :  { %v5558_v57 = vsub.f32 %v5453_v43, %v5468_v46  ;;  %v6004_v43 = vld [vmem:[%s28909_s5 + $0x38] sm:$0xff] }
 0x9d2   :  { %22374 = vmatmul.mubr.f32.vlgmr.msra.gmra.mrb[10].mxu0 %v4964_v10 }
 0x9d3   :  { %24509 = vmatpush3.bf16.msra.mxu0 %v24506_v47  ;;  %22384 = vmatprep.mubr.f32.mxu0 %v4955_v33  ;;  %v5471_v47 = vand.u32 4294901760, %v5454_v44  ;;  %v5559_v59 = vand.u32 4294901760, %v5558_v57 }
 0x9d4   :  { %24511 = vmatprep.subr.bf16.mxu0 %v24510_v48 }
 0x9d5   :  { %v26874_v51 = vpack.c.bf16 %v5471_v47, %v5468_v46  ;;  %v5565_v58 = vsub.f32 %v5454_v44, %v5471_v47  ;;  %v5560_v60 = vsub.f32 %v5558_v57, %v5559_v59  ;;  %v6039_v46 = vand.u32 4294901760, %v6004_v43 }
 0x9d7   :  { %24513 = vmatpush3.bf16.msra.mxu0 %v24510_v48  ;;  %v5456_v48 = vld [vmem:[%s28908_s4 + $0x18] sm:$0xff]  ;;  %24539 = vmatprep.subr.bf16.mxu1 %v26874_v51  ;;  %v5566_v62 = vand.u32 4294901760, %v5565_v58  ;;  %v5561_v1 = vand.u32 4294901760, %v5560_v60  ;;  %v26887_v31 = vpack.c.bf16 %v5565_v58, %v5558_v57  ;;  %v6005_v57 = vld [vmem:[%s28909_s5 + $0x40] sm:$0xff] }
 0x9d8   :  { %24515 = vmatprep.subr.bf16.mxu0 %v26798_v14  ;;  %24541 = vmatpush3.bf16.msra.mxu1 %v26874_v51 }
 0x9d9   :  { %v5567_v61 = vsub.f32 %v5565_v58, %v5566_v62  ;;  %v6006_v58 = vld [vmem:[%s28909_s5 + $0x48] sm:$0xff] }
 0x9da   :  { %22385 = vmatmul.mubr.f32.vlgmr.msra.gmra.mrb[10].mxu0 %v4965_v24  ;;  %v26891_v24 = vpack.c.bf16 %v5566_v62, %v5559_v59  ;;  %v6042_v59 = vand.u32 4294901760, %v6005_v57  ;;  %v6045_v62 = vand.u32 4294901760, %v6006_v58 }
 0x9db   :  { %24517 = vmatpush3.bf16.msra.mxu0 %v26798_v14  ;;  %22395 = vmatprep.mubr.f32.mxu0 %v4956_v25  ;;  %v5568_v55 = vand.u32 4294901760, %v5567_v61  ;;  %v5998_v25 = vld [vmem:[%s28909_s5 + $0x8] sm:$0xff] }
 0x9dc   :  { %24519 = vmatprep.subr.bf16.mxu0 %v26801_v36  ;;  %v6021_v18 = vand.u32 4294901760, %v5998_v25  ;;  %v26955_v60 = vpack.c.bf16 %v6045_v62, %v6042_v59 }
 0x9dd   :  { %v26882_v9 = vpack.c.bf16 %v5568_v55, %v5561_v1  ;;  %v6007_v1 = vld [vmem:[%s28909_s5 + $0x50] sm:$0xff]  ;;  %v6008_v55 = vld [vmem:[%s28909_s5 + $0x58] sm:$0xff] }
 0x9df   :  { %24521 = vmatpush3.bf16.msra.mxu0 %v26801_v36 }
 0x9e0   :  { %24523 = vmatprep.subr.bf16.mxu0 %v24522_v49 }
 0x9e2   :  { %22396 = vmatmul.mubr.f32.vlgmr.msra.gmra.mrb[10].mxu0 %v4966_v5  ;;  %v5997_v5 = vld [vmem:[%s28909_s5] sm:$0xff] }
 0x9e3   :  { %24525 = vmatpush3.bf16.msra.mxu0 %v24522_v49  ;;  %22406 = vmatprep.mubr.f32.mxu0 %v4954_v32  ;;  %v5474_v49 = vand.u32 4294901760, %v5455_v45  ;;  %v6018_v4 = vand.u32 4294901760, %v5997_v5 }
 0x9e4   :  { %24527 = vmatprep.subr.bf16.mxu0 %v24526_v50 }
 0x9e5   :  { %v5572_v63 = vsub.f32 %v5455_v45, %v5474_v49 }
 0x9e7   :  { %24529 = vmatpush3.bf16.msra.mxu0 %v24526_v50  ;;  %v5477_v50 = vand.u32 4294901760, %v5456_v48  ;;  %v5573_v7 = vand.u32 4294901760, %v5572_v63 }
 0x9e8   :  { %24531 = vmatprep.subr.bf16.mxu0 %v26798_v14 }
 0x9e9   :  { %v26876_v53 = vpack.c.bf16 %v5477_v50, %v5474_v49  ;;  %v5579_v0 = vsub.f32 %v5456_v48, %v5477_v50  ;;  %v5574_v6 = vsub.f32 %v5572_v63, %v5573_v7  ;;  %v26947_v50 = vsub.f32 %v6004_v43, %v6039_v46 }
 0x9ea   :  { %22407 = vmatmul.mubr.f32.vlgmr.msra.gmra.mrb[10].mxu0 %v4964_v10 }
 0x9eb   :  { %24533 = vmatpush3.bf16.msra.mxu0 %v26798_v14  ;;  %22417 = vmatprep.mubr.f32.mxu0 %v4954_v32  ;;  %v5580_v8 = vand.u32 4294901760, %v5579_v0  ;;  %v5575_v12 = vand.u32 4294901760, %v5574_v6  ;;  %v26889_v32 = vpack.c.bf16 %v5579_v0, %v5572_v63  ;;  %v26959_v63 = vsub.f32 %v6005_v57, %v6042_v59 }
 0x9ec   :  { %24535 = vmatprep.subr.bf16.mxu0 %v26801_v36  ;;  %24543 = vmatprep.subr.bf16.mxu1 %v26876_v53 }
 0x9ed   :  { %24545 = vmatpush3.bf16.msra.mxu1 %v26876_v53  ;;  %v5581_v11 = vsub.f32 %v5579_v0, %v5580_v8  ;;  %v26893_v33 = vpack.c.bf16 %v5580_v8, %v5573_v7  ;;  %v26961_v0 = vsub.f32 %v6006_v58, %v6045_v62  ;;  %v6048_v7 = vand.u32 4294901760, %v6007_v1 }
 0x9ee   :  { %24547 = vmatprep.subr.bf16.mxu1 %v26882_v9  ;;  %v6051_v8 = vand.u32 4294901760, %v6008_v55 }
 0x9ef   :  { %24537 = vmatpush3.bf16.msra.mxu0 %v26801_v36  ;;  %v26437_v36 = vld [vmem:[%s28905_s1 + $0x8] sm:$0xff]  ;;  %v5582_v30 = vand.u32 4294901760, %v5581_v11  ;;  %v24666_v11 = vpack.c.bf16 %v26961_v0, %v26959_v63 }
 0x9f0   :  { %v26969_v6 = vpack.c.bf16 %v6051_v8, %v6048_v7 }
 0x9f2   :  { %22418 = vmatmul.mubr.f32.vlgmr.msra.gmra.mrb[10].mxu0 %v4964_v10  ;;  %v26885_v10 = vpack.c.bf16 %v5582_v30, %v5575_v12  ;;  %v26973_v12 = vsub.f32 %v6007_v1, %v6048_v7  ;;  %v26975_v30 = vsub.f32 %v6008_v55, %v6051_v8 }
 0xac5   :  { %v22419_v19 = vpop.f32.mrb[10].mxu0 }
 0xac6   :  { %v25892_v21 = vadd.f32 %v22419_v19, %v4878_v17  ;;  %v5403_v14 = vpop.f32.mrb[11].mxu0  ;;  %v6001_v19 = vld [vmem:[%s28909_s5 + $0x20] sm:$0xff] }
 0xac7   :  { %v25893_v37 = vadd.f32 %v5403_v14, %v4878_v17  ;;  %v6024_v17 = vand.u32 4294901760, %v5999_v13  ;;  %v6027_v14 = vand.u32 4294901760, %v6000_v15 }
 0xac8   :  { %v26839_v23 = vadd.f32 %v26437_v36, %v25892_v21  ;;  %v6002_v21 = vld [vmem:[%s28909_s5 + $0x28] sm:$0xff] }
 0xac9   :  { %v26844_v3 = vadd.f32 %v26438_v22, %v25893_v37  ;;  %v6030_v37 = vand.u32 4294901760, %v6001_v19  ;;  %v6033_v36 = vand.u32 4294901760, %v6002_v21  ;;  %v26913_v22 = vpack.c.bf16 %v6021_v18, %v6018_v4 }
 0xaca   :  { %v5418_v26 = vsel %vm38_vm0, %v26839_v23, 0.0 }
 0xacb   :  { %5419 = vadd.xlane.f32.xlu1 %v5418_v26  ;;  %v5415_v27 = vsel %vm38_vm0, %v26844_v3, 0.0  ;;  %v26915_v26 = vsub.f32 %v5997_v5, %v6018_v4  ;;  %v24670_v5 = vpack.c.bf16 %v26975_v30, %v26973_v12 }
 0xacc   :  { %5416 = vadd.xlane.f32.xlu0 %v5415_v27  ;;  %v26917_v27 = vsub.f32 %v5998_v25, %v6021_v18 }
 0xb58   :  { %v5420_v2 = vpop.xlane.xlu1 %5419 }
 0xb59   :  { %v5422_v29 = vmul.f32 0.03125, %v5420_v2  ;;  %v5417_v28 = vpop.xlane.xlu0 %5416  ;;  %v26919_v2 = vsub.f32 %v5999_v13, %v6024_v17 }
 0xb5a   :  { %v5421_v34 = vmul.f32 0.03125, %v5417_v28  ;;  %v26923_v28 = vsub.f32 %v6000_v15, %v6027_v14 }
 0xb5b   :  { %v26851_v35 = vsub.f32 %v26839_v23, %v5422_v29  ;;  %v26921_v29 = vpack.c.bf16 %v6027_v14, %v6024_v17 }
 0xb5c   :  { %v26854_v38 = vsub.f32 %v26844_v3, %v5421_v34  ;;  %v26925_v34 = vpack.c.bf16 %v6033_v36, %v6030_v37  ;;  %v24654_v44 = vpack.c.bf16 %v26923_v28, %v26919_v2 }
 0xb5d   :  { %v5426_v41 = vmul.f32 %v26851_v35, %v26851_v35 }
 0xb5e   :  { %v5425_v39 = vmul.f32 %v26854_v38, %v26854_v38 }
 0xb5f   :  { %v5430_v42 = vsel %vm38_vm0, %v5426_v41, 0.0  ;;  %v26931_v41 = vsub.f32 %v6002_v21, %v6033_v36  ;;  %v26983_v21 = vsub.s32 3, %v26573_v52 }
 0xb60   :  { %v5427_v40 = vsel %vm38_vm0, %v5425_v39, 0.0  ;;  %v24650_v39 = vpack.c.bf16 %v26917_v27, %v26915_v26 }
 0xb61   :  { %5428 = vadd.xlane.f32.xlu0 %v5427_v40  ;;  %v26929_v40 = vsub.f32 %v6001_v19, %v6030_v37  ;;  %v26980_v19 = vsub.s32 2, %v26573_v52 }
 0xb62   :  { %24651 = vmatprep.subr.bf16.mxu0 %v24650_v39 }
 0xb63   :  { %24653 = vmatpush3.bf16.msra.mxu0 %v24650_v39  ;;  %v24658_v48 = vpack.c.bf16 %v26931_v41, %v26929_v40  ;;  %v5444_v14 = vrot.slane %v26832_v16, %v26980_v19  ;;  %v5450_v39 = vrot.slane %v26832_v16, %v26983_v21 }
 0xb64   :  { %24655 = vmatprep.subr.bf16.mxu0 %v24654_v44 }
 0xb65   :  { %5431 = vadd.xlane.f32.xlu0 %v5430_v42  ;;  %v6003_v42 = vld [vmem:[%s28909_s5 + $0x30] sm:$0xff] }
 0xb66   :  { %v6036_v45 = vand.u32 4294901760, %v6003_v42 }
 0xb67   :  { %24657 = vmatpush3.bf16.msra.mxu0 %v24654_v44 }
 0xb68   :  { %v26941_v47 = vpack.c.bf16 %v6039_v46, %v6036_v45  ;;  %v26945_v49 = vsub.f32 %v6003_v42, %v6036_v45  ;;  %24659 = vmatprep.subr.bf16.mxu0 %v24658_v48 }
 0xb6a   :  { %v24662_v61 = vpack.c.bf16 %v26947_v50, %v26945_v49 }
 0xb6b   :  { %24661 = vmatpush3.bf16.msra.mxu0 %v24658_v48 }
 0xb6c   :  { %24663 = vmatprep.subr.bf16.mxu0 %v24662_v61 }
 0xb6f   :  { %24665 = vmatpush3.bf16.msra.mxu0 %v24662_v61 }
 0xb70   :  { %24667 = vmatprep.subr.bf16.mxu0 %v24666_v11 }
 0xb73   :  { %24669 = vmatpush3.bf16.msra.mxu0 %v24666_v11 }
 0xb74   :  { %24671 = vmatprep.subr.bf16.mxu0 %v24670_v5 }
 0xb77   :  { %24673 = vmatpush3.bf16.msra.mxu0 %v24670_v5 }
 0xbee   :  { %v5429_v25 = vpop.xlane.xlu0 %5428 }
 0xbef   :  { %v5433_v13 = vmul.f32 0.03125, %v5429_v25 }
 0xbf1   :  { %v5435_v4 = vadd.f32 1e-05, %v5433_v13 }
 0xbf2   :  { %v5432_v18 = vpop.xlane.xlu0 %5431 }
 0xbf3   :  { %26348 = vrsqrt.f32 %v5435_v4  ;;  %v5434_v15 = vmul.f32 0.03125, %v5432_v18 }
 0xbf5   :  { %v5436_v17 = vadd.f32 1e-05, %v5434_v15 }
 0xbf7   :  { %26350 = vrsqrt.f32 %v5436_v17 }
 0xbfd   :  { %v26349_v37 = vpop.eup %26348 }
 0xbfe   :  { %v5439_v36 = vmul.f32 %v26349_v37, %v26854_v38  ;;  %v6121_v37 = vand.u32 4294901760, %v26915_v26 }
 0xc00   :  { %v5445_v42 = vmul.f32 %v5444_v14, %v5439_v36  ;;  %v6128_v36 = vand.u32 4294901760, %v26917_v27 }
 0xc01   :  { %v26351_v43 = vpop.eup %26350 }
 0xc02   :  { %v5440_v44 = vmul.f32 %v26351_v43, %v26851_v35  ;;  %v5451_v45 = vadd.f32 %v5450_v39, %v5445_v42  ;;  %v6009_v35 = vld [vmem:[%s28909_s5 + $0x60] sm:$0xff]  ;;  %v6129_v42 = vsub.f32 %v26917_v27, %v6128_v36 }
 0xc04   :  { %v5446_v46 = vmul.f32 %v5444_v14, %v5440_v44  ;;  %v5462_v48 = vsel %vm38_vm0, %v5451_v45, 0  ;;  %v6130_v44 = vand.u32 4294901760, %v6129_v42 }
 0xc05   :  { %v5536_v57 = vand.u32 4294901760, %v5462_v48 }
 0xc06   :  { %v5452_v58 = vadd.f32 %v5450_v39, %v5446_v46  ;;  %v6122_v39 = vsub.f32 %v26915_v26, %v6121_v37 }
 0xc07   :  { %v5537_v59 = vsub.f32 %v5462_v48, %v5536_v57 }
 0xc08   :  { %v5465_v62 = vsel %vm38_vm0, %v5452_v58, 0  ;;  %v6123_v43 = vand.u32 4294901760, %v6122_v39 }
 0xc09   :  { %v5538_v61 = vand.u32 4294901760, %v5537_v59  ;;  %v5546_v1 = vand.u32 4294901760, %v5465_v62 }
 0xc0a   :  { %v27049_v45 = vpack.c.bf16 %v6130_v44, %v6123_v43 }
 0xc0b   :  { %v5539_v55 = vsub.f32 %v5537_v59, %v5538_v61  ;;  %v5547_v38 = vsub.f32 %v5465_v62, %v5546_v1 }
 0xc0d   :  { %v5540_v7 = vand.u32 4294901760, %v5539_v55  ;;  %v5548_v8 = vand.u32 4294901760, %v5547_v38 }
 0xc0f   :  { %22428 = vmatprep.mubr.f32.mxu1 %v5540_v7  ;;  %v5549_v11 = vsub.f32 %v5547_v38, %v5548_v8 }
 0xc11   :  { %v5550_v5 = vand.u32 4294901760, %v5549_v11 }
 0xc13   :  { %22429 = vmatmul.mubr.f32.vlgmr.msra.gmra.mrb[10].mxu1 %v5550_v5 }
 0xc14   :  { %24549 = vmatpush3.bf16.msra.mxu1 %v26882_v9  ;;  %22439 = vmatprep.mubr.f32.mxu1 %v5536_v57 }
 0xc15   :  { %24551 = vmatprep.subr.bf16.mxu1 %v26885_v10 }
 0xc18   :  { %24553 = vmatpush3.bf16.msra.mxu1 %v26885_v10 }
 0xc19   :  { %24555 = vmatprep.subr.bf16.mxu1 %v26887_v31 }
 0xc1b   :  { %22440 = vmatmul.mubr.f32.vlgmr.msra.gmra.mrb[10].mxu1 %v5546_v1 }
 0xc1c   :  { %24557 = vmatpush3.bf16.msra.mxu1 %v26887_v31  ;;  %22450 = vmatprep.mubr.f32.mxu1 %v5537_v59 }
 0xc1d   :  { %24559 = vmatprep.subr.bf16.mxu1 %v26889_v32 }
 0xc20   :  { %24561 = vmatpush3.bf16.msra.mxu1 %v26889_v32  ;;  %v6011_v32 = vld [vmem:[%s28909_s5 + $0x70] sm:$0xff] }
 0xc21   :  { %24563 = vmatprep.subr.bf16.mxu1 %v26874_v51  ;;  %v6060_v25 = vand.u32 4294901760, %v6011_v32 }
 0xc23   :  { %22451 = vmatmul.mubr.f32.vlgmr.msra.gmra.mrb[10].mxu1 %v5547_v38  ;;  %v6218_v4 = vsub.f32 %v6011_v32, %v6060_v25  ;;  %v27054_v38 = vpack.c.bf16 %v6128_v36, %v6121_v37  ;;  %v6156_v37 = vand.u32 4294901760, %v26931_v41 }
 0xc24   :  { %24565 = vmatpush3.bf16.msra.mxu1 %v26874_v51  ;;  %22461 = vmatprep.mubr.f32.mxu1 %v5538_v61 }
 0xc25   :  { %24567 = vmatprep.subr.bf16.mxu1 %v26876_v53  ;;  %v6219_v61 = vand.u32 4294901760, %v6218_v4 }
 0xc27   :  { %v6220_v26 = vsub.f32 %v6218_v4, %v6219_v61 }
 0xc28   :  { %24569 = vmatpush3.bf16.msra.mxu1 %v26876_v53 }
 0xc29   :  { %24571 = vmatprep.subr.bf16.mxu1 %v26891_v24  ;;  %v6221_v7 = vand.u32 4294901760, %v6220_v26 }
 0xc2b   :  { %22462 = vmatmul.mubr.f32.vlgmr.msra.gmra.mrb[10].mxu1 %v5548_v8 }
 0xc2c   :  { %24573 = vmatpush3.bf16.msra.mxu1 %v26891_v24  ;;  %22472 = vmatprep.mubr.f32.mxu1 %v5536_v57  ;;  %v6012_v24 = vld [vmem:[%s28909_s5 + $0x78] sm:$0xff] }
 0xc2d   :  { %24575 = vmatprep.subr.bf16.mxu1 %v26893_v33  ;;  %v6063_v13 = vand.u32 4294901760, %v6012_v24 }
 0xc2f   :  { %v6225_v18 = vsub.f32 %v6012_v24, %v6063_v13  ;;  %v27038_v14 = vpack.c.bf16 %v6063_v13, %v6060_v25  ;;  %v6142_v25 = vand.u32 4294901760, %v26923_v28 }
 0xc30   :  { %24577 = vmatpush3.bf16.msra.mxu1 %v26893_v33 }
 0xc31   :  { %24579 = vmatprep.subr.bf16.mxu1 %v26874_v51  ;;  %v24678_v15 = vpack.c.bf16 %v6225_v18, %v6218_v4  ;;  %v6143_v42 = vsub.f32 %v26923_v28, %v6142_v25 }
 0xc33   :  { %22473 = vmatmul.mubr.f32.vlgmr.msra.gmra.mrb[10].mxu1 %v5546_v1 }
 0xc34   :  { %24581 = vmatpush3.bf16.msra.mxu1 %v26874_v51  ;;  %22483 = vmatprep.mubr.f32.mxu1 %v5536_v57  ;;  %v6010_v51 = vld [vmem:[%s28909_s5 + $0x68] sm:$0xff] }
 0xc35   :  { %24583 = vmatprep.subr.bf16.mxu1 %v26876_v53  ;;  %v6057_v9 = vand.u32 4294901760, %v6010_v51 }
 0xc37   :  { %v6211_v31 = vsub.f32 %v6010_v51, %v6057_v9  ;;  %v27063_v51 = vsub.s32 6, %v26573_v52 }
 0xc38   :  { %24585 = vmatpush3.bf16.msra.mxu1 %v26876_v53  ;;  %v6054_v53 = vand.u32 4294901760, %v6009_v35 }
 0xc39   :  { %24587 = vmatprep.subr.bf16.mxu1 %v26913_v22  ;;  %v6212_v48 = vand.u32 4294901760, %v6211_v31  ;;  %28945 = vst [vmem:[#allocation5_spill] sm:$0xff] %v27063_v51 }
 0xc3a   :  { %v6204_v10 = vsub.f32 %v6009_v35, %v6054_v53  ;;  %v27036_v17 = vpack.c.bf16 %v6057_v9, %v6054_v53  ;;  %v5460_v53 = vrot.slane %v26832_v16, %v27063_v51 }
 0xc3b   :  { %22484 = vmatmul.mubr.f32.vlgmr.msra.gmra.mrb[10].mxu1 %v5546_v1  ;;  %v6213_v58 = vsub.f32 %v6211_v31, %v6212_v48  ;;  %v6226_v1 = vand.u32 4294901760, %v6225_v18 }
 0xc3c   :  { %24589 = vmatpush3.bf16.msra.mxu1 %v26913_v22  ;;  %v24674_v33 = vpack.c.bf16 %v6211_v31, %v6204_v10  ;;  %v6205_v46 = vand.u32 4294901760, %v6204_v10 }
 0xc3d   :  { %24591 = vmatprep.subr.bf16.mxu1 %v26921_v29  ;;  %v6214_v62 = vand.u32 4294901760, %v6213_v58  ;;  %v6227_v27 = vsub.f32 %v6225_v18, %v6226_v1  ;;  %v27060_v35 = vpack.c.bf16 %v6226_v1, %v6219_v61  ;;  %v6149_v18 = vand.u32 4294901760, %v26929_v40 }
 0xc3e   :  { %24675 = vmatprep.subr.bf16.mxu0 %v24674_v33  ;;  %v6206_v57 = vsub.f32 %v6204_v10, %v6205_v46  ;;  %v27058_v5 = vpack.c.bf16 %v6212_v48, %v6205_v46  ;;  %v6163_v58 = vand.u32 4294901760, %v26945_v49  ;;  %v6144_v1 = vand.u32 4294901760, %v6143_v42 }
 0xc3f   :  { %24677 = vmatpush3.bf16.msra.mxu0 %v24674_v33  ;;  %v6228_v8 = vand.u32 4294901760, %v6227_v27  ;;  %v6135_v33 = vand.u32 4294901760, %v26919_v2  ;;  %v6150_v46 = vsub.f32 %v26929_v40, %v6149_v18 }
 0xc40   :  { %24593 = vmatpush3.bf16.msra.mxu1 %v26921_v29  ;;  %24679 = vmatprep.subr.bf16.mxu0 %v24678_v15  ;;  %v6207_v59 = vand.u32 4294901760, %v6206_v57  ;;  %v6157_v57 = vsub.f32 %v26931_v41, %v6156_v37 }
 0xc41   :  { %24595 = vmatprep.subr.bf16.mxu1 %v26925_v34  ;;  %v27056_v11 = vpack.c.bf16 %v6228_v8, %v6221_v7  ;;  %v6136_v39 = vsub.f32 %v26919_v2, %v6135_v33  ;;  %v6151_v27 = vand.u32 4294901760, %v6150_v46  ;;  %v24722_v2 = vpack.c.bf16 %v6156_v37, %v6149_v18  ;;  %v20636_v37 = vld [vmem:[%s28906_s2 + $0x28] sm:$0xff] }
 0xc42   :  { %v27052_v55 = vpack.c.bf16 %v6214_v62, %v6207_v59  ;;  %v6170_v59 = vand.u32 4294901760, %v26947_v50  ;;  %v6158_v8 = vand.u32 4294901760, %v6157_v57  ;;  %v6198_v57 = vand.u32 4294901760, %v26975_v30 }
 0xc43   :  { %24681 = vmatpush3.bf16.msra.mxu0 %v24678_v15  ;;  %v6137_v61 = vand.u32 4294901760, %v6136_v39 }
 0xc44   :  { %24597 = vmatpush3.bf16.msra.mxu1 %v26925_v34  ;;  %24683 = vmatprep.subr.bf16.mxu0 %v26913_v22  ;;  %v24726_v28 = vpack.c.bf16 %v6170_v59, %v6163_v58 }
 0xc45   :  { %24599 = vmatprep.subr.bf16.mxu1 %v26941_v47 }
 0xc48   :  { %24601 = vmatpush3.bf16.msra.mxu1 %v26941_v47 }
 0xc49   :  { %24603 = vmatprep.subr.bf16.mxu1 %v26955_v60 }
 0xc4c   :  { %24605 = vmatpush3.bf16.msra.mxu1 %v26955_v60 }
 0xc4d   :  { %24607 = vmatprep.subr.bf16.mxu1 %v26969_v6 }
 0xc50   :  { %24609 = vmatpush3.bf16.msra.mxu1 %v26969_v6 }
 0xc51   :  { %24611 = vmatprep.subr.bf16.mxu1 %v27036_v17 }
 0xc54   :  { %24613 = vmatpush3.bf16.msra.mxu1 %v27036_v17 }
 0xc55   :  { %24615 = vmatprep.subr.bf16.mxu1 %v27038_v14 }
 0xc58   :  { %24617 = vmatpush3.bf16.msra.mxu1 %v27038_v14 }
 0xc59   :  { %24619 = vmatprep.subr.bf16.mxu1 %v27049_v45 }
 0xd0e   :  { %v22485_v9 = vpop.f32.mrb[10].mxu1 }
 0xd0f   :  { %v25894_v10 = vadd.f32 %v22485_v9, %v5460_v53  ;;  %v5985_v31 = vpop.f32.mrb[11].mxu1  ;;  %v6171_v9 = vsub.f32 %v26947_v50, %v6170_v59  ;;  %v20638_v59 = vld [vmem:[%s28906_s2 + $0x38] sm:$0xff] }
 0xd10   :  { %v25895_v32 = vadd.f32 %v5985_v31, %v5460_v53  ;;  %v6164_v53 = vsub.f32 %v26945_v49, %v6163_v58  ;;  %v24622_v31 = vpack.c.bf16 %v6144_v1, %v6137_v61  ;;  %v6758_v58 = vand.u32 4294901760, %v20636_v37 }
 0xd11   :  { %v5996_v24 = vmax.f32 %v25894_v10, 0.0  ;;  %v6172_v42 = vand.u32 4294901760, %v6171_v9 }
 0xd12   :  { %v5995_v13 = vmax.f32 %v25895_v32, 0.0  ;;  %v6177_v32 = vand.u32 4294901760, %v26959_v63  ;;  %v6165_v39 = vand.u32 4294901760, %v6164_v53  ;;  %v6764_v53 = vand.u32 4294901760, %v20638_v59 }
 0xd13   :  { %v27069_v4 = vand.u32 4294901760, %v5996_v24 }
 0xd14   :  { %v27072_v15 = vand.u32 4294901760, %v5995_v13 }
 0xd15   :  { %v27076_v36 = vsub.f32 %v5996_v24, %v27069_v4  ;;  %v6184_v24 = vand.u32 4294901760, %v26961_v0 }
 0xd16   :  { %v6099_v43 = vsub.f32 %v5995_v13, %v27072_v15  ;;  %v24626_v13 = vpack.c.bf16 %v6158_v8, %v6151_v27 }
 0xd17   :  { %v6110_v44 = vand.u32 4294901760, %v27076_v36  ;;  %v6185_v46 = vsub.f32 %v26961_v0, %v6184_v24 }
 0xd18   :  { %22588 = vmatprep.mubr.f32.mxu0 %v6099_v43  ;;  %v6100_v48 = vand.u32 4294901760, %v6099_v43 }
 0xd19   :  { %v6111_v62 = vsub.f32 %v27076_v36, %v6110_v44  ;;  %22589 = vmatmul.mubr.f32.vlgmr.msra.gmra.mrb[12].mxu0 %v27076_v36  ;;  %v6186_v61 = vand.u32 4294901760, %v6185_v46  ;;  %v20637_v36 = vld [vmem:[%s28906_s2 + $0x30] sm:$0xff]  ;;  %v6866_v46 = vsub.f32 %v20638_v59, %v6764_v53 }
 0xd1a   :  { %24685 = vmatpush3.bf16.msra.mxu0 %v26913_v22  ;;  %22623 = vmatprep.mubr.f32.mxu0 %v6100_v48  ;;  %v6101_v26 = vsub.f32 %v6099_v43, %v6100_v48  ;;  %v6178_v43 = vsub.f32 %v26959_v63, %v6177_v32  ;;  %v6191_v48 = vand.u32 4294901760, %v26973_v12  ;;  %v6761_v8 = vand.u32 4294901760, %v20637_v36 }
 0xd1b   :  { %24687 = vmatprep.subr.bf16.mxu0 %v26921_v29  ;;  %v6112_v10 = vand.u32 4294901760, %v6111_v62 }
 0xd1c   :  { %v6102_v7 = vand.u32 4294901760, %v6101_v26  ;;  %v6179_v62 = vand.u32 4294901760, %v6178_v43  ;;  %v6192_v1 = vsub.f32 %v26973_v12, %v6191_v48  ;;  %v6199_v26 = vsub.f32 %v26975_v30, %v6198_v57 }
 0xd1d   :  { %v24718_v12 = vpack.c.bf16 %v6142_v25, %v6135_v33  ;;  %v24730_v30 = vpack.c.bf16 %v6184_v24, %v6177_v32  ;;  %v24734_v40 = vpack.c.bf16 %v6198_v57, %v6191_v48  ;;  %v6852_v32 = vsub.f32 %v20636_v37, %v6758_v58 }
 0xd1e   :  { %24689 = vmatpush3.bf16.msra.mxu0 %v26921_v29  ;;  %22518 = vmatprep.mubr.f32.mxu1 %v6102_v7  ;;  %v24634_v63 = vpack.c.bf16 %v6186_v61, %v6179_v62  ;;  %v6193_v0 = vand.u32 4294901760, %v6192_v1  ;;  %v6200_v27 = vand.u32 4294901760, %v6199_v26  ;;  %v6859_v43 = vsub.f32 %v20637_v36, %v6761_v8 }
 0xd1f   :  { %22519 = vmatmul.mubr.f32.vlgmr.msra.gmra.mrb[12].mxu1 %v6112_v10  ;;  %24691 = vmatprep.subr.bf16.mxu0 %v26925_v34  ;;  %v27207_v10 = vpack.c.bf16 %v6764_v53, %v6761_v8  ;;  %v6867_v62 = vand.u32 4294901760, %v6866_v46 }
 0xd20   :  { %24621 = vmatpush3.bf16.msra.mxu1 %v27049_v45  ;;  %22553 = vmatprep.mubr.f32.mxu1 %v27072_v15  ;;  %v24630_v45 = vpack.c.bf16 %v6172_v42, %v6165_v39  ;;  %v24638_v7 = vpack.c.bf16 %v6200_v27, %v6193_v0 }
 0xd21   :  { %24623 = vmatprep.subr.bf16.mxu1 %v24622_v31  ;;  %v6868_v26 = vsub.f32 %v6866_v46, %v6867_v62 }
 0xd22   :  { %24693 = vmatpush3.bf16.msra.mxu0 %v26925_v34 }
 0xd23   :  { %24695 = vmatprep.subr.bf16.mxu0 %v26941_v47  ;;  %v6869_v0 = vand.u32 4294901760, %v6868_v26 }
 0xd24   :  { %24625 = vmatpush3.bf16.msra.mxu1 %v24622_v31 }
 0xd25   :  { %24627 = vmatprep.subr.bf16.mxu1 %v24626_v13 }
 0xd26   :  { %24697 = vmatpush3.bf16.msra.mxu0 %v26941_v47 }
 0xd27   :  { %24699 = vmatprep.subr.bf16.mxu0 %v26955_v60 }
 0xd28   :  { %24629 = vmatpush3.bf16.msra.mxu1 %v24626_v13  ;;  %v6853_v13 = vand.u32 4294901760, %v6852_v32 }
 0xd29   :  { %24631 = vmatprep.subr.bf16.mxu1 %v24630_v45 }
 0xd2a   :  { %24701 = vmatpush3.bf16.msra.mxu0 %v26955_v60  ;;  %v6854_v42 = vsub.f32 %v6852_v32, %v6853_v13 }
 0xd2b   :  { %24703 = vmatprep.subr.bf16.mxu0 %v26969_v6 }
 0xd2c   :  { %24633 = vmatpush3.bf16.msra.mxu1 %v24630_v45  ;;  %v6855_v57 = vand.u32 4294901760, %v6854_v42  ;;  %v6860_v45 = vand.u32 4294901760, %v6859_v43 }
 0xd2d   :  { %24635 = vmatprep.subr.bf16.mxu1 %v24634_v63 }
 0xd2e   :  { %24705 = vmatpush3.bf16.msra.mxu0 %v26969_v6  ;;  %v6861_v1 = vsub.f32 %v6859_v43, %v6860_v45 }
 0xd2f   :  { %24707 = vmatprep.subr.bf16.mxu0 %v27036_v17 }
 0xd30   :  { %24637 = vmatpush3.bf16.msra.mxu1 %v24634_v63  ;;  %v6862_v63 = vand.u32 4294901760, %v6861_v1 }
 0xd31   :  { %24639 = vmatprep.subr.bf16.mxu1 %v24638_v7 }
 0xd32   :  { %24709 = vmatpush3.bf16.msra.mxu0 %v27036_v17  ;;  %v24790_v27 = vpack.c.bf16 %v6869_v0, %v6862_v63 }
 0xd33   :  { %24711 = vmatprep.subr.bf16.mxu0 %v27038_v14 }
 0xd34   :  { %24641 = vmatpush3.bf16.msra.mxu1 %v24638_v7 }
 0xd35   :  { %24643 = vmatprep.subr.bf16.mxu1 %v27052_v55 }
 0xd36   :  { %24713 = vmatpush3.bf16.msra.mxu0 %v27038_v14 }
 0xd37   :  { %24715 = vmatprep.subr.bf16.mxu0 %v27054_v38 }
 0xd38   :  { %24645 = vmatpush3.bf16.msra.mxu1 %v27052_v55 }
 0xd39   :  { %22624 = vmatmul.mubr.f32.vlgmr.msra.gmra.mrb[12].mxu0 %v6110_v44  ;;  %24647 = vmatprep.subr.bf16.mxu1 %v27056_v11 }
 0xd3a   :  { %24717 = vmatpush3.bf16.msra.mxu0 %v27054_v38  ;;  %22658 = vmatprep.mubr.f32.mxu0 %v27072_v15 }
 0xd3b   :  { %24719 = vmatprep.subr.bf16.mxu0 %v24718_v12 }
 0xd3c   :  { %24649 = vmatpush3.bf16.msra.mxu1 %v27056_v11 }
 0xd3e   :  { %24721 = vmatpush3.bf16.msra.mxu0 %v24718_v12  ;;  %v24798_v12 = vpack.c.bf16 %v6866_v46, %v6859_v43 }
 0xd3f   :  { %22554 = vmatmul.mubr.f32.vlgmr.msra.gmra.mrb[12].mxu1 %v27069_v4  ;;  %24723 = vmatprep.subr.bf16.mxu0 %v24722_v2 }
 0xd42   :  { %24725 = vmatpush3.bf16.msra.mxu0 %v24722_v2 }
 0xd43   :  { %24727 = vmatprep.subr.bf16.mxu0 %v24726_v28 }
 0xd46   :  { %24729 = vmatpush3.bf16.msra.mxu0 %v24726_v28  ;;  %v24814_v28 = vpack.c.bf16 %v6867_v62, %v6860_v45 }
 0xd47   :  { %24731 = vmatprep.subr.bf16.mxu0 %v24730_v30 }
 0xd4a   :  { %24733 = vmatpush3.bf16.msra.mxu0 %v24730_v30 }
 0xd4b   :  { %24735 = vmatprep.subr.bf16.mxu0 %v24734_v40 }
 0xd4e   :  { %24737 = vmatpush3.bf16.msra.mxu0 %v24734_v40 }
 0xd4f   :  { %24739 = vmatprep.subr.bf16.mxu0 %v27058_v5 }
 0xd52   :  { %24741 = vmatpush3.bf16.msra.mxu0 %v27058_v5 }
 0xd53   :  { %24743 = vmatprep.subr.bf16.mxu0 %v27060_v35 }
 0xd56   :  { %24745 = vmatpush3.bf16.msra.mxu0 %v27060_v35 }
 0xd57   :  { %24747 = vmatprep.subr.bf16.mxu0 %v26913_v22 }
 0xd59   :  { %22659 = vmatmul.mubr.f32.vlgmr.msra.gmra.mrb[12].mxu0 %v27069_v4 }
 0xd5a   :  { %24749 = vmatpush3.bf16.msra.mxu0 %v26913_v22  ;;  %22693 = vmatprep.mubr.f32.mxu0 %v27072_v15  ;;  %v20635_v15 = vld [vmem:[%s28906_s2 + $0x20] sm:$0xff] }
 0xd5b   :  { %24751 = vmatprep.subr.bf16.mxu0 %v26921_v29  ;;  %v6755_v44 = vand.u32 4294901760, %v20635_v15 }
 0xd5d   :  { %v27205_v9 = vpack.c.bf16 %v6758_v58, %v6755_v44  ;;  %v6845_v31 = vsub.f32 %v20635_v15, %v6755_v44 }
 0xd5e   :  { %24753 = vmatpush3.bf16.msra.mxu0 %v26921_v29 }
 0xd5f   :  { %24755 = vmatprep.subr.bf16.mxu0 %v26925_v34  ;;  %24779 = vmatprep.subr.bf16.mxu1 %v27205_v9  ;;  %v6846_v24 = vand.u32 4294901760, %v6845_v31  ;;  %v24794_v7 = vpack.c.bf16 %v6852_v32, %v6845_v31 }
 0xd60   :  { %24781 = vmatpush3.bf16.msra.mxu1 %v27205_v9 }
 0xd61   :  { %24783 = vmatprep.subr.bf16.mxu1 %v27207_v10  ;;  %v6847_v39 = vsub.f32 %v6845_v31, %v6846_v24  ;;  %v24810_v2 = vpack.c.bf16 %v6853_v13, %v6846_v24 }
 0xd62   :  { %24757 = vmatpush3.bf16.msra.mxu0 %v26925_v34  ;;  %v27175_v34 = vsub.s32 5, %v26573_v52 }
 0xd63   :  { %24759 = vmatprep.subr.bf16.mxu0 %v26941_v47  ;;  %v6848_v48 = vand.u32 4294901760, %v6847_v39 }
 0xd64   :  { %v6016_v41 = vrot.slane %v26832_v16, %v27175_v34  ;;  %24785 = vmatpush3.bf16.msra.mxu1 %v27207_v10 }
 0xd65   :  { %v24786_v61 = vpack.c.bf16 %v6855_v57, %v6848_v48 }
 0xd66   :  { %24761 = vmatpush3.bf16.msra.mxu0 %v26941_v47 }
 0xd67   :  { %24763 = vmatprep.subr.bf16.mxu0 %v26955_v60  ;;  %24787 = vmatprep.subr.bf16.mxu1 %v24786_v61 }
 0xd6a   :  { %24765 = vmatpush3.bf16.msra.mxu0 %v26955_v60 }
 0xd6b   :  { %24767 = vmatprep.subr.bf16.mxu0 %v26969_v6 }
 0xd6e   :  { %24769 = vmatpush3.bf16.msra.mxu0 %v26969_v6 }
 0xd6f   :  { %24771 = vmatprep.subr.bf16.mxu0 %v27036_v17 }
 0xd72   :  { %24773 = vmatpush3.bf16.msra.mxu0 %v27036_v17 }
 0xd73   :  { %24775 = vmatprep.subr.bf16.mxu0 %v27038_v14 }
 0xd76   :  { %24777 = vmatpush3.bf16.msra.mxu0 %v27038_v14 }
 0xd79   :  { %22694 = vmatmul.mubr.f32.vlgmr.msra.gmra.mrb[12].mxu0 %v27069_v4 }
 0xe12   :  { %v22555_v22 = vpop.f32.mrb[12].mxu1 }
 0xe13   :  { %v6265_v29 = vpop.f32.mrb[13].mxu1  ;;  %v25896_v47 = vadd.f32 %v22555_v22, %v6016_v41 }
 0xe14   :  { %v25898_v49 = vadd.f32 %v6265_v29, %v6016_v41 }
 0xe4c   :  { %v22695_v50 = vpop.f32.mrb[12].mxu0 }
 0xe4d   :  { %v25897_v60 = vadd.f32 %v25896_v47, %v22695_v50  ;;  %v6691_v6 = vpop.f32.mrb[13].mxu0 }
 0xe4e   :  { %v25899_v17 = vadd.f32 %v25898_v49, %v6691_v6  ;;  %v20634_v49 = vld [vmem:[%s28910_s6 + $0x8] sm:$0xff] }
 0xe4f   :  { %v27180_v55 = vadd.f32 %v25897_v60, %v26839_v23  ;;  %v6734_v50 = vrot.slane %v20634_v49, %v26576_v54 }
 0xe50   :  { %v27183_v14 = vadd.f32 %v25899_v17, %v26844_v3 }
 0xe51   :  { %v6708_v38 = vsel %vm38_vm0, %v27180_v55, 0.0 }
 0xe52   :  { %6709 = vadd.xlane.f32.xlu1 %v6708_v38  ;;  %v6705_v52 = vsel %vm38_vm0, %v27183_v14, 0.0  ;;  %v6740_v38 = vrot.slane %v20634_v49, %v26582_v56 }
 0xe53   :  { %6706 = vadd.xlane.f32.xlu0 %v6705_v52 }
 0xedf   :  { %v6710_v16 = vpop.xlane.xlu1 %6709 }
 0xee0   :  { %v6712_v11 = vmul.f32 0.03125, %v6710_v16  ;;  %v6707_v5 = vpop.xlane.xlu0 %6706 }
 0xee1   :  { %v6711_v35 = vmul.f32 0.03125, %v6707_v5 }
 0xee2   :  { %v6714_v33 = vsub.f32 %v27180_v55, %v6712_v11 }
 0xee3   :  { %v6713_v23 = vsub.f32 %v27183_v14, %v6711_v35 }
 0xee4   :  { %v6716_v25 = vmul.f32 %v6714_v33, %v6714_v33 }
 0xee5   :  { %v6715_v4 = vmul.f32 %v6713_v23, %v6713_v23 }
 0xee6   :  { %v6720_v3 = vsel %vm38_vm0, %v6716_v25, 0.0 }
 0xee7   :  { %6721 = vadd.xlane.f32.xlu1 %v6720_v3  ;;  %v6717_v18 = vsel %vm38_vm0, %v6715_v4, 0.0 }
 0xee8   :  { %6718 = vadd.xlane.f32.xlu0 %v6717_v18 }
 0xf74   :  { %v6722_v30 = vpop.xlane.xlu1 %6721 }
 0xf75   :  { %v6724_v40 = vmul.f32 0.03125, %v6722_v30  ;;  %v6719_v22 = vpop.xlane.xlu0 %6718 }
 0xf76   :  { %v6723_v29 = vmul.f32 0.03125, %v6719_v22 }
 0xf77   :  { %v6726_v41 = vadd.f32 1e-05, %v6724_v40 }
 0xf78   :  { %v6725_v47 = vadd.f32 1e-05, %v6723_v29 }
 0xf79   :  { %26352 = vrsqrt.f32 %v6726_v41 }
 0xf7a   :  { %26354 = vrsqrt.f32 %v6725_v47 }
 0xf83   :  { %v26353_v60 = vpop.eup %26352 }
 0xf84   :  { %v26355_v6 = vpop.eup %26354  ;;  %v6730_v17 = vmul.f32 %v26353_v60, %v6714_v33 }
 0xf85   :  { %v6729_v52 = vmul.f32 %v26355_v6, %v6713_v23 }
 0xf86   :  { %v6736_v16 = vmul.f32 %v6734_v50, %v6730_v17  ;;  %v27251_v17 = vld [vmem:[%s28904_s0] sm:$0xff] }
 0xf87   :  { %v6735_v11 = vmul.f32 %v6734_v50, %v6729_v52  ;;  %v27245_v50 = vld [vmem:[%s28904_s0 + $0x8] sm:$0xff] }
 0xf88   :  { %v6742_v5 = vadd.f32 %v6740_v38, %v6736_v16 }
 0xf89   :  { %v6741_v35 = vadd.f32 %v6740_v38, %v6735_v11 }
 0xf8a   :  { %v6752_v25 = vsel %vm38_vm0, %v6742_v5, 0 }
 0xf8b   :  { %v6749_v4 = vsel %vm38_vm0, %v6741_v35, 0  ;;  %v6833_v3 = vand.u32 4294901760, %v6752_v25 }
 0xf8c   :  { %v6823_v18 = vand.u32 4294901760, %v6749_v4 }
 0xf8d   :  { %v6834_v15 = vsub.f32 %v6752_v25, %v6833_v3 }
 0xf8e   :  { %v6824_v37 = vsub.f32 %v6749_v4, %v6823_v18 }
 0xf8f   :  { %v6835_v36 = vand.u32 4294901760, %v6834_v15 }
 0xf90   :  { %v6825_v44 = vand.u32 4294901760, %v6824_v37 }
 0xf91   :  { %v6836_v58 = vsub.f32 %v6834_v15, %v6835_v36 }
 0xf92   :  { %v6826_v59 = vsub.f32 %v6824_v37, %v6825_v44 }
 0xf93   :  { %v6837_v8 = vand.u32 4294901760, %v6836_v58 }
 0xf94   :  { %v6827_v33 = vand.u32 4294901760, %v6826_v59 }
 0xf96   :  { %22704 = vmatprep.mubr.f32.mxu1 %v6827_v33 }
 0xf97   :  { %22705 = vmatmul.mubr.f32.vlgmr.msra.gmra.mrb[14].mxu1 %v6837_v8 }
 0xf98   :  { %24789 = vmatpush3.bf16.msra.mxu1 %v24786_v61  ;;  %22715 = vmatprep.mubr.f32.mxu1 %v6823_v18 }
 0xf99   :  { %24791 = vmatprep.subr.bf16.mxu1 %v24790_v27 }
 0xf9c   :  { %24793 = vmatpush3.bf16.msra.mxu1 %v24790_v27 }
 0xf9d   :  { %24795 = vmatprep.subr.bf16.mxu1 %v24794_v7 }
 0xf9f   :  { %22716 = vmatmul.mubr.f32.vlgmr.msra.gmra.mrb[14].mxu1 %v6833_v3 }
 0xfa0   :  { %24797 = vmatpush3.bf16.msra.mxu1 %v24794_v7  ;;  %22726 = vmatprep.mubr.f32.mxu1 %v6824_v37 }
 0xfa1   :  { %24799 = vmatprep.subr.bf16.mxu1 %v24798_v12 }
 0xfa4   :  { %24801 = vmatpush3.bf16.msra.mxu1 %v24798_v12 }
 0xfa5   :  { %24803 = vmatprep.subr.bf16.mxu1 %v27205_v9 }
 0xfa7   :  { %22727 = vmatmul.mubr.f32.vlgmr.msra.gmra.mrb[14].mxu1 %v6834_v15 }
 0xfa8   :  { %24805 = vmatpush3.bf16.msra.mxu1 %v27205_v9  ;;  %22737 = vmatprep.mubr.f32.mxu1 %v6825_v44 }
 0xfa9   :  { %24807 = vmatprep.subr.bf16.mxu1 %v27207_v10 }
 0xfac   :  { %24809 = vmatpush3.bf16.msra.mxu1 %v27207_v10 }
 0xfad   :  { %24811 = vmatprep.subr.bf16.mxu1 %v24810_v2 }
 0xfaf   :  { %22738 = vmatmul.mubr.f32.vlgmr.msra.gmra.mrb[14].mxu1 %v6835_v36 }
 0xfb0   :  { %24813 = vmatpush3.bf16.msra.mxu1 %v24810_v2  ;;  %22748 = vmatprep.mubr.f32.mxu1 %v6823_v18 }
 0xfb1   :  { %24815 = vmatprep.subr.bf16.mxu1 %v24814_v28 }
 0xfb4   :  { %24817 = vmatpush3.bf16.msra.mxu1 %v24814_v28 }
 0xfb5   :  { %24819 = vmatprep.subr.bf16.mxu1 %v27205_v9 }
 0xfb7   :  { %22749 = vmatmul.mubr.f32.vlgmr.msra.gmra.mrb[14].mxu1 %v6833_v3 }
 0xfb8   :  { %24821 = vmatpush3.bf16.msra.mxu1 %v27205_v9  ;;  %22759 = vmatprep.mubr.f32.mxu1 %v6823_v18 }
 0xfb9   :  { %24823 = vmatprep.subr.bf16.mxu1 %v27207_v10 }
 0xfbc   :  { %24825 = vmatpush3.bf16.msra.mxu1 %v27207_v10 }
 0xfbf   :  { %22760 = vmatmul.mubr.f32.vlgmr.msra.gmra.mrb[14].mxu1 %v6833_v3 }
0x1092   :  { %v27228_v23 = vpop.f32.mrb[14].mxu1 }
0x1093   :  { %7286 = vrot.lane.b32.xlu1 %v27228_v23, %s26469_s23  ;;  %v27232_v53 = vpop.f32.mrb[15].mxu1  ;;  %v7290_v10 = vsel %vm622_vm1, %v27228_v23, 0 }
0x1094   :  { %7284 = vrot.lane.b32.xlu0 %v27232_v53, %s26469_s23  ;;  %v7288_v31 = vsel %vm622_vm1, %v27232_v53, 0  ;;  %v7373_v42 = vand.u32 4294901760, %v7290_v10 }
0x1095   :  { %v7363_v9 = vand.u32 4294901760, %v7288_v31 }
0x1096   :  { %v7374_v57 = vsub.f32 %v7290_v10, %v7373_v42 }
0x1097   :  { %v7364_v32 = vsub.f32 %v7288_v31, %v7363_v9 }
0x1098   :  { %v7375_v0 = vand.u32 4294901760, %v7374_v57 }
0x1099   :  { %v7365_v24 = vand.u32 4294901760, %v7364_v32 }
0x109a   :  { %v7376_v2 = vsub.f32 %v7374_v57, %v7375_v0 }
0x109b   :  { %v7366_v13 = vsub.f32 %v7364_v32, %v7365_v24 }
0x109c   :  { %v7377_v22 = vand.u32 4294901760, %v7376_v2 }
0x109d   :  { %v7367_v39 = vand.u32 4294901760, %v7366_v13 }
0x109f   :  { %22766 = vmatprep.mubr.f32.mxu1 %v7367_v39 }
0x1105   :  { %v7287_v43 = vpop.permute.xlu1 %7286 }
0x1106   :  { %v7294_v46 = vsel %vm622_vm1, %v7287_v43, 0  ;;  %v7285_v48 = vpop.permute.xlu0 %7284 }
0x1107   :  { %v7300_v45 = vand.u32 4294901760, %v7294_v46  ;;  %v7292_v62 = vsel %vm622_vm1, %v7285_v48, 0 }
0x1108   :  { %v7297_v61 = vand.u32 4294901760, %v7292_v62 }
0x1109   :  { %v7392_v1 = vsub.f32 %v7294_v46, %v7300_v45 }
0x110a   :  { %v24826_v26 = vpack.c.bf16 %v7300_v45, %v7297_v61  ;;  %v7385_v63 = vsub.f32 %v7292_v62, %v7297_v61 }
0x110b   :  { %v7393_v27 = vand.u32 4294901760, %v7392_v1 }
0x110c   :  { %v7386_v7 = vand.u32 4294901760, %v7385_v63  ;;  %24827 = vmatprep.subr.bf16.mxu1 %v24826_v26  ;;  %v24834_v41 = vpack.c.bf16 %v7392_v1, %v7385_v63 }
0x110d   :  { %24829 = vmatpush3.bf16.xpose.msra.mxu1 %v24826_v26  ;;  %v7394_v12 = vsub.f32 %v7392_v1, %v7393_v27 }
0x110e   :  { %v7387_v28 = vsub.f32 %v7385_v63, %v7386_v7  ;;  %v24842_v47 = vpack.c.bf16 %v7393_v27, %v7386_v7 }
0x110f   :  { %v7395_v30 = vand.u32 4294901760, %v7394_v12 }
0x1110   :  { %v7388_v40 = vand.u32 4294901760, %v7387_v28 }
0x1112   :  { %v24830_v29 = vpack.c.bf16 %v7395_v30, %v7388_v40 }
0x1114   :  { %22767 = vmatmul.mubr.f32.vlgmr.msra.gmra.mrb[16].mxu1 %v7377_v22  ;;  %24831 = vmatprep.subr.bf16.mxu1 %v24830_v29 }
0x1115   :  { %24833 = vmatpush3.bf16.xpose.msra.mxu1 %v24830_v29  ;;  %22773 = vmatprep.mubr.f32.mxu1 %v7363_v9 }
0x1116   :  { %24835 = vmatprep.subr.bf16.mxu1 %v24834_v41 }
0x111c   :  { %22774 = vmatmul.mubr.f32.vlgmr.msra.gmra.mrb[16].mxu1 %v7373_v42 }
0x111d   :  { %24837 = vmatpush3.bf16.xpose.msra.mxu1 %v24834_v41  ;;  %22780 = vmatprep.mubr.f32.mxu1 %v7364_v32 }
0x111e   :  { %24839 = vmatprep.subr.bf16.mxu1 %v24826_v26 }
0x1124   :  { %22781 = vmatmul.mubr.f32.vlgmr.msra.gmra.mrb[16].mxu1 %v7374_v57 }
0x1125   :  { %24841 = vmatpush3.bf16.xpose.msra.mxu1 %v24826_v26  ;;  %22787 = vmatprep.mubr.f32.mxu1 %v7365_v24 }
0x1126   :  { %24843 = vmatprep.subr.bf16.mxu1 %v24842_v47 }
0x112c   :  { %22788 = vmatmul.mubr.f32.vlgmr.msra.gmra.mrb[16].mxu1 %v7375_v0 }
0x112d   :  { %24845 = vmatpush3.bf16.xpose.msra.mxu1 %v24842_v47  ;;  %22794 = vmatprep.mubr.f32.mxu1 %v7363_v9 }
0x112e   :  { %24847 = vmatprep.subr.bf16.mxu1 %v24826_v26 }
0x1134   :  { %22795 = vmatmul.mubr.f32.vlgmr.msra.gmra.mrb[16].mxu1 %v7373_v42 }
0x1135   :  { %24849 = vmatpush3.bf16.xpose.msra.mxu1 %v24826_v26  ;;  %22801 = vmatprep.mubr.f32.mxu1 %v7363_v9 }
0x113c   :  { %22802 = vmatmul.mubr.f32.vlgmr.msra.gmra.mrb[16].mxu1 %v7373_v42 }
0x120f   :  { %v22803_v49 = vpop.f32.mrb[16].mxu1 }
0x1210   :  { %v25900_v60 = vadd.f32 %v27245_v50, %v22803_v49  ;;  %v7788_v6 = vpop.f32.mrb[17].mxu1 }
0x1211   :  { %v25901_v38 = vadd.f32 %v27251_v17, %v7788_v6 }
0x1212   :  { %v7801_v52 = vsel %vm1133_vm2, %v25900_v60, -inf }
0x1213   :  { %7802 = vmax.xlane.f32.xlu0 %v7801_v52  ;;  %v7798_v16 = vsel %vm1133_vm2, %v25901_v38, -inf }
0x1214   :  { %7799 = vmax.xlane.f32.xlu1 %v7798_v16 }
0x1225   :  { %7818 = vrot.lane.b32.xlu1 %v27228_v23, %s26472_s30 }
0x1229   :  { %7816 = vrot.lane.b32.xlu0 %v27232_v53, %s26472_s30  ;;  %8340 = vrot.lane.b32.xlu1 %v27232_v53, %s26470_s24 }
0x122d   :  { %8336 = vrot.lane.b32.xlu0 %v27232_v53, %s26471_s25  ;;  %8342 = vrot.lane.b32.xlu1 %v27228_v23, %s26470_s24 }
0x1231   :  { %9396 = vrot.lane.b32.xlu0 %v27232_v53, %s26474_s11  ;;  %8338 = vrot.lane.b32.xlu1 %v27228_v23, %s26471_s25 }
0x1235   :  { %9392 = vrot.lane.b32.xlu0 %v27232_v53, %s26475_s12  ;;  %9398 = vrot.lane.b32.xlu1 %v27228_v23, %s26474_s11 }
0x1239   :  { %9394 = vrot.lane.b32.xlu1 %v27228_v23, %s26475_s12 }
0x12a0   :  { %v7803_v11 = vpop.xlane.xlu0 %7802 }
0x12a1   :  { %v7805_v5 = vsub.f32 %v25900_v60, %v7803_v11  ;;  %v7800_v35 = vpop.xlane.xlu1 %7799 }
0x12a2   :  { %v7804_v25 = vsub.f32 %v25901_v38, %v7800_v35 }
0x12a3   :  { %v7808_v4 = vmul.f32 1.442695, %v7805_v5 }
0x12a4   :  { %v7806_v3 = vmul.f32 1.442695, %v7804_v25  ;;  %v7817_v18 = vpop.permute.xlu0 %7816 }
0x12a5   :  { %26356 = vpow2.f32 %v7808_v4  ;;  %v7829_v15 = vand.u32 4294901760, %v7817_v18  ;;  %v7819_v37 = vpop.permute.xlu1 %7818 }
0x12a6   :  { %26358 = vpow2.f32 %v7806_v3  ;;  %v7832_v36 = vand.u32 4294901760, %v7819_v37 }
0x12a7   :  { %v27276_v44 = vsub.f32 %v7817_v18, %v7829_v15 }
0x12a8   :  { %v27278_v58 = vpack.c.bf16 %v7832_v36, %v7829_v15  ;;  %v27280_v59 = vsub.f32 %v7819_v37, %v7832_v36  ;;  %v27282_v33 = vpop.permute.xlu0 %8336 }
0x12a9   :  { %v7918_v8 = vand.u32 4294901760, %v27276_v44  ;;  %v27285_v31 = vpop.permute.xlu1 %8340 }
0x12aa   :  { %v7925_v9 = vand.u32 4294901760, %v27280_v59  ;;  %24851 = vmatprep.subr.bf16.mxu1 %v27278_v58 }
0x12ab   :  { %24853 = vmatpush3.bf16.msra.mxu1 %v27278_v58  ;;  %v7919_v32 = vsub.f32 %v27276_v44, %v7918_v8 }
0x12ac   :  { %v9397_v24 = vpop.permute.xlu0 %9396  ;;  %v7926_v13 = vsub.f32 %v27280_v59, %v7925_v9 }
0x12ad   :  { %v9404_v39 = vsel %vm622_vm1, %v9397_v24, 0  ;;  %v27297_v10 = vpop.permute.xlu1 %8342  ;;  %v7920_v42 = vand.u32 4294901760, %v7919_v32  ;;  %v24858_v24 = vpack.c.bf16 %v27280_v59, %v27276_v44  ;;  %v8348_v44 = vsel %vm622_vm1, %v27285_v31, 0 }
0x12ae   :  { %v7927_v43 = vand.u32 4294901760, %v7926_v13  ;;  %v9409_v48 = vand.u32 4294901760, %v9404_v39 }
0x12af   :  { %v27299_v46 = vpop.eup %26356 }
0x12b0   :  { %v27301_v57 = vpop.eup %26358  ;;  %v9393_v45 = vpop.permute.xlu0 %9392  ;;  %v24854_v62 = vpack.c.bf16 %v7927_v43, %v7920_v42  ;;  %v7826_v61 = vsel %vm1133_vm2, %v27299_v46, 0  ;;  %v27312_v27 = vsub.f32 %v9404_v39, %v9409_v48 }
0x12b1   :  { %v9400_v1 = vsel %vm622_vm1, %v9393_v45, 0  ;;  %v27306_v26 = vpop.permute.xlu1 %8338  ;;  %v7823_v0 = vsel %vm1133_vm2, %v27301_v57, 0  ;;  %v27316_v12 = vand.u32 4294901760, %v7826_v61 }
0x12b2   :  { %v27308_v63 = vand.u32 4294901760, %v9400_v1  ;;  %24855 = vmatprep.subr.bf16.mxu1 %v24854_v62  ;;  %v27314_v7 = vand.u32 4294901760, %v7823_v0  ;;  %v9498_v41 = vand.u32 4294901760, %v27312_v27 }
0x12b3   :  { %v27323_v40 = vsub.f32 %v7826_v61, %v27316_v12 }
0x12b4   :  { %v27319_v2 = vsub.f32 %v9400_v1, %v27308_v63  ;;  %v7896_v30 = vsub.f32 %v7823_v0, %v27314_v7  ;;  %v9499_v4 = vsub.f32 %v27312_v27, %v9498_v41  ;;  %v8350_v1 = vsel %vm622_vm1, %v27297_v10, 0 }
0x12b5   :  { %v9399_v28 = vpop.permute.xlu1 %9398  ;;  %v7907_v60 = vand.u32 4294901760, %v27323_v40  ;;  %v8344_v0 = vsel %vm622_vm1, %v27282_v33, 0 }
0x12b6   :  { %v9477_v22 = vand.u32 4294901760, %v27319_v2  ;;  %v9406_v29 = vsel %vm622_vm1, %v9399_v28, 0  ;;  %v7897_v49 = vand.u32 4294901760, %v7896_v30  ;;  %v9500_v39 = vand.u32 4294901760, %v9499_v4 }
0x12b7   :  { %v9412_v47 = vand.u32 4294901760, %v9406_v29  ;;  %v7908_v25 = vsub.f32 %v27323_v40, %v7907_v60  ;;  %v8356_v28 = vand.u32 4294901760, %v8350_v1  ;;  %v27366_v59 = vand.u32 4294901760, %v8344_v0 }
0x12b8   :  { %v9478_v6 = vsub.f32 %v27319_v2, %v9477_v22  ;;  %v7898_v11 = vsub.f32 %v7896_v30, %v7897_v49 }
0x12b9   :  { %v27332_v38 = vpack.c.bf16 %v9412_v47, %v9409_v48  ;;  %v9504_v52 = vsub.f32 %v9406_v29, %v9412_v47  ;;  %v9395_v16 = vpop.permute.xlu1 %9394  ;;  %v7909_v37 = vand.u32 4294901760, %v7908_v25  ;;  %v8420_v33 = vsub.f32 %v8344_v0, %v27366_v59 }
0x12ba   :  { %v9402_v5 = vsel %vm622_vm1, %v9395_v16, 0  ;;  %v9479_v35 = vand.u32 4294901760, %v9478_v6  ;;  %v7899_v15 = vand.u32 4294901760, %v7898_v11 }
0x12bb   :  { %v9505_v3 = vand.u32 4294901760, %v9504_v52  ;;  %v27339_v18 = vand.u32 4294901760, %v9402_v5  ;;  %24923 = vmatprep.subr.bf16.mxu0 %v27332_v38  ;;  %v24930_v61 = vpack.c.bf16 %v9504_v52, %v27312_v27  ;;  %v8421_v29 = vand.u32 4294901760, %v8420_v33 }
0x12bc   :  { %24925 = vmatpush3.bf16.xpose.msra.mxu0 %v27332_v38  ;;  %22934 = vmatprep.mubr.f32.mxu0 %v9479_v35 }
0x12bd   :  { %v9506_v36 = vsub.f32 %v9504_v52, %v9505_v3  ;;  %v9486_v32 = vsub.f32 %v9402_v5, %v27339_v18  ;;  %22808 = vmatprep.mubr.f32.mxu1 %v7899_v15  ;;  %v24938_v10 = vpack.c.bf16 %v9505_v3, %v9498_v41 }
0x12be   :  { %22809 = vmatmul.mubr.f32.vlgmr.msra.gmra.mrb[18].mxu1 %v7909_v37 }
0x12bf   :  { %v9487_v13 = vand.u32 4294901760, %v9486_v32  ;;  %24857 = vmatpush3.bf16.msra.mxu1 %v24854_v62  ;;  %22815 = vmatprep.mubr.f32.mxu1 %v27314_v7  ;;  %v9507_v42 = vand.u32 4294901760, %v9506_v36  ;;  %v24866_v62 = vpack.c.bf16 %v7925_v9, %v7918_v8  ;;  %v8353_v8 = vand.u32 4294901760, %v8348_v44 }
0x12c0   :  { %24859 = vmatprep.subr.bf16.mxu1 %v24858_v24  ;;  %v8448_v9 = vsub.f32 %v8350_v1, %v8356_v28 }
0x12c1   :  { %v9488_v43 = vsub.f32 %v9486_v32, %v9487_v13  ;;  %v24926_v48 = vpack.c.bf16 %v9507_v42, %v9500_v39  ;;  %v8441_v31 = vsub.f32 %v8348_v44, %v8353_v8 }
0x12c3   :  { %v9489_v45 = vand.u32 4294901760, %v9488_v43  ;;  %24927 = vmatprep.subr.bf16.mxu0 %v24926_v48  ;;  %v8442_v47 = vand.u32 4294901760, %v8441_v31  ;;  %v24882_v5 = vpack.c.bf16 %v8448_v9, %v8441_v31 }
0x12c5   :  { %22935 = vmatmul.mubr.f32.vlgmr.msra.gmra.mrb[14].mxu0 %v9489_v45 }
0x12c6   :  { %22816 = vmatmul.mubr.f32.vlgmr.msra.gmra.mrb[18].mxu1 %v27316_v12  ;;  %24929 = vmatpush3.bf16.xpose.msra.mxu0 %v24926_v48 }
0x12c7   :  { %24861 = vmatpush3.bf16.msra.mxu1 %v24858_v24  ;;  %22822 = vmatprep.mubr.f32.mxu1 %v7896_v30  ;;  %v8346_v30 = vsel %vm622_vm1, %v27306_v26, 0  ;;  %v8422_v26 = vsub.f32 %v8420_v33, %v8421_v29 }
0x12c8   :  { %24863 = vmatprep.subr.bf16.mxu1 %v27278_v58  ;;  %22941 = vmatprep.mubr.f32.mxu0 %v27308_v63 }
0x12c9   :  { %24931 = vmatprep.subr.bf16.mxu0 %v24930_v61  ;;  %v8423_v52 = vand.u32 4294901760, %v8422_v26 }
0x12cd   :  { %22942 = vmatmul.mubr.f32.vlgmr.msra.gmra.mrb[14].mxu0 %v27339_v18 }
0x12ce   :  { %22823 = vmatmul.mubr.f32.vlgmr.msra.gmra.mrb[18].mxu1 %v27323_v40  ;;  %24933 = vmatpush3.bf16.xpose.msra.mxu0 %v24930_v61  ;;  %v8449_v40 = vand.u32 4294901760, %v8448_v9 }
0x12cf   :  { %24865 = vmatpush3.bf16.msra.mxu1 %v27278_v58  ;;  %22829 = vmatprep.mubr.f32.mxu1 %v7897_v49  ;;  %v8429_v49 = vand.u32 4294901760, %v8346_v30 }
0x12d0   :  { %24867 = vmatprep.subr.bf16.mxu1 %v24866_v62  ;;  %22948 = vmatprep.mubr.f32.mxu0 %v27319_v2  ;;  %v8450_v27 = vsub.f32 %v8448_v9, %v8449_v40  ;;  %v8443_v2 = vsub.f32 %v8441_v31, %v8442_v47 }
0x12d1   :  { %24935 = vmatprep.subr.bf16.mxu0 %v27332_v38 }
0x12d2   :  { %v8451_v41 = vand.u32 4294901760, %v8450_v27  ;;  %v8444_v16 = vand.u32 4294901760, %v8443_v2 }
0x12d5   :  { %22949 = vmatmul.mubr.f32.vlgmr.msra.gmra.mrb[14].mxu0 %v9486_v32 }
0x12d6   :  { %22830 = vmatmul.mubr.f32.vlgmr.msra.gmra.mrb[18].mxu1 %v7907_v60  ;;  %24937 = vmatpush3.bf16.xpose.msra.mxu0 %v27332_v38  ;;  %v24874_v60 = vpack.c.bf16 %v8356_v28, %v8353_v8 }
0x12d7   :  { %24869 = vmatpush3.bf16.msra.mxu1 %v24866_v62  ;;  %22836 = vmatprep.mubr.f32.mxu1 %v27314_v7 }
0x12d8   :  { %24871 = vmatprep.subr.bf16.mxu1 %v27278_v58  ;;  %22955 = vmatprep.mubr.f32.mxu0 %v9477_v22  ;;  %v8430_v22 = vsub.f32 %v8346_v30, %v8429_v49 }
0x12d9   :  { %24939 = vmatprep.subr.bf16.mxu0 %v24938_v10 }
0x12da   :  { %v8431_v6 = vand.u32 4294901760, %v8430_v22 }
0x12dd   :  { %22956 = vmatmul.mubr.f32.vlgmr.msra.gmra.mrb[14].mxu0 %v9487_v13 }
0x12de   :  { %22837 = vmatmul.mubr.f32.vlgmr.msra.gmra.mrb[18].mxu1 %v27316_v12  ;;  %24941 = vmatpush3.bf16.xpose.msra.mxu0 %v24938_v10 }
0x12df   :  { %24873 = vmatpush3.bf16.msra.mxu1 %v27278_v58  ;;  %22843 = vmatprep.mubr.f32.mxu1 %v27314_v7  ;;  %v24878_v58 = vpack.c.bf16 %v8451_v41, %v8444_v16  ;;  %v8432_v7 = vsub.f32 %v8430_v22, %v8431_v6 }
0x12e0   :  { %24875 = vmatprep.subr.bf16.mxu1 %v24874_v60  ;;  %22962 = vmatprep.mubr.f32.mxu0 %v27308_v63 }
0x12e1   :  { %24943 = vmatprep.subr.bf16.mxu0 %v27332_v38  ;;  %v8433_v11 = vand.u32 4294901760, %v8432_v7 }
0x12e5   :  { %22963 = vmatmul.mubr.f32.vlgmr.msra.gmra.mrb[14].mxu0 %v27339_v18 }
0x12e6   :  { %22844 = vmatmul.mubr.f32.vlgmr.msra.gmra.mrb[18].mxu1 %v27316_v12  ;;  %24945 = vmatpush3.bf16.xpose.msra.mxu0 %v27332_v38  ;;  %v24890_v12 = vpack.c.bf16 %v8449_v40, %v8442_v47 }
0x12e7   :  { %22850 = vmatprep.mubr.f32.mxu1 %v8423_v52  ;;  %22969 = vmatprep.mubr.f32.mxu0 %v27308_v63 }
0x12e8   :  { %24877 = vmatpush3.bf16.xpose.msra.mxu1 %v24874_v60 }
0x12e9   :  { %24879 = vmatprep.subr.bf16.mxu1 %v24878_v58 }
0x12ed   :  { %22970 = vmatmul.mubr.f32.vlgmr.msra.gmra.mrb[14].mxu0 %v27339_v18 }
0x12ef   :  { %22851 = vmatmul.mubr.f32.vlgmr.msra.gmra.mrb[20].mxu1 %v8433_v11 }
0x12f0   :  { %24881 = vmatpush3.bf16.xpose.msra.mxu1 %v24878_v58  ;;  %22857 = vmatprep.mubr.f32.mxu1 %v27366_v59 }
0x12f1   :  { %24883 = vmatprep.subr.bf16.mxu1 %v24882_v5 }
0x12f7   :  { %22858 = vmatmul.mubr.f32.vlgmr.msra.gmra.mrb[20].mxu1 %v8429_v49 }
0x12f8   :  { %24885 = vmatpush3.bf16.xpose.msra.mxu1 %v24882_v5  ;;  %22864 = vmatprep.mubr.f32.mxu1 %v8420_v33 }
0x12f9   :  { %24887 = vmatprep.subr.bf16.mxu1 %v24874_v60 }
0x12ff   :  { %22865 = vmatmul.mubr.f32.vlgmr.msra.gmra.mrb[20].mxu1 %v8430_v22 }
0x1300   :  { %24889 = vmatpush3.bf16.xpose.msra.mxu1 %v24874_v60  ;;  %22871 = vmatprep.mubr.f32.mxu1 %v8421_v29 }
0x1301   :  { %24891 = vmatprep.subr.bf16.mxu1 %v24890_v12 }
0x1307   :  { %22872 = vmatmul.mubr.f32.vlgmr.msra.gmra.mrb[20].mxu1 %v8431_v6 }
0x1308   :  { %24893 = vmatpush3.bf16.xpose.msra.mxu1 %v24890_v12  ;;  %22878 = vmatprep.mubr.f32.mxu1 %v27366_v59 }
0x1309   :  { %24895 = vmatprep.subr.bf16.mxu1 %v24874_v60 }
0x130f   :  { %22879 = vmatmul.mubr.f32.vlgmr.msra.gmra.mrb[20].mxu1 %v8429_v49 }
0x1310   :  { %24897 = vmatpush3.bf16.xpose.msra.mxu1 %v24874_v60  ;;  %22885 = vmatprep.mubr.f32.mxu1 %v27366_v59 }
0x1317   :  { %22886 = vmatmul.mubr.f32.vlgmr.msra.gmra.mrb[20].mxu1 %v8429_v49 }
0x13b9   :  { %v27391_v63 = vpop.f32.mrb[18].mxu1 }
0x13ba   :  { %v27393_v38 = vpop.f32.mrb[19].mxu1 }
0x13c0   :  { %v22971_v35 = vpop.f32.mrb[14].mxu0 }
0x13c1   :  { %v9900_v25 = vpop.f32.mrb[15].mxu0  ;;  %v27404_v32 = vadd.f32 %v27245_v50, %v22971_v35 }
0x13c2   :  { %v27407_v24 = vadd.f32 %v27251_v17, %v9900_v25 }
0x13c3   :  { %v9913_v13 = vsel %vm1133_vm2, %v27404_v32, -inf }
0x13c4   :  { %v9910_v39 = vsel %vm1133_vm2, %v27407_v24, -inf }
0x13ea   :  { %v22887_v4 = vpop.f32.mrb[20].mxu1 }
0x13eb   :  { %v25902_v3 = vadd.f32 %v27245_v50, %v22887_v4  ;;  %v8844_v18 = vpop.f32.mrb[21].mxu1 }
0x13ec   :  { %v25903_v15 = vadd.f32 %v27251_v17, %v8844_v18 }
0x13ed   :  { %v8857_v37 = vsel %vm1133_vm2, %v25902_v3, -inf }
0x13ee   :  { %8858 = vmax.xlane.f32.xlu1 %v8857_v37  ;;  %v8854_v36 = vsel %vm1133_vm2, %v25903_v15, -inf }
0x13ef   :  { %8855 = vmax.xlane.f32.xlu0 %v8854_v36 }
0x13ff   :  { %8874 = vrot.lane.b32.xlu1 %v27228_v23, %s26473_s10 }
0x1405   :  { %8872 = vrot.lane.b32.xlu0 %v27232_v53, %s26473_s10 }
0x1423   :  { %9914 = vmax.xlane.f32.xlu1 %v9913_v13 }
0x1424   :  { %9911 = vmax.xlane.f32.xlu0 %v9910_v39 }
0x1434   :  { %9930 = vrot.lane.b32.xlu1 %v27228_v23, %s26476_s13 }
0x1438   :  { %10454 = vrot.lane.b32.xlu1 %v27228_v23, %s26477_s14 }
0x143a   :  { %9928 = vrot.lane.b32.xlu0 %v27232_v53, %s26476_s13 }
0x143c   :  { %10450 = vrot.lane.b32.xlu1 %v27228_v23, %s26478_s15 }
0x143e   :  { %10452 = vrot.lane.b32.xlu0 %v27232_v53, %s26477_s14 }
0x1442   :  { %10448 = vrot.lane.b32.xlu0 %v27232_v53, %s26478_s15 }
0x147b   :  { %v8859_v42 = vpop.xlane.xlu1 %8858 }
0x147c   :  { %v8861_v43 = vsub.f32 %v25902_v3, %v8859_v42  ;;  %v8856_v48 = vpop.xlane.xlu0 %8855 }
0x147d   :  { %v8860_v45 = vsub.f32 %v25903_v15, %v8856_v48 }
0x147e   :  { %v8864_v61 = vmul.f32 1.442695, %v8861_v43 }
0x147f   :  { %v8862_v62 = vmul.f32 1.442695, %v8860_v45  ;;  %v8875_v1 = vpop.permute.xlu1 %8874 }
0x1480   :  { %26360 = vpow2.f32 %v8864_v61  ;;  %v8888_v0 = vand.u32 4294901760, %v8875_v1  ;;  %v8873_v44 = vpop.permute.xlu0 %8872 }
0x1481   :  { %26362 = vpow2.f32 %v8862_v62  ;;  %v8885_v28 = vand.u32 4294901760, %v8873_v44 }
0x1482   :  { %v8980_v59 = vsub.f32 %v8875_v1, %v8888_v0 }
0x1483   :  { %v24898_v8 = vpack.c.bf16 %v8888_v0, %v8885_v28  ;;  %v8973_v9 = vsub.f32 %v8873_v44, %v8885_v28 }
0x1484   :  { %v8981_v10 = vand.u32 4294901760, %v8980_v59 }
0x1485   :  { %v8974_v33 = vand.u32 4294901760, %v8973_v9  ;;  %24899 = vmatprep.subr.bf16.mxu1 %v24898_v8  ;;  %v24906_v12 = vpack.c.bf16 %v8980_v59, %v8973_v9 }
0x1486   :  { %v8982_v31 = vsub.f32 %v8980_v59, %v8981_v10  ;;  %24901 = vmatpush3.bf16.msra.mxu1 %v24898_v8 }
0x1487   :  { %v8975_v30 = vsub.f32 %v8973_v9, %v8974_v33  ;;  %v24914_v35 = vpack.c.bf16 %v8981_v10, %v8974_v33 }
0x1488   :  { %v8983_v40 = vand.u32 4294901760, %v8982_v31 }
0x1489   :  { %v8976_v29 = vand.u32 4294901760, %v8975_v30 }
0x148a   :  { %v27425_v47 = vpop.eup %26360 }
0x148b   :  { %v27427_v49 = vpop.eup %26362  ;;  %v8882_v60 = vsel %vm1133_vm2, %v27425_v47, 0  ;;  %v24902_v27 = vpack.c.bf16 %v8983_v40, %v8976_v29 }
0x148c   :  { %v8961_v2 = vand.u32 4294901760, %v8882_v60  ;;  %v8879_v22 = vsel %vm1133_vm2, %v27427_v49, 0 }
0x148d   :  { %24903 = vmatprep.subr.bf16.mxu1 %v24902_v27  ;;  %v8951_v26 = vand.u32 4294901760, %v8879_v22 }
0x148e   :  { %v8962_v41 = vsub.f32 %v8882_v60, %v8961_v2 }
0x148f   :  { %v8952_v6 = vsub.f32 %v8879_v22, %v8951_v26 }
0x1490   :  { %v8963_v52 = vand.u32 4294901760, %v8962_v41 }
0x1491   :  { %v8953_v16 = vand.u32 4294901760, %v8952_v6 }
0x1492   :  { %v8964_v58 = vsub.f32 %v8962_v41, %v8963_v52 }
0x1493   :  { %v8954_v7 = vsub.f32 %v8952_v6, %v8953_v16 }
0x1494   :  { %v8965_v5 = vand.u32 4294901760, %v8964_v58 }
0x1495   :  { %v8955_v11 = vand.u32 4294901760, %v8954_v7 }
0x1497   :  { %22892 = vmatprep.mubr.f32.mxu1 %v8955_v11 }
0x1498   :  { %22893 = vmatmul.mubr.f32.vlgmr.msra.gmra.mrb[22].mxu1 %v8965_v5 }
0x1499   :  { %24905 = vmatpush3.bf16.msra.mxu1 %v24902_v27  ;;  %22899 = vmatprep.mubr.f32.mxu1 %v8951_v26 }
0x149a   :  { %24907 = vmatprep.subr.bf16.mxu1 %v24906_v12 }
0x14a0   :  { %22900 = vmatmul.mubr.f32.vlgmr.msra.gmra.mrb[22].mxu1 %v8961_v2 }
0x14a1   :  { %24909 = vmatpush3.bf16.msra.mxu1 %v24906_v12  ;;  %22906 = vmatprep.mubr.f32.mxu1 %v8952_v6 }
0x14a2   :  { %24911 = vmatprep.subr.bf16.mxu1 %v24898_v8 }
0x14a8   :  { %22907 = vmatmul.mubr.f32.vlgmr.msra.gmra.mrb[22].mxu1 %v8962_v41 }
0x14a9   :  { %24913 = vmatpush3.bf16.msra.mxu1 %v24898_v8  ;;  %22913 = vmatprep.mubr.f32.mxu1 %v8953_v16 }
0x14aa   :  { %24915 = vmatprep.subr.bf16.mxu1 %v24914_v35 }
0x14b0   :  { %22914 = vmatmul.mubr.f32.vlgmr.msra.gmra.mrb[22].mxu1 %v8963_v52  ;;  %v9915_v25 = vpop.xlane.xlu1 %9914 }
0x14b1   :  { %24917 = vmatpush3.bf16.msra.mxu1 %v24914_v35  ;;  %v9917_v4 = vsub.f32 %v27404_v32, %v9915_v25  ;;  %v9912_v3 = vpop.xlane.xlu0 %9911  ;;  %22920 = vmatprep.mubr.f32.mxu1 %v8951_v26 }
0x14b2   :  { %v9916_v18 = vsub.f32 %v27407_v24, %v9912_v3  ;;  %24919 = vmatprep.subr.bf16.mxu1 %v24898_v8 }
0x14b3   :  { %v9920_v15 = vmul.f32 1.442695, %v9917_v4 }
0x14b4   :  { %v9918_v37 = vmul.f32 1.442695, %v9916_v18  ;;  %v9931_v36 = vpop.permute.xlu1 %9930 }
0x14b5   :  { %26364 = vpow2.f32 %v9920_v15  ;;  %v9944_v13 = vand.u32 4294901760, %v9931_v36  ;;  %v9929_v39 = vpop.permute.xlu0 %9928 }
0x14b6   :  { %26366 = vpow2.f32 %v9918_v37  ;;  %v9941_v42 = vand.u32 4294901760, %v9929_v39 }
0x14b7   :  { %v10036_v43 = vsub.f32 %v9931_v36, %v9944_v13 }
0x14b8   :  { %v27435_v48 = vpack.c.bf16 %v9944_v13, %v9941_v42  ;;  %v10029_v45 = vsub.f32 %v9929_v39, %v9941_v42  ;;  %22921 = vmatmul.mubr.f32.vlgmr.msra.gmra.mrb[22].mxu1 %v8961_v2  ;;  %v10455_v6 = vpop.permute.xlu1 %10454 }
0x14b9   :  { %v10037_v61 = vand.u32 4294901760, %v10036_v43  ;;  %24921 = vmatpush3.bf16.msra.mxu1 %v24898_v8  ;;  %22927 = vmatprep.mubr.f32.mxu1 %v8951_v26  ;;  %v10453_v41 = vpop.permute.xlu0 %10452  ;;  %v10462_v58 = vsel %vm622_vm1, %v10455_v6, 0 }
0x14ba   :  { %v10030_v32 = vand.u32 4294901760, %v10029_v45  ;;  %24947 = vmatprep.subr.bf16.mxu1 %v27435_v48  ;;  %v10460_v7 = vsel %vm622_vm1, %v10453_v41, 0  ;;  %v10468_v5 = vand.u32 4294901760, %v10462_v58  ;;  %v8869_v41 = vsel %vm1133_vm2, %v27425_v47, 0.0 }
0x14bb   :  { %v10038_v24 = vsub.f32 %v10036_v43, %v10037_v61  ;;  %v10465_v12 = vand.u32 4294901760, %v10460_v7 }
0x14bc   :  { %v10031_v62 = vsub.f32 %v10029_v45, %v10030_v32  ;;  %v24962_v52 = vpack.c.bf16 %v10037_v61, %v10030_v32  ;;  %v10560_v25 = vsub.f32 %v10462_v58, %v10468_v5  ;;  %v10451_v3 = vpop.permute.xlu1 %10450 }
0x14bd   :  { %v10039_v1 = vand.u32 4294901760, %v10038_v24  ;;  %v10449_v16 = vpop.permute.xlu0 %10448  ;;  %v10553_v4 = vsub.f32 %v10460_v7, %v10465_v12  ;;  %v10458_v15 = vsel %vm622_vm1, %v10451_v3, 0  ;;  %v24970_v42 = vpack.c.bf16 %v10468_v5, %v10465_v12 }
0x14be   :  { %v10032_v0 = vand.u32 4294901760, %v10031_v62  ;;  %v10456_v11 = vsel %vm622_vm1, %v10449_v16, 0  ;;  %v10561_v37 = vand.u32 4294901760, %v10560_v25  ;;  %v10541_v13 = vand.u32 4294901760, %v10458_v15 }
0x14bf   :  { %v27438_v44 = vpop.eup %26364  ;;  %v10531_v35 = vand.u32 4294901760, %v10456_v11  ;;  %v10554_v36 = vand.u32 4294901760, %v10553_v4 }
0x14c0   :  { %v27440_v28 = vpop.eup %26366  ;;  %v9938_v59 = vsel %vm1133_vm2, %v27438_v44, 0  ;;  %22928 = vmatmul.mubr.f32.vlgmr.msra.gmra.mrb[22].mxu1 %v8961_v2  ;;  %v24950_v9 = vpack.c.bf16 %v10039_v1, %v10032_v0  ;;  %v24954_v2 = vpack.c.bf16 %v10036_v43, %v10029_v45  ;;  %v10562_v43 = vsub.f32 %v10560_v25, %v10561_v37 }
0x14c1   :  { %v10017_v10 = vand.u32 4294901760, %v9938_v59  ;;  %24949 = vmatpush3.bf16.msra.mxu1 %v27435_v48  ;;  %v9935_v8 = vsel %vm1133_vm2, %v27440_v28, 0  ;;  %v10532_v18 = vsub.f32 %v10456_v11, %v10531_v35  ;;  %v10555_v45 = vsub.f32 %v10553_v4, %v10554_v36 }
0x14c2   :  { %24951 = vmatprep.subr.bf16.mxu1 %v24950_v9  ;;  %v10007_v33 = vand.u32 4294901760, %v9935_v8  ;;  %v10542_v61 = vsub.f32 %v10458_v15, %v10541_v13  ;;  %v10563_v62 = vand.u32 4294901760, %v10562_v43  ;;  %v9925_v6 = vsel %vm1133_vm2, %v27438_v44, 0.0 }
0x14c3   :  { %v10018_v31 = vsub.f32 %v9938_v59, %v10017_v10  ;;  %v10533_v39 = vand.u32 4294901760, %v10532_v18  ;;  %v10556_v24 = vand.u32 4294901760, %v10555_v45 }
0x14c4   :  { %v10008_v30 = vsub.f32 %v9935_v8, %v10007_v33  ;;  %v10543_v1 = vand.u32 4294901760, %v10542_v61 }
0x14c5   :  { %v10019_v40 = vand.u32 4294901760, %v10018_v31  ;;  %v10534_v32 = vsub.f32 %v10532_v18, %v10533_v39  ;;  %v24974_v59 = vpack.c.bf16 %v10563_v62, %v10556_v24  ;;  %v7813_v62 = vsel %vm1133_vm2, %v27299_v46, 0.0 }
0x14c6   :  { %v10009_v29 = vand.u32 4294901760, %v10008_v30 }
0x14c7   :  { %v10020_v60 = vsub.f32 %v10018_v31, %v10019_v40  ;;  %v10535_v0 = vand.u32 4294901760, %v10534_v32 }
0x14c8   :  { %v10010_v27 = vsub.f32 %v10008_v30, %v10009_v29 }
0x14c9   :  { %v10021_v26 = vand.u32 4294901760, %v10020_v60 }
0x14ca   :  { %v10011_v22 = vand.u32 4294901760, %v10010_v27 }
0x14cc   :  { %22976 = vmatprep.mubr.f32.mxu1 %v10011_v22 }
0x14cd   :  { %22977 = vmatmul.mubr.f32.vlgmr.msra.gmra.mrb[24].mxu1 %v10021_v26 }
0x14ce   :  { %24953 = vmatpush3.bf16.msra.mxu1 %v24950_v9  ;;  %22983 = vmatprep.mubr.f32.mxu1 %v10007_v33  ;;  %v10544_v9 = vsub.f32 %v10542_v61, %v10543_v1 }
0x14cf   :  { %24955 = vmatprep.subr.bf16.mxu1 %v24954_v2 }
0x14d0   :  { %v10545_v8 = vand.u32 4294901760, %v10544_v9 }
0x14d5   :  { %22984 = vmatmul.mubr.f32.vlgmr.msra.gmra.mrb[24].mxu1 %v10017_v10 }
0x14d6   :  { %24957 = vmatpush3.bf16.msra.mxu1 %v24954_v2  ;;  %22990 = vmatprep.mubr.f32.mxu1 %v10008_v30 }
0x14d7   :  { %24959 = vmatprep.subr.bf16.mxu1 %v27435_v48 }
0x14dd   :  { %22991 = vmatmul.mubr.f32.vlgmr.msra.gmra.mrb[24].mxu1 %v10018_v31  ;;  %v24978_v31 = vpack.c.bf16 %v10560_v25, %v10553_v4 }
0x14de   :  { %24961 = vmatpush3.bf16.msra.mxu1 %v27435_v48  ;;  %22997 = vmatprep.mubr.f32.mxu1 %v10009_v29 }
0x14df   :  { %24963 = vmatprep.subr.bf16.mxu1 %v24962_v52 }
0x14e5   :  { %22998 = vmatmul.mubr.f32.vlgmr.msra.gmra.mrb[24].mxu1 %v10019_v40 }
0x14e6   :  { %24965 = vmatpush3.bf16.msra.mxu1 %v24962_v52  ;;  %23004 = vmatprep.mubr.f32.mxu1 %v10007_v33 }
0x14e7   :  { %24967 = vmatprep.subr.bf16.mxu1 %v27435_v48 }
0x14ed   :  { %23005 = vmatmul.mubr.f32.vlgmr.msra.gmra.mrb[24].mxu1 %v10017_v10 }
0x14ee   :  { %24969 = vmatpush3.bf16.msra.mxu1 %v27435_v48  ;;  %23011 = vmatprep.mubr.f32.mxu1 %v10007_v33  ;;  %v24986_v48 = vpack.c.bf16 %v10561_v37, %v10554_v36 }
0x14ef   :  { %24971 = vmatprep.subr.bf16.mxu1 %v24970_v42 }
0x14f5   :  { %23012 = vmatmul.mubr.f32.vlgmr.msra.gmra.mrb[24].mxu1 %v10017_v10 }
0x14f6   :  { %23018 = vmatprep.mubr.f32.mxu1 %v10535_v0  ;;  %v7810_v0 = vsel %vm1133_vm2, %v27301_v57, 0.0 }
0x14f7   :  { %24973 = vmatpush3.bf16.xpose.msra.mxu1 %v24970_v42 }
0x14f8   :  { %24975 = vmatprep.subr.bf16.mxu1 %v24974_v59 }
0x14fe   :  { %23019 = vmatmul.mubr.f32.vlgmr.msra.gmra.mrb[26].mxu1 %v10545_v8 }
0x14ff   :  { %24977 = vmatpush3.bf16.xpose.msra.mxu1 %v24974_v59  ;;  %23025 = vmatprep.mubr.f32.mxu1 %v10531_v35 }
0x1500   :  { %24979 = vmatprep.subr.bf16.mxu1 %v24978_v31 }
0x1506   :  { %23026 = vmatmul.mubr.f32.vlgmr.msra.gmra.mrb[26].mxu1 %v10541_v13 }
0x1507   :  { %24981 = vmatpush3.bf16.xpose.msra.mxu1 %v24978_v31  ;;  %23032 = vmatprep.mubr.f32.mxu1 %v10532_v18 }
0x1508   :  { %24983 = vmatprep.subr.bf16.mxu1 %v24970_v42 }
0x150e   :  { %23033 = vmatmul.mubr.f32.vlgmr.msra.gmra.mrb[26].mxu1 %v10542_v61 }
0x150f   :  { %24985 = vmatpush3.bf16.xpose.msra.mxu1 %v24970_v42  ;;  %23039 = vmatprep.mubr.f32.mxu1 %v10533_v39 }
0x1510   :  { %24987 = vmatprep.subr.bf16.mxu1 %v24986_v48 }
0x1516   :  { %23040 = vmatmul.mubr.f32.vlgmr.msra.gmra.mrb[26].mxu1 %v10543_v1 }
0x1517   :  { %24989 = vmatpush3.bf16.xpose.msra.mxu1 %v24986_v48  ;;  %23046 = vmatprep.mubr.f32.mxu1 %v10531_v35 }
0x1518   :  { %24991 = vmatprep.subr.bf16.mxu1 %v24970_v42 }
0x151e   :  { %23047 = vmatmul.mubr.f32.vlgmr.msra.gmra.mrb[26].mxu1 %v10541_v13 }
0x151f   :  { %24993 = vmatpush3.bf16.xpose.msra.mxu1 %v24970_v42  ;;  %23053 = vmatprep.mubr.f32.mxu1 %v10531_v35 }
0x1526   :  { %23054 = vmatmul.mubr.f32.vlgmr.msra.gmra.mrb[26].mxu1 %v10541_v13 }
0x1593   :  { %v27455_v10 = vpop.f32.mrb[22].mxu1 }
0x1594   :  { %v27457_v33 = vpop.f32.mrb[23].mxu1 }
0x15c8   :  { %v27459_v30 = vpop.f32.mrb[24].mxu1 }
0x15c9   :  { %v27461_v40 = vpop.f32.mrb[25].mxu1 }
0x15f9   :  { %v23055_v29 = vpop.f32.mrb[26].mxu1 }
0x15fa   :  { %v25906_v60 = vadd.f32 %v27245_v50, %v23055_v29  ;;  %v10956_v27 = vpop.f32.mrb[27].mxu1  ;;  %v8866_v50 = vsel %vm1133_vm2, %v27427_v49, 0.0 }
0x15fb   :  { %v25907_v22 = vadd.f32 %v27251_v17, %v10956_v27  ;;  %v9922_v17 = vsel %vm1133_vm2, %v27440_v28, 0.0 }
0x15fc   :  { %v10969_v26 = vsel %vm1133_vm2, %v25906_v60, -inf }
0x15fd   :  { %10970 = vmax.xlane.f32.xlu1 %v10969_v26  ;;  %v10966_v2 = vsel %vm1133_vm2, %v25907_v22, -inf }
0x15fe   :  { %10967 = vmax.xlane.f32.xlu0 %v10966_v2 }
0x160e   :  { %10986 = vrot.lane.b32.xlu1 %v27228_v23, %s26479_s16 }
0x1614   :  { %10984 = vrot.lane.b32.xlu0 %v27232_v53, %s26479_s16 }
0x1632   :  { %8870 = vadd.xlane.f32.xlu1 %v8869_v41 }
0x1633   :  { %8867 = vadd.xlane.f32.xlu0 %v8866_v50 }
0x1637   :  { %9923 = vadd.xlane.f32.xlu0 %v9922_v17 }
0x163b   :  { %9926 = vadd.xlane.f32.xlu0 %v9925_v6 }
0x168a   :  { %v10971_v23 = vpop.xlane.xlu1 %10970 }
0x168b   :  { %v10973_v52 = vsub.f32 %v25906_v60, %v10971_v23  ;;  %v10968_v16 = vpop.xlane.xlu0 %10967 }
0x168c   :  { %v10972_v53 = vsub.f32 %v25907_v22, %v10968_v16 }
0x168d   :  { %v10976_v58 = vmul.f32 1.442695, %v10973_v52 }
0x168e   :  { %v10974_v7 = vmul.f32 1.442695, %v10972_v53  ;;  %v10987_v47 = vpop.permute.xlu1 %10986 }
0x168f   :  { %26368 = vpow2.f32 %v10976_v58  ;;  %v11000_v11 = vand.u32 4294901760, %v10987_v47  ;;  %v10985_v5 = vpop.permute.xlu0 %10984 }
0x1690   :  { %26370 = vpow2.f32 %v10974_v7  ;;  %v10997_v49 = vand.u32 4294901760, %v10985_v5 }
0x1691   :  { %v11092_v12 = vsub.f32 %v10987_v47, %v11000_v11  ;;  %v20642_v47 = vld [vmem:[%s28907_s3 + $0x38] sm:$0xff] }
0x1692   :  { %v24994_v35 = vpack.c.bf16 %v11000_v11, %v10997_v49  ;;  %v11085_v28 = vsub.f32 %v10985_v5, %v10997_v49  ;;  %v11559_v5 = vand.u32 4294901760, %v20642_v47 }
0x1693   :  { %v11093_v25 = vand.u32 4294901760, %v11092_v12 }
0x1694   :  { %v11086_v4 = vand.u32 4294901760, %v11085_v28  ;;  %24995 = vmatprep.subr.bf16.mxu0 %v24994_v35  ;;  %v25002_v60 = vpack.c.bf16 %v11092_v12, %v11085_v28 }
0x1695   :  { %v11094_v44 = vsub.f32 %v11092_v12, %v11093_v25  ;;  %24997 = vmatpush3.bf16.msra.mxu0 %v24994_v35 }
0x1696   :  { %v11087_v3 = vsub.f32 %v11085_v28, %v11086_v4  ;;  %v25010_v46 = vpack.c.bf16 %v11093_v25, %v11086_v4 }
0x1697   :  { %v11095_v18 = vand.u32 4294901760, %v11094_v44 }
0x1698   :  { %v11088_v15 = vand.u32 4294901760, %v11087_v3 }
0x1699   :  { %v26369_v37 = vpop.eup %26368 }
0x169a   :  { %v26371_v36 = vpop.eup %26370  ;;  %v10994_v13 = vsel %vm1133_vm2, %v26369_v37, 0  ;;  %v10981_v39 = vsel %vm1133_vm2, %v26369_v37, 0.0  ;;  %v24998_v42 = vpack.c.bf16 %v11095_v18, %v11088_v15 }
0x169b   :  { %v11073_v43 = vand.u32 4294901760, %v10994_v13  ;;  %10982 = vadd.xlane.f32.xlu1 %v10981_v39  ;;  %v10978_v45 = vsel %vm1133_vm2, %v26371_v36, 0.0  ;;  %v10991_v61 = vsel %vm1133_vm2, %v26371_v36, 0  ;;  %v11661_v39 = vsub.f32 %v20642_v47, %v11559_v5 }
0x169c   :  { %10979 = vadd.xlane.f32.xlu0 %v10978_v45  ;;  %24999 = vmatprep.subr.bf16.mxu0 %v24998_v42  ;;  %v11063_v32 = vand.u32 4294901760, %v10991_v61 }
0x169d   :  { %v11074_v24 = vsub.f32 %v10994_v13, %v11073_v43 }
0x169e   :  { %v11064_v1 = vsub.f32 %v10991_v61, %v11063_v32  ;;  %v11662_v61 = vand.u32 4294901760, %v11661_v39 }
0x169f   :  { %7814 = vadd.xlane.f32.xlu1 %v7813_v62  ;;  %v11075_v59 = vand.u32 4294901760, %v11074_v24 }
0x16a0   :  { %7811 = vadd.xlane.f32.xlu0 %v7810_v0  ;;  %v11065_v9 = vand.u32 4294901760, %v11064_v1 }
0x16a1   :  { %v11076_v8 = vsub.f32 %v11074_v24, %v11075_v59 }
0x16a2   :  { %v11066_v31 = vsub.f32 %v11064_v1, %v11065_v9 }
0x16a3   :  { %v11077_v29 = vand.u32 4294901760, %v11076_v8 }
0x16a4   :  { %v11067_v48 = vand.u32 4294901760, %v11066_v31 }
0x16a6   :  { %23060 = vmatprep.mubr.f32.mxu0 %v11067_v48 }
0x16a7   :  { %23061 = vmatmul.mubr.f32.vlgmr.msra.gmra.mrb[16].mxu0 %v11077_v29 }
0x16a8   :  { %25001 = vmatpush3.bf16.msra.mxu0 %v24998_v42  ;;  %23067 = vmatprep.mubr.f32.mxu0 %v11063_v32 }
0x16a9   :  { %25003 = vmatprep.subr.bf16.mxu0 %v25002_v60 }
0x16af   :  { %23068 = vmatmul.mubr.f32.vlgmr.msra.gmra.mrb[16].mxu0 %v11073_v43 }
0x16b0   :  { %25005 = vmatpush3.bf16.msra.mxu0 %v25002_v60  ;;  %23074 = vmatprep.mubr.f32.mxu0 %v11064_v1  ;;  %v11663_v1 = vsub.f32 %v11661_v39, %v11662_v61 }
0x16b1   :  { %25007 = vmatprep.subr.bf16.mxu0 %v24994_v35 }
0x16b7   :  { %23075 = vmatmul.mubr.f32.vlgmr.msra.gmra.mrb[16].mxu0 %v11074_v24 }
0x16b8   :  { %25009 = vmatpush3.bf16.msra.mxu0 %v24994_v35  ;;  %23081 = vmatprep.mubr.f32.mxu0 %v11065_v9  ;;  %v11664_v9 = vand.u32 4294901760, %v11663_v1 }
0x16b9   :  { %25011 = vmatprep.subr.bf16.mxu0 %v25010_v46 }
0x16bf   :  { %v8871_v57 = vpop.xlane.xlu1 %8870  ;;  %23082 = vmatmul.mubr.f32.vlgmr.msra.gmra.mrb[16].mxu0 %v11075_v59 }
0x16c0   :  { %26372 = vrcp.f32 %v8871_v57  ;;  %25013 = vmatpush3.bf16.msra.mxu0 %v25010_v46  ;;  %23088 = vmatprep.mubr.f32.mxu0 %v11063_v32  ;;  %v8868_v27 = vpop.xlane.xlu0 %8867 }
0x16c1   :  { %25015 = vmatprep.subr.bf16.mxu0 %v24994_v35  ;;  %26374 = vrcp.f32 %v8868_v27 }
0x16c4   :  { %v9924_v22 = vpop.xlane.xlu0 %9923 }
0x16c5   :  { %26376 = vrcp.f32 %v9924_v22 }
0x16c7   :  { %23089 = vmatmul.mubr.f32.vlgmr.msra.gmra.mrb[16].mxu0 %v11073_v43 }
0x16c8   :  { %25017 = vmatpush3.bf16.msra.mxu0 %v24994_v35  ;;  %23095 = vmatprep.mubr.f32.mxu0 %v11063_v32  ;;  %v9927_v26 = vpop.xlane.xlu0 %9926 }
0x16c9   :  { %26378 = vrcp.f32 %v9927_v26 }
0x16ca   :  { %v26373_v2 = vpop.eup %26372 }
0x16cb   :  { %v26375_v41 = vpop.eup %26374  ;;  %v9391_v50 = vmul.f32 %v26373_v2, %v27455_v10  ;;  %v20639_v10 = vld [vmem:[%s28907_s3 + $0x20] sm:$0xff] }
0x16cc   :  { %v9390_v17 = vmul.f32 %v26375_v41, %v27457_v33  ;;  %v20640_v33 = vld [vmem:[%s28907_s3 + $0x28] sm:$0xff]  ;;  %v11550_v7 = vand.u32 4294901760, %v20639_v10 }
0x16cd   :  { %11508 = vrot.lane.b32.xlu1 %v9391_v50, %s26480_s17 }
0x16ce   :  { %11506 = vrot.lane.b32.xlu0 %v9390_v17, %s26480_s17  ;;  %v11640_v18 = vsub.f32 %v20639_v10, %v11550_v7 }
0x16cf   :  { %v26377_v6 = vpop.eup %26376  ;;  %23096 = vmatmul.mubr.f32.vlgmr.msra.gmra.mrb[16].mxu0 %v11073_v43 }
0x16d0   :  { %v10446_v23 = vmul.f32 %v26377_v6, %v27461_v40  ;;  %v20641_v40 = vld [vmem:[%s28907_s3 + $0x30] sm:$0xff]  ;;  %v11641_v37 = vand.u32 4294901760, %v11640_v18 }
0x16d1   :  { %v11556_v11 = vand.u32 4294901760, %v20641_v40 }
0x16d2   :  { %11514 = vrot.lane.b32.xlu1 %v10446_v23, %s28946_s22  ;;  %v11642_v42 = vsub.f32 %v11640_v18, %v11641_v37 }
0x16d3   :  { %v26379_v52 = vpop.eup %26378  ;;  %v27509_v28 = vpack.c.bf16 %v11559_v5, %v11556_v11  ;;  %v11654_v13 = vsub.f32 %v20641_v40, %v11556_v11 }
0x16d4   :  { %v10447_v16 = vmul.f32 %v26379_v52, %v27459_v30  ;;  %v11553_v30 = vand.u32 4294901760, %v20640_v33  ;;  %v11643_v32 = vand.u32 4294901760, %v11642_v42 }
0x16d5   :  { %v11655_v45 = vand.u32 4294901760, %v11654_v13  ;;  %v25038_v48 = vpack.c.bf16 %v11661_v39, %v11654_v13 }
0x16d6   :  { %11516 = vrot.lane.b32.xlu1 %v10447_v16, %s28946_s22  ;;  %v27507_v49 = vpack.c.bf16 %v11553_v30, %v11550_v7  ;;  %v11647_v15 = vsub.f32 %v20640_v33, %v11553_v30 }
0x16d7   :  { %v11656_v62 = vsub.f32 %v11654_v13, %v11655_v45  ;;  %v25054_v60 = vpack.c.bf16 %v11662_v61, %v11655_v45 }
0x16d8   :  { %25019 = vmatprep.subr.bf16.mxu0 %v27507_v49  ;;  %v11648_v36 = vand.u32 4294901760, %v11647_v15  ;;  %v25034_v8 = vpack.c.bf16 %v11647_v15, %v11640_v18 }
0x16d9   :  { %25021 = vmatpush3.bf16.msra.mxu0 %v27507_v49  ;;  %v11657_v59 = vand.u32 4294901760, %v11656_v62 }
0x16da   :  { %25023 = vmatprep.subr.bf16.mxu0 %v27509_v28  ;;  %v11649_v43 = vsub.f32 %v11647_v15, %v11648_v36  ;;  %v25050_v29 = vpack.c.bf16 %v11648_v36, %v11641_v37 }
0x16db   :  { %v25030_v31 = vpack.c.bf16 %v11664_v9, %v11657_v59  ;;  %v20643_v59 = vld [vmem:[%s28908_s4 + $0x20] sm:$0xff]  ;;  %v20644_v9 = vld [vmem:[%s28908_s4 + $0x28] sm:$0xff] }
0x16dc   :  { %v11650_v24 = vand.u32 4294901760, %v11649_v43 }
0x16dd   :  { %25025 = vmatpush3.bf16.msra.mxu0 %v27509_v28 }
0x16de   :  { %v25026_v0 = vpack.c.bf16 %v11650_v24, %v11643_v32 }
0x16e0   :  { %25027 = vmatprep.subr.bf16.mxu0 %v25026_v0 }
0x1728   :  { %v10983_v53 = vpop.xlane.xlu1 %10982 }
0x1729   :  { %v10980_v58 = vpop.xlane.xlu0 %10979  ;;  %26380 = vrcp.f32 %v10983_v53 }
0x172a   :  { %26382 = vrcp.f32 %v10980_v58 }
0x172c   :  { %v7815_v46 = vpop.xlane.xlu1 %7814 }
0x172d   :  { %v7812_v57 = vpop.xlane.xlu0 %7811  ;;  %26384 = vrcp.f32 %v7815_v46 }
0x172e   :  { %26386 = vrcp.f32 %v7812_v57 }
0x1733   :  { %v26381_v12 = vpop.eup %26380 }
0x1734   :  { %v26383_v25 = vpop.eup %26382 }
0x1737   :  { %v26385_v26 = vpop.eup %26384 }
0x1738   :  { %v26387_v2 = vpop.eup %26386  ;;  %v8335_v50 = vmul.f32 %v26385_v26, %v27391_v63 }
0x1739   :  { %v8334_v6 = vmul.f32 %v26387_v2, %v27393_v38 }
0x173f   :  { %v11509_v27 = vpop.permute.xlu1 %11508 }
0x1740   :  { %v11507_v17 = vpop.permute.xlu0 %11506  ;;  %v11529_v23 = vsel %vm622_vm1, %v8335_v50, %v11509_v27 }
0x1741   :  { %v11528_v52 = vsel %vm622_vm1, %v8334_v6, %v11507_v17 }
0x1744   :  { %v11515_v22 = vpop.permute.xlu1 %11514 }
0x1745   :  { %v11530_v58 = vsel %vm1133_vm2, %v11528_v52, %v11515_v22 }
0x1748   :  { %v11517_v41 = vpop.permute.xlu1 %11516 }
0x1749   :  { %v11531_v16 = vsel %vm1133_vm2, %v11529_v23, %v11517_v41 }
0x17a2   :  { %v23097_v35 = vpop.f32.mrb[16].mxu0 }
0x17a3   :  { %v11503_v4 = vmul.f32 %v26381_v12, %v23097_v35  ;;  %v11488_v44 = vpop.f32.mrb[17].mxu0 }
0x17a4   :  { %v11502_v3 = vmul.f32 %v26383_v25, %v11488_v44 }
0x17a5   :  { %11524 = vrot.lane.b32.xlu1 %v11503_v4, %s28947_s21 }
0x17a6   :  { %11522 = vrot.lane.b32.xlu0 %v11502_v3, %s28947_s21  ;;  %v27538_v3 = vld [vmem:[%s28910_s6 + $0x8] sm:$0xff] }
0x17a7   :  { %v11542_v18 = vrot.slane %v27538_v3, %v26827_v20 }
0x1817   :  { %v11525_v53 = vpop.permute.xlu1 %11524 }
0x1818   :  { %v11533_v10 = vsel %vm4868_vm3, %v11531_v16, %v11525_v53  ;;  %v11523_v33 = vpop.permute.xlu0 %11522 }
0x1819   :  { %v11547_v40 = vsel %vm38_vm0, %v11533_v10, 0  ;;  %v11532_v7 = vsel %vm4868_vm3, %v11530_v58, %v11523_v33 }
0x181a   :  { %v11628_v63 = vand.u32 4294901760, %v11547_v40  ;;  %v11544_v30 = vsel %vm38_vm0, %v11532_v7, 0 }
0x181b   :  { %v11618_v38 = vand.u32 4294901760, %v11544_v30 }
0x181c   :  { %v11629_v47 = vsub.f32 %v11547_v40, %v11628_v63 }
0x181d   :  { %v11619_v11 = vsub.f32 %v11544_v30, %v11618_v38 }
0x181e   :  { %v11630_v5 = vand.u32 4294901760, %v11629_v47 }
0x181f   :  { %v11620_v12 = vand.u32 4294901760, %v11619_v11 }
0x1820   :  { %v11631_v35 = vsub.f32 %v11629_v47, %v11630_v5 }
0x1821   :  { %v11621_v25 = vsub.f32 %v11619_v11, %v11620_v12 }
0x1822   :  { %v11632_v44 = vand.u32 4294901760, %v11631_v35  ;;  %v27605_v35 = vld [vmem:[%s28909_s5 + $0x88] sm:$0xff] }
0x1823   :  { %v11622_v4 = vand.u32 4294901760, %v11621_v25  ;;  %v27610_v25 = vld [vmem:[%s28909_s5 + $0x90] sm:$0xff] }
0x1825   :  { %23106 = vmatprep.mubr.f32.mxu0 %v11622_v4 }
0x1826   :  { %23107 = vmatmul.mubr.f32.vlgmr.msra.gmra.mrb[18].mxu0 %v11632_v44  ;;  %v12687_v44 = vand.u32 4294901760, %v27605_v35 }
0x1827   :  { %25029 = vmatpush3.bf16.msra.mxu0 %v25026_v0  ;;  %23117 = vmatprep.mubr.f32.mxu0 %v11618_v38 }
0x1828   :  { %25031 = vmatprep.subr.bf16.mxu0 %v25030_v31 }
0x182b   :  { %25033 = vmatpush3.bf16.msra.mxu0 %v25030_v31  ;;  %v12133_v31 = vand.u32 4294901760, %v20643_v59 }
0x182c   :  { %25035 = vmatprep.subr.bf16.mxu0 %v25034_v8 }
0x182d   :  { %v12223_v22 = vsub.f32 %v20643_v59, %v12133_v31 }
0x182e   :  { %23118 = vmatmul.mubr.f32.vlgmr.msra.gmra.mrb[18].mxu0 %v11628_v63 }
0x182f   :  { %25037 = vmatpush3.bf16.msra.mxu0 %v25034_v8  ;;  %23128 = vmatprep.mubr.f32.mxu0 %v11619_v11  ;;  %v20645_v8 = vld [vmem:[%s28908_s4 + $0x30] sm:$0xff]  ;;  %v12224_v2 = vand.u32 4294901760, %v12223_v22 }
0x1830   :  { %25039 = vmatprep.subr.bf16.mxu0 %v25038_v48 }
0x1831   :  { %v12225_v6 = vsub.f32 %v12223_v22, %v12224_v2 }
0x1833   :  { %25041 = vmatpush3.bf16.msra.mxu0 %v25038_v48  ;;  %v12136_v48 = vand.u32 4294901760, %v20644_v9  ;;  %v12226_v53 = vand.u32 4294901760, %v12225_v6 }
0x1834   :  { %25043 = vmatprep.subr.bf16.mxu0 %v27507_v49 }
0x1835   :  { %v27576_v57 = vpack.c.bf16 %v12136_v48, %v12133_v31  ;;  %v12230_v26 = vsub.f32 %v20644_v9, %v12136_v48 }
0x1836   :  { %23129 = vmatmul.mubr.f32.vlgmr.msra.gmra.mrb[18].mxu0 %v11629_v47 }
0x1837   :  { %25045 = vmatpush3.bf16.msra.mxu0 %v27507_v49  ;;  %23139 = vmatprep.mubr.f32.mxu0 %v11620_v12  ;;  %v12231_v41 = vand.u32 4294901760, %v12230_v26  ;;  %v27587_v30 = vpack.c.bf16 %v12230_v26, %v12223_v22  ;;  %v27600_v12 = vld [vmem:[%s28909_s5 + $0x80] sm:$0xff] }
0x1838   :  { %25047 = vmatprep.subr.bf16.mxu0 %v27509_v28  ;;  %25067 = vmatprep.subr.bf16.mxu1 %v27576_v57  ;;  %v12684_v4 = vand.u32 4294901760, %v27600_v12 }
0x1839   :  { %25069 = vmatpush3.bf16.msra.mxu1 %v27576_v57  ;;  %v12232_v23 = vsub.f32 %v12230_v26, %v12231_v41  ;;  %v27593_v11 = vpack.c.bf16 %v12231_v41, %v12224_v2  ;;  %v12114_v26 = vrot.slane %v27538_v3, %v26983_v21 }
0x183b   :  { %25049 = vmatpush3.bf16.msra.mxu0 %v27509_v28  ;;  %v12233_v58 = vand.u32 4294901760, %v12232_v23 }
0x183c   :  { %25051 = vmatprep.subr.bf16.mxu0 %v25050_v29 }
0x183d   :  { %v27584_v40 = vpack.c.bf16 %v12233_v58, %v12226_v53 }
0x183e   :  { %23140 = vmatmul.mubr.f32.vlgmr.msra.gmra.mrb[18].mxu0 %v11630_v5 }
0x183f   :  { %25053 = vmatpush3.bf16.msra.mxu0 %v25050_v29  ;;  %23150 = vmatprep.mubr.f32.mxu0 %v11618_v38  ;;  %v20646_v29 = vld [vmem:[%s28908_s4 + $0x38] sm:$0xff] }
0x1840   :  { %25055 = vmatprep.subr.bf16.mxu0 %v25054_v60  ;;  %v12142_v46 = vand.u32 4294901760, %v20646_v29 }
0x1842   :  { %v12244_v17 = vsub.f32 %v20646_v29, %v12142_v46 }
0x1843   :  { %25057 = vmatpush3.bf16.msra.mxu0 %v25054_v60  ;;  %v12139_v60 = vand.u32 4294901760, %v20645_v8 }
0x1844   :  { %25059 = vmatprep.subr.bf16.mxu0 %v27507_v49  ;;  %v12245_v16 = vand.u32 4294901760, %v12244_v17 }
0x1845   :  { %v27578_v27 = vpack.c.bf16 %v12142_v46, %v12139_v60  ;;  %v12237_v50 = vsub.f32 %v20645_v8, %v12139_v60  ;;  %v12108_v60 = vrot.slane %v27538_v3, %v26980_v19 }
0x1846   :  { %23151 = vmatmul.mubr.f32.vlgmr.msra.gmra.mrb[18].mxu0 %v11628_v63  ;;  %v12246_v33 = vsub.f32 %v12244_v17, %v12245_v16 }
0x1847   :  { %25061 = vmatpush3.bf16.msra.mxu0 %v27507_v49  ;;  %23161 = vmatprep.mubr.f32.mxu0 %v11618_v38  ;;  %v12238_v52 = vand.u32 4294901760, %v12237_v50  ;;  %v27591_v47 = vpack.c.bf16 %v12244_v17, %v12237_v50 }
0x1848   :  { %25063 = vmatprep.subr.bf16.mxu0 %v27509_v28  ;;  %25071 = vmatprep.subr.bf16.mxu1 %v27578_v27 }
0x1849   :  { %25073 = vmatpush3.bf16.msra.mxu1 %v27578_v27  ;;  %v12239_v10 = vsub.f32 %v12237_v50, %v12238_v52  ;;  %v27595_v5 = vpack.c.bf16 %v12245_v16, %v12238_v52 }
0x184a   :  { %25075 = vmatprep.subr.bf16.mxu1 %v27584_v40 }
0x184b   :  { %25065 = vmatpush3.bf16.msra.mxu0 %v27509_v28  ;;  %v12240_v7 = vand.u32 4294901760, %v12239_v10 }
0x184e   :  { %23162 = vmatmul.mubr.f32.vlgmr.msra.gmra.mrb[18].mxu0 %v11628_v63  ;;  %v12247_v63 = vand.u32 4294901760, %v12246_v33 }
0x1850   :  { %v27589_v38 = vpack.c.bf16 %v12247_v63, %v12240_v7 }
0x1921   :  { %v23163_v15 = vpop.f32.mrb[18].mxu0 }
0x1922   :  { %v25908_v37 = vadd.f32 %v23163_v15, %v11542_v18  ;;  %v12067_v36 = vpop.f32.mrb[19].mxu0  ;;  %v12690_v15 = vand.u32 4294901760, %v27610_v25 }
0x1923   :  { %v25909_v13 = vadd.f32 %v12067_v36, %v11542_v18  ;;  %v27617_v18 = vld [vmem:[%s28909_s5 + $0x98] sm:$0xff]  ;;  %v27628_v36 = vld [vmem:[%s28909_s5 + $0xa8] sm:$0xff] }
0x1924   :  { %v27543_v49 = vadd.f32 %v25908_v37, %v27180_v55  ;;  %v27623_v37 = vld [vmem:[%s28909_s5 + $0xa0] sm:$0xff] }
0x1925   :  { %v27546_v39 = vadd.f32 %v25909_v13, %v27183_v14  ;;  %v12693_v13 = vand.u32 4294901760, %v27617_v18 }
0x1926   :  { %v12082_v28 = vsel %vm38_vm0, %v27543_v49, 0.0 }
0x1927   :  { %12083 = vadd.xlane.f32.xlu1 %v12082_v28  ;;  %v12079_v42 = vsel %vm38_vm0, %v27546_v39, 0.0  ;;  %v27635_v28 = vpack.c.bf16 %v12687_v44, %v12684_v4 }
0x1928   :  { %12080 = vadd.xlane.f32.xlu0 %v12079_v42  ;;  %v12696_v42 = vand.u32 4294901760, %v27623_v37 }
0x1929   :  { %25115 = vmatprep.subr.bf16.mxu0 %v27635_v28 }
0x192a   :  { %25117 = vmatpush3.bf16.msra.mxu0 %v27635_v28 }
0x19b4   :  { %v12084_v43 = vpop.xlane.xlu1 %12083 }
0x19b5   :  { %v12086_v45 = vmul.f32 0.03125, %v12084_v43  ;;  %v12081_v61 = vpop.xlane.xlu0 %12080  ;;  %v12699_v43 = vand.u32 4294901760, %v27628_v36 }
0x19b6   :  { %v12085_v32 = vmul.f32 0.03125, %v12081_v61  ;;  %v27648_v61 = vld [vmem:[%s28909_s5 + $0xb0] sm:$0xff] }
0x19b7   :  { %v27553_v24 = vsub.f32 %v27543_v49, %v12086_v45  ;;  %v27643_v45 = vpack.c.bf16 %v12693_v13, %v12690_v15 }
0x19b8   :  { %v27556_v55 = vsub.f32 %v27546_v39, %v12085_v32  ;;  %v27653_v32 = vld [vmem:[%s28909_s5 + $0xb8] sm:$0xff] }
0x19b9   :  { %v12090_v1 = vmul.f32 %v27553_v24, %v27553_v24  ;;  %25119 = vmatprep.subr.bf16.mxu0 %v27643_v45 }
0x19ba   :  { %v12089_v14 = vmul.f32 %v27556_v55, %v27556_v55  ;;  %25121 = vmatpush3.bf16.msra.mxu0 %v27643_v45 }
0x19bb   :  { %v12094_v0 = vsel %vm38_vm0, %v12090_v1, 0.0  ;;  %v12705_v1 = vand.u32 4294901760, %v27653_v32 }
0x19bc   :  { %v12091_v62 = vsel %vm38_vm0, %v12089_v14, 0.0  ;;  %v27662_v14 = vpack.c.bf16 %v12699_v43, %v12696_v42 }
0x19bd   :  { %12092 = vadd.xlane.f32.xlu0 %v12091_v62  ;;  %v12702_v62 = vand.u32 4294901760, %v27648_v61 }
0x19be   :  { %25123 = vmatprep.subr.bf16.mxu0 %v27662_v14 }
0x19bf   :  { %25125 = vmatpush3.bf16.msra.mxu0 %v27662_v14 }
0x19c1   :  { %12095 = vadd.xlane.f32.xlu0 %v12094_v0  ;;  %v27672_v0 = vpack.c.bf16 %v12705_v1, %v12702_v62 }
0x19c3   :  { %25127 = vmatprep.subr.bf16.mxu0 %v27672_v0 }
0x19c4   :  { %25129 = vmatpush3.bf16.msra.mxu0 %v27672_v0 }
0x1a4a   :  { %v12093_v59 = vpop.xlane.xlu0 %12092 }
0x1a4b   :  { %v12097_v9 = vmul.f32 0.03125, %v12093_v59 }
0x1a4d   :  { %v12099_v8 = vadd.f32 1e-05, %v12097_v9 }
0x1a4e   :  { %v12096_v31 = vpop.xlane.xlu0 %12095 }
0x1a4f   :  { %26388 = vrsqrt.f32 %v12099_v8  ;;  %v12098_v48 = vmul.f32 0.03125, %v12096_v31 }
0x1a51   :  { %v12100_v29 = vadd.f32 1e-05, %v12098_v48  ;;  %v20659_v48 = vld [vmem:[%s28909_s5 + $0xe0] sm:$0xff] }
0x1a53   :  { %26390 = vrsqrt.f32 %v12100_v29  ;;  %v20660_v29 = vld [vmem:[%s28909_s5 + $0xe8] sm:$0xff] }
0x1a59   :  { %v26389_v46 = vpop.eup %26388 }
0x1a5a   :  { %v12103_v22 = vmul.f32 %v26389_v46, %v27556_v55  ;;  %v12720_v46 = vand.u32 4294901760, %v20659_v48 }
0x1a5c   :  { %v12109_v2 = vmul.f32 %v12108_v60, %v12103_v22  ;;  %v12723_v22 = vand.u32 4294901760, %v20660_v29 }
0x1a5d   :  { %v26391_v41 = vpop.eup %26390 }
0x1a5e   :  { %v12104_v50 = vmul.f32 %v26391_v41, %v27553_v24  ;;  %v12115_v17 = vadd.f32 %v12114_v26, %v12109_v2  ;;  %v20655_v24 = vld [vmem:[%s28909_s5 + $0xc0] sm:$0xff] }
0x1a60   :  { %v12110_v6 = vmul.f32 %v12108_v60, %v12104_v50  ;;  %v12127_v23 = vsel %vm38_vm0, %v12115_v17, 0  ;;  %v20661_v60 = vld [vmem:[%s28909_s5 + $0xf0] sm:$0xff]  ;;  %v27736_v50 = vpack.c.bf16 %v12723_v22, %v12720_v46  ;;  %v27741_v17 = vsub.f32 %v27600_v12, %v12684_v4 }
0x1a61   :  { %v12201_v52 = vand.u32 4294901760, %v12127_v23  ;;  %v12726_v2 = vand.u32 4294901760, %v20661_v60 }
0x1a62   :  { %v12116_v16 = vadd.f32 %v12114_v26, %v12110_v6  ;;  %v20662_v26 = vld [vmem:[%s28909_s5 + $0xf8] sm:$0xff]  ;;  %v27746_v6 = vsub.f32 %v27605_v35, %v12687_v44 }
0x1a63   :  { %v12202_v53 = vsub.f32 %v12127_v23, %v12201_v52  ;;  %v12729_v41 = vand.u32 4294901760, %v20662_v26 }
0x1a64   :  { %v12130_v58 = vsel %vm38_vm0, %v12116_v16, 0  ;;  %v28928_v16 = vand.u32 4294901760, %v27746_v6 }
0x1a65   :  { %v12203_v10 = vand.u32 4294901760, %v12202_v53  ;;  %v12211_v33 = vand.u32 4294901760, %v12130_v58  ;;  %v27748_v23 = vpack.c.bf16 %v12729_v41, %v12726_v2 }
0x1a66   :  { %v12795_v35 = vsub.f32 %v27746_v6, %v28928_v16 }
0x1a67   :  { %v12204_v7 = vsub.f32 %v12202_v53, %v12203_v10  ;;  %v12212_v55 = vsub.f32 %v12130_v58, %v12211_v33 }
0x1a68   :  { %v12796_v44 = vand.u32 4294901760, %v12795_v35  ;;  %v27788_v35 = vsub.f32 %v20659_v48, %v12720_v46  ;;  %v27805_v46 = vsub.f32 %v20662_v26, %v12729_v41  ;;  %v27821_v41 = vpack.c.bf16 %v27746_v6, %v27741_v17 }
0x1a69   :  { %v12205_v63 = vand.u32 4294901760, %v12204_v7  ;;  %v12213_v59 = vand.u32 4294901760, %v12212_v55 }
0x1a6b   :  { %23172 = vmatprep.mubr.f32.mxu1 %v12205_v63  ;;  %v12214_v9 = vsub.f32 %v12212_v55, %v12213_v59 }
0x1a6d   :  { %v12215_v8 = vand.u32 4294901760, %v12214_v9 }
0x1a6f   :  { %23173 = vmatmul.mubr.f32.vlgmr.msra.gmra.mrb[28].mxu1 %v12215_v8 }
0x1a70   :  { %25077 = vmatpush3.bf16.msra.mxu1 %v27584_v40  ;;  %23183 = vmatprep.mubr.f32.mxu1 %v12201_v52  ;;  %v20656_v40 = vld [vmem:[%s28909_s5 + $0xc8] sm:$0xff] }
0x1a71   :  { %25079 = vmatprep.subr.bf16.mxu1 %v27589_v38 }
0x1a74   :  { %25081 = vmatpush3.bf16.msra.mxu1 %v27589_v38  ;;  %v12711_v38 = vand.u32 4294901760, %v20656_v40 }
0x1a75   :  { %25083 = vmatprep.subr.bf16.mxu1 %v27587_v30 }
0x1a77   :  { %23184 = vmatmul.mubr.f32.vlgmr.msra.gmra.mrb[28].mxu1 %v12211_v33 }
0x1a78   :  { %25085 = vmatpush3.bf16.msra.mxu1 %v27587_v30  ;;  %23194 = vmatprep.mubr.f32.mxu1 %v12202_v53  ;;  %v12708_v30 = vand.u32 4294901760, %v20655_v24 }
0x1a79   :  { %25087 = vmatprep.subr.bf16.mxu1 %v27591_v47 }
0x1a7a   :  { %v27765_v58 = vsub.f32 %v20655_v24, %v12708_v30 }
0x1a7c   :  { %25089 = vmatpush3.bf16.msra.mxu1 %v27591_v47  ;;  %v27710_v47 = vpack.c.bf16 %v12711_v38, %v12708_v30 }
0x1a7d   :  { %25091 = vmatprep.subr.bf16.mxu1 %v27576_v57 }
0x1a7e   :  { %25131 = vmatprep.subr.bf16.mxu0 %v27710_v47 }
0x1a7f   :  { %23195 = vmatmul.mubr.f32.vlgmr.msra.gmra.mrb[28].mxu1 %v12212_v55  ;;  %25133 = vmatpush3.bf16.msra.mxu0 %v27710_v47 }
0x1a80   :  { %25093 = vmatpush3.bf16.msra.mxu1 %v27576_v57  ;;  %23205 = vmatprep.mubr.f32.mxu1 %v12203_v10  ;;  %v27767_v10 = vsub.f32 %v20656_v40, %v12711_v38 }
0x1a81   :  { %25095 = vmatprep.subr.bf16.mxu1 %v27578_v27 }
0x1a82   :  { %v28924_v7 = vand.u32 4294901760, %v27767_v10 }
0x1a84   :  { %25097 = vmatpush3.bf16.msra.mxu1 %v27578_v27  ;;  %v12851_v63 = vsub.f32 %v27767_v10, %v28924_v7 }
0x1a85   :  { %25099 = vmatprep.subr.bf16.mxu1 %v27593_v11 }
0x1a86   :  { %v12852_v24 = vand.u32 4294901760, %v12851_v63 }
0x1a87   :  { %23206 = vmatmul.mubr.f32.vlgmr.msra.gmra.mrb[28].mxu1 %v12213_v59 }
0x1a88   :  { %25101 = vmatpush3.bf16.msra.mxu1 %v27593_v11  ;;  %23216 = vmatprep.mubr.f32.mxu1 %v12201_v52 }
0x1a89   :  { %25103 = vmatprep.subr.bf16.mxu1 %v27595_v5 }
0x1a8c   :  { %25105 = vmatpush3.bf16.msra.mxu1 %v27595_v5 }
0x1a8d   :  { %25107 = vmatprep.subr.bf16.mxu1 %v27576_v57 }
0x1a8f   :  { %23217 = vmatmul.mubr.f32.vlgmr.msra.gmra.mrb[28].mxu1 %v12211_v33 }
0x1a90   :  { %25109 = vmatpush3.bf16.msra.mxu1 %v27576_v57  ;;  %23227 = vmatprep.mubr.f32.mxu1 %v12201_v52  ;;  %v20657_v57 = vld [vmem:[%s28909_s5 + $0xd0] sm:$0xff]  ;;  %v28929_v52 = vand.u32 4294901760, %v27741_v17 }
0x1a91   :  { %25111 = vmatprep.subr.bf16.mxu1 %v27578_v27  ;;  %v12714_v11 = vand.u32 4294901760, %v20657_v57 }
0x1a92   :  { %v12788_v12 = vsub.f32 %v27741_v17, %v28929_v52 }
0x1a93   :  { %v27777_v59 = vsub.f32 %v20657_v57, %v12714_v11 }
0x1a94   :  { %25113 = vmatpush3.bf16.msra.mxu1 %v27578_v27  ;;  %v20658_v27 = vld [vmem:[%s28909_s5 + $0xd8] sm:$0xff]  ;;  %v12789_v4 = vand.u32 4294901760, %v12788_v12 }
0x1a95   :  { %v12717_v5 = vand.u32 4294901760, %v20658_v27  ;;  %v28923_v40 = vand.u32 4294901760, %v27777_v59 }
0x1a96   :  { %v27762_v53 = vpack.c.bf16 %v12796_v44, %v12789_v4  ;;  %v27790_v4 = vsub.f32 %v20660_v29, %v12723_v22  ;;  %v27803_v29 = vsub.f32 %v20661_v60, %v12726_v2 }
0x1a97   :  { %23228 = vmatmul.mubr.f32.vlgmr.msra.gmra.mrb[28].mxu1 %v12211_v33  ;;  %v27720_v31 = vpack.c.bf16 %v12717_v5, %v12714_v11  ;;  %v28925_v33 = vand.u32 4294901760, %v27765_v58  ;;  %v27779_v9 = vsub.f32 %v20658_v27, %v12717_v5  ;;  %v12858_v12 = vsub.f32 %v27777_v59, %v28923_v40 }
0x1a98   :  { %v28918_v11 = vand.u32 4294901760, %v27788_v35  ;;  %v28921_v5 = vand.u32 4294901760, %v27790_v4  ;;  %v27858_v40 = vsub.f32 %v27623_v37, %v12696_v42 }
0x1a99   :  { %25135 = vmatprep.subr.bf16.mxu0 %v27720_v31  ;;  %v12844_v55 = vsub.f32 %v27765_v58, %v28925_v33  ;;  %v28922_v30 = vand.u32 4294901760, %v27779_v9  ;;  %v12859_v27 = vand.u32 4294901760, %v12858_v12  ;;  %v28919_v12 = vand.u32 4294901760, %v27805_v46 }
0x1a9a   :  { %25137 = vmatpush3.bf16.msra.mxu0 %v27720_v31  ;;  %v12879_v48 = vsub.f32 %v27790_v4, %v28921_v5  ;;  %v28931_v42 = vand.u32 4294901760, %v27858_v40 }
0x1a9b   :  { %25139 = vmatprep.subr.bf16.mxu0 %v27736_v50  ;;  %v12845_v8 = vand.u32 4294901760, %v12844_v55  ;;  %v12865_v57 = vsub.f32 %v27779_v9, %v28922_v30  ;;  %v12872_v55 = vsub.f32 %v27788_v35, %v28918_v11  ;;  %v12893_v60 = vsub.f32 %v27805_v46, %v28919_v12 }
0x1a9d   :  { %v27783_v38 = vpack.c.bf16 %v12852_v24, %v12845_v8  ;;  %v12866_v44 = vand.u32 4294901760, %v12865_v57  ;;  %v12873_v63 = vand.u32 4294901760, %v12872_v55  ;;  %v12880_v8 = vand.u32 4294901760, %v12879_v48 }
0x1a9e   :  { %25141 = vmatpush3.bf16.msra.mxu0 %v27736_v50  ;;  %v28920_v24 = vand.u32 4294901760, %v27803_v29  ;;  %v12894_v2 = vand.u32 4294901760, %v12893_v60  ;;  %v27831_v55 = vpack.c.bf16 %v27779_v9, %v27777_v59  ;;  %v27835_v48 = vpack.c.bf16 %v27790_v4, %v27788_v35 }
0x1a9f   :  { %25143 = vmatprep.subr.bf16.mxu0 %v27748_v23  ;;  %v27807_v22 = vpack.c.bf16 %v12866_v44, %v12859_v27  ;;  %v27811_v57 = vpack.c.bf16 %v12880_v8, %v12873_v63  ;;  %v27827_v44 = vpack.c.bf16 %v27767_v10, %v27765_v58  ;;  %v12125_v63 = vrot.slane %v27538_v3, %v27063_v51 }
0x1aa0   :  { %v12886_v11 = vsub.f32 %v27803_v29, %v28920_v24  ;;  %v27846_v8 = vsub.f32 %v27610_v25, %v12690_v15  ;;  %v27851_v60 = vsub.f32 %v27617_v18, %v12693_v13  ;;  %v27863_v15 = vsub.f32 %v27628_v36, %v12699_v43 }
0x1aa1   :  { %v27883_v43 = vsub.f32 %v27648_v61, %v12702_v62 }
0x1aa2   :  { %25145 = vmatpush3.bf16.msra.mxu0 %v27748_v23  ;;  %v12887_v26 = vand.u32 4294901760, %v12886_v11  ;;  %v27839_v11 = vpack.c.bf16 %v27805_v46, %v27803_v29  ;;  %v28927_v5 = vand.u32 4294901760, %v27846_v8  ;;  %v28926_v30 = vand.u32 4294901760, %v27851_v60 }
0x1aa3   :  { %25147 = vmatprep.subr.bf16.mxu0 %v27762_v53  ;;  %v12822_v36 = vand.u32 4294901760, %v27863_v15  ;;  %v12829_v62 = vand.u32 4294901760, %v27883_v43 }
0x1aa4   :  { %v27823_v27 = vpack.c.bf16 %v12894_v2, %v12887_v26  ;;  %v12809_v37 = vsub.f32 %v27851_v60, %v28926_v30 }
0x1aa6   :  { %v12810_v30 = vand.u32 4294901760, %v12809_v37 }
0x1b6a   :  { %v23229_v26 = vpop.f32.mrb[28].mxu1 }
0x1b6b   :  { %v25910_v2 = vadd.f32 %v23229_v26, %v12125_v63  ;;  %v12650_v12 = vpop.f32.mrb[29].mxu1 }
0x1b6c   :  { %v25911_v24 = vadd.f32 %v12650_v12, %v12125_v63  ;;  %v12802_v12 = vsub.f32 %v27846_v8, %v28927_v5  ;;  %v12816_v5 = vsub.f32 %v27858_v40, %v28931_v42  ;;  %v12830_v42 = vsub.f32 %v27883_v43, %v12829_v62 }
0x1b6d   :  { %v12661_v25 = vmax.f32 %v25910_v2, 0.0 }
0x1b6e   :  { %v12660_v18 = vmax.f32 %v25911_v24, 0.0  ;;  %v27888_v24 = vsub.f32 %v27653_v32, %v12705_v1  ;;  %v12803_v33 = vand.u32 4294901760, %v12802_v12  ;;  %v12823_v32 = vsub.f32 %v27863_v15, %v12822_v36 }
0x1b6f   :  { %v27865_v13 = vand.u32 4294901760, %v12661_v25  ;;  %v12817_v16 = vand.u32 4294901760, %v12816_v5 }
0x1b70   :  { %v27867_v26 = vand.u32 4294901760, %v12660_v18  ;;  %v12836_v1 = vand.u32 4294901760, %v27888_v24  ;;  %v25150_v37 = vpack.c.bf16 %v12810_v30, %v12803_v33  ;;  %v12824_v51 = vand.u32 4294901760, %v12823_v32  ;;  %v20667_v32 = vld [vmem:[%s28906_s2 + $0x58] sm:$0xff] }
0x1b71   :  { %v27877_v63 = vsub.f32 %v12661_v25, %v27865_v13  ;;  %v12831_v33 = vand.u32 4294901760, %v12830_v42  ;;  %v28959_v42 = vand.u32 4294901760, %v27790_v4 }
0x1b72   :  { %v27891_v2 = vsub.f32 %v12660_v18, %v27867_v26 }
0x1b73   :  { %v28932_v7 = vand.u32 4294901760, %v27877_v63 }
0x1b74   :  { %v12766_v25 = vand.u32 4294901760, %v27891_v2 }
0x1b75   :  { %v12777_v61 = vsub.f32 %v27877_v63, %v28932_v7  ;;  %v12837_v7 = vsub.f32 %v27888_v24, %v12836_v1 }
0x1b76   :  { %v12767_v18 = vsub.f32 %v27891_v2, %v12766_v25 }
0x1b77   :  { %v12778_v52 = vand.u32 4294901760, %v12777_v61  ;;  %v12838_v30 = vand.u32 4294901760, %v12837_v7  ;;  %v28949_v7 = vand.u32 4294901760, %v27746_v6 }
0x1b78   :  { %v12768_v12 = vand.u32 4294901760, %v12767_v18  ;;  %v25154_v18 = vpack.c.bf16 %v12824_v51, %v12817_v16  ;;  %v25182_v51 = vpack.c.bf16 %v27851_v60, %v27846_v8  ;;  %v25190_v16 = vpack.c.bf16 %v27888_v24, %v27883_v43  ;;  %v20664_v43 = vld [vmem:[%s28906_s2 + $0x40] sm:$0xff]  ;;  %v20665_v24 = vld [vmem:[%s28906_s2 + $0x48] sm:$0xff] }
0x1b79   :  { %v25158_v5 = vpack.c.bf16 %v12838_v30, %v12831_v33  ;;  %v13424_v61 = vand.u32 4294901760, %v20665_v24 }
0x1b7a   :  { %23262 = vmatprep.mubr.f32.mxu0 %v12768_v12 }
0x1b7b   :  { %23263 = vmatmul.mubr.f32.vlgmr.msra.gmra.mrb[20].mxu0 %v12778_v52  ;;  %v25186_v52 = vpack.c.bf16 %v27863_v15, %v27858_v40  ;;  %v28958_v15 = vand.u32 4294901760, %v27788_v35  ;;  %v13518_v33 = vsub.f32 %v20665_v24, %v13424_v61 }
0x1b7c   :  { %25149 = vmatpush3.bf16.msra.mxu0 %v27762_v53  ;;  %23297 = vmatprep.mubr.f32.mxu0 %v27867_v26  ;;  %v28948_v53 = vand.u32 4294901760, %v27741_v17  ;;  %v28953_v17 = vand.u32 4294901760, %v27858_v40  ;;  %v28956_v40 = vand.u32 4294901760, %v27777_v59 }
0x1b7d   :  { %25151 = vmatprep.subr.bf16.mxu0 %v25150_v37 }
0x1b7e   :  { %v25250_v6 = vpack.c.bf16 %v12822_v36, %v28953_v17 }
0x1b80   :  { %25153 = vmatpush3.bf16.msra.mxu0 %v25150_v37 }
0x1b81   :  { %25155 = vmatprep.subr.bf16.mxu0 %v25154_v18 }
0x1b84   :  { %25157 = vmatpush3.bf16.msra.mxu0 %v25154_v18 }
0x1b85   :  { %25159 = vmatprep.subr.bf16.mxu0 %v25158_v5 }
0x1b88   :  { %25161 = vmatpush3.bf16.msra.mxu0 %v25158_v5  ;;  %v13519_v5 = vand.u32 4294901760, %v13518_v33 }
0x1b89   :  { %25163 = vmatprep.subr.bf16.mxu0 %v27783_v38 }
0x1b8c   :  { %25165 = vmatpush3.bf16.msra.mxu0 %v27783_v38  ;;  %v25242_v38 = vpack.c.bf16 %v28949_v7, %v28948_v53 }
0x1b8d   :  { %25167 = vmatprep.subr.bf16.mxu0 %v27807_v22 }
0x1b90   :  { %25169 = vmatpush3.bf16.msra.mxu0 %v27807_v22  ;;  %v28950_v22 = vand.u32 4294901760, %v27846_v8  ;;  %v28957_v8 = vand.u32 4294901760, %v27779_v9 }
0x1b91   :  { %25171 = vmatprep.subr.bf16.mxu0 %v27811_v57 }
0x1b94   :  { %25173 = vmatpush3.bf16.msra.mxu0 %v27811_v57  ;;  %v28951_v57 = vand.u32 4294901760, %v27851_v60  ;;  %v25262_v60 = vpack.c.bf16 %v28957_v8, %v28956_v40 }
0x1b95   :  { %25175 = vmatprep.subr.bf16.mxu0 %v27823_v27 }
0x1b98   :  { %25177 = vmatpush3.bf16.msra.mxu0 %v27823_v27  ;;  %v28952_v27 = vand.u32 4294901760, %v27877_v63 }
0x1b99   :  { %25179 = vmatprep.subr.bf16.mxu0 %v27821_v41 }
0x1b9b   :  { %23298 = vmatmul.mubr.f32.vlgmr.msra.gmra.mrb[20].mxu0 %v27865_v13 }
0x1b9c   :  { %25181 = vmatpush3.bf16.msra.mxu0 %v27821_v41  ;;  %23332 = vmatprep.mubr.f32.mxu0 %v27891_v2  ;;  %v25246_v41 = vpack.c.bf16 %v28951_v57, %v28950_v22  ;;  %v20666_v2 = vld [vmem:[%s28906_s2 + $0x50] sm:$0xff] }
0x1b9d   :  { %25183 = vmatprep.subr.bf16.mxu0 %v25182_v51 }
0x1ba0   :  { %25185 = vmatpush3.bf16.msra.mxu0 %v25182_v51 }
0x1ba1   :  { %25187 = vmatprep.subr.bf16.mxu0 %v25186_v52 }
0x1ba4   :  { %25189 = vmatpush3.bf16.msra.mxu0 %v25186_v52  ;;  %v13520_v52 = vsub.f32 %v13518_v33, %v13519_v5 }
0x1ba5   :  { %25191 = vmatprep.subr.bf16.mxu0 %v25190_v16 }
0x1ba8   :  { %25193 = vmatpush3.bf16.msra.mxu0 %v25190_v16 }
0x1ba9   :  { %25195 = vmatprep.subr.bf16.mxu0 %v27827_v44 }
0x1bac   :  { %25197 = vmatpush3.bf16.msra.mxu0 %v27827_v44  ;;  %v25254_v44 = vpack.c.bf16 %v12836_v1, %v12829_v62  ;;  %v13427_v62 = vand.u32 4294901760, %v20666_v2  ;;  %v13430_v1 = vand.u32 4294901760, %v20667_v32 }
0x1bad   :  { %25199 = vmatprep.subr.bf16.mxu0 %v27831_v55 }
0x1bae   :  { %v28042_v37 = vpack.c.bf16 %v13430_v1, %v13427_v62  ;;  %v13525_v16 = vsub.f32 %v20666_v2, %v13427_v62  ;;  %v13532_v53 = vsub.f32 %v20667_v32, %v13430_v1 }
0x1bb0   :  { %25201 = vmatpush3.bf16.msra.mxu0 %v27831_v55  ;;  %v28954_v55 = vand.u32 4294901760, %v27765_v58  ;;  %v28960_v58 = vand.u32 4294901760, %v27803_v29  ;;  %v13526_v22 = vand.u32 4294901760, %v13525_v16  ;;  %v13533_v57 = vand.u32 4294901760, %v13532_v53 }
0x1bb1   :  { %25203 = vmatprep.subr.bf16.mxu0 %v27835_v48 }
0x1bb2   :  { %v13534_v17 = vsub.f32 %v13532_v53, %v13533_v57  ;;  %v25342_v8 = vpack.c.bf16 %v13533_v57, %v13526_v22 }
0x1bb4   :  { %25205 = vmatpush3.bf16.msra.mxu0 %v27835_v48  ;;  %v28955_v48 = vand.u32 4294901760, %v27767_v10  ;;  %v28961_v10 = vand.u32 4294901760, %v27805_v46 }
0x1bb5   :  { %25207 = vmatprep.subr.bf16.mxu0 %v27839_v11 }
0x1bb6   :  { %v25270_v36 = vpack.c.bf16 %v28961_v10, %v28960_v58 }
0x1bb8   :  { %25209 = vmatpush3.bf16.msra.mxu0 %v27839_v11  ;;  %v25258_v11 = vpack.c.bf16 %v28955_v48, %v28954_v55 }
0x1bb9   :  { %25211 = vmatprep.subr.bf16.mxu0 %v27635_v28 }
0x1bbb   :  { %23333 = vmatmul.mubr.f32.vlgmr.msra.gmra.mrb[20].mxu0 %v27877_v63  ;;  %v25266_v63 = vpack.c.bf16 %v28959_v42, %v28958_v15 }
0x1bbc   :  { %25213 = vmatpush3.bf16.msra.mxu0 %v27635_v28  ;;  %23367 = vmatprep.mubr.f32.mxu0 %v12766_v25  ;;  %v13421_v25 = vand.u32 4294901760, %v20664_v43 }
0x1bbd   :  { %25215 = vmatprep.subr.bf16.mxu0 %v27643_v45 }
0x1bbe   :  { %v28040_v12 = vpack.c.bf16 %v13424_v61, %v13421_v25  ;;  %v13511_v18 = vsub.f32 %v20664_v43, %v13421_v25 }
0x1bc0   :  { %25217 = vmatpush3.bf16.msra.mxu0 %v27643_v45  ;;  %25307 = vmatprep.subr.bf16.mxu1 %v28040_v12  ;;  %v13512_v30 = vand.u32 4294901760, %v13511_v18  ;;  %v25322_v55 = vpack.c.bf16 %v13518_v33, %v13511_v18 }
0x1bc1   :  { %25219 = vmatprep.subr.bf16.mxu0 %v27662_v14  ;;  %25309 = vmatpush3.bf16.msra.mxu1 %v28040_v12 }
0x1bc2   :  { %25311 = vmatprep.subr.bf16.mxu1 %v28042_v37  ;;  %v13513_v51 = vsub.f32 %v13511_v18, %v13512_v30  ;;  %v25338_v40 = vpack.c.bf16 %v13519_v5, %v13512_v30 }
0x1bc4   :  { %25221 = vmatpush3.bf16.msra.mxu0 %v27662_v14  ;;  %v13514_v7 = vand.u32 4294901760, %v13513_v51 }
0x1bc5   :  { %25223 = vmatprep.subr.bf16.mxu0 %v27672_v0  ;;  %25313 = vmatpush3.bf16.msra.mxu1 %v28042_v37 }
0x1bc8   :  { %25225 = vmatpush3.bf16.msra.mxu0 %v27672_v0 }
0x1bc9   :  { %25227 = vmatprep.subr.bf16.mxu0 %v27710_v47 }
0x1bcc   :  { %25229 = vmatpush3.bf16.msra.mxu0 %v27710_v47 }
0x1bcd   :  { %25231 = vmatprep.subr.bf16.mxu0 %v27720_v31 }
0x1bd0   :  { %25233 = vmatpush3.bf16.msra.mxu0 %v27720_v31 }
0x1bd1   :  { %25235 = vmatprep.subr.bf16.mxu0 %v27736_v50 }
0x1bd4   :  { %25237 = vmatpush3.bf16.msra.mxu0 %v27736_v50 }
0x1bd5   :  { %25239 = vmatprep.subr.bf16.mxu0 %v27748_v23 }
0x1bd8   :  { %25241 = vmatpush3.bf16.msra.mxu0 %v27748_v23 }
0x1bd9   :  { %25243 = vmatprep.subr.bf16.mxu0 %v25242_v38 }
0x1bdb   :  { %23368 = vmatmul.mubr.f32.vlgmr.msra.gmra.mrb[20].mxu0 %v28952_v27  ;;  %v13527_v27 = vsub.f32 %v13525_v16, %v13526_v22 }
0x1bdc   :  { %25245 = vmatpush3.bf16.msra.mxu0 %v25242_v38  ;;  %23402 = vmatprep.mubr.f32.mxu0 %v27867_v26  ;;  %v13521_v38 = vand.u32 4294901760, %v13520_v52 }
0x1bdd   :  { %25247 = vmatprep.subr.bf16.mxu0 %v25246_v41 }
0x1be0   :  { %25249 = vmatpush3.bf16.msra.mxu0 %v25246_v41  ;;  %v25314_v41 = vpack.c.bf16 %v13521_v38, %v13514_v7 }
0x1be1   :  { %25251 = vmatprep.subr.bf16.mxu0 %v25250_v6 }
0x1be2   :  { %25315 = vmatprep.subr.bf16.mxu1 %v25314_v41 }
0x1be4   :  { %25253 = vmatpush3.bf16.msra.mxu0 %v25250_v6  ;;  %v13528_v6 = vand.u32 4294901760, %v13527_v27 }
0x1be5   :  { %25255 = vmatprep.subr.bf16.mxu0 %v25254_v44 }
0x1be8   :  { %25257 = vmatpush3.bf16.msra.mxu0 %v25254_v44  ;;  %v13535_v44 = vand.u32 4294901760, %v13534_v17 }
0x1be9   :  { %25259 = vmatprep.subr.bf16.mxu0 %v25258_v11 }
0x1bea   :  { %v25318_v48 = vpack.c.bf16 %v13535_v44, %v13528_v6 }
0x1bec   :  { %25261 = vmatpush3.bf16.msra.mxu0 %v25258_v11  ;;  %v25326_v11 = vpack.c.bf16 %v13532_v53, %v13525_v16 }
0x1bed   :  { %25263 = vmatprep.subr.bf16.mxu0 %v25262_v60 }
0x1bf0   :  { %25265 = vmatpush3.bf16.msra.mxu0 %v25262_v60 }
0x1bf1   :  { %25267 = vmatprep.subr.bf16.mxu0 %v25266_v63 }
0x1bf4   :  { %25269 = vmatpush3.bf16.msra.mxu0 %v25266_v63 }
0x1bf5   :  { %25271 = vmatprep.subr.bf16.mxu0 %v25270_v36 }
0x1bf8   :  { %25273 = vmatpush3.bf16.msra.mxu0 %v25270_v36  ;;  %v20663_v36 = vld [vmem:[%s28910_s6 + $0x10] sm:$0xff] }
0x1bf9   :  { %25275 = vmatprep.subr.bf16.mxu0 %v27635_v28 }
0x1bfb   :  { %23403 = vmatmul.mubr.f32.vlgmr.msra.gmra.mrb[20].mxu0 %v27865_v13 }
0x1bfc   :  { %25277 = vmatpush3.bf16.msra.mxu0 %v27635_v28  ;;  %23437 = vmatprep.mubr.f32.mxu0 %v27867_v26  ;;  %v12682_v28 = vrot.slane %v27538_v3, %v27175_v34 }
0x1bfd   :  { %25279 = vmatprep.subr.bf16.mxu0 %v27643_v45 }
0x1c00   :  { %25281 = vmatpush3.bf16.msra.mxu0 %v27643_v45 }
0x1c01   :  { %25283 = vmatprep.subr.bf16.mxu0 %v27662_v14 }
0x1c04   :  { %25285 = vmatpush3.bf16.msra.mxu0 %v27662_v14 }
0x1c05   :  { %25287 = vmatprep.subr.bf16.mxu0 %v27672_v0 }
0x1c08   :  { %25289 = vmatpush3.bf16.msra.mxu0 %v27672_v0 }
0x1c09   :  { %25291 = vmatprep.subr.bf16.mxu0 %v27710_v47 }
0x1c0c   :  { %25293 = vmatpush3.bf16.msra.mxu0 %v27710_v47 }
0x1c0d   :  { %25295 = vmatprep.subr.bf16.mxu0 %v27720_v31 }
0x1c10   :  { %25297 = vmatpush3.bf16.msra.mxu0 %v27720_v31 }
0x1c11   :  { %25299 = vmatprep.subr.bf16.mxu0 %v27736_v50 }
0x1c14   :  { %25301 = vmatpush3.bf16.msra.mxu0 %v27736_v50 }
0x1c15   :  { %25303 = vmatprep.subr.bf16.mxu0 %v27748_v23 }
0x1c18   :  { %25305 = vmatpush3.bf16.msra.mxu0 %v27748_v23 }
0x1c1b   :  { %23438 = vmatmul.mubr.f32.vlgmr.msra.gmra.mrb[20].mxu0 %v27865_v13 }
0x1cee   :  { %v23439_v45 = vpop.f32.mrb[20].mxu0 }
0x1cef   :  { %v25912_v14 = vadd.f32 %v23439_v45, %v12682_v28  ;;  %v13357_v0 = vpop.f32.mrb[21].mxu0 }
0x1cf0   :  { %v25913_v47 = vadd.f32 %v13357_v0, %v12682_v28  ;;  %v13400_v28 = vrot.slane %v20663_v36, %v26576_v54 }
0x1cf1   :  { %v28015_v59 = vadd.f32 %v25912_v14, %v27543_v49 }
0x1cf2   :  { %v28018_v31 = vadd.f32 %v25913_v47, %v27546_v39  ;;  %v13406_v47 = vrot.slane %v20663_v36, %v26582_v56  ;;  %v28080_v36 = vld [vmem:[%s28904_s0 + $0x8] sm:$0xff] }
0x1cf3   :  { %v13374_v50 = vsel %vm38_vm0, %v28015_v59, 0.0 }
0x1cf4   :  { %13375 = vadd.xlane.f32.xlu1 %v13374_v50  ;;  %v13371_v23 = vsel %vm38_vm0, %v28018_v31, 0.0 }
0x1cf5   :  { %13372 = vadd.xlane.f32.xlu0 %v13371_v23 }
0x1d81   :  { %v13376_v9 = vpop.xlane.xlu1 %13375 }
0x1d82   :  { %v13378_v3 = vmul.f32 0.03125, %v13376_v9  ;;  %v13373_v35 = vpop.xlane.xlu0 %13372 }
0x1d83   :  { %v13377_v4 = vmul.f32 0.03125, %v13373_v35 }
0x1d84   :  { %v13380_v29 = vsub.f32 %v28015_v59, %v13378_v3 }
0x1d85   :  { %v13379_v49 = vsub.f32 %v28018_v31, %v13377_v4 }
0x1d86   :  { %v13382_v46 = vmul.f32 %v13380_v29, %v13380_v29 }
0x1d87   :  { %v13381_v13 = vmul.f32 %v13379_v49, %v13379_v49 }
0x1d88   :  { %v13386_v39 = vsel %vm38_vm0, %v13382_v46, 0.0 }
0x1d89   :  { %13387 = vadd.xlane.f32.xlu1 %v13386_v39  ;;  %v13383_v26 = vsel %vm38_vm0, %v13381_v13, 0.0 }
0x1d8a   :  { %13384 = vadd.xlane.f32.xlu0 %v13383_v26 }
0x1e16   :  { %v13388_v60 = vpop.xlane.xlu1 %13387 }
0x1e17   :  { %v13390_v15 = vmul.f32 0.03125, %v13388_v60  ;;  %v13385_v42 = vpop.xlane.xlu0 %13384 }
0x1e18   :  { %v13389_v63 = vmul.f32 0.03125, %v13385_v42 }
0x1e19   :  { %v13392_v58 = vadd.f32 1e-05, %v13390_v15 }
0x1e1a   :  { %v13391_v10 = vadd.f32 1e-05, %v13389_v63 }
0x1e1b   :  { %26392 = vrsqrt.f32 %v13392_v58 }
0x1e1c   :  { %26394 = vrsqrt.f32 %v13391_v10 }
0x1e25   :  { %v26393_v45 = vpop.eup %26392 }
0x1e26   :  { %v26395_v14 = vpop.eup %26394  ;;  %v13396_v0 = vmul.f32 %v26393_v45, %v13380_v29 }
0x1e27   :  { %v13395_v50 = vmul.f32 %v26395_v14, %v13379_v49  ;;  %v28086_v14 = vld [vmem:[%s28904_s0] sm:$0xff] }
0x1e28   :  { %v13402_v23 = vmul.f32 %v13400_v28, %v13396_v0 }
0x1e29   :  { %v13401_v9 = vmul.f32 %v13400_v28, %v13395_v50 }
0x1e2a   :  { %v13408_v3 = vadd.f32 %v13406_v47, %v13402_v23 }
0x1e2b   :  { %v13407_v35 = vadd.f32 %v13406_v47, %v13401_v9 }
0x1e2c   :  { %v13418_v4 = vsel %vm38_vm0, %v13408_v3, 0 }
0x1e2d   :  { %v13415_v46 = vsel %vm38_vm0, %v13407_v35, 0  ;;  %v13499_v13 = vand.u32 4294901760, %v13418_v4 }
0x1e2e   :  { %v13489_v39 = vand.u32 4294901760, %v13415_v46 }
0x1e2f   :  { %v13500_v26 = vsub.f32 %v13418_v4, %v13499_v13 }
0x1e30   :  { %v13490_v43 = vsub.f32 %v13415_v46, %v13489_v39 }
0x1e31   :  { %v13501_v24 = vand.u32 4294901760, %v13500_v26 }
0x1e32   :  { %v13491_v2 = vand.u32 4294901760, %v13490_v43 }
0x1e33   :  { %v13502_v25 = vsub.f32 %v13500_v26, %v13501_v24 }
0x1e34   :  { %v13492_v61 = vsub.f32 %v13490_v43, %v13491_v2 }
0x1e35   :  { %v13503_v32 = vand.u32 4294901760, %v13502_v25 }
0x1e36   :  { %v13493_v29 = vand.u32 4294901760, %v13492_v61 }
0x1e38   :  { %23448 = vmatprep.mubr.f32.mxu1 %v13493_v29 }
0x1e39   :  { %23449 = vmatmul.mubr.f32.vlgmr.msra.gmra.mrb[30].mxu1 %v13503_v32 }
0x1e3a   :  { %25317 = vmatpush3.bf16.msra.mxu1 %v25314_v41  ;;  %23459 = vmatprep.mubr.f32.mxu1 %v13489_v39 }
0x1e3b   :  { %25319 = vmatprep.subr.bf16.mxu1 %v25318_v48 }
0x1e3e   :  { %25321 = vmatpush3.bf16.msra.mxu1 %v25318_v48 }
0x1e3f   :  { %25323 = vmatprep.subr.bf16.mxu1 %v25322_v55 }
0x1e41   :  { %23460 = vmatmul.mubr.f32.vlgmr.msra.gmra.mrb[30].mxu1 %v13499_v13 }
0x1e42   :  { %25325 = vmatpush3.bf16.msra.mxu1 %v25322_v55  ;;  %23470 = vmatprep.mubr.f32.mxu1 %v13490_v43 }
0x1e43   :  { %25327 = vmatprep.subr.bf16.mxu1 %v25326_v11 }
0x1e46   :  { %25329 = vmatpush3.bf16.msra.mxu1 %v25326_v11 }
0x1e47   :  { %25331 = vmatprep.subr.bf16.mxu1 %v28040_v12 }
0x1e49   :  { %23471 = vmatmul.mubr.f32.vlgmr.msra.gmra.mrb[30].mxu1 %v13500_v26 }
0x1e4a   :  { %25333 = vmatpush3.bf16.msra.mxu1 %v28040_v12  ;;  %23481 = vmatprep.mubr.f32.mxu1 %v13491_v2 }
0x1e4b   :  { %25335 = vmatprep.subr.bf16.mxu1 %v28042_v37 }
0x1e4e   :  { %25337 = vmatpush3.bf16.msra.mxu1 %v28042_v37 }
0x1e4f   :  { %25339 = vmatprep.subr.bf16.mxu1 %v25338_v40 }
0x1e51   :  { %23482 = vmatmul.mubr.f32.vlgmr.msra.gmra.mrb[30].mxu1 %v13501_v24 }
0x1e52   :  { %25341 = vmatpush3.bf16.msra.mxu1 %v25338_v40  ;;  %23492 = vmatprep.mubr.f32.mxu1 %v13489_v39 }
0x1e53   :  { %25343 = vmatprep.subr.bf16.mxu1 %v25342_v8 }
0x1e56   :  { %25345 = vmatpush3.bf16.msra.mxu1 %v25342_v8 }
0x1e57   :  { %25347 = vmatprep.subr.bf16.mxu1 %v28040_v12 }
0x1e59   :  { %23493 = vmatmul.mubr.f32.vlgmr.msra.gmra.mrb[30].mxu1 %v13499_v13 }
0x1e5a   :  { %25349 = vmatpush3.bf16.msra.mxu1 %v28040_v12  ;;  %23503 = vmatprep.mubr.f32.mxu1 %v13489_v39 }
0x1e5b   :  { %25351 = vmatprep.subr.bf16.mxu1 %v28042_v37 }
0x1e5e   :  { %25353 = vmatpush3.bf16.msra.mxu1 %v28042_v37 }
0x1e61   :  { %23504 = vmatmul.mubr.f32.vlgmr.msra.gmra.mrb[30].mxu1 %v13499_v13 }
0x1f34   :  { %v28063_v49 = vpop.f32.mrb[30].mxu1 }
0x1f35   :  { %13952 = vrot.lane.b32.xlu1 %v28063_v49, %s26469_s23  ;;  %v28067_v62 = vpop.f32.mrb[31].mxu1  ;;  %v13956_v37 = vsel %vm622_vm1, %v28063_v49, 0 }
0x1f36   :  { %13950 = vrot.lane.b32.xlu0 %v28067_v62, %s26469_s23  ;;  %v13954_v1 = vsel %vm622_vm1, %v28067_v62, 0  ;;  %v14039_v51 = vand.u32 4294901760, %v13956_v37 }
0x1f37   :  { %v14029_v12 = vand.u32 4294901760, %v13954_v1 }
0x1f38   :  { %v14040_v7 = vsub.f32 %v13956_v37, %v14039_v51 }
0x1f39   :  { %v14030_v18 = vsub.f32 %v13954_v1, %v14029_v12 }
0x1f3a   :  { %v14041_v6 = vand.u32 4294901760, %v14040_v7 }
0x1f3b   :  { %v14031_v33 = vand.u32 4294901760, %v14030_v18 }
0x1f3c   :  { %v14042_v40 = vsub.f32 %v14040_v7, %v14041_v6 }
0x1f3d   :  { %v14032_v30 = vsub.f32 %v14030_v18, %v14031_v33 }
0x1f3e   :  { %v14043_v15 = vand.u32 4294901760, %v14042_v40 }
0x1f3f   :  { %v14033_v5 = vand.u32 4294901760, %v14032_v30 }
0x1f41   :  { %23510 = vmatprep.mubr.f32.mxu1 %v14033_v5 }
0x1fa7   :  { %v13953_v52 = vpop.permute.xlu1 %13952 }
0x1fa8   :  { %v13960_v16 = vsel %vm622_vm1, %v13953_v52, 0  ;;  %v13951_v53 = vpop.permute.xlu0 %13950 }
0x1fa9   :  { %v13966_v38 = vand.u32 4294901760, %v13960_v16  ;;  %v13958_v22 = vsel %vm622_vm1, %v13951_v53, 0 }
0x1faa   :  { %v13963_v57 = vand.u32 4294901760, %v13958_v22 }
0x1fab   :  { %v14058_v41 = vsub.f32 %v13960_v16, %v13966_v38 }
0x1fac   :  { %v25354_v27 = vpack.c.bf16 %v13966_v38, %v13963_v57  ;;  %v14051_v17 = vsub.f32 %v13958_v22, %v13963_v57 }
0x1fad   :  { %v14059_v44 = vand.u32 4294901760, %v14058_v41 }
0x1fae   :  { %v14052_v55 = vand.u32 4294901760, %v14051_v17  ;;  %25355 = vmatprep.subr.bf16.mxu1 %v25354_v27  ;;  %v25362_v63 = vpack.c.bf16 %v14058_v41, %v14051_v17 }
0x1faf   :  { %v14060_v48 = vsub.f32 %v14058_v41, %v14059_v44  ;;  %25357 = vmatpush3.bf16.xpose.msra.mxu1 %v25354_v27 }
0x1fb0   :  { %v14053_v11 = vsub.f32 %v14051_v17, %v14052_v55  ;;  %v25370_v58 = vpack.c.bf16 %v14059_v44, %v14052_v55 }
0x1fb1   :  { %v14061_v8 = vand.u32 4294901760, %v14060_v48 }
0x1fb2   :  { %v14054_v60 = vand.u32 4294901760, %v14053_v11 }
0x1fb4   :  { %v25358_v42 = vpack.c.bf16 %v14061_v8, %v14054_v60 }
0x1fb6   :  { %23511 = vmatmul.mubr.f32.vlgmr.msra.gmra.mrb[32].mxu1 %v14043_v15  ;;  %25359 = vmatprep.subr.bf16.mxu1 %v25358_v42 }
0x1fb7   :  { %25361 = vmatpush3.bf16.xpose.msra.mxu1 %v25358_v42  ;;  %23517 = vmatprep.mubr.f32.mxu1 %v14029_v12 }
0x1fb8   :  { %25363 = vmatprep.subr.bf16.mxu1 %v25362_v63 }
0x1fbe   :  { %23518 = vmatmul.mubr.f32.vlgmr.msra.gmra.mrb[32].mxu1 %v14039_v51 }
0x1fbf   :  { %25365 = vmatpush3.bf16.xpose.msra.mxu1 %v25362_v63  ;;  %23524 = vmatprep.mubr.f32.mxu1 %v14030_v18 }
0x1fc0   :  { %25367 = vmatprep.subr.bf16.mxu1 %v25354_v27 }
0x1fc6   :  { %23525 = vmatmul.mubr.f32.vlgmr.msra.gmra.mrb[32].mxu1 %v14040_v7 }
0x1fc7   :  { %25369 = vmatpush3.bf16.xpose.msra.mxu1 %v25354_v27  ;;  %23531 = vmatprep.mubr.f32.mxu1 %v14031_v33 }
0x1fc8   :  { %25371 = vmatprep.subr.bf16.mxu1 %v25370_v58 }
0x1fce   :  { %23532 = vmatmul.mubr.f32.vlgmr.msra.gmra.mrb[32].mxu1 %v14041_v6 }
0x1fcf   :  { %25373 = vmatpush3.bf16.xpose.msra.mxu1 %v25370_v58  ;;  %23538 = vmatprep.mubr.f32.mxu1 %v14029_v12 }
0x1fd0   :  { %25375 = vmatprep.subr.bf16.mxu1 %v25354_v27 }
0x1fd6   :  { %23539 = vmatmul.mubr.f32.vlgmr.msra.gmra.mrb[32].mxu1 %v14039_v51 }
0x1fd7   :  { %25377 = vmatpush3.bf16.xpose.msra.mxu1 %v25354_v27  ;;  %23545 = vmatprep.mubr.f32.mxu1 %v14029_v12 }
0x1fde   :  { %23546 = vmatmul.mubr.f32.vlgmr.msra.gmra.mrb[32].mxu1 %v14039_v51 }
0x20b1   :  { %v23547_v10 = vpop.f32.mrb[32].mxu1 }
0x20b2   :  { %v25914_v28 = vadd.f32 %v28080_v36, %v23547_v10  ;;  %v14454_v45 = vpop.f32.mrb[33].mxu1 }
0x20b3   :  { %v25915_v0 = vadd.f32 %v28086_v14, %v14454_v45 }
0x20b4   :  { %v14467_v47 = vsel %vm1133_vm2, %v25914_v28, -inf }
0x20b5   :  { %14468 = vmax.xlane.f32.xlu0 %v14467_v47  ;;  %v14464_v50 = vsel %vm1133_vm2, %v25915_v0, -inf }
0x20b6   :  { %14465 = vmax.xlane.f32.xlu1 %v14464_v50 }
0x20c7   :  { %14484 = vrot.lane.b32.xlu1 %v28063_v49, %s26472_s30 }
0x20cb   :  { %14482 = vrot.lane.b32.xlu0 %v28067_v62, %s26472_s30  ;;  %15006 = vrot.lane.b32.xlu1 %v28067_v62, %s26470_s24 }
0x20cf   :  { %15002 = vrot.lane.b32.xlu0 %v28067_v62, %s26471_s25  ;;  %15008 = vrot.lane.b32.xlu1 %v28063_v49, %s26470_s24 }
0x20d3   :  { %16062 = vrot.lane.b32.xlu0 %v28067_v62, %s26474_s11  ;;  %15004 = vrot.lane.b32.xlu1 %v28063_v49, %s26471_s25 }
0x20d7   :  { %16058 = vrot.lane.b32.xlu0 %v28067_v62, %s26475_s12  ;;  %16064 = vrot.lane.b32.xlu1 %v28063_v49, %s26474_s11 }
0x20db   :  { %16060 = vrot.lane.b32.xlu1 %v28063_v49, %s26475_s12 }
0x2142   :  { %v14469_v23 = vpop.xlane.xlu0 %14468 }
0x2143   :  { %v14471_v9 = vsub.f32 %v25914_v28, %v14469_v23  ;;  %v14466_v3 = vpop.xlane.xlu1 %14465 }
0x2144   :  { %v14470_v35 = vsub.f32 %v25915_v0, %v14466_v3 }
0x2145   :  { %v14474_v4 = vmul.f32 1.442695, %v14471_v9 }
0x2146   :  { %v14472_v46 = vmul.f32 1.442695, %v14470_v35  ;;  %v14483_v13 = vpop.permute.xlu0 %14482 }
0x2147   :  { %26396 = vpow2.f32 %v14474_v4  ;;  %v14495_v39 = vand.u32 4294901760, %v14483_v13  ;;  %v14485_v26 = vpop.permute.xlu1 %14484 }
0x2148   :  { %26398 = vpow2.f32 %v14472_v46  ;;  %v14498_v43 = vand.u32 4294901760, %v14485_v26 }
0x2149   :  { %v28111_v24 = vsub.f32 %v14483_v13, %v14495_v39 }
0x214a   :  { %v28113_v2 = vpack.c.bf16 %v14498_v43, %v14495_v39  ;;  %v28115_v25 = vsub.f32 %v14485_v26, %v14498_v43  ;;  %v28117_v61 = vpop.permute.xlu0 %15002 }
0x214b   :  { %v14584_v29 = vand.u32 4294901760, %v28111_v24  ;;  %v28120_v32 = vpop.permute.xlu1 %15006 }
0x214c   :  { %v14591_v1 = vand.u32 4294901760, %v28115_v25  ;;  %25379 = vmatprep.subr.bf16.mxu1 %v28113_v2 }
0x214d   :  { %v14585_v12 = vsub.f32 %v28111_v24, %v14584_v29  ;;  %25381 = vmatpush3.bf16.msra.mxu1 %v28113_v2 }
0x214e   :  { %v14592_v18 = vsub.f32 %v28115_v25, %v14591_v1  ;;  %v16063_v33 = vpop.permute.xlu0 %16062 }
0x214f   :  { %v16070_v30 = vsel %vm622_vm1, %v16063_v33, 0  ;;  %v28132_v5 = vpop.permute.xlu1 %15008  ;;  %v14586_v37 = vand.u32 4294901760, %v14585_v12  ;;  %v25386_v12 = vpack.c.bf16 %v28115_v25, %v28111_v24  ;;  %v15014_v24 = vsel %vm622_vm1, %v28120_v32, 0 }
0x2150   :  { %v14593_v51 = vand.u32 4294901760, %v14592_v18  ;;  %v16075_v16 = vand.u32 4294901760, %v16070_v30 }
0x2151   :  { %v28134_v52 = vpop.eup %26396 }
0x2152   :  { %v28136_v53 = vpop.eup %26398  ;;  %v14492_v7 = vsel %vm1133_vm2, %v28134_v52, 0  ;;  %v16059_v38 = vpop.permute.xlu0 %16058  ;;  %v25382_v22 = vpack.c.bf16 %v14593_v51, %v14586_v37  ;;  %v28147_v6 = vsub.f32 %v16070_v30, %v16075_v16 }
0x2153   :  { %v28140_v57 = vand.u32 4294901760, %v14492_v7  ;;  %v28142_v41 = vpop.permute.xlu1 %15004  ;;  %v16066_v27 = vsel %vm622_vm1, %v16059_v38, 0  ;;  %v14489_v17 = vsel %vm1133_vm2, %v28136_v53, 0  ;;  %v25394_v38 = vpack.c.bf16 %v14591_v1, %v14584_v29 }
0x2154   :  { %25383 = vmatprep.subr.bf16.mxu1 %v25382_v22  ;;  %v28149_v44 = vand.u32 4294901760, %v16066_v27  ;;  %v28151_v55 = vand.u32 4294901760, %v14489_v17  ;;  %v16164_v42 = vand.u32 4294901760, %v28147_v6  ;;  %v15019_v29 = vand.u32 4294901760, %v15014_v24 }
0x2155   :  { %v28154_v48 = vsub.f32 %v14492_v7, %v28140_v57 }
0x2156   :  { %v28157_v11 = vsub.f32 %v16066_v27, %v28149_v44  ;;  %v14562_v8 = vsub.f32 %v14489_v17, %v28151_v55  ;;  %v16165_v3 = vsub.f32 %v28147_v6, %v16164_v42  ;;  %v15010_v27 = vsel %vm622_vm1, %v28117_v61, 0 }
0x2157   :  { %v16065_v40 = vpop.permute.xlu1 %16064  ;;  %v14573_v15 = vand.u32 4294901760, %v28154_v48  ;;  %v28201_v25 = vand.u32 4294901760, %v15010_v27  ;;  %v15107_v32 = vsub.f32 %v15014_v24, %v15019_v29 }
0x2158   :  { %v16072_v60 = vsel %vm622_vm1, %v16065_v40, 0  ;;  %v16143_v63 = vand.u32 4294901760, %v28157_v11  ;;  %v14563_v10 = vand.u32 4294901760, %v14562_v8  ;;  %v16166_v33 = vand.u32 4294901760, %v16165_v3 }
0x2159   :  { %v16078_v58 = vand.u32 4294901760, %v16072_v60  ;;  %v14574_v28 = vsub.f32 %v28154_v48, %v14573_v15  ;;  %v15086_v61 = vsub.f32 %v15010_v27, %v28201_v25 }
0x215a   :  { %v14564_v50 = vsub.f32 %v14562_v8, %v14563_v10  ;;  %v16144_v9 = vsub.f32 %v28157_v11, %v16143_v63 }
0x215b   :  { %v28165_v45 = vpack.c.bf16 %v16078_v58, %v16075_v16  ;;  %v16170_v0 = vsub.f32 %v16072_v60, %v16078_v58  ;;  %v16061_v47 = vpop.permute.xlu1 %16060  ;;  %v14575_v39 = vand.u32 4294901760, %v14574_v28  ;;  %v15108_v60 = vand.u32 4294901760, %v15107_v32 }
0x215c   :  { %v16068_v23 = vsel %vm622_vm1, %v16061_v47, 0  ;;  %v14565_v46 = vand.u32 4294901760, %v14564_v50  ;;  %v16145_v13 = vand.u32 4294901760, %v16144_v9 }
0x215d   :  { %v16171_v35 = vand.u32 4294901760, %v16170_v0  ;;  %v28174_v4 = vand.u32 4294901760, %v16068_v23  ;;  %25451 = vmatprep.subr.bf16.mxu0 %v28165_v45  ;;  %v25458_v7 = vpack.c.bf16 %v16170_v0, %v28147_v6 }
0x215e   :  { %25453 = vmatpush3.bf16.xpose.msra.mxu0 %v28165_v45  ;;  %23552 = vmatprep.mubr.f32.mxu1 %v14565_v46 }
0x215f   :  { %v16172_v26 = vsub.f32 %v16170_v0, %v16171_v35  ;;  %v16152_v43 = vsub.f32 %v16068_v23, %v28174_v4  ;;  %23678 = vmatprep.mubr.f32.mxu0 %v16145_v13  ;;  %23553 = vmatmul.mubr.f32.vlgmr.msra.gmra.mrb[34].mxu1 %v14575_v39 }
0x2160   :  { %25385 = vmatpush3.bf16.msra.mxu1 %v25382_v22  ;;  %23559 = vmatprep.mubr.f32.mxu1 %v28151_v55  ;;  %v15016_v22 = vsel %vm622_vm1, %v28132_v5, 0  ;;  %v25466_v5 = vpack.c.bf16 %v16171_v35, %v16164_v42 }
0x2161   :  { %v16153_v18 = vand.u32 4294901760, %v16152_v43  ;;  %v16173_v30 = vand.u32 4294901760, %v16172_v26  ;;  %25387 = vmatprep.subr.bf16.mxu1 %v25386_v12  ;;  %v15022_v17 = vand.u32 4294901760, %v15016_v22 }
0x2163   :  { %v16154_v37 = vsub.f32 %v16152_v43, %v16153_v18  ;;  %v25454_v51 = vpack.c.bf16 %v16173_v30, %v16166_v33  ;;  %v15114_v1 = vsub.f32 %v15016_v22, %v15022_v17  ;;  %v25402_v58 = vpack.c.bf16 %v15022_v17, %v15019_v29 }
0x2165   :  { %v16155_v16 = vand.u32 4294901760, %v16154_v37  ;;  %25455 = vmatprep.subr.bf16.mxu0 %v25454_v51  ;;  %v15115_v40 = vand.u32 4294901760, %v15114_v1  ;;  %v25410_v50 = vpack.c.bf16 %v15114_v1, %v15107_v32 }
0x2167   :  { %23679 = vmatmul.mubr.f32.vlgmr.msra.gmra.mrb[22].mxu0 %v16155_v16  ;;  %23560 = vmatmul.mubr.f32.vlgmr.msra.gmra.mrb[34].mxu1 %v28140_v57  ;;  %v15116_v6 = vsub.f32 %v15114_v1, %v15115_v40 }
0x2168   :  { %25457 = vmatpush3.bf16.xpose.msra.mxu0 %v25454_v51  ;;  %25389 = vmatpush3.bf16.msra.mxu1 %v25386_v12 }
0x2169   :  { %23566 = vmatprep.mubr.f32.mxu1 %v14562_v8  ;;  %25391 = vmatprep.subr.bf16.mxu1 %v28113_v2  ;;  %v15087_v8 = vand.u32 4294901760, %v15086_v61 }
0x216a   :  { %23685 = vmatprep.mubr.f32.mxu0 %v28149_v44  ;;  %25459 = vmatprep.subr.bf16.mxu0 %v25458_v7 }
0x216f   :  { %23686 = vmatmul.mubr.f32.vlgmr.msra.gmra.mrb[22].mxu0 %v28174_v4  ;;  %23567 = vmatmul.mubr.f32.vlgmr.msra.gmra.mrb[34].mxu1 %v28154_v48  ;;  %v15012_v48 = vsel %vm622_vm1, %v28142_v41, 0  ;;  %v15088_v41 = vsub.f32 %v15086_v61, %v15087_v8 }
0x2170   :  { %25461 = vmatpush3.bf16.xpose.msra.mxu0 %v25458_v7  ;;  %25393 = vmatpush3.bf16.msra.mxu1 %v28113_v2 }
0x2171   :  { %23573 = vmatprep.mubr.f32.mxu1 %v14563_v10  ;;  %25395 = vmatprep.subr.bf16.mxu1 %v25394_v38  ;;  %v15089_v28 = vand.u32 4294901760, %v15088_v41 }
0x2172   :  { %23692 = vmatprep.mubr.f32.mxu0 %v28157_v11  ;;  %25463 = vmatprep.subr.bf16.mxu0 %v28165_v45  ;;  %v15109_v11 = vsub.f32 %v15107_v32, %v15108_v60 }
0x2174   :  { %v15110_v0 = vand.u32 4294901760, %v15109_v11 }
0x2177   :  { %23693 = vmatmul.mubr.f32.vlgmr.msra.gmra.mrb[22].mxu0 %v16152_v43  ;;  %23574 = vmatmul.mubr.f32.vlgmr.msra.gmra.mrb[34].mxu1 %v14573_v15  ;;  %v15095_v15 = vand.u32 4294901760, %v15012_v48 }
0x2178   :  { %25465 = vmatpush3.bf16.xpose.msra.mxu0 %v28165_v45  ;;  %25397 = vmatpush3.bf16.msra.mxu1 %v25394_v38 }
0x2179   :  { %23580 = vmatprep.mubr.f32.mxu1 %v28151_v55  ;;  %25399 = vmatprep.subr.bf16.mxu1 %v28113_v2  ;;  %v15096_v42 = vsub.f32 %v15012_v48, %v15095_v15 }
0x217a   :  { %23699 = vmatprep.mubr.f32.mxu0 %v16143_v63  ;;  %25467 = vmatprep.subr.bf16.mxu0 %v25466_v5  ;;  %v15117_v63 = vand.u32 4294901760, %v15116_v6 }
0x217b   :  { %v15097_v10 = vand.u32 4294901760, %v15096_v42 }
0x217f   :  { %23700 = vmatmul.mubr.f32.vlgmr.msra.gmra.mrb[22].mxu0 %v16153_v18  ;;  %23581 = vmatmul.mubr.f32.vlgmr.msra.gmra.mrb[34].mxu1 %v28140_v57 }
0x2180   :  { %25469 = vmatpush3.bf16.xpose.msra.mxu0 %v25466_v5  ;;  %25401 = vmatpush3.bf16.msra.mxu1 %v28113_v2  ;;  %v25406_v2 = vpack.c.bf16 %v15117_v63, %v15110_v0 }
0x2181   :  { %23587 = vmatprep.mubr.f32.mxu1 %v28151_v55  ;;  %25403 = vmatprep.subr.bf16.mxu1 %v25402_v58  ;;  %v15098_v55 = vsub.f32 %v15096_v42, %v15097_v10 }
0x2182   :  { %23706 = vmatprep.mubr.f32.mxu0 %v28149_v44  ;;  %25471 = vmatprep.subr.bf16.mxu0 %v28165_v45 }
0x2183   :  { %v15099_v47 = vand.u32 4294901760, %v15098_v55 }
0x2187   :  { %23707 = vmatmul.mubr.f32.vlgmr.msra.gmra.mrb[22].mxu0 %v28174_v4  ;;  %23588 = vmatmul.mubr.f32.vlgmr.msra.gmra.mrb[34].mxu1 %v28140_v57  ;;  %v25418_v57 = vpack.c.bf16 %v15115_v40, %v15108_v60 }
0x2188   :  { %25473 = vmatpush3.bf16.xpose.msra.mxu0 %v28165_v45  ;;  %23594 = vmatprep.mubr.f32.mxu1 %v15089_v28 }
0x2189   :  { %23713 = vmatprep.mubr.f32.mxu0 %v28149_v44  ;;  %25405 = vmatpush3.bf16.xpose.msra.mxu1 %v25402_v58 }
0x218a   :  { %25407 = vmatprep.subr.bf16.mxu1 %v25406_v2 }
0x218f   :  { %23714 = vmatmul.mubr.f32.vlgmr.msra.gmra.mrb[22].mxu0 %v28174_v4 }
0x2190   :  { %23595 = vmatmul.mubr.f32.vlgmr.msra.gmra.mrb[36].mxu1 %v15099_v47 }
0x2191   :  { %25409 = vmatpush3.bf16.xpose.msra.mxu1 %v25406_v2  ;;  %23601 = vmatprep.mubr.f32.mxu1 %v28201_v25 }
0x2192   :  { %25411 = vmatprep.subr.bf16.mxu1 %v25410_v50 }
0x2198   :  { %23602 = vmatmul.mubr.f32.vlgmr.msra.gmra.mrb[36].mxu1 %v15095_v15 }
0x2199   :  { %25413 = vmatpush3.bf16.xpose.msra.mxu1 %v25410_v50  ;;  %23608 = vmatprep.mubr.f32.mxu1 %v15086_v61 }
0x219a   :  { %25415 = vmatprep.subr.bf16.mxu1 %v25402_v58 }
0x21a0   :  { %23609 = vmatmul.mubr.f32.vlgmr.msra.gmra.mrb[36].mxu1 %v15096_v42 }
0x21a1   :  { %25417 = vmatpush3.bf16.xpose.msra.mxu1 %v25402_v58  ;;  %23615 = vmatprep.mubr.f32.mxu1 %v15087_v8 }
0x21a2   :  { %25419 = vmatprep.subr.bf16.mxu1 %v25418_v57 }
0x21a8   :  { %23616 = vmatmul.mubr.f32.vlgmr.msra.gmra.mrb[36].mxu1 %v15097_v10 }
0x21a9   :  { %25421 = vmatpush3.bf16.xpose.msra.mxu1 %v25418_v57  ;;  %23622 = vmatprep.mubr.f32.mxu1 %v28201_v25 }
0x21aa   :  { %25423 = vmatprep.subr.bf16.mxu1 %v25402_v58 }
0x21b0   :  { %23623 = vmatmul.mubr.f32.vlgmr.msra.gmra.mrb[36].mxu1 %v15095_v15 }
0x21b1   :  { %25425 = vmatpush3.bf16.xpose.msra.mxu1 %v25402_v58  ;;  %23629 = vmatprep.mubr.f32.mxu1 %v28201_v25 }
0x21b8   :  { %23630 = vmatmul.mubr.f32.vlgmr.msra.gmra.mrb[36].mxu1 %v15095_v15 }
0x225a   :  { %v28226_v44 = vpop.f32.mrb[34].mxu1 }
0x225b   :  { %v28228_v45 = vpop.f32.mrb[35].mxu1 }
0x2262   :  { %v23715_v23 = vpop.f32.mrb[22].mxu0 }
0x2263   :  { %v16566_v9 = vpop.f32.mrb[23].mxu0  ;;  %v28239_v26 = vadd.f32 %v28080_v36, %v23715_v23 }
0x2264   :  { %v28242_v43 = vadd.f32 %v28086_v14, %v16566_v9 }
0x2265   :  { %v16579_v12 = vsel %vm1133_vm2, %v28239_v26, -inf }
0x2266   :  { %v16576_v18 = vsel %vm1133_vm2, %v28242_v43, -inf }
0x228b   :  { %v23631_v3 = vpop.f32.mrb[36].mxu1 }
0x228c   :  { %v25916_v35 = vadd.f32 %v28080_v36, %v23631_v3  ;;  %v15510_v4 = vpop.f32.mrb[37].mxu1 }
0x228d   :  { %v25917_v46 = vadd.f32 %v28086_v14, %v15510_v4 }
0x228e   :  { %v15523_v13 = vsel %vm1133_vm2, %v25916_v35, -inf }
0x228f   :  { %15524 = vmax.xlane.f32.xlu1 %v15523_v13  ;;  %v15520_v39 = vsel %vm1133_vm2, %v25917_v46, -inf }
0x2290   :  { %15521 = vmax.xlane.f32.xlu0 %v15520_v39 }
0x22a0   :  { %15540 = vrot.lane.b32.xlu1 %v28063_v49, %s26473_s10 }
0x22a6   :  { %15538 = vrot.lane.b32.xlu0 %v28067_v62, %s26473_s10 }
0x22c4   :  { %16580 = vmax.xlane.f32.xlu1 %v16579_v12 }
0x22c5   :  { %16577 = vmax.xlane.f32.xlu0 %v16576_v18 }
0x22d5   :  { %16596 = vrot.lane.b32.xlu1 %v28063_v49, %s26476_s13 }
0x22d9   :  { %17120 = vrot.lane.b32.xlu1 %v28063_v49, %s26477_s14 }
0x22db   :  { %16594 = vrot.lane.b32.xlu0 %v28067_v62, %s26476_s13 }
0x22dd   :  { %17116 = vrot.lane.b32.xlu1 %v28063_v49, %s26478_s15 }
0x22df   :  { %17118 = vrot.lane.b32.xlu0 %v28067_v62, %s26477_s14 }
0x22e3   :  { %17114 = vrot.lane.b32.xlu0 %v28067_v62, %s26478_s15 }
0x231c   :  { %v15525_v33 = vpop.xlane.xlu1 %15524 }
0x231d   :  { %v15527_v30 = vsub.f32 %v25916_v35, %v15525_v33  ;;  %v15522_v37 = vpop.xlane.xlu0 %15521 }
0x231e   :  { %v15526_v51 = vsub.f32 %v25917_v46, %v15522_v37 }
0x231f   :  { %v15530_v16 = vmul.f32 1.442695, %v15527_v30 }
0x2320   :  { %v15528_v7 = vmul.f32 1.442695, %v15526_v51  ;;  %v15541_v38 = vpop.permute.xlu1 %15540 }
0x2321   :  { %26400 = vpow2.f32 %v15530_v16  ;;  %v15554_v22 = vand.u32 4294901760, %v15541_v38  ;;  %v15539_v27 = vpop.permute.xlu0 %15538 }
0x2322   :  { %26402 = vpow2.f32 %v15528_v7  ;;  %v15551_v24 = vand.u32 4294901760, %v15539_v27 }
0x2323   :  { %v15646_v17 = vsub.f32 %v15541_v38, %v15554_v22 }
0x2324   :  { %v25426_v25 = vpack.c.bf16 %v15554_v22, %v15551_v24  ;;  %v15639_v29 = vsub.f32 %v15539_v27, %v15551_v24 }
0x2325   :  { %v15647_v1 = vand.u32 4294901760, %v15646_v17 }
0x2326   :  { %v15640_v5 = vand.u32 4294901760, %v15639_v29  ;;  %25427 = vmatprep.subr.bf16.mxu1 %v25426_v25  ;;  %v25434_v50 = vpack.c.bf16 %v15646_v17, %v15639_v29 }
0x2327   :  { %v15648_v61 = vsub.f32 %v15646_v17, %v15647_v1  ;;  %25429 = vmatpush3.bf16.msra.mxu1 %v25426_v25 }
0x2328   :  { %v15641_v32 = vsub.f32 %v15639_v29, %v15640_v5  ;;  %v25442_v57 = vpack.c.bf16 %v15647_v1, %v15640_v5 }
0x2329   :  { %v15649_v48 = vand.u32 4294901760, %v15648_v61 }
0x232a   :  { %v15642_v40 = vand.u32 4294901760, %v15641_v32 }
0x232b   :  { %v28260_v8 = vpop.eup %26400 }
0x232c   :  { %v28262_v60 = vpop.eup %26402  ;;  %v15548_v15 = vsel %vm1133_vm2, %v28260_v8, 0  ;;  %v25430_v58 = vpack.c.bf16 %v15649_v48, %v15642_v40 }
0x232d   :  { %v15627_v6 = vand.u32 4294901760, %v15548_v15  ;;  %v15545_v11 = vsel %vm1133_vm2, %v28262_v60, 0 }
0x232e   :  { %25431 = vmatprep.subr.bf16.mxu1 %v25430_v58  ;;  %v15617_v42 = vand.u32 4294901760, %v15545_v11 }
0x232f   :  { %v15628_v41 = vsub.f32 %v15548_v15, %v15627_v6 }
0x2330   :  { %v15618_v63 = vsub.f32 %v15545_v11, %v15617_v42 }
0x2331   :  { %v15629_v10 = vand.u32 4294901760, %v15628_v41 }
0x2332   :  { %v15619_v28 = vand.u32 4294901760, %v15618_v63 }
0x2333   :  { %v15630_v0 = vsub.f32 %v15628_v41, %v15629_v10 }
0x2334   :  { %v15620_v2 = vsub.f32 %v15618_v63, %v15619_v28 }
0x2335   :  { %v15631_v47 = vand.u32 4294901760, %v15630_v0 }
0x2336   :  { %v15621_v55 = vand.u32 4294901760, %v15620_v2 }
0x2338   :  { %23636 = vmatprep.mubr.f32.mxu1 %v15621_v55 }
0x2339   :  { %23637 = vmatmul.mubr.f32.vlgmr.msra.gmra.mrb[38].mxu1 %v15631_v47 }
0x233a   :  { %25433 = vmatpush3.bf16.msra.mxu1 %v25430_v58  ;;  %23643 = vmatprep.mubr.f32.mxu1 %v15617_v42 }
0x233b   :  { %25435 = vmatprep.subr.bf16.mxu1 %v25434_v50 }
0x2341   :  { %23644 = vmatmul.mubr.f32.vlgmr.msra.gmra.mrb[38].mxu1 %v15627_v6 }
0x2342   :  { %25437 = vmatpush3.bf16.msra.mxu1 %v25434_v50  ;;  %23650 = vmatprep.mubr.f32.mxu1 %v15618_v63 }
0x2343   :  { %25439 = vmatprep.subr.bf16.mxu1 %v25426_v25 }
0x2349   :  { %23651 = vmatmul.mubr.f32.vlgmr.msra.gmra.mrb[38].mxu1 %v15628_v41 }
0x234a   :  { %25441 = vmatpush3.bf16.msra.mxu1 %v25426_v25  ;;  %23657 = vmatprep.mubr.f32.mxu1 %v15619_v28 }
0x234b   :  { %25443 = vmatprep.subr.bf16.mxu1 %v25442_v57 }
0x2351   :  { %23658 = vmatmul.mubr.f32.vlgmr.msra.gmra.mrb[38].mxu1 %v15629_v10  ;;  %v16581_v23 = vpop.xlane.xlu1 %16580 }
0x2352   :  { %25445 = vmatpush3.bf16.msra.mxu1 %v25442_v57  ;;  %v16583_v9 = vsub.f32 %v28239_v26, %v16581_v23  ;;  %v16578_v3 = vpop.xlane.xlu0 %16577  ;;  %23664 = vmatprep.mubr.f32.mxu1 %v15617_v42 }
0x2353   :  { %v16582_v35 = vsub.f32 %v28242_v43, %v16578_v3  ;;  %25447 = vmatprep.subr.bf16.mxu1 %v25426_v25 }
0x2354   :  { %v16586_v4 = vmul.f32 1.442695, %v16583_v9 }
0x2355   :  { %v16584_v46 = vmul.f32 1.442695, %v16582_v35  ;;  %v16597_v13 = vpop.permute.xlu1 %16596 }
0x2356   :  { %26404 = vpow2.f32 %v16586_v4  ;;  %v16610_v39 = vand.u32 4294901760, %v16597_v13  ;;  %v16595_v12 = vpop.permute.xlu0 %16594 }
0x2357   :  { %26406 = vpow2.f32 %v16584_v46  ;;  %v16607_v18 = vand.u32 4294901760, %v16595_v12 }
0x2358   :  { %v16702_v33 = vsub.f32 %v16597_v13, %v16610_v39 }
0x2359   :  { %v28270_v30 = vpack.c.bf16 %v16610_v39, %v16607_v18  ;;  %v16695_v37 = vsub.f32 %v16595_v12, %v16607_v18  ;;  %23665 = vmatmul.mubr.f32.vlgmr.msra.gmra.mrb[38].mxu1 %v15627_v6  ;;  %v17121_v41 = vpop.permute.xlu1 %17120 }
0x235a   :  { %v16703_v51 = vand.u32 4294901760, %v16702_v33  ;;  %25449 = vmatpush3.bf16.msra.mxu1 %v25426_v25  ;;  %23671 = vmatprep.mubr.f32.mxu1 %v15617_v42  ;;  %v17119_v42 = vpop.permute.xlu0 %17118  ;;  %v17128_v28 = vsel %vm622_vm1, %v17121_v41, 0 }
0x235b   :  { %v16696_v26 = vand.u32 4294901760, %v16695_v37  ;;  %25475 = vmatprep.subr.bf16.mxu1 %v28270_v30  ;;  %v17126_v0 = vsel %vm622_vm1, %v17119_v42, 0  ;;  %v17134_v55 = vand.u32 4294901760, %v17128_v28 }
0x235c   :  { %v16704_v43 = vsub.f32 %v16702_v33, %v16703_v51  ;;  %v17131_v47 = vand.u32 4294901760, %v17126_v0 }
0x235d   :  { %v16697_v16 = vsub.f32 %v16695_v37, %v16696_v26  ;;  %v25490_v63 = vpack.c.bf16 %v16703_v51, %v16696_v26  ;;  %v17226_v57 = vsub.f32 %v17128_v28, %v17134_v55  ;;  %v17117_v9 = vpop.permute.xlu1 %17116 }
0x235e   :  { %v16705_v7 = vand.u32 4294901760, %v16704_v43  ;;  %v17115_v10 = vpop.permute.xlu0 %17114  ;;  %v17219_v23 = vsub.f32 %v17126_v0, %v17131_v47  ;;  %v17124_v35 = vsel %vm622_vm1, %v17117_v9, 0  ;;  %v25498_v12 = vpack.c.bf16 %v17134_v55, %v17131_v47 }
0x235f   :  { %v16698_v38 = vand.u32 4294901760, %v16697_v16  ;;  %v17122_v2 = vsel %vm622_vm1, %v17115_v10, 0  ;;  %v17227_v4 = vand.u32 4294901760, %v17226_v57  ;;  %v17207_v13 = vand.u32 4294901760, %v17124_v35 }
0x2360   :  { %v28273_v22 = vpop.eup %26404  ;;  %v17197_v50 = vand.u32 4294901760, %v17122_v2  ;;  %v17220_v46 = vand.u32 4294901760, %v17219_v23 }
0x2361   :  { %v28275_v27 = vpop.eup %26406  ;;  %v16604_v24 = vsel %vm1133_vm2, %v28273_v22, 0  ;;  %23672 = vmatmul.mubr.f32.vlgmr.msra.gmra.mrb[38].mxu1 %v15627_v6  ;;  %v25478_v17 = vpack.c.bf16 %v16705_v7, %v16698_v38  ;;  %v25482_v6 = vpack.c.bf16 %v16702_v33, %v16695_v37  ;;  %v17228_v18 = vsub.f32 %v17226_v57, %v17227_v4 }
0x2362   :  { %v16683_v29 = vand.u32 4294901760, %v16604_v24  ;;  %25477 = vmatpush3.bf16.msra.mxu1 %v28270_v30  ;;  %v16601_v25 = vsel %vm1133_vm2, %v28275_v27, 0  ;;  %v17198_v3 = vsub.f32 %v17122_v2, %v17197_v50  ;;  %v17221_v33 = vsub.f32 %v17219_v23, %v17220_v46 }
0x2363   :  { %25479 = vmatprep.subr.bf16.mxu1 %v25478_v17  ;;  %v16673_v1 = vand.u32 4294901760, %v16601_v25  ;;  %v17208_v37 = vsub.f32 %v17124_v35, %v17207_v13  ;;  %v17229_v43 = vand.u32 4294901760, %v17228_v18  ;;  %v16591_v42 = vsel %vm1133_vm2, %v28273_v22, 0.0 }
0x2364   :  { %v16684_v5 = vsub.f32 %v16604_v24, %v16683_v29  ;;  %v17199_v39 = vand.u32 4294901760, %v17198_v3  ;;  %v17222_v26 = vand.u32 4294901760, %v17221_v33 }
0x2365   :  { %v16674_v61 = vsub.f32 %v16601_v25, %v16673_v1  ;;  %v17209_v16 = vand.u32 4294901760, %v17208_v37  ;;  %v25506_v25 = vpack.c.bf16 %v17226_v57, %v17219_v23 }
0x2366   :  { %v16685_v32 = vand.u32 4294901760, %v16684_v5  ;;  %v17200_v51 = vsub.f32 %v17198_v3, %v17199_v39  ;;  %v25502_v38 = vpack.c.bf16 %v17229_v43, %v17222_v26  ;;  %v14479_v26 = vsel %vm1133_vm2, %v28134_v52, 0.0 }
0x2367   :  { %v16675_v48 = vand.u32 4294901760, %v16674_v61  ;;  %v17210_v24 = vsub.f32 %v17208_v37, %v17209_v16 }
0x2368   :  { %v16686_v40 = vsub.f32 %v16684_v5, %v16685_v32  ;;  %v17201_v7 = vand.u32 4294901760, %v17200_v51 }
0x2369   :  { %v16676_v15 = vsub.f32 %v16674_v61, %v16675_v48 }
0x236a   :  { %v16687_v11 = vand.u32 4294901760, %v16686_v40 }
0x236b   :  { %v16677_v58 = vand.u32 4294901760, %v16676_v15 }
0x236d   :  { %23720 = vmatprep.mubr.f32.mxu1 %v16677_v58 }
0x236e   :  { %23721 = vmatmul.mubr.f32.vlgmr.msra.gmra.mrb[40].mxu1 %v16687_v11 }
0x236f   :  { %25481 = vmatpush3.bf16.msra.mxu1 %v25478_v17  ;;  %23727 = vmatprep.mubr.f32.mxu1 %v16673_v1  ;;  %v17211_v17 = vand.u32 4294901760, %v17210_v24 }
0x2370   :  { %25483 = vmatprep.subr.bf16.mxu1 %v25482_v6 }
0x2376   :  { %23728 = vmatmul.mubr.f32.vlgmr.msra.gmra.mrb[40].mxu1 %v16683_v29 }
0x2377   :  { %25485 = vmatpush3.bf16.msra.mxu1 %v25482_v6  ;;  %23734 = vmatprep.mubr.f32.mxu1 %v16674_v61  ;;  %v15535_v6 = vsel %vm1133_vm2, %v28260_v8, 0.0 }
0x2378   :  { %25487 = vmatprep.subr.bf16.mxu1 %v28270_v30 }
0x237e   :  { %23735 = vmatmul.mubr.f32.vlgmr.msra.gmra.mrb[40].mxu1 %v16684_v5 }
0x237f   :  { %25489 = vmatpush3.bf16.msra.mxu1 %v28270_v30  ;;  %23741 = vmatprep.mubr.f32.mxu1 %v16675_v48 }
0x2380   :  { %25491 = vmatprep.subr.bf16.mxu1 %v25490_v63 }
0x2386   :  { %23742 = vmatmul.mubr.f32.vlgmr.msra.gmra.mrb[40].mxu1 %v16685_v32 }
0x2387   :  { %25493 = vmatpush3.bf16.msra.mxu1 %v25490_v63  ;;  %23748 = vmatprep.mubr.f32.mxu1 %v16673_v1 }
0x2388   :  { %25495 = vmatprep.subr.bf16.mxu1 %v28270_v30 }
0x238e   :  { %23749 = vmatmul.mubr.f32.vlgmr.msra.gmra.mrb[40].mxu1 %v16683_v29 }
0x238f   :  { %25497 = vmatpush3.bf16.msra.mxu1 %v28270_v30  ;;  %23755 = vmatprep.mubr.f32.mxu1 %v16673_v1  ;;  %v25514_v30 = vpack.c.bf16 %v17227_v4, %v17220_v46 }
0x2390   :  { %25499 = vmatprep.subr.bf16.mxu1 %v25498_v12 }
0x2396   :  { %23756 = vmatmul.mubr.f32.vlgmr.msra.gmra.mrb[40].mxu1 %v16683_v29 }
0x2397   :  { %23762 = vmatprep.mubr.f32.mxu1 %v17201_v7 }
0x2398   :  { %25501 = vmatpush3.bf16.xpose.msra.mxu1 %v25498_v12 }
0x2399   :  { %25503 = vmatprep.subr.bf16.mxu1 %v25502_v38 }
0x239f   :  { %23763 = vmatmul.mubr.f32.vlgmr.msra.gmra.mrb[42].mxu1 %v17211_v17 }
0x23a0   :  { %25505 = vmatpush3.bf16.xpose.msra.mxu1 %v25502_v38  ;;  %23769 = vmatprep.mubr.f32.mxu1 %v17197_v50 }
0x23a1   :  { %25507 = vmatprep.subr.bf16.mxu1 %v25506_v25 }
0x23a7   :  { %23770 = vmatmul.mubr.f32.vlgmr.msra.gmra.mrb[42].mxu1 %v17207_v13 }
0x23a8   :  { %25509 = vmatpush3.bf16.xpose.msra.mxu1 %v25506_v25  ;;  %23776 = vmatprep.mubr.f32.mxu1 %v17198_v3 }
0x23a9   :  { %25511 = vmatprep.subr.bf16.mxu1 %v25498_v12 }
0x23af   :  { %23777 = vmatmul.mubr.f32.vlgmr.msra.gmra.mrb[42].mxu1 %v17208_v37 }
0x23b0   :  { %25513 = vmatpush3.bf16.xpose.msra.mxu1 %v25498_v12  ;;  %23783 = vmatprep.mubr.f32.mxu1 %v17199_v39 }
0x23b1   :  { %25515 = vmatprep.subr.bf16.mxu1 %v25514_v30 }
0x23b7   :  { %23784 = vmatmul.mubr.f32.vlgmr.msra.gmra.mrb[42].mxu1 %v17209_v16  ;;  %v14476_v16 = vsel %vm1133_vm2, %v28136_v53, 0.0 }
0x23b8   :  { %25517 = vmatpush3.bf16.xpose.msra.mxu1 %v25514_v30  ;;  %23790 = vmatprep.mubr.f32.mxu1 %v17197_v50 }
0x23b9   :  { %25519 = vmatprep.subr.bf16.mxu1 %v25498_v12 }
0x23bf   :  { %23791 = vmatmul.mubr.f32.vlgmr.msra.gmra.mrb[42].mxu1 %v17207_v13 }
0x23c0   :  { %25521 = vmatpush3.bf16.xpose.msra.mxu1 %v25498_v12  ;;  %23797 = vmatprep.mubr.f32.mxu1 %v17197_v50 }
0x23c7   :  { %23798 = vmatmul.mubr.f32.vlgmr.msra.gmra.mrb[42].mxu1 %v17207_v13 }
0x2434   :  { %v28290_v29 = vpop.f32.mrb[38].mxu1 }
0x2435   :  { %v28292_v1 = vpop.f32.mrb[39].mxu1 }
0x2469   :  { %v28294_v5 = vpop.f32.mrb[40].mxu1 }
0x246a   :  { %v28296_v61 = vpop.f32.mrb[41].mxu1 }
0x249a   :  { %v23799_v32 = vpop.f32.mrb[42].mxu1 }
0x249b   :  { %v25920_v48 = vadd.f32 %v28080_v36, %v23799_v32  ;;  %v17622_v40 = vpop.f32.mrb[43].mxu1  ;;  %v15532_v36 = vsel %vm1133_vm2, %v28262_v60, 0.0 }
0x249c   :  { %v25921_v15 = vadd.f32 %v28086_v14, %v17622_v40  ;;  %v16588_v14 = vsel %vm1133_vm2, %v28275_v27, 0.0 }
0x249d   :  { %v17635_v58 = vsel %vm1133_vm2, %v25920_v48, -inf }
0x249e   :  { %17636 = vmax.xlane.f32.xlu1 %v17635_v58  ;;  %v17632_v11 = vsel %vm1133_vm2, %v25921_v15, -inf }
0x249f   :  { %17633 = vmax.xlane.f32.xlu0 %v17632_v11 }
0x24af   :  { %17652 = vrot.lane.b32.xlu1 %v28063_v49, %s26479_s16 }
0x24b5   :  { %17650 = vrot.lane.b32.xlu0 %v28067_v62, %s26479_s16 }
0x24d3   :  { %15536 = vadd.xlane.f32.xlu1 %v15535_v6 }
0x24d4   :  { %15533 = vadd.xlane.f32.xlu0 %v15532_v36 }
0x24d8   :  { %16589 = vadd.xlane.f32.xlu0 %v16588_v14 }
0x24dc   :  { %16592 = vadd.xlane.f32.xlu0 %v16591_v42 }
0x252b   :  { %v17637_v49 = vpop.xlane.xlu1 %17636 }
0x252c   :  { %v17639_v41 = vsub.f32 %v25920_v48, %v17637_v49  ;;  %v17634_v63 = vpop.xlane.xlu0 %17633 }
0x252d   :  { %v17638_v62 = vsub.f32 %v25921_v15, %v17634_v63 }
0x252e   :  { %v17642_v10 = vmul.f32 1.442695, %v17639_v41 }
0x252f   :  { %v17640_v28 = vmul.f32 1.442695, %v17638_v62  ;;  %v17653_v8 = vpop.permute.xlu1 %17652 }
0x2530   :  { %26408 = vpow2.f32 %v17642_v10  ;;  %v17666_v0 = vand.u32 4294901760, %v17653_v8  ;;  %v17651_v2 = vpop.permute.xlu0 %17650 }
0x2531   :  { %26410 = vpow2.f32 %v17640_v28  ;;  %v17663_v60 = vand.u32 4294901760, %v17651_v2  ;;  %v20671_v28 = vld [vmem:[%s28907_s3 + $0x58] sm:$0xff] }
0x2532   :  { %v17758_v55 = vsub.f32 %v17653_v8, %v17666_v0 }
0x2533   :  { %v25522_v47 = vpack.c.bf16 %v17666_v0, %v17663_v60  ;;  %v17751_v27 = vsub.f32 %v17651_v2, %v17663_v60  ;;  %v18225_v0 = vand.u32 4294901760, %v20671_v28 }
0x2534   :  { %v17759_v50 = vand.u32 4294901760, %v17758_v55 }
0x2535   :  { %v17752_v57 = vand.u32 4294901760, %v17751_v27  ;;  %25523 = vmatprep.subr.bf16.mxu0 %v25522_v47  ;;  %v25530_v32 = vpack.c.bf16 %v17758_v55, %v17751_v27 }
0x2536   :  { %v17760_v22 = vsub.f32 %v17758_v55, %v17759_v50  ;;  %25525 = vmatpush3.bf16.msra.mxu0 %v25522_v47 }
0x2537   :  { %v17753_v23 = vsub.f32 %v17751_v27, %v17752_v57  ;;  %v25538_v52 = vpack.c.bf16 %v17759_v50, %v17752_v57 }
0x2538   :  { %v17761_v9 = vand.u32 4294901760, %v17760_v22 }
0x2539   :  { %v17754_v3 = vand.u32 4294901760, %v17753_v23 }
0x253a   :  { %v26409_v35 = vpop.eup %26408 }
0x253b   :  { %v26411_v4 = vpop.eup %26410  ;;  %v17660_v46 = vsel %vm1133_vm2, %v26409_v35, 0  ;;  %v17647_v13 = vsel %vm1133_vm2, %v26409_v35, 0.0  ;;  %v25526_v39 = vpack.c.bf16 %v17761_v9, %v17754_v3 }
0x253c   :  { %v17739_v12 = vand.u32 4294901760, %v17660_v46  ;;  %17648 = vadd.xlane.f32.xlu1 %v17647_v13  ;;  %v17644_v18 = vsel %vm1133_vm2, %v26411_v4, 0.0  ;;  %v17657_v33 = vsel %vm1133_vm2, %v26411_v4, 0 }
0x253d   :  { %17645 = vadd.xlane.f32.xlu0 %v17644_v18  ;;  %25527 = vmatprep.subr.bf16.mxu0 %v25526_v39  ;;  %v17729_v37 = vand.u32 4294901760, %v17657_v33 }
0x253e   :  { %v17740_v51 = vsub.f32 %v17660_v46, %v17739_v12  ;;  %v18327_v46 = vsub.f32 %v20671_v28, %v18225_v0 }
0x253f   :  { %v17730_v43 = vsub.f32 %v17657_v33, %v17729_v37 }
0x2540   :  { %14480 = vadd.xlane.f32.xlu1 %v14479_v26  ;;  %v17741_v7 = vand.u32 4294901760, %v17740_v51  ;;  %v18328_v18 = vand.u32 4294901760, %v18327_v46 }
0x2541   :  { %14477 = vadd.xlane.f32.xlu0 %v14476_v16  ;;  %v17731_v38 = vand.u32 4294901760, %v17730_v43 }
0x2542   :  { %v17742_v24 = vsub.f32 %v17740_v51, %v17741_v7  ;;  %v18329_v26 = vsub.f32 %v18327_v46, %v18328_v18 }
0x2543   :  { %v17732_v17 = vsub.f32 %v17730_v43, %v17731_v38 }
0x2544   :  { %v17743_v30 = vand.u32 4294901760, %v17742_v24 }
0x2545   :  { %v17733_v25 = vand.u32 4294901760, %v17732_v17 }
0x2547   :  { %23804 = vmatprep.mubr.f32.mxu0 %v17733_v25 }
0x2548   :  { %23805 = vmatmul.mubr.f32.vlgmr.msra.gmra.mrb[24].mxu0 %v17743_v30 }
0x2549   :  { %25529 = vmatpush3.bf16.msra.mxu0 %v25526_v39  ;;  %23811 = vmatprep.mubr.f32.mxu0 %v17729_v37 }
0x254a   :  { %25531 = vmatprep.subr.bf16.mxu0 %v25530_v32 }
0x2550   :  { %23812 = vmatmul.mubr.f32.vlgmr.msra.gmra.mrb[24].mxu0 %v17739_v12 }
0x2551   :  { %25533 = vmatpush3.bf16.msra.mxu0 %v25530_v32  ;;  %23818 = vmatprep.mubr.f32.mxu0 %v17730_v43 }
0x2552   :  { %25535 = vmatprep.subr.bf16.mxu0 %v25522_v47 }
0x2558   :  { %23819 = vmatmul.mubr.f32.vlgmr.msra.gmra.mrb[24].mxu0 %v17740_v51 }
0x2559   :  { %25537 = vmatpush3.bf16.msra.mxu0 %v25522_v47  ;;  %23825 = vmatprep.mubr.f32.mxu0 %v17731_v38 }
0x255a   :  { %25539 = vmatprep.subr.bf16.mxu0 %v25538_v52 }
0x2560   :  { %v15537_v53 = vpop.xlane.xlu1 %15536  ;;  %23826 = vmatmul.mubr.f32.vlgmr.msra.gmra.mrb[24].mxu0 %v17741_v7  ;;  %v18330_v7 = vand.u32 4294901760, %v18329_v26  ;;  %v20672_v26 = vld [vmem:[%s28908_s4 + $0x40] sm:$0xff] }
0x2561   :  { %26412 = vrcp.f32 %v15537_v53  ;;  %25541 = vmatpush3.bf16.msra.mxu0 %v25538_v52  ;;  %23832 = vmatprep.mubr.f32.mxu0 %v17729_v37  ;;  %v15534_v48 = vpop.xlane.xlu0 %15533 }
0x2562   :  { %25543 = vmatprep.subr.bf16.mxu0 %v25522_v47  ;;  %26414 = vrcp.f32 %v15534_v48 }
0x2565   :  { %v16590_v40 = vpop.xlane.xlu0 %16589 }
0x2566   :  { %26416 = vrcp.f32 %v16590_v40 }
0x2568   :  { %23833 = vmatmul.mubr.f32.vlgmr.msra.gmra.mrb[24].mxu0 %v17739_v12 }
0x2569   :  { %25545 = vmatpush3.bf16.msra.mxu0 %v25522_v47  ;;  %23839 = vmatprep.mubr.f32.mxu0 %v17729_v37  ;;  %v16593_v15 = vpop.xlane.xlu0 %16592 }
0x256a   :  { %26418 = vrcp.f32 %v16593_v15 }
0x256b   :  { %v26413_v58 = vpop.eup %26412 }
0x256c   :  { %v26415_v11 = vpop.eup %26414  ;;  %v16057_v6 = vmul.f32 %v26413_v58, %v28290_v29  ;;  %v20668_v29 = vld [vmem:[%s28907_s3 + $0x40] sm:$0xff] }
0x256d   :  { %v16056_v36 = vmul.f32 %v26415_v11, %v28292_v1  ;;  %v20669_v1 = vld [vmem:[%s28907_s3 + $0x48] sm:$0xff]  ;;  %v18216_v10 = vand.u32 4294901760, %v20668_v29 }
0x256e   :  { %18174 = vrot.lane.b32.xlu1 %v16057_v6, %s26480_s17 }
0x256f   :  { %18172 = vrot.lane.b32.xlu0 %v16056_v36, %s26480_s17  ;;  %v18306_v23 = vsub.f32 %v20668_v29, %v18216_v10 }
0x2570   :  { %v26417_v14 = vpop.eup %26416  ;;  %23840 = vmatmul.mubr.f32.vlgmr.msra.gmra.mrb[24].mxu0 %v17739_v12 }
0x2571   :  { %v17112_v42 = vmul.f32 %v26417_v14, %v28296_v61  ;;  %v20670_v61 = vld [vmem:[%s28907_s3 + $0x50] sm:$0xff]  ;;  %v18307_v3 = vand.u32 4294901760, %v18306_v23 }
0x2572   :  { %v18222_v8 = vand.u32 4294901760, %v20670_v61 }
0x2573   :  { %18180 = vrot.lane.b32.xlu1 %v17112_v42, %s28946_s22  ;;  %v18308_v13 = vsub.f32 %v18306_v23, %v18307_v3 }
0x2574   :  { %v26419_v49 = vpop.eup %26418  ;;  %v28344_v47 = vpack.c.bf16 %v18225_v0, %v18222_v8  ;;  %v18320_v4 = vsub.f32 %v20670_v61, %v18222_v8 }
0x2575   :  { %v17113_v41 = vmul.f32 %v26419_v49, %v28294_v5  ;;  %v18219_v5 = vand.u32 4294901760, %v20669_v1  ;;  %v18309_v33 = vand.u32 4294901760, %v18308_v13 }
0x2576   :  { %v18321_v12 = vand.u32 4294901760, %v18320_v4  ;;  %v25566_v17 = vpack.c.bf16 %v18327_v46, %v18320_v4 }
0x2577   :  { %18182 = vrot.lane.b32.xlu1 %v17113_v41, %s28946_s22  ;;  %v28342_v2 = vpack.c.bf16 %v18219_v5, %v18216_v10  ;;  %v18313_v9 = vsub.f32 %v20669_v1, %v18219_v5 }
0x2578   :  { %v18322_v51 = vsub.f32 %v18320_v4, %v18321_v12  ;;  %v25582_v30 = vpack.c.bf16 %v18328_v18, %v18321_v12 }
0x2579   :  { %25547 = vmatprep.subr.bf16.mxu0 %v28342_v2  ;;  %v18314_v35 = vand.u32 4294901760, %v18313_v9  ;;  %v25562_v38 = vpack.c.bf16 %v18313_v9, %v18306_v23 }
0x257a   :  { %25549 = vmatpush3.bf16.msra.mxu0 %v28342_v2  ;;  %v18323_v16 = vand.u32 4294901760, %v18322_v51 }
0x257b   :  { %25551 = vmatprep.subr.bf16.mxu0 %v28344_v47  ;;  %v18315_v39 = vsub.f32 %v18313_v9, %v18314_v35  ;;  %v25578_v25 = vpack.c.bf16 %v18314_v35, %v18307_v3 }
0x257c   :  { %v25558_v24 = vpack.c.bf16 %v18330_v7, %v18323_v16  ;;  %v20674_v16 = vld [vmem:[%s28908_s4 + $0x50] sm:$0xff]  ;;  %v18799_v7 = vand.u32 4294901760, %v20672_v26 }
0x257d   :  { %v18316_v37 = vand.u32 4294901760, %v18315_v39 }
0x257e   :  { %25553 = vmatpush3.bf16.msra.mxu0 %v28344_v47 }
0x257f   :  { %v25554_v43 = vpack.c.bf16 %v18316_v37, %v18309_v33 }
0x2581   :  { %25555 = vmatprep.subr.bf16.mxu0 %v25554_v43 }
0x25c9   :  { %v17649_v63 = vpop.xlane.xlu1 %17648 }
0x25ca   :  { %v17646_v62 = vpop.xlane.xlu0 %17645  ;;  %26420 = vrcp.f32 %v17649_v63 }
0x25cb   :  { %26422 = vrcp.f32 %v17646_v62 }
0x25cd   :  { %v14481_v32 = vpop.xlane.xlu1 %14480 }
0x25ce   :  { %v14478_v52 = vpop.xlane.xlu0 %14477  ;;  %26424 = vrcp.f32 %v14481_v32 }
0x25cf   :  { %26426 = vrcp.f32 %v14478_v52  ;;  %v18889_v52 = vsub.f32 %v20672_v26, %v18799_v7 }
0x25d4   :  { %v26421_v60 = vpop.eup %26420 }
0x25d5   :  { %v26423_v27 = vpop.eup %26422 }
0x25d8   :  { %v26425_v40 = vpop.eup %26424 }
0x25d9   :  { %v26427_v15 = vpop.eup %26426  ;;  %v15001_v11 = vmul.f32 %v26425_v40, %v28226_v44 }
0x25da   :  { %v15000_v36 = vmul.f32 %v26427_v15, %v28228_v45 }
0x25e0   :  { %v18175_v53 = vpop.permute.xlu1 %18174 }
0x25e1   :  { %v18173_v6 = vpop.permute.xlu0 %18172  ;;  %v18195_v14 = vsel %vm622_vm1, %v15001_v11, %v18175_v53 }
0x25e2   :  { %v18194_v42 = vsel %vm622_vm1, %v15000_v36, %v18173_v6 }
0x25e5   :  { %v18181_v48 = vpop.permute.xlu1 %18180 }
0x25e6   :  { %v18196_v63 = vsel %vm1133_vm2, %v18194_v42, %v18181_v48  ;;  %v18890_v48 = vand.u32 4294901760, %v18889_v52 }
0x25e8   :  { %v18891_v11 = vsub.f32 %v18889_v52, %v18890_v48 }
0x25e9   :  { %v18183_v58 = vpop.permute.xlu1 %18182 }
0x25ea   :  { %v18197_v49 = vsel %vm1133_vm2, %v18195_v14, %v18183_v58  ;;  %v18892_v42 = vand.u32 4294901760, %v18891_v11 }
0x2643   :  { %v23841_v55 = vpop.f32.mrb[24].mxu0 }
0x2644   :  { %v18169_v50 = vmul.f32 %v26421_v60, %v23841_v55  ;;  %v18154_v57 = vpop.f32.mrb[25].mxu0 }
0x2645   :  { %v18168_v22 = vmul.f32 %v26423_v27, %v18154_v57  ;;  %v28373_v57 = vld [vmem:[%s28910_s6 + $0x10] sm:$0xff] }
0x2646   :  { %18190 = vrot.lane.b32.xlu1 %v18169_v50, %s28947_s21 }
0x2647   :  { %18188 = vrot.lane.b32.xlu0 %v18168_v22, %s28947_s21  ;;  %v18208_v22 = vrot.slane %v28373_v57, %v26827_v20 }
0x26b8   :  { %v18191_v41 = vpop.permute.xlu1 %18190 }
0x26b9   :  { %v18199_v62 = vsel %vm4868_vm3, %v18197_v49, %v18191_v41  ;;  %v18189_v29 = vpop.permute.xlu0 %18188 }
0x26ba   :  { %v18213_v1 = vsel %vm38_vm0, %v18199_v62, 0  ;;  %v18198_v61 = vsel %vm4868_vm3, %v18196_v63, %v18189_v29 }
0x26bb   :  { %v18294_v44 = vand.u32 4294901760, %v18213_v1  ;;  %v18210_v10 = vsel %vm38_vm0, %v18198_v61, 0 }
0x26bc   :  { %v18284_v45 = vand.u32 4294901760, %v18210_v10 }
0x26bd   :  { %v18295_v5 = vsub.f32 %v18213_v1, %v18294_v44 }
0x26be   :  { %v18285_v28 = vsub.f32 %v18210_v10, %v18284_v45 }
0x26bf   :  { %v18296_v8 = vand.u32 4294901760, %v18295_v5 }
0x26c0   :  { %v18286_v0 = vand.u32 4294901760, %v18285_v28 }
0x26c1   :  { %v18297_v60 = vsub.f32 %v18295_v5, %v18296_v8 }
0x26c2   :  { %v18287_v55 = vsub.f32 %v18285_v28, %v18286_v0 }
0x26c3   :  { %v18298_v50 = vand.u32 4294901760, %v18297_v60 }
0x26c4   :  { %v18288_v27 = vand.u32 4294901760, %v18287_v55 }
0x26c6   :  { %23850 = vmatprep.mubr.f32.mxu0 %v18288_v27  ;;  %v28452_v27 = vld [vmem:[%s28909_s5 + $0x118] sm:$0xff] }
0x26c7   :  { %23851 = vmatmul.mubr.f32.vlgmr.msra.gmra.mrb[26].mxu0 %v18298_v50 }
0x26c8   :  { %25557 = vmatpush3.bf16.msra.mxu0 %v25554_v43  ;;  %23861 = vmatprep.mubr.f32.mxu0 %v18284_v45  ;;  %v20673_v43 = vld [vmem:[%s28908_s4 + $0x48] sm:$0xff] }
0x26c9   :  { %25559 = vmatprep.subr.bf16.mxu0 %v25558_v24 }
0x26cc   :  { %25561 = vmatpush3.bf16.msra.mxu0 %v25558_v24  ;;  %v20675_v24 = vld [vmem:[%s28908_s4 + $0x58] sm:$0xff] }
0x26cd   :  { %25563 = vmatprep.subr.bf16.mxu0 %v25562_v38 }
0x26cf   :  { %23862 = vmatmul.mubr.f32.vlgmr.msra.gmra.mrb[26].mxu0 %v18294_v44 }
0x26d0   :  { %25565 = vmatpush3.bf16.msra.mxu0 %v25562_v38  ;;  %23872 = vmatprep.mubr.f32.mxu0 %v18285_v28  ;;  %v18802_v38 = vand.u32 4294901760, %v20673_v43  ;;  %v28435_v28 = vld [vmem:[%s28909_s5 + $0x100] sm:$0xff] }
0x26d1   :  { %25567 = vmatprep.subr.bf16.mxu0 %v25566_v17  ;;  %v19350_v60 = vand.u32 4294901760, %v28435_v28 }
0x26d2   :  { %v18896_v53 = vsub.f32 %v20673_v43, %v18802_v38 }
0x26d4   :  { %25569 = vmatpush3.bf16.msra.mxu0 %v25566_v17  ;;  %v18805_v17 = vand.u32 4294901760, %v20674_v16  ;;  %v18897_v40 = vand.u32 4294901760, %v18896_v53  ;;  %v28422_v61 = vpack.c.bf16 %v18896_v53, %v18889_v52 }
0x26d5   :  { %25571 = vmatprep.subr.bf16.mxu0 %v28342_v2 }
0x26d6   :  { %v18903_v15 = vsub.f32 %v20674_v16, %v18805_v17  ;;  %v18898_v6 = vsub.f32 %v18896_v53, %v18897_v40 }
0x26d7   :  { %23873 = vmatmul.mubr.f32.vlgmr.msra.gmra.mrb[26].mxu0 %v18295_v5 }
0x26d8   :  { %25573 = vmatpush3.bf16.msra.mxu0 %v28342_v2  ;;  %23883 = vmatprep.mubr.f32.mxu0 %v18286_v0  ;;  %v18904_v36 = vand.u32 4294901760, %v18903_v15  ;;  %v18899_v49 = vand.u32 4294901760, %v18898_v6  ;;  %v28445_v0 = vld [vmem:[%s28909_s5 + $0x110] sm:$0xff] }
0x26d9   :  { %25575 = vmatprep.subr.bf16.mxu0 %v28344_v47  ;;  %v19356_v50 = vand.u32 4294901760, %v28445_v0 }
0x26da   :  { %v18905_v41 = vsub.f32 %v18903_v15, %v18904_v36  ;;  %v28419_v62 = vpack.c.bf16 %v18899_v49, %v18892_v42 }
0x26dc   :  { %25577 = vmatpush3.bf16.msra.mxu0 %v28344_v47  ;;  %v18906_v29 = vand.u32 4294901760, %v18905_v41 }
0x26dd   :  { %25579 = vmatprep.subr.bf16.mxu0 %v25578_v25 }
0x26df   :  { %23884 = vmatmul.mubr.f32.vlgmr.msra.gmra.mrb[26].mxu0 %v18296_v8  ;;  %v28440_v8 = vld [vmem:[%s28909_s5 + $0x108] sm:$0xff] }
0x26e0   :  { %25581 = vmatpush3.bf16.msra.mxu0 %v25578_v25  ;;  %23894 = vmatprep.mubr.f32.mxu0 %v18284_v45  ;;  %v18808_v25 = vand.u32 4294901760, %v20675_v24  ;;  %v19353_v55 = vand.u32 4294901760, %v28440_v8 }
0x26e1   :  { %25583 = vmatprep.subr.bf16.mxu0 %v25582_v30 }
0x26e2   :  { %v28413_v32 = vpack.c.bf16 %v18808_v25, %v18805_v17  ;;  %v18910_v58 = vsub.f32 %v20675_v24, %v18808_v25  ;;  %v18780_v25 = vrot.slane %v28373_v57, %v26983_v21 }
0x26e4   :  { %25585 = vmatpush3.bf16.msra.mxu0 %v25582_v30  ;;  %v28411_v30 = vpack.c.bf16 %v18802_v38, %v18799_v7  ;;  %v18911_v14 = vand.u32 4294901760, %v18910_v58  ;;  %v28426_v10 = vpack.c.bf16 %v18910_v58, %v18903_v15  ;;  %v18774_v38 = vrot.slane %v28373_v57, %v26980_v19 }
0x26e5   :  { %25587 = vmatprep.subr.bf16.mxu0 %v28342_v2 }
0x26e6   :  { %25595 = vmatprep.subr.bf16.mxu1 %v28411_v30  ;;  %v18912_v63 = vsub.f32 %v18910_v58, %v18911_v14  ;;  %v28430_v5 = vpack.c.bf16 %v18911_v14, %v18904_v36 }
0x26e7   :  { %23895 = vmatmul.mubr.f32.vlgmr.msra.gmra.mrb[26].mxu0 %v18294_v44  ;;  %25597 = vmatpush3.bf16.msra.mxu1 %v28411_v30 }
0x26e8   :  { %25589 = vmatpush3.bf16.msra.mxu0 %v28342_v2  ;;  %23905 = vmatprep.mubr.f32.mxu0 %v18284_v45  ;;  %v18913_v1 = vand.u32 4294901760, %v18912_v63  ;;  %v28428_v45 = vpack.c.bf16 %v18897_v40, %v18890_v48 }
0x26e9   :  { %25591 = vmatprep.subr.bf16.mxu0 %v28344_v47  ;;  %25599 = vmatprep.subr.bf16.mxu1 %v28413_v32 }
0x26eb   :  { %25601 = vmatpush3.bf16.msra.mxu1 %v28413_v32 }
0x26ec   :  { %25593 = vmatpush3.bf16.msra.mxu0 %v28344_v47  ;;  %25603 = vmatprep.subr.bf16.mxu1 %v28419_v62 }
0x26ef   :  { %23906 = vmatmul.mubr.f32.vlgmr.msra.gmra.mrb[26].mxu0 %v18294_v44  ;;  %v28424_v44 = vpack.c.bf16 %v18913_v1, %v18906_v29 }
0x27c2   :  { %v23907_v23 = vpop.f32.mrb[26].mxu0 }
0x27c3   :  { %v25922_v9 = vadd.f32 %v23907_v23, %v18208_v22  ;;  %v18733_v3 = vpop.f32.mrb[27].mxu0  ;;  %v28463_v23 = vld [vmem:[%s28909_s5 + $0x128] sm:$0xff] }
0x27c4   :  { %v25923_v35 = vadd.f32 %v18733_v3, %v18208_v22  ;;  %v28458_v22 = vld [vmem:[%s28909_s5 + $0x120] sm:$0xff]  ;;  %v28470_v3 = vpack.c.bf16 %v19353_v55, %v19350_v60 }
0x27c5   :  { %v28378_v2 = vadd.f32 %v25922_v9, %v28015_v59  ;;  %v19359_v9 = vand.u32 4294901760, %v28452_v27 }
0x27c6   :  { %v28381_v4 = vadd.f32 %v25923_v35, %v28018_v31  ;;  %v19362_v35 = vand.u32 4294901760, %v28458_v22  ;;  %25643 = vmatprep.subr.bf16.mxu0 %v28470_v3 }
0x27c7   :  { %v18748_v47 = vsel %vm38_vm0, %v28378_v2, 0.0  ;;  %25645 = vmatpush3.bf16.msra.mxu0 %v28470_v3 }
0x27c8   :  { %18749 = vadd.xlane.f32.xlu1 %v18748_v47  ;;  %v18745_v46 = vsel %vm38_vm0, %v28381_v4, 0.0  ;;  %v19365_v47 = vand.u32 4294901760, %v28463_v23 }
0x27c9   :  { %18746 = vadd.xlane.f32.xlu0 %v18745_v46  ;;  %v28478_v46 = vpack.c.bf16 %v19359_v9, %v19356_v50 }
0x27cb   :  { %25647 = vmatprep.subr.bf16.mxu0 %v28478_v46 }
0x27cc   :  { %25649 = vmatpush3.bf16.msra.mxu0 %v28478_v46 }
0x2855   :  { %v18750_v13 = vpop.xlane.xlu1 %18749 }
0x2856   :  { %v18752_v20 = vmul.f32 0.03125, %v18750_v13  ;;  %v18747_v39 = vpop.xlane.xlu0 %18746  ;;  %v28483_v13 = vld [vmem:[%s28909_s5 + $0x130] sm:$0xff] }
0x2857   :  { %v18751_v12 = vmul.f32 0.03125, %v18747_v39  ;;  %v28497_v39 = vpack.c.bf16 %v19365_v47, %v19362_v35 }
0x2858   :  { %v28388_v18 = vsub.f32 %v28378_v2, %v18752_v20  ;;  %v28488_v20 = vld [vmem:[%s28909_s5 + $0x138] sm:$0xff] }
0x2859   :  { %v28391_v59 = vsub.f32 %v28381_v4, %v18751_v12  ;;  %v19368_v12 = vand.u32 4294901760, %v28483_v13  ;;  %25651 = vmatprep.subr.bf16.mxu0 %v28497_v39 }
0x285a   :  { %v18756_v37 = vmul.f32 %v28388_v18, %v28388_v18  ;;  %25653 = vmatpush3.bf16.msra.mxu0 %v28497_v39 }
0x285b   :  { %v18755_v31 = vmul.f32 %v28391_v59, %v28391_v59 }
0x285c   :  { %v18760_v51 = vsel %vm38_vm0, %v18756_v37, 0.0 }
0x285d   :  { %v18757_v33 = vsel %vm38_vm0, %v18755_v31, 0.0  ;;  %v19371_v31 = vand.u32 4294901760, %v28488_v20 }
0x285e   :  { %18758 = vadd.xlane.f32.xlu0 %v18757_v33 }
0x285f   :  { %v28507_v33 = vpack.c.bf16 %v19371_v31, %v19368_v12 }
0x2861   :  { %25655 = vmatprep.subr.bf16.mxu0 %v28507_v33 }
0x2862   :  { %18761 = vadd.xlane.f32.xlu0 %v18760_v51  ;;  %25657 = vmatpush3.bf16.msra.mxu0 %v28507_v33 }
0x28eb   :  { %v18759_v37 = vpop.xlane.xlu0 %18758 }
0x28ec   :  { %v18763_v51 = vmul.f32 0.03125, %v18759_v37 }
0x28ee   :  { %v18765_v26 = vadd.f32 1e-05, %v18763_v51  ;;  %v20688_v51 = vld [vmem:[%s28909_s5 + $0x160] sm:$0xff] }
0x28ef   :  { %v18762_v43 = vpop.xlane.xlu0 %18761 }
0x28f0   :  { %26428 = vrsqrt.f32 %v18765_v26  ;;  %v18764_v16 = vmul.f32 0.03125, %v18762_v43  ;;  %v20689_v26 = vld [vmem:[%s28909_s5 + $0x168] sm:$0xff]  ;;  %v20690_v43 = vld [vmem:[%s28909_s5 + $0x170] sm:$0xff] }
0x28f2   :  { %v18766_v7 = vadd.f32 1e-05, %v18764_v16  ;;  %v19386_v16 = vand.u32 4294901760, %v20688_v51 }
0x28f4   :  { %26430 = vrsqrt.f32 %v18766_v7  ;;  %v19389_v7 = vand.u32 4294901760, %v20689_v26 }
0x28fa   :  { %v26429_v24 = vpop.eup %26428 }
0x28fb   :  { %v18769_v17 = vmul.f32 %v26429_v24, %v28391_v59  ;;  %v19392_v24 = vand.u32 4294901760, %v20690_v43 }
0x28fd   :  { %v18775_v52 = vmul.f32 %v18774_v38, %v18769_v17 }
0x28fe   :  { %v26431_v53 = vpop.eup %26430 }
0x28ff   :  { %v18770_v48 = vmul.f32 %v26431_v53, %v28388_v18  ;;  %v18781_v40 = vadd.f32 %v18780_v25, %v18775_v52  ;;  %v20684_v18 = vld [vmem:[%s28909_s5 + $0x140] sm:$0xff]  ;;  %v28576_v52 = vsub.f32 %v28435_v28, %v19350_v60  ;;  %v28581_v53 = vsub.f32 %v28440_v8, %v19353_v55 }
0x2901   :  { %v18776_v15 = vmul.f32 %v18774_v38, %v18770_v48  ;;  %v18793_v58 = vsel %vm38_vm0, %v18781_v40, 0  ;;  %v20691_v38 = vld [vmem:[%s28909_s5 + $0x178] sm:$0xff]  ;;  %v19453_v40 = vand.u32 4294901760, %v28576_v52 }
0x2902   :  { %v18867_v11 = vand.u32 4294901760, %v18793_v58  ;;  %v19395_v17 = vand.u32 4294901760, %v20691_v38 }
0x2903   :  { %v18782_v6 = vadd.f32 %v18780_v25, %v18776_v15  ;;  %v28571_v25 = vpack.c.bf16 %v19389_v7, %v19386_v16  ;;  %v19460_v15 = vand.u32 4294901760, %v28581_v53  ;;  %v19454_v28 = vsub.f32 %v28576_v52, %v19453_v40 }
0x2904   :  { %v18868_v36 = vsub.f32 %v18793_v58, %v18867_v11  ;;  %v28583_v48 = vpack.c.bf16 %v19395_v17, %v19392_v24 }
0x2905   :  { %v18796_v14 = vsel %vm38_vm0, %v18782_v6, 0  ;;  %v19461_v8 = vsub.f32 %v28581_v53, %v19460_v15  ;;  %v19455_v60 = vand.u32 4294901760, %v19454_v28 }
0x2906   :  { %v18869_v42 = vand.u32 4294901760, %v18868_v36  ;;  %v18877_v49 = vand.u32 4294901760, %v18796_v14 }
0x2907   :  { %v19462_v55 = vand.u32 4294901760, %v19461_v8 }
0x2908   :  { %v18870_v41 = vsub.f32 %v18868_v36, %v18869_v42  ;;  %v18878_v59 = vsub.f32 %v18796_v14, %v18877_v49 }
0x2909   :  { %v28597_v58 = vpack.c.bf16 %v19462_v55, %v19455_v60 }
0x290a   :  { %v18871_v63 = vand.u32 4294901760, %v18870_v41  ;;  %v18879_v29 = vand.u32 4294901760, %v18878_v59 }
0x290c   :  { %23916 = vmatprep.mubr.f32.mxu1 %v18871_v63  ;;  %v18880_v21 = vsub.f32 %v18878_v59, %v18879_v29 }
0x290e   :  { %v18881_v1 = vand.u32 4294901760, %v18880_v21 }
0x2910   :  { %23917 = vmatmul.mubr.f32.vlgmr.msra.gmra.mrb[44].mxu1 %v18881_v1 }
0x2911   :  { %25605 = vmatpush3.bf16.msra.mxu1 %v28419_v62  ;;  %23927 = vmatprep.mubr.f32.mxu1 %v18867_v11  ;;  %v20685_v62 = vld [vmem:[%s28909_s5 + $0x148] sm:$0xff] }
0x2912   :  { %25607 = vmatprep.subr.bf16.mxu1 %v28424_v44 }
0x2915   :  { %25609 = vmatpush3.bf16.msra.mxu1 %v28424_v44  ;;  %v19377_v44 = vand.u32 4294901760, %v20685_v62 }
0x2916   :  { %25611 = vmatprep.subr.bf16.mxu1 %v28422_v61 }
0x2917   :  { %v28602_v6 = vsub.f32 %v20685_v62, %v19377_v44 }
0x2918   :  { %23928 = vmatmul.mubr.f32.vlgmr.msra.gmra.mrb[44].mxu1 %v18877_v49 }
0x2919   :  { %25613 = vmatpush3.bf16.msra.mxu1 %v28422_v61  ;;  %23938 = vmatprep.mubr.f32.mxu1 %v18868_v36  ;;  %v19374_v61 = vand.u32 4294901760, %v20684_v18  ;;  %v28939_v14 = vand.u32 4294901760, %v28602_v6 }
0x291a   :  { %25615 = vmatprep.subr.bf16.mxu1 %v28426_v10 }
0x291d   :  { %25617 = vmatpush3.bf16.msra.mxu1 %v28426_v10  ;;  %v28545_v10 = vpack.c.bf16 %v19377_v44, %v19374_v61  ;;  %v28625_v44 = vsub.f32 %v20689_v26, %v19389_v7  ;;  %v28638_v26 = vsub.f32 %v20690_v43, %v19392_v24 }
0x291e   :  { %25619 = vmatprep.subr.bf16.mxu1 %v28411_v30 }
0x291f   :  { %25659 = vmatprep.subr.bf16.mxu0 %v28545_v10 }
0x2920   :  { %23939 = vmatmul.mubr.f32.vlgmr.msra.gmra.mrb[44].mxu1 %v18878_v59  ;;  %25661 = vmatpush3.bf16.msra.mxu0 %v28545_v10 }
0x2921   :  { %25621 = vmatpush3.bf16.msra.mxu1 %v28411_v30  ;;  %23949 = vmatprep.mubr.f32.mxu1 %v18869_v42 }
0x2922   :  { %25623 = vmatprep.subr.bf16.mxu1 %v28413_v32 }
0x2925   :  { %25625 = vmatpush3.bf16.msra.mxu1 %v28413_v32 }
0x2926   :  { %25627 = vmatprep.subr.bf16.mxu1 %v28428_v45 }
0x2928   :  { %23950 = vmatmul.mubr.f32.vlgmr.msra.gmra.mrb[44].mxu1 %v18879_v29 }
0x2929   :  { %25629 = vmatpush3.bf16.msra.mxu1 %v28428_v45  ;;  %23960 = vmatprep.mubr.f32.mxu1 %v18867_v11 }
0x292a   :  { %25631 = vmatprep.subr.bf16.mxu1 %v28430_v5 }
0x292d   :  { %25633 = vmatpush3.bf16.msra.mxu1 %v28430_v5 }
0x292e   :  { %25635 = vmatprep.subr.bf16.mxu1 %v28411_v30 }
0x2930   :  { %23961 = vmatmul.mubr.f32.vlgmr.msra.gmra.mrb[44].mxu1 %v18877_v49 }
0x2931   :  { %25637 = vmatpush3.bf16.msra.mxu1 %v28411_v30  ;;  %23971 = vmatprep.mubr.f32.mxu1 %v18867_v11  ;;  %v20686_v30 = vld [vmem:[%s28909_s5 + $0x150] sm:$0xff]  ;;  %v28600_v11 = vsub.f32 %v20684_v18, %v19374_v61  ;;  %v28623_v61 = vsub.f32 %v20688_v51, %v19386_v16  ;;  %v28640_v16 = vsub.f32 %v20691_v38, %v19395_v17 }
0x2932   :  { %25639 = vmatprep.subr.bf16.mxu1 %v28413_v32  ;;  %v19380_v45 = vand.u32 4294901760, %v20686_v30  ;;  %v28656_v17 = vpack.c.bf16 %v28581_v53, %v28576_v52 }
0x2933   :  { %v28940_v36 = vand.u32 4294901760, %v28600_v11 }
0x2934   :  { %v28612_v41 = vsub.f32 %v20686_v30, %v19380_v45 }
0x2935   :  { %25641 = vmatpush3.bf16.msra.mxu1 %v28413_v32  ;;  %v20687_v32 = vld [vmem:[%s28909_s5 + $0x158] sm:$0xff]  ;;  %v19510_v42 = vsub.f32 %v28600_v11, %v28940_v36 }
0x2936   :  { %v19383_v5 = vand.u32 4294901760, %v20687_v32  ;;  %v28938_v21 = vand.u32 4294901760, %v28612_v41 }
0x2937   :  { %v19511_v63 = vand.u32 4294901760, %v19510_v42  ;;  %v28934_v42 = vand.u32 4294901760, %v28638_v26 }
0x2938   :  { %23972 = vmatmul.mubr.f32.vlgmr.msra.gmra.mrb[44].mxu1 %v18877_v49  ;;  %v28555_v37 = vpack.c.bf16 %v19383_v5, %v19380_v45  ;;  %v19517_v49 = vsub.f32 %v28602_v6, %v28939_v14  ;;  %v28614_v59 = vsub.f32 %v20687_v32, %v19383_v5  ;;  %v19524_v62 = vsub.f32 %v28612_v41, %v28938_v21 }
0x2939   :  { %v28936_v45 = vand.u32 4294901760, %v28623_v61  ;;  %v28935_v5 = vand.u32 4294901760, %v28625_v44 }
0x293a   :  { %25663 = vmatprep.subr.bf16.mxu0 %v28555_v37  ;;  %v19518_v29 = vand.u32 4294901760, %v19517_v49  ;;  %v28937_v1 = vand.u32 4294901760, %v28614_v59  ;;  %v19525_v32 = vand.u32 4294901760, %v19524_v62  ;;  %v28933_v49 = vand.u32 4294901760, %v28640_v16 }
0x293b   :  { %25665 = vmatpush3.bf16.msra.mxu0 %v28555_v37  ;;  %v19538_v8 = vsub.f32 %v28623_v61, %v28936_v45  ;;  %v19545_v51 = vsub.f32 %v28625_v44, %v28935_v5 }
0x293c   :  { %25667 = vmatprep.subr.bf16.mxu0 %v28571_v25  ;;  %v28618_v18 = vpack.c.bf16 %v19518_v29, %v19511_v63  ;;  %v19531_v30 = vsub.f32 %v28614_v59, %v28937_v1  ;;  %v19552_v29 = vsub.f32 %v28638_v26, %v28934_v42  ;;  %v19559_v43 = vsub.f32 %v28640_v16, %v28933_v49 }
0x293d   :  { %v19539_v60 = vand.u32 4294901760, %v19538_v8  ;;  %v19546_v55 = vand.u32 4294901760, %v19545_v51  ;;  %v28674_v8 = vpack.c.bf16 %v28640_v16, %v28638_v26  ;;  %v28962_v51 = vld [vmem:[#allocation5_spill] sm:$0xff] }
0x293e   :  { %v19532_v28 = vand.u32 4294901760, %v19531_v30  ;;  %v19553_v38 = vand.u32 4294901760, %v19552_v29  ;;  %v19560_v24 = vand.u32 4294901760, %v19559_v43  ;;  %v28662_v30 = vpack.c.bf16 %v28602_v6, %v28600_v11 }
0x293f   :  { %25669 = vmatpush3.bf16.msra.mxu0 %v28571_v25  ;;  %v28646_v63 = vpack.c.bf16 %v19546_v55, %v19539_v60  ;;  %v18791_v60 = vrot.slane %v28373_v57, %v28962_v51  ;;  %v28681_v55 = vsub.f32 %v28445_v0, %v19356_v50  ;;  %v28686_v29 = vsub.f32 %v28452_v27, %v19359_v9 }
0x2940   :  { %25671 = vmatprep.subr.bf16.mxu0 %v28583_v48  ;;  %v28642_v7 = vpack.c.bf16 %v19532_v28, %v19525_v32  ;;  %v28658_v62 = vpack.c.bf16 %v19560_v24, %v19553_v38  ;;  %v28666_v32 = vpack.c.bf16 %v28614_v59, %v28612_v41  ;;  %v28670_v28 = vpack.c.bf16 %v28625_v44, %v28623_v61 }
0x2941   :  { %v28942_v42 = vand.u32 4294901760, %v28681_v55  ;;  %v28941_v5 = vand.u32 4294901760, %v28686_v29  ;;  %v28693_v51 = vsub.f32 %v28458_v22, %v19362_v35  ;;  %v28698_v50 = vsub.f32 %v28463_v23, %v19365_v47 }
0x2942   :  { %v28718_v47 = vsub.f32 %v28483_v13, %v19368_v12 }
0x2943   :  { %25673 = vmatpush3.bf16.msra.mxu0 %v28583_v48  ;;  %v19475_v22 = vsub.f32 %v28686_v29, %v28941_v5  ;;  %v28943_v35 = vand.u32 4294901760, %v28693_v51  ;;  %v19488_v23 = vand.u32 4294901760, %v28698_v50  ;;  %v28966_v52 = vand.u32 4294901760, %v28693_v51 }
0x2944   :  { %25675 = vmatprep.subr.bf16.mxu0 %v28597_v58  ;;  %v19495_v12 = vand.u32 4294901760, %v28718_v47 }
0x2945   :  { %v19476_v21 = vand.u32 4294901760, %v19475_v22  ;;  %v19482_v14 = vsub.f32 %v28693_v51, %v28943_v35  ;;  %v25778_v53 = vpack.c.bf16 %v19488_v23, %v28966_v52 }
0x2946   :  { %v19496_v35 = vsub.f32 %v28718_v47, %v19495_v12 }
0x2947   :  { %v19483_v36 = vand.u32 4294901760, %v19482_v14 }
0x2a0b   :  { %v23973_v43 = vpop.f32.mrb[44].mxu1 }
0x2a0c   :  { %v25924_v38 = vadd.f32 %v23973_v43, %v18791_v60  ;;  %v19316_v24 = vpop.f32.mrb[45].mxu1 }
0x2a0d   :  { %v25925_v49 = vadd.f32 %v19316_v24, %v18791_v60  ;;  %v19468_v60 = vsub.f32 %v28681_v55, %v28942_v42 }
0x2a0e   :  { %v19327_v0 = vmax.f32 %v25924_v38, 0.0 }
0x2a0f   :  { %v19326_v27 = vmax.f32 %v25925_v49, 0.0  ;;  %v28723_v49 = vsub.f32 %v28488_v20, %v19371_v31  ;;  %v19469_v1 = vand.u32 4294901760, %v19468_v60  ;;  %v19489_v20 = vsub.f32 %v28698_v50, %v19488_v23 }
0x2a10   :  { %v28700_v9 = vand.u32 4294901760, %v19327_v0 }
0x2a11   :  { %v28702_v43 = vand.u32 4294901760, %v19326_v27  ;;  %v19502_v31 = vand.u32 4294901760, %v28723_v49  ;;  %v25678_v22 = vpack.c.bf16 %v19476_v21, %v19469_v1  ;;  %v19490_v42 = vand.u32 4294901760, %v19489_v20 }
0x2a12   :  { %v28712_v38 = vsub.f32 %v19327_v0, %v28700_v9  ;;  %v19497_v21 = vand.u32 4294901760, %v19496_v35  ;;  %v20076_v35 = vld [vmem:[%s28911_s7 + $0x10] sm:$0xff] }
0x2a13   :  { %v28726_v24 = vsub.f32 %v19326_v27, %v28702_v43 }
0x2a14   :  { %v28944_v45 = vand.u32 4294901760, %v28712_v38 }
0x2a15   :  { %v19432_v0 = vand.u32 4294901760, %v28726_v24 }
0x2a16   :  { %v19443_v13 = vsub.f32 %v28712_v38, %v28944_v45  ;;  %v19503_v45 = vsub.f32 %v28723_v49, %v19502_v31 }
0x2a17   :  { %v19433_v27 = vsub.f32 %v28726_v24, %v19432_v0 }
0x2a18   :  { %v19444_v5 = vand.u32 4294901760, %v19443_v13  ;;  %v19504_v14 = vand.u32 4294901760, %v19503_v45  ;;  %v25770_v45 = vpack.c.bf16 %v19460_v15, %v19453_v40  ;;  %v25782_v40 = vpack.c.bf16 %v19502_v31, %v19495_v12 }
0x2a19   :  { %v19434_v60 = vand.u32 4294901760, %v19433_v27  ;;  %v25682_v27 = vpack.c.bf16 %v19490_v42, %v19483_v36  ;;  %v25714_v36 = vpack.c.bf16 %v28698_v50, %v28693_v51  ;;  %v28967_v15 = vand.u32 4294901760, %v28600_v11 }
0x2a1a   :  { %v25686_v1 = vpack.c.bf16 %v19504_v14, %v19497_v21  ;;  %v28973_v11 = vand.u32 4294901760, %v28638_v26 }
0x2a1b   :  { %24006 = vmatprep.mubr.f32.mxu0 %v19434_v60 }
0x2a1c   :  { %24007 = vmatmul.mubr.f32.vlgmr.msra.gmra.mrb[28].mxu0 %v19444_v5  ;;  %v28963_v5 = vand.u32 4294901760, %v28681_v55 }
0x2a1d   :  { %25677 = vmatpush3.bf16.msra.mxu0 %v28597_v58  ;;  %24041 = vmatprep.mubr.f32.mxu0 %v28702_v43  ;;  %v25710_v58 = vpack.c.bf16 %v28686_v29, %v28681_v55  ;;  %v28972_v55 = vand.u32 4294901760, %v28625_v44 }
0x2a1e   :  { %25679 = vmatprep.subr.bf16.mxu0 %v25678_v22 }
0x2a21   :  { %25681 = vmatpush3.bf16.msra.mxu0 %v25678_v22 }
0x2a22   :  { %25683 = vmatprep.subr.bf16.mxu0 %v25682_v27 }
0x2a25   :  { %25685 = vmatpush3.bf16.msra.mxu0 %v25682_v27 }
0x2a26   :  { %25687 = vmatprep.subr.bf16.mxu0 %v25686_v1 }
0x2a29   :  { %25689 = vmatpush3.bf16.msra.mxu0 %v25686_v1 }
0x2a2a   :  { %25691 = vmatprep.subr.bf16.mxu0 %v28618_v18 }
0x2a2d   :  { %25693 = vmatpush3.bf16.msra.mxu0 %v28618_v18  ;;  %v25718_v18 = vpack.c.bf16 %v28723_v49, %v28718_v47  ;;  %v20077_v47 = vld [vmem:[%s28911_s7 + $0x18] sm:$0xff]  ;;  %v20095_v49 = vand.u32 4294901760, %v20076_v35 }
0x2a2e   :  { %25695 = vmatprep.subr.bf16.mxu0 %v28642_v7 }
0x2a2f   :  { %v20193_v21 = vsub.f32 %v20076_v35, %v20095_v49 }
0x2a31   :  { %25697 = vmatpush3.bf16.msra.mxu0 %v28642_v7  ;;  %v28964_v7 = vand.u32 4294901760, %v28686_v29 }
0x2a32   :  { %25699 = vmatprep.subr.bf16.mxu0 %v28646_v63 }
0x2a33   :  { %v25774_v42 = vpack.c.bf16 %v28964_v7, %v28963_v5 }
0x2a35   :  { %25701 = vmatpush3.bf16.msra.mxu0 %v28646_v63  ;;  %v28965_v63 = vand.u32 4294901760, %v28712_v38 }
0x2a36   :  { %25703 = vmatprep.subr.bf16.mxu0 %v28658_v62 }
0x2a39   :  { %25705 = vmatpush3.bf16.msra.mxu0 %v28658_v62 }
0x2a3a   :  { %25707 = vmatprep.subr.bf16.mxu0 %v28656_v17 }
0x2a3c   :  { %24042 = vmatmul.mubr.f32.vlgmr.msra.gmra.mrb[28].mxu0 %v28700_v9 }
0x2a3d   :  { %25709 = vmatpush3.bf16.msra.mxu0 %v28656_v17  ;;  %24076 = vmatprep.mubr.f32.mxu0 %v28726_v24  ;;  %v28968_v17 = vand.u32 4294901760, %v28602_v6  ;;  %v28974_v6 = vand.u32 4294901760, %v28640_v16  ;;  %v20098_v24 = vand.u32 4294901760, %v20077_v47 }
0x2a3e   :  { %25711 = vmatprep.subr.bf16.mxu0 %v25710_v58 }
0x2a3f   :  { %v25786_v62 = vpack.c.bf16 %v28968_v17, %v28967_v15  ;;  %v25798_v51 = vpack.c.bf16 %v28974_v6, %v28973_v11  ;;  %v28869_v13 = vpack.c.bf16 %v20098_v24, %v20095_v49  ;;  %v20200_v14 = vsub.f32 %v20077_v47, %v20098_v24 }
0x2a41   :  { %25713 = vmatpush3.bf16.msra.mxu0 %v25710_v58 }
0x2a42   :  { %25715 = vmatprep.subr.bf16.mxu0 %v25714_v36 }
0x2a45   :  { %25717 = vmatpush3.bf16.msra.mxu0 %v25714_v36  ;;  %v20194_v36 = vand.u32 4294901760, %v20193_v21 }
0x2a46   :  { %25719 = vmatprep.subr.bf16.mxu0 %v25718_v18 }
0x2a47   :  { %v20195_v5 = vsub.f32 %v20193_v21, %v20194_v36 }
0x2a49   :  { %25721 = vmatpush3.bf16.msra.mxu0 %v25718_v18  ;;  %v20201_v18 = vand.u32 4294901760, %v20200_v14 }
0x2a4a   :  { %25723 = vmatprep.subr.bf16.mxu0 %v28662_v30 }
0x2a4b   :  { %v20202_v7 = vsub.f32 %v20200_v14, %v20201_v18  ;;  %v25870_v17 = vpack.c.bf16 %v20201_v18, %v20194_v36 }
0x2a4d   :  { %25725 = vmatpush3.bf16.msra.mxu0 %v28662_v30  ;;  %v28969_v30 = vand.u32 4294901760, %v28612_v41 }
0x2a4e   :  { %25727 = vmatprep.subr.bf16.mxu0 %v28666_v32 }
0x2a51   :  { %25729 = vmatpush3.bf16.msra.mxu0 %v28666_v32  ;;  %v28970_v32 = vand.u32 4294901760, %v28614_v59 }
0x2a52   :  { %25731 = vmatprep.subr.bf16.mxu0 %v28670_v28 }
0x2a55   :  { %25733 = vmatpush3.bf16.msra.mxu0 %v28670_v28  ;;  %v25790_v28 = vpack.c.bf16 %v28970_v32, %v28969_v30 }
0x2a56   :  { %25735 = vmatprep.subr.bf16.mxu0 %v28674_v8 }
0x2a59   :  { %25737 = vmatpush3.bf16.msra.mxu0 %v28674_v8  ;;  %v28971_v8 = vand.u32 4294901760, %v28623_v61 }
0x2a5a   :  { %25739 = vmatprep.subr.bf16.mxu0 %v28470_v3 }
0x2a5b   :  { %v25794_v29 = vpack.c.bf16 %v28972_v55, %v28971_v8 }
0x2a5c   :  { %24077 = vmatmul.mubr.f32.vlgmr.msra.gmra.mrb[28].mxu0 %v28712_v38 }
0x2a5d   :  { %25741 = vmatpush3.bf16.msra.mxu0 %v28470_v3  ;;  %24111 = vmatprep.mubr.f32.mxu0 %v19432_v0 }
0x2a5e   :  { %25743 = vmatprep.subr.bf16.mxu0 %v28478_v46 }
0x2a61   :  { %25745 = vmatpush3.bf16.msra.mxu0 %v28478_v46 }
0x2a62   :  { %25747 = vmatprep.subr.bf16.mxu0 %v28497_v39 }
0x2a65   :  { %25749 = vmatpush3.bf16.msra.mxu0 %v28497_v39 }
0x2a66   :  { %25751 = vmatprep.subr.bf16.mxu0 %v28507_v33 }
0x2a69   :  { %25753 = vmatpush3.bf16.msra.mxu0 %v28507_v33 }
0x2a6a   :  { %25755 = vmatprep.subr.bf16.mxu0 %v28545_v10 }
0x2a6d   :  { %25757 = vmatpush3.bf16.msra.mxu0 %v28545_v10 }
0x2a6e   :  { %25759 = vmatprep.subr.bf16.mxu0 %v28555_v37 }
0x2a71   :  { %25761 = vmatpush3.bf16.msra.mxu0 %v28555_v37 }
0x2a72   :  { %25763 = vmatprep.subr.bf16.mxu0 %v28571_v25 }
0x2a75   :  { %25765 = vmatpush3.bf16.msra.mxu0 %v28571_v25 }
0x2a76   :  { %25767 = vmatprep.subr.bf16.mxu0 %v28583_v48 }
0x2a79   :  { %25769 = vmatpush3.bf16.msra.mxu0 %v28583_v48 }
0x2a7a   :  { %25771 = vmatprep.subr.bf16.mxu0 %v25770_v45 }
0x2a7c   :  { %24112 = vmatmul.mubr.f32.vlgmr.msra.gmra.mrb[28].mxu0 %v28965_v63  ;;  %v20203_v63 = vand.u32 4294901760, %v20202_v7 }
0x2a7d   :  { %25773 = vmatpush3.bf16.msra.mxu0 %v25770_v45  ;;  %24146 = vmatprep.mubr.f32.mxu0 %v28702_v43 }
0x2a7e   :  { %25775 = vmatprep.subr.bf16.mxu0 %v25774_v42 }
0x2a81   :  { %25777 = vmatpush3.bf16.msra.mxu0 %v25774_v42  ;;  %v20196_v42 = vand.u32 4294901760, %v20195_v5 }
0x2a82   :  { %25779 = vmatprep.subr.bf16.mxu0 %v25778_v53 }
0x2a85   :  { %25781 = vmatpush3.bf16.msra.mxu0 %v25778_v53  ;;  %v25846_v53 = vpack.c.bf16 %v20203_v63, %v20196_v42 }
0x2a86   :  { %25783 = vmatprep.subr.bf16.mxu0 %v25782_v40 }
0x2a89   :  { %25785 = vmatpush3.bf16.msra.mxu0 %v25782_v40  ;;  %v25854_v40 = vpack.c.bf16 %v20200_v14, %v20193_v21 }
0x2a8a   :  { %25787 = vmatprep.subr.bf16.mxu0 %v25786_v62 }
0x2a8d   :  { %25789 = vmatpush3.bf16.msra.mxu0 %v25786_v62 }
0x2a8e   :  { %25791 = vmatprep.subr.bf16.mxu0 %v25790_v28 }
0x2a91   :  { %25793 = vmatpush3.bf16.msra.mxu0 %v25790_v28 }
0x2a92   :  { %25795 = vmatprep.subr.bf16.mxu0 %v25794_v29 }
0x2a95   :  { %25797 = vmatpush3.bf16.msra.mxu0 %v25794_v29  ;;  %v20035_v29 = vld [vmem:[%s28912_s8] sm:$0xff]  ;;  %s26483_s8 = smov [#allocation2]  }
0x2a96   :  { %25799 = vmatprep.subr.bf16.mxu0 %v25798_v51  ;;  %v20065_v11 = vrot.slane %v20035_v29, %v26576_v54  ;;  %s20623_s12 = sshll.u32 %s26483_s8, 4  ;;  %s20624_s12 = int_to_ptr.vmem [resolvable:$true] %s20623_s12 }
0x2a97   :  { %s26445_s13 = scalar_lea.vmem %s20624_s12, 256  ;;  %p26450_p1 = scmp.lt.s32.totalorder %s20624_s12, %s20624_s12 }
0x2a98   :  { %p26446_p0 = scmp.ne.s32.totalorder %s20624_s12, %s26445_s13  ;;  %p26451_p2 = scmp.lt.s32.totalorder %s26445_s13, %s26445_s13 }
0x2a99   :  { %25801 = vmatpush3.bf16.msra.mxu0 %v25798_v51 }
0x2a9a   :  { %25803 = vmatprep.subr.bf16.mxu0 %v28470_v3  ;;  %p26452_p3 = por %p26451_p2, %p26450_p1 }
0x2a9c   :  { %24147 = vmatmul.mubr.f32.vlgmr.msra.gmra.mrb[28].mxu0 %v28700_v9  ;;  %p26453_p4 = pnand %p26452_p3, %p26446_p0 }
0x2a9d   :  { %25805 = vmatpush3.bf16.msra.mxu0 %v28470_v3  ;;  %24181 = vmatprep.mubr.f32.mxu0 %v28702_v43  ;;  %v19348_v3 = vrot.slane %v28373_v57, %v27175_v34  ;;  %v20075_v43 = vld [vmem:[%s28911_s7 + $0x8] sm:$0xff] }
0x2a9e   :  { %25807 = vmatprep.subr.bf16.mxu0 %v28478_v46  ;;  %v20092_v23 = vand.u32 4294901760, %v20075_v43 }
0x2aa0   :  { %v20186_v12 = vsub.f32 %v20075_v43, %v20092_v23 }
0x2aa1   :  { %25809 = vmatpush3.bf16.msra.mxu0 %v28478_v46 }
0x2aa2   :  { %25811 = vmatprep.subr.bf16.mxu0 %v28497_v39  ;;  %v20187_v60 = vand.u32 4294901760, %v20186_v12 }
0x2aa4   :  { %v20188_v27 = vsub.f32 %v20186_v12, %v20187_v60 }
0x2aa5   :  { %25813 = vmatpush3.bf16.msra.mxu0 %v28497_v39 }
0x2aa6   :  { %25815 = vmatprep.subr.bf16.mxu0 %v28507_v33  ;;  %v20189_v58 = vand.u32 4294901760, %v20188_v27 }
0x2aa9   :  { %25817 = vmatpush3.bf16.msra.mxu0 %v28507_v33 }
0x2aaa   :  { %25819 = vmatprep.subr.bf16.mxu0 %v28545_v10 }
0x2aad   :  { %25821 = vmatpush3.bf16.msra.mxu0 %v28545_v10 }
0x2aae   :  { %25823 = vmatprep.subr.bf16.mxu0 %v28555_v37 }
0x2ab1   :  { %25825 = vmatpush3.bf16.msra.mxu0 %v28555_v37 }
0x2ab2   :  { %25827 = vmatprep.subr.bf16.mxu0 %v28571_v25 }
0x2ab5   :  { %25829 = vmatpush3.bf16.msra.mxu0 %v28571_v25 }
0x2ab6   :  { %25831 = vmatprep.subr.bf16.mxu0 %v28583_v48 }
0x2ab9   :  { %25833 = vmatpush3.bf16.msra.mxu0 %v28583_v48 }
0x2abc   :  { %24182 = vmatmul.mubr.f32.vlgmr.msra.gmra.mrb[28].mxu0 %v28700_v9 }
0x2b8f   :  { %v24183_v46 = vpop.f32.mrb[28].mxu0 }
0x2b90   :  { %v25926_v39 = vadd.f32 %v24183_v46, %v19348_v3  ;;  %v20023_v33 = vpop.f32.mrb[29].mxu0  ;;  %v20071_v46 = vrot.slane %v20035_v29, %v26582_v56  ;;  %v20081_v56 = vrot.slane %v20035_v29, %v26980_v19 }
0x2b91   :  { %v25927_v10 = vadd.f32 %v20023_v33, %v19348_v3 }
0x2b92   :  { %v20034_v41 = vadd.f32 %v25926_v39, %v28378_v2 }
0x2b93   :  { %v20033_v37 = vadd.f32 %v25927_v10, %v28381_v4  ;;  %v20074_v4 = vld [vmem:[%s28911_s7] sm:$0xff] }
0x2b94   :  { %v20039_v59 = vsel %vm38_vm0, %v20034_v41, 0.0  ;;  %v20089_v38 = vand.u32 4294901760, %v20074_v4 }
0x2b95   :  { %20040 = vadd.xlane.f32.xlu1 %v20039_v59  ;;  %v20036_v25 = vsel %vm38_vm0, %v20033_v37, 0.0 }
0x2b96   :  { %20037 = vadd.xlane.f32.xlu0 %v20036_v25  ;;  %v28867_v0 = vpack.c.bf16 %v20092_v23, %v20089_v38  ;;  %v20179_v20 = vsub.f32 %v20074_v4, %v20089_v38 }
0x2b98   :  { %25835 = vmatprep.subr.bf16.mxu1 %v28867_v0  ;;  %v20180_v31 = vand.u32 4294901760, %v20179_v20  ;;  %v25850_v52 = vpack.c.bf16 %v20186_v12, %v20179_v20 }
0x2b99   :  { %25837 = vmatpush3.bf16.msra.mxu1 %v28867_v0 }
0x2b9a   :  { %25839 = vmatprep.subr.bf16.mxu1 %v28869_v13  ;;  %v20181_v22 = vsub.f32 %v20179_v20, %v20180_v31  ;;  %v25866_v15 = vpack.c.bf16 %v20187_v60, %v20180_v31 }
0x2b9c   :  { %v20182_v1 = vand.u32 4294901760, %v20181_v22 }
0x2b9d   :  { %25841 = vmatpush3.bf16.msra.mxu1 %v28869_v13 }
0x2b9e   :  { %v25842_v45 = vpack.c.bf16 %v20189_v58, %v20182_v1 }
0x2ba0   :  { %25843 = vmatprep.subr.bf16.mxu1 %v25842_v45 }
0x2c22   :  { %v20041_v48 = vpop.xlane.xlu1 %20040 }
0x2c23   :  { %v20043_v61 = vmul.f32 0.03125, %v20041_v48  ;;  %v20038_v44 = vpop.xlane.xlu0 %20037 }
0x2c24   :  { %v20042_v26 = vmul.f32 0.03125, %v20038_v44 }
0x2c25   :  { %v20045_v16 = vsub.f32 %v20034_v41, %v20043_v61 }
0x2c26   :  { %v20044_v34 = vsub.f32 %v20033_v37, %v20042_v26 }
0x2c27   :  { %v20047_v57 = vmul.f32 %v20045_v16, %v20045_v16 }
0x2c28   :  { %v20046_v50 = vmul.f32 %v20044_v34, %v20044_v34 }
0x2c29   :  { %v20051_v9 = vsel %vm38_vm0, %v20047_v57, 0.0 }
0x2c2a   :  { %20052 = vadd.xlane.f32.xlu1 %v20051_v9  ;;  %v20048_v2 = vsel %vm38_vm0, %v20046_v50, 0.0 }
0x2c2b   :  { %20049 = vadd.xlane.f32.xlu0 %v20048_v2 }
0x2cb7   :  { %v20053_v62 = vpop.xlane.xlu1 %20052 }
0x2cb8   :  { %v20055_v30 = vmul.f32 0.03125, %v20053_v62  ;;  %v20050_v32 = vpop.xlane.xlu0 %20049 }
0x2cb9   :  { %v20054_v28 = vmul.f32 0.03125, %v20050_v32 }
0x2cba   :  { %v20057_v8 = vadd.f32 1e-05, %v20055_v30 }
0x2cbb   :  { %v20056_v55 = vadd.f32 1e-05, %v20054_v28 }
0x2cbc   :  { %26432 = vrsqrt.f32 %v20057_v8 }
0x2cbd   :  { %26434 = vrsqrt.f32 %v20056_v55 }
0x2cc6   :  { %v26433_v6 = vpop.eup %26432 }
0x2cc7   :  { %v26435_v51 = vpop.eup %26434  ;;  %v20061_v3 = vmul.f32 %v26433_v6, %v20045_v16 }
0x2cc8   :  { %v20060_v39 = vmul.f32 %v26435_v51, %v20044_v34 }
0x2cc9   :  { %v20067_v33 = vmul.f32 %v20065_v11, %v20061_v3 }
0x2cca   :  { %v20066_v10 = vmul.f32 %v20065_v11, %v20060_v39 }
0x2ccb   :  { %v20073_v41 = vadd.f32 %v20071_v46, %v20067_v33 }
0x2ccc   :  { %v20072_v37 = vadd.f32 %v20071_v46, %v20066_v10 }
0x2ccd   :  { %v20086_v59 = vsel %vm38_vm0, %v20073_v41, 0 }
0x2cce   :  { %v20083_v25 = vsel %vm38_vm0, %v20072_v37, 0  ;;  %v20167_v48 = vand.u32 4294901760, %v20086_v59 }
0x2ccf   :  { %v20157_v61 = vand.u32 4294901760, %v20083_v25 }
0x2cd0   :  { %v20168_v44 = vsub.f32 %v20086_v59, %v20167_v48 }
0x2cd1   :  { %v20158_v26 = vsub.f32 %v20083_v25, %v20157_v61 }
0x2cd2   :  { %v20169_v57 = vand.u32 4294901760, %v20168_v44 }
0x2cd3   :  { %v20159_v54 = vand.u32 4294901760, %v20158_v26 }
0x2cd4   :  { %v20170_v50 = vsub.f32 %v20168_v44, %v20169_v57 }
0x2cd5   :  { %v20160_v9 = vsub.f32 %v20158_v26, %v20159_v54 }
0x2cd6   :  { %v20171_v2 = vand.u32 4294901760, %v20170_v50 }
0x2cd7   :  { %v20161_v16 = vand.u32 4294901760, %v20160_v9 }
0x2cd9   :  { %24192 = vmatprep.mubr.f32.mxu1 %v20161_v16 }
0x2cda   :  { %24193 = vmatmul.mubr.f32.vlgmr.msra.gmra.mrb[46].mxu1 %v20171_v2 }
0x2cdb   :  { %25845 = vmatpush3.bf16.msra.mxu1 %v25842_v45  ;;  %24203 = vmatprep.mubr.f32.mxu1 %v20157_v61 }
0x2cdc   :  { %25847 = vmatprep.subr.bf16.mxu1 %v25846_v53 }
0x2cdf   :  { %25849 = vmatpush3.bf16.msra.mxu1 %v25846_v53 }
0x2ce0   :  { %25851 = vmatprep.subr.bf16.mxu1 %v25850_v52 }
0x2ce2   :  { %24204 = vmatmul.mubr.f32.vlgmr.msra.gmra.mrb[46].mxu1 %v20167_v48 }
0x2ce3   :  { %25853 = vmatpush3.bf16.msra.mxu1 %v25850_v52  ;;  %24214 = vmatprep.mubr.f32.mxu1 %v20158_v26 }
0x2ce4   :  { %25855 = vmatprep.subr.bf16.mxu1 %v25854_v40 }
0x2ce7   :  { %25857 = vmatpush3.bf16.msra.mxu1 %v25854_v40 }
0x2ce8   :  { %25859 = vmatprep.subr.bf16.mxu1 %v28867_v0 }
0x2cea   :  { %24215 = vmatmul.mubr.f32.vlgmr.msra.gmra.mrb[46].mxu1 %v20168_v44 }
0x2ceb   :  { %25861 = vmatpush3.bf16.msra.mxu1 %v28867_v0  ;;  %24225 = vmatprep.mubr.f32.mxu1 %v20159_v54 }
0x2cec   :  { %25863 = vmatprep.subr.bf16.mxu1 %v28869_v13 }
0x2cef   :  { %25865 = vmatpush3.bf16.msra.mxu1 %v28869_v13 }
0x2cf0   :  { %25867 = vmatprep.subr.bf16.mxu1 %v25866_v15 }
0x2cf2   :  { %24226 = vmatmul.mubr.f32.vlgmr.msra.gmra.mrb[46].mxu1 %v20169_v57 }
0x2cf3   :  { %25869 = vmatpush3.bf16.msra.mxu1 %v25866_v15  ;;  %24236 = vmatprep.mubr.f32.mxu1 %v20157_v61 }
0x2cf4   :  { %25871 = vmatprep.subr.bf16.mxu1 %v25870_v17 }
0x2cf7   :  { %25873 = vmatpush3.bf16.msra.mxu1 %v25870_v17 }
0x2cf8   :  { %25875 = vmatprep.subr.bf16.mxu1 %v28867_v0 }
0x2cfa   :  { %24237 = vmatmul.mubr.f32.vlgmr.msra.gmra.mrb[46].mxu1 %v20167_v48 }
0x2cfb   :  { %25877 = vmatpush3.bf16.msra.mxu1 %v28867_v0  ;;  %24247 = vmatprep.mubr.f32.mxu1 %v20157_v61 }
0x2cfc   :  { %25879 = vmatprep.subr.bf16.mxu1 %v28869_v13 }
0x2cff   :  { %25881 = vmatpush3.bf16.msra.mxu1 %v28869_v13 }
0x2d02   :  { %24248 = vmatmul.mubr.f32.vlgmr.msra.gmra.mrb[46].mxu1 %v20167_v48 }
0x2dd5   :  { %v24249_v34 = vpop.f32.mrb[46].mxu1 }
0x2dd6   :  { %v25928_v4 = vadd.f32 %v24249_v34, %v20081_v56  ;;  %v20606_v43 = vpop.f32.mrb[47].mxu1 }
0x2dd7   :  { %v25929_v35 = vadd.f32 %v20606_v43, %v20081_v56 }
0x2dd8   :  { %20617 = vst [vmem:[#allocation2 + $0x8] sm:$0xff] %v25928_v4 }
0x2dd9   :  { %20616 = vst [vmem:[#allocation2] sm:$0xff] %v25929_v35 }
0x2dda   :  { %26456 = shalt.err (!%p26453_p4)
}
0x2ddb   :  { %s26457_s6 = scalar_lea.hbm %s28913_s9, 256 }
0x2ddc   :  { %p26458_p5 = scmp.ne.s32.totalorder %s28913_s9, %s26457_s6  ;;  %p26461_p6 = scmp.lt.u32.totalorder %s26457_s6, %s28913_s9 }
0x2dde   :  { %p26463_p7 = pnand %p26461_p6, %p26458_p5 }
0x2de0   :  { %26466 = shalt.err (!%p26463_p7)
}
0x2de1   :  { %s26484_s19 = smov 128  }
0x2de2   :  { %20629 = dma.vmem_to_hbm [thread:$0]  %s20624_s12, 256, %s28913_s9, [#allocation3], %s26484_s19, %s26484_s19, %s26480_s17  }
0x2de3   :  { %26467 = dma.done.wait [#allocation3], 256  }
0x2de4   :  { %26468 = vsyncadd [#allocation3], 4294967040 }
0x2de5   :  { %20633 = vsyncpa [#allocation3], 1 }

</bundles_post_ra>
